<compile_context>
chip_gen: v7x
topology: tpu7x:2x2x1
jax: 0.10.0
libtpu: 0.0.40
codegen_flags: <defaults>
</compile_context>

<pallas_src>
import functools

import jax
import jax.numpy as jnp
from jax import lax
from jax.experimental import pallas as pl
from jax.experimental.pallas import tpu as pltpu

BN_EPS = 1e-5
_VMEM = pl.BlockSpec(memory_space=pltpu.MemorySpace.VMEM)

C_REAL, C_PAD = 120, 128      # channel width padded to the 128-lane vreg width
M_REAL, M_PAD = 480, 512      # mid channels of the kernel-1 conv, padded
CR_REAL, CR_PAD = 60, 64      # scSE reduced channels (r=2), padded
N_DILATED = 100               # number of dilated conv layers
LAYERS_PER_STEP = 4           # dilated layers fused per grid step (100 % 4 == 0)


# ----------------------------------------------------------------------------
# In-kernel helpers (operate on values, not refs).
# ----------------------------------------------------------------------------
def _batchnorm(acc, gamma, beta, n, relu):
    """BatchNorm1d, training-mode batch stats over the (B*L) axis, single pass."""
    inv_n = 1.0 / n
    s1 = jnp.sum(acc, axis=0, keepdims=True)
    s2 = jnp.sum(acc * acc, axis=0, keepdims=True)
    mean = s1 * inv_n
    var = jnp.maximum(s2 * inv_n - mean * mean, 0.0)
    y = (acc - mean) * lax.rsqrt(var + BN_EPS) * gamma + beta
    if relu:
        y = jnp.maximum(y, 0.0)
    return y


def _scse(x, w1, b1, w2, b2, ws, bs):
    """scSE: channel-SE gate + spatial-SE gate, summed.  x: (B, L, C) float32."""
    B, L, C = x.shape
    # cSE: global average pool over L -> FC -> ReLU -> FC -> sigmoid channel gate.
    z = jnp.mean(x, axis=1)                                              # (B, C)
    h = jnp.maximum(jnp.dot(z, w1, preferred_element_type=jnp.float32) + b1, 0.0)
    sc = jax.nn.sigmoid(jnp.dot(h, w2, preferred_element_type=jnp.float32) + b2)
    cse = x * sc[:, None, :]
    # sSE: 1x1 conv C->1 as a VPU/XLU lane reduction (avoid a 1-lane MXU matmul).
    ss = jax.nn.sigmoid(jnp.sum(x * ws.reshape(1, 1, C), axis=-1, keepdims=True)
                        + bs.reshape(1, 1, 1))                           # (B, L, 1)
    sse = x * ss
    return cse + sse


# ----------------------------------------------------------------------------
# Kernel 1: head = conv(k=3, pad=1) + BN + ReLU, then scSE.  Output bf16.
# ----------------------------------------------------------------------------
def _head_kernel(x_ref, w_ref, bn_ref, w1_ref, b1_ref, w2_ref, b2_ref, ws_ref, bs_ref,
                 o_ref, xpad_ref, *, K, pad, pad_a):
    B, L, C = x_ref.shape
    zero_band = jnp.zeros((B, pad_a, C), xpad_ref.dtype)
    xpad_ref[:, :pad_a, :] = zero_band                       # halo bands only
    xpad_ref[:, L + pad_a:L + 2 * pad_a, :] = zero_band
    xpad_ref[:, pad_a:pad_a + L, :] = x_ref[...].astype(xpad_ref.dtype)
    off = pad_a - pad
    taps = [xpad_ref[:, off + k: off + k + L, :].reshape(B * L, C) for k in range(K)]
    xi = jnp.concatenate(taps, axis=-1)                      # (B*L, K*C) bf16
    acc = jnp.dot(xi, w_ref[...].reshape(K * C, C),
                  preferred_element_type=jnp.float32)
    bn = bn_ref[...]
    y = _batchnorm(acc, bn[0:1], bn[1:2], B * L, relu=True).reshape(B, L, C)
    o_ref[...] = _scse(y, w1_ref[...], b1_ref[...], w2_ref[...], b2_ref[...],
                       ws_ref[...], bs_ref[...]).astype(o_ref.dtype)


def head_block(x, p):
    B, L, C = x.shape
    pad, pad_a = 1, 16
    kernel = functools.partial(_head_kernel, K=3, pad=pad, pad_a=pad_a)
    return pl.pallas_call(
        kernel,
        out_shape=jax.ShapeDtypeStruct((B, L, C), jnp.bfloat16),
        in_specs=[_VMEM] * 9,
        out_specs=_VMEM,
        scratch_shapes=[pltpu.VMEM((B, L + 2 * pad_a, C), jnp.bfloat16)],
    )(x, p["c0_w"], p["c0_bn"], p["se1_w1"], p["se1_b1"], p["se1_w2"],
      p["se1_b2"], p["se1_ws"], p["se1_bs"])


# ----------------------------------------------------------------------------
# Kernel 2: fused 100-layer dilated conv(k=7, pad=15, dil=5) + BN + ReLU stack.
# grid=(25,), 4 layers per step; activation carried in a bf16 VMEM scratch that is
# seeded once by DMA from HBM; weights streamed per step; output written last step.
# ----------------------------------------------------------------------------
def _stack_kernel(x0_ref, w_ref, bn_ref, o_ref, xpad_ref, sem, *,
                  K, dil, pad, pad_a, lps):
    B, L, C = x0_ref.shape
    i = pl.program_id(0)

    @pl.when(i == 0)
    def _():
        zero_band = jnp.zeros((B, pad_a, C), xpad_ref.dtype)
        xpad_ref[:, :pad_a, :] = zero_band                   # zero halo bands once
        xpad_ref[:, L + pad_a:L + 2 * pad_a, :] = zero_band
        cp = pltpu.make_async_copy(                          # seed carry from HBM
            x0_ref, xpad_ref.at[:, pad_a:pad_a + L, :], sem)
        cp.start()
        cp.wait()

    off = pad_a - pad
    for j in range(lps):                                     # unrolled: lps layers/step
        # im2col: 7 shifted bf16 views -> one wide-K (K*C = 896) MXU matmul.
        taps = [xpad_ref[:, off + k * dil: off + k * dil + L, :].reshape(B * L, C)
                for k in range(K)]
        xi = jnp.concatenate(taps, axis=-1)                  # (B*L, K*C) bf16
        acc = jnp.dot(xi, w_ref[j].reshape(K * C, C),
                      preferred_element_type=jnp.float32)
        bn = bn_ref[j]
        y = _batchnorm(acc, bn[0:1], bn[1:2], B * L, relu=True)
        xpad_ref[:, pad_a:pad_a + L, :] = y.astype(xpad_ref.dtype).reshape(B, L, C)

    @pl.when(i == pl.num_programs(0) - 1)
    def _():
        o_ref[...] = xpad_ref[:, pad_a:pad_a + L, :]         # single writeback


def dilated_stack(x, w, bn, *, layers_per_step=LAYERS_PER_STEP):
    B, L, C = x.shape
    n, K = w.shape[0], w.shape[1]
    assert n % layers_per_step == 0
    pad, dil, pad_a = 15, 5, 16
    kernel = functools.partial(_stack_kernel, K=K, dil=dil, pad=pad, pad_a=pad_a,
                               lps=layers_per_step)
    return pl.pallas_call(
        kernel,
        grid=(n // layers_per_step,),
        out_shape=jax.ShapeDtypeStruct((B, L, C), jnp.bfloat16),
        in_specs=[
            pl.BlockSpec(memory_space=pl.ANY),                     # x0 stays in HBM
            pl.BlockSpec((layers_per_step, K, C, C),
                         lambda i: (i, 0, 0, 0)),                  # streamed weights
            pl.BlockSpec((layers_per_step, 2, C),
                         lambda i: (i, 0, 0)),                     # streamed gamma/beta
        ],
        out_specs=pl.BlockSpec((B, L, C), lambda i: (0, 0, 0)),
        scratch_shapes=[pltpu.VMEM((B, L + 2 * pad_a, C), jnp.bfloat16),
                        pltpu.SemaphoreType.DMA],
        compiler_params=pltpu.CompilerParams(
            dimension_semantics=("arbitrary",),
            vmem_limit_bytes=48 * 1024 * 1024),
    )(x, w, bn)


# ----------------------------------------------------------------------------
# Kernel 3: tail = scSE, conv(k=1) 120->480 + BN + ReLU, conv(k=9, pad=4) 480->1 + BN.
# Final 480->1 conv is a per-tap weighted lane reduction; output is lane-dense (B, L).
# ----------------------------------------------------------------------------
def _tail_kernel(x_ref, w1_ref, b1_ref, w2_ref, b2_ref, ws_ref, bs_ref,
                 wc1_ref, bn1_ref, wc2_ref, bn2_ref, o_ref, ypad_ref,
                 *, K2, pad, pad_a):
    B, L, C = x_ref.shape
    x = _scse(x_ref[...].astype(jnp.float32), w1_ref[...], b1_ref[...],
              w2_ref[...], b2_ref[...], ws_ref[...], bs_ref[...])
    # c1: 1x1 conv C -> M, BN, ReLU.
    acc1 = jnp.dot(x.reshape(B * L, C).astype(jnp.bfloat16), wc1_ref[...],
                   preferred_element_type=jnp.float32)
    M = acc1.shape[-1]
    bn1 = bn1_ref[...]
    y1 = _batchnorm(acc1, bn1[0:1], bn1[1:2], B * L, relu=True)
    # c2: k=9, pad=4 conv M -> 1 as a VPU lane reduction (no lane-padded MXU matmul).
    zero_band = jnp.zeros((B, pad_a, M), ypad_ref.dtype)
    ypad_ref[:, :pad_a, :] = zero_band
    ypad_ref[:, L + pad_a:L + 2 * pad_a, :] = zero_band
    ypad_ref[:, pad_a:pad_a + L, :] = y1.reshape(B, L, M).astype(ypad_ref.dtype)
    off = pad_a - pad
    wc2 = wc2_ref[...]                                       # (K2, M) f32
    acc2 = jnp.zeros((B, L), jnp.float32)
    for k in range(K2):
        tap = ypad_ref[:, off + k: off + k + L, :].astype(jnp.float32)   # (B, L, M)
        acc2 = acc2 + jnp.sum(tap * wc2[k].reshape(1, 1, M), axis=-1)
    # BN (single channel, no ReLU): batch stats over all B*L positions.
    n = B * L
    mean = jnp.sum(acc2) / n
    var = jnp.maximum(jnp.sum(acc2 * acc2) / n - mean * mean, 0.0)
    bn2 = bn2_ref[...]                                       # (2, 1): gamma, beta
    o_ref[...] = ((acc2 - mean) * lax.rsqrt(var + BN_EPS) * bn2[0:1, 0:1]
                  + bn2[1:2, 0:1])


def tail_block(x, p):
    B, L, C = x.shape
    pad, pad_a = 4, 16
    kernel = functools.partial(_tail_kernel, K2=9, pad=pad, pad_a=pad_a)
    return pl.pallas_call(
        kernel,
        out_shape=jax.ShapeDtypeStruct((B, L), jnp.float32),
        in_specs=[_VMEM] * 11,
        out_specs=_VMEM,
        scratch_shapes=[pltpu.VMEM((B, L + 2 * pad_a, M_PAD), jnp.bfloat16)],
    )(x, p["se2_w1"], p["se2_b1"], p["se2_w2"], p["se2_b2"], p["se2_ws"], p["se2_bs"],
      p["c1_w"], p["c1_bn"], p["c2_w"], p["c2_bn"])


# ----------------------------------------------------------------------------
# Parameter init (deterministic, synthetic).  Real channels carry random values;
# padded channels are zero-weighted so the padded model == the 120-ch model.
# ----------------------------------------------------------------------------
def init_params(key):
    keys = iter(jax.random.split(key, 32))

    def nrm(shape, scale):
        return scale * jax.random.normal(next(keys), shape, jnp.float32)

    def pad_to(a, shape):
        return jnp.pad(a, [(0, t - s) for s, t in zip(a.shape, shape)])

    def conv_w(k, cin, cout, cin_p, cout_p, stack=None):
        # TODO(synk): conv bias init unknown (commonly bias=False before BN); the
        # pre-BN bias is a mathematical no-op, so it is dropped entirely.
        shp = (k, cin, cout) if stack is None else (stack, k, cin, cout)
        tgt = (k, cin_p, cout_p) if stack is None else (stack, k, cin_p, cout_p)
        return pad_to(nrm(shp, 0.04), tgt).astype(jnp.bfloat16)

    def bn_p(c, stack=None):
        shape = (2, c) if stack is None else (stack, 2, c)   # row0=gamma, row1=beta
        return jnp.zeros(shape, jnp.float32).at[..., 0, :].set(1.0)

    def scse_p():
        # TODO(synk): model.scSE reduction ratio unknown; assuming r=2 (120 -> 60).
        return dict(w1=pad_to(nrm((C_REAL, CR_REAL), 0.1), (C_PAD, CR_PAD)),
                    b1=jnp.zeros((1, CR_PAD), jnp.float32),
                    w2=pad_to(nrm((CR_REAL, C_REAL), 0.1), (CR_PAD, C_PAD)),
                    b2=jnp.zeros((1, C_PAD), jnp.float32),
                    ws=pad_to(nrm((1, C_REAL), 0.1), (1, C_PAD)),
                    bs=jnp.zeros((1, 1), jnp.float32))

    params = dict(
        emb=pad_to(nrm((6, C_REAL), 1.0), (6, C_PAD)),
        c0_w=conv_w(3, C_REAL, C_REAL, C_PAD, C_PAD),                   # k=3, pad=1
        c0_bn=bn_p(C_PAD),
        cd_w=conv_w(7, C_REAL, C_REAL, C_PAD, C_PAD, stack=N_DILATED),  # 100x k=7,d=5
        cd_bn=bn_p(C_PAD, stack=N_DILATED),                             # (100, 2, 128)
        c1_w=pad_to(nrm((C_REAL, M_REAL), 0.04), (C_PAD, M_PAD)).astype(jnp.bfloat16),
        c1_bn=bn_p(M_PAD),
        c2_w=pad_to(nrm((9, M_REAL), 0.04), (9, M_PAD)),                # f32, VPU use
        c2_bn=bn_p(1),                                                  # (2, 1)
    )
    se1, se2 = scse_p(), scse_p()
    params.update({f"se1_{k}": v for k, v in se1.items()})
    params.update({f"se2_{k}": v for k, v in se2.items()})
    return params


# ----------------------------------------------------------------------------
# Forward pass.
# ----------------------------------------------------------------------------
@jax.jit
def dcnn_forward(params, input_ids):
    # Embedding lookup (data-dependent gather) kept in plain-JAX glue.
    x = jnp.take(params["emb"], input_ids, axis=0)            # (B, L, 128) f32
    x = head_block(x, params)                                 # conv/BN/ReLU + scSE (bf16)
    x = dilated_stack(x, params["cd_w"], params["cd_bn"])     # 100 fused dilated layers
    return tail_block(x, params)                              # scSE + c1 + c2 -> (B, L)


if __name__ == "__main__":
    key = jax.random.PRNGKey(0)
    pkey, dkey = jax.random.split(key)
    params = init_params(pkey)

    B, L = 2, 16
    input_ids = jax.random.randint(dkey, (B, L), 0, 6, dtype=jnp.int32)

    out = dcnn_forward(params, input_ids)
    out = jax.block_until_ready(out)

    assert out.shape == (B, L), out.shape
    assert bool(jnp.all(jnp.isfinite(out)))
    print("KERNEL_OK")
</pallas_src>

<mosaic_0001>
module attributes {stable_mosaic.version = 11 : i64} {
  func.func @_tail_kernel(%arg0: memref<2x16x128xbf16, #tpu.memory_space<vmem>>, %arg1: memref<128x64xf32, #tpu.memory_space<vmem>>, %arg2: memref<1x64xf32, #tpu.memory_space<vmem>>, %arg3: memref<64x128xf32, #tpu.memory_space<vmem>>, %arg4: memref<1x128xf32, #tpu.memory_space<vmem>>, %arg5: memref<1x128xf32, #tpu.memory_space<vmem>>, %arg6: memref<1x1xf32, #tpu.memory_space<vmem>>, %arg7: memref<128x512xbf16, #tpu.memory_space<vmem>>, %arg8: memref<2x512xf32, #tpu.memory_space<vmem>>, %arg9: memref<9x512xf32, #tpu.memory_space<vmem>>, %arg10: memref<2x1xf32, #tpu.memory_space<vmem>>, %arg11: memref<2x16xf32, #tpu.memory_space<vmem>>, %arg12: memref<2x48x512xbf16, #tpu.memory_space<vmem>>) attributes {dimension_semantics = [], scalar_prefetch = 0 : i64, scratch_operands = 1 : i64, tpu.core_type = #tpu.core_type<tc>} {
    %c0 = arith.constant 0 : index
    %c0_0 = arith.constant 0 : index
    %c0_1 = arith.constant 0 : index
    %0 = vector.load %arg0[%c0, %c0_0, %c0_1] : memref<2x16x128xbf16, #tpu.memory_space<vmem>>, vector<2x16x128xbf16>
    %1 = arith.extf %0 : vector<2x16x128xbf16> to vector<2x16x128xf32>
    %c0_2 = arith.constant 0 : index
    %c0_3 = arith.constant 0 : index
    %2 = vector.load %arg1[%c0_2, %c0_3] : memref<128x64xf32, #tpu.memory_space<vmem>>, vector<128x64xf32>
    %c0_4 = arith.constant 0 : index
    %c0_5 = arith.constant 0 : index
    %3 = vector.load %arg2[%c0_4, %c0_5] : memref<1x64xf32, #tpu.memory_space<vmem>>, vector<1x64xf32>
    %c0_6 = arith.constant 0 : index
    %c0_7 = arith.constant 0 : index
    %4 = vector.load %arg3[%c0_6, %c0_7] : memref<64x128xf32, #tpu.memory_space<vmem>>, vector<64x128xf32>
    %c0_8 = arith.constant 0 : index
    %c0_9 = arith.constant 0 : index
    %5 = vector.load %arg4[%c0_8, %c0_9] : memref<1x128xf32, #tpu.memory_space<vmem>>, vector<1x128xf32>
    %c0_10 = arith.constant 0 : index
    %c0_11 = arith.constant 0 : index
    %6 = vector.load %arg5[%c0_10, %c0_11] : memref<1x128xf32, #tpu.memory_space<vmem>>, vector<1x128xf32>
    %c0_12 = arith.constant 0 : index
    %c0_13 = arith.constant 0 : index
    %7 = vector.load %arg6[%c0_12, %c0_13] : memref<1x1xf32, #tpu.memory_space<vmem>>, vector<1x1xf32>
    %cst = arith.constant dense<0.000000e+00> : vector<2x128xf32>
    %8 = vector.multi_reduction <add>, %1, %cst [1] : vector<2x16x128xf32> to vector<2x128xf32>
    %cst_14 = arith.constant 1.600000e+01 : f32
    %9 = vector.broadcast %cst_14 : f32 to vector<2x128xf32>
    %10 = arith.divf %8, %9 : vector<2x128xf32>
    %cst_15 = arith.constant dense<0.000000e+00> : vector<2x64xf32>
    %11 = tpu.matmul %10, %2, %cst_15 {dimension_numbers = #tpu.dot_dimension_numbers<[1], [0], [0], [1], [0, 0, 1, 1], [], []>} : vector<2x128xf32>, vector<128x64xf32>, vector<2x64xf32> -> vector<2x64xf32>
    %12 = vector.broadcast %3 : vector<1x64xf32> to vector<2x64xf32>
    %13 = arith.addf %11, %12 : vector<2x64xf32>
    %cst_16 = arith.constant 0.000000e+00 : f32
    %14 = vector.broadcast %cst_16 : f32 to vector<2x64xf32>
    %15 = arith.maximumf %13, %14 : vector<2x64xf32>
    %cst_17 = arith.constant dense<0.000000e+00> : vector<2x128xf32>
    %16 = tpu.matmul %15, %4, %cst_17 {dimension_numbers = #tpu.dot_dimension_numbers<[1], [0], [0], [1], [0, 0, 1, 1], [], []>} : vector<2x64xf32>, vector<64x128xf32>, vector<2x128xf32> -> vector<2x128xf32>
    %17 = vector.broadcast %5 : vector<1x128xf32> to vector<2x128xf32>
    %18 = arith.addf %16, %17 : vector<2x128xf32>
    %19 = arith.negf %18 : vector<2x128xf32>
    %20 = math.exp %19 : vector<2x128xf32>
    %cst_18 = arith.constant 1.000000e+00 : f32
    %21 = vector.broadcast %cst_18 : f32 to vector<2x128xf32>
    %22 = arith.addf %21, %20 : vector<2x128xf32>
    %23 = arith.divf %21, %22 : vector<2x128xf32>
    %24 = vector.shape_cast %23 : vector<2x128xf32> to vector<2x1x128xf32>
    %25 = vector.broadcast %24 : vector<2x1x128xf32> to vector<2x16x128xf32>
    %26 = arith.mulf %1, %25 : vector<2x16x128xf32>
    %27 = vector.shape_cast %6 : vector<1x128xf32> to vector<1x1x128xf32>
    %28 = vector.broadcast %27 : vector<1x1x128xf32> to vector<2x16x128xf32>
    %29 = arith.mulf %1, %28 : vector<2x16x128xf32>
    %cst_19 = arith.constant dense<0.000000e+00> : vector<2x16xf32>
    %30 = vector.multi_reduction <add>, %29, %cst_19 [2] : vector<2x16x128xf32> to vector<2x16xf32>
    %31 = vector.shape_cast %30 : vector<2x16xf32> to vector<2x16x1xf32>
    %32 = vector.shape_cast %7 : vector<1x1xf32> to vector<1x1x1xf32>
    %33 = vector.broadcast %32 : vector<1x1x1xf32> to vector<2x16x1xf32>
    %34 = arith.addf %31, %33 : vector<2x16x1xf32>
    %35 = arith.negf %34 : vector<2x16x1xf32>
    %36 = math.exp %35 : vector<2x16x1xf32>
    %cst_20 = arith.constant 1.000000e+00 : f32
    %37 = vector.broadcast %cst_20 : f32 to vector<2x16x1xf32>
    %38 = arith.addf %37, %36 : vector<2x16x1xf32>
    %39 = arith.divf %37, %38 : vector<2x16x1xf32>
    %40 = vector.broadcast %39 : vector<2x16x1xf32> to vector<2x16x128xf32>
    %41 = arith.mulf %1, %40 : vector<2x16x128xf32>
    %42 = arith.addf %26, %41 : vector<2x16x128xf32>
    %43 = vector.shape_cast %42 : vector<2x16x128xf32> to vector<32x128xf32>
    %44 = arith.truncf %43 : vector<32x128xf32> to vector<32x128xbf16>
    %c0_21 = arith.constant 0 : index
    %c0_22 = arith.constant 0 : index
    %45 = vector.load %arg7[%c0_21, %c0_22] : memref<128x512xbf16, #tpu.memory_space<vmem>>, vector<128x512xbf16>
    %cst_23 = arith.constant dense<0.000000e+00> : vector<32x512xf32>
    %46 = tpu.matmul %44, %45, %cst_23 {dimension_numbers = #tpu.dot_dimension_numbers<[1], [0], [0], [1], [0, 0, 1, 1], [], []>} : vector<32x128xbf16>, vector<128x512xbf16>, vector<32x512xf32> -> vector<32x512xf32>
    %c0_24 = arith.constant 0 : index
    %c0_25 = arith.constant 0 : index
    %47 = vector.load %arg8[%c0_24, %c0_25] : memref<2x512xf32, #tpu.memory_space<vmem>>, vector<2x512xf32>
    %48 = vector.extract_strided_slice %47 {offsets = [0, 0], sizes = [1, 512], strides = [1, 1]} : vector<2x512xf32> to vector<1x512xf32>
    %49 = vector.extract_strided_slice %47 {offsets = [1, 0], sizes = [1, 512], strides = [1, 1]} : vector<2x512xf32> to vector<1x512xf32>
    %cst_26 = arith.constant dense<0.000000e+00> : vector<512xf32>
    %50 = vector.multi_reduction <add>, %46, %cst_26 [0] : vector<32x512xf32> to vector<512xf32>
    %51 = vector.shape_cast %50 : vector<512xf32> to vector<1x512xf32>
    %52 = arith.mulf %46, %46 : vector<32x512xf32>
    %cst_27 = arith.constant dense<0.000000e+00> : vector<512xf32>
    %53 = vector.multi_reduction <add>, %52, %cst_27 [0] : vector<32x512xf32> to vector<512xf32>
    %54 = vector.shape_cast %53 : vector<512xf32> to vector<1x512xf32>
    %cst_28 = arith.constant 3.125000e-02 : f32
    %55 = vector.broadcast %cst_28 : f32 to vector<1x512xf32>
    %56 = arith.mulf %51, %55 : vector<1x512xf32>
    %cst_29 = arith.constant 3.125000e-02 : f32
    %57 = vector.broadcast %cst_29 : f32 to vector<1x512xf32>
    %58 = arith.mulf %54, %57 : vector<1x512xf32>
    %59 = arith.mulf %56, %56 : vector<1x512xf32>
    %60 = arith.subf %58, %59 : vector<1x512xf32>
    %cst_30 = arith.constant 0.000000e+00 : f32
    %61 = vector.broadcast %cst_30 : f32 to vector<1x512xf32>
    %62 = arith.maximumf %60, %61 : vector<1x512xf32>
    %63 = vector.broadcast %56 : vector<1x512xf32> to vector<32x512xf32>
    %64 = arith.subf %46, %63 : vector<32x512xf32>
    %cst_31 = arith.constant 9.99999974E-6 : f32
    %65 = vector.broadcast %cst_31 : f32 to vector<1x512xf32>
    %66 = arith.addf %62, %65 : vector<1x512xf32>
    %67 = math.rsqrt %66 : vector<1x512xf32>
    %68 = vector.broadcast %67 : vector<1x512xf32> to vector<32x512xf32>
    %69 = arith.mulf %64, %68 : vector<32x512xf32>
    %70 = vector.broadcast %48 : vector<1x512xf32> to vector<32x512xf32>
    %71 = arith.mulf %69, %70 : vector<32x512xf32>
    %72 = vector.broadcast %49 : vector<1x512xf32> to vector<32x512xf32>
    %73 = arith.addf %71, %72 : vector<32x512xf32>
    %cst_32 = arith.constant 0.000000e+00 : f32
    %74 = vector.broadcast %cst_32 : f32 to vector<32x512xf32>
    %75 = arith.maximumf %73, %74 : vector<32x512xf32>
    %cst_33 = arith.constant 0.000000e+00 : bf16
    %76 = vector.broadcast %cst_33 : bf16 to vector<2x16x512xbf16>
    %c0_34 = arith.constant 0 : index
    %c0_35 = arith.constant 0 : index
    %c0_36 = arith.constant 0 : index
    %77 = vector.load %arg12[%c0_34, %c0_35, %c0_36] : memref<2x48x512xbf16, #tpu.memory_space<vmem>>, vector<2x16x512xbf16>
    tpu.vector_store %arg12[%c0_34, %c0_35, %c0_36], %76 {strides = array<i32>} : memref<2x48x512xbf16, #tpu.memory_space<vmem>>, vector<2x16x512xbf16>,
    %c0_37 = arith.constant 0 : index
    %c32 = arith.constant 32 : index
    %c0_38 = arith.constant 0 : index
    %78 = vector.load %arg12[%c0_37, %c32, %c0_38] : memref<2x48x512xbf16, #tpu.memory_space<vmem>>, vector<2x16x512xbf16>
    tpu.vector_store %arg12[%c0_37, %c32, %c0_38], %76 {strides = array<i32>} : memref<2x48x512xbf16, #tpu.memory_space<vmem>>, vector<2x16x512xbf16>,
    %79 = vector.shape_cast %75 : vector<32x512xf32> to vector<2x16x512xf32>
    %80 = arith.truncf %79 : vector<2x16x512xf32> to vector<2x16x512xbf16>
    %c0_39 = arith.constant 0 : index
    %c16 = arith.constant 16 : index
    %c0_40 = arith.constant 0 : index
    %81 = vector.load %arg12[%c0_39, %c16, %c0_40] : memref<2x48x512xbf16, #tpu.memory_space<vmem>>, vector<2x16x512xbf16>
    tpu.vector_store %arg12[%c0_39, %c16, %c0_40], %80 {strides = array<i32>} : memref<2x48x512xbf16, #tpu.memory_space<vmem>>, vector<2x16x512xbf16>,
    %c0_41 = arith.constant 0 : index
    %c0_42 = arith.constant 0 : index
    %82 = vector.load %arg9[%c0_41, %c0_42] : memref<9x512xf32, #tpu.memory_space<vmem>>, vector<9x512xf32>
    %cst_43 = arith.constant 0.000000e+00 : f32
    %83 = vector.broadcast %cst_43 : f32 to vector<2x16xf32>
    %c0_44 = arith.constant 0 : index
    %c12 = arith.constant 12 : index
    %c0_45 = arith.constant 0 : index
    %84 = vector.load %arg12[%c0_44, %c12, %c0_45] : memref<2x48x512xbf16, #tpu.memory_space<vmem>>, vector<2x16x512xbf16>
    %85 = arith.extf %84 : vector<2x16x512xbf16> to vector<2x16x512xf32>
    %86 = vector.extract_strided_slice %82 {offsets = [0, 0], sizes = [1, 512], strides = [1, 1]} : vector<9x512xf32> to vector<1x512xf32>
    %87 = vector.shape_cast %86 : vector<1x512xf32> to vector<512xf32>
    %88 = vector.shape_cast %87 : vector<512xf32> to vector<1x1x512xf32>
    %89 = vector.broadcast %88 : vector<1x1x512xf32> to vector<2x16x512xf32>
    %90 = arith.mulf %85, %89 : vector<2x16x512xf32>
    %cst_46 = arith.constant dense<0.000000e+00> : vector<2x16xf32>
    %91 = vector.multi_reduction <add>, %90, %cst_46 [2] : vector<2x16x512xf32> to vector<2x16xf32>
    %92 = arith.addf %83, %91 : vector<2x16xf32>
    %c0_47 = arith.constant 0 : index
    %c13 = arith.constant 13 : index
    %c0_48 = arith.constant 0 : index
    %93 = vector.load %arg12[%c0_47, %c13, %c0_48] : memref<2x48x512xbf16, #tpu.memory_space<vmem>>, vector<2x16x512xbf16>
    %94 = arith.extf %93 : vector<2x16x512xbf16> to vector<2x16x512xf32>
    %95 = vector.extract_strided_slice %82 {offsets = [1, 0], sizes = [1, 512], strides = [1, 1]} : vector<9x512xf32> to vector<1x512xf32>
    %96 = vector.shape_cast %95 : vector<1x512xf32> to vector<512xf32>
    %97 = vector.shape_cast %96 : vector<512xf32> to vector<1x1x512xf32>
    %98 = vector.broadcast %97 : vector<1x1x512xf32> to vector<2x16x512xf32>
    %99 = arith.mulf %94, %98 : vector<2x16x512xf32>
    %cst_49 = arith.constant dense<0.000000e+00> : vector<2x16xf32>
    %100 = vector.multi_reduction <add>, %99, %cst_49 [2] : vector<2x16x512xf32> to vector<2x16xf32>
    %101 = arith.addf %92, %100 : vector<2x16xf32>
    %c0_50 = arith.constant 0 : index
    %c14 = arith.constant 14 : index
    %c0_51 = arith.constant 0 : index
    %102 = vector.load %arg12[%c0_50, %c14, %c0_51] : memref<2x48x512xbf16, #tpu.memory_space<vmem>>, vector<2x16x512xbf16>
    %103 = arith.extf %102 : vector<2x16x512xbf16> to vector<2x16x512xf32>
    %104 = vector.extract_strided_slice %82 {offsets = [2, 0], sizes = [1, 512], strides = [1, 1]} : vector<9x512xf32> to vector<1x512xf32>
    %105 = vector.shape_cast %104 : vector<1x512xf32> to vector<512xf32>
    %106 = vector.shape_cast %105 : vector<512xf32> to vector<1x1x512xf32>
    %107 = vector.broadcast %106 : vector<1x1x512xf32> to vector<2x16x512xf32>
    %108 = arith.mulf %103, %107 : vector<2x16x512xf32>
    %cst_52 = arith.constant dense<0.000000e+00> : vector<2x16xf32>
    %109 = vector.multi_reduction <add>, %108, %cst_52 [2] : vector<2x16x512xf32> to vector<2x16xf32>
    %110 = arith.addf %101, %109 : vector<2x16xf32>
    %c0_53 = arith.constant 0 : index
    %c15 = arith.constant 15 : index
    %c0_54 = arith.constant 0 : index
    %111 = vector.load %arg12[%c0_53, %c15, %c0_54] : memref<2x48x512xbf16, #tpu.memory_space<vmem>>, vector<2x16x512xbf16>
    %112 = arith.extf %111 : vector<2x16x512xbf16> to vector<2x16x512xf32>
    %113 = vector.extract_strided_slice %82 {offsets = [3, 0], sizes = [1, 512], strides = [1, 1]} : vector<9x512xf32> to vector<1x512xf32>
    %114 = vector.shape_cast %113 : vector<1x512xf32> to vector<512xf32>
    %115 = vector.shape_cast %114 : vector<512xf32> to vector<1x1x512xf32>
    %116 = vector.broadcast %115 : vector<1x1x512xf32> to vector<2x16x512xf32>
    %117 = arith.mulf %112, %116 : vector<2x16x512xf32>
    %cst_55 = arith.constant dense<0.000000e+00> : vector<2x16xf32>
    %118 = vector.multi_reduction <add>, %117, %cst_55 [2] : vector<2x16x512xf32> to vector<2x16xf32>
    %119 = arith.addf %110, %118 : vector<2x16xf32>
    %c0_56 = arith.constant 0 : index
    %c16_57 = arith.constant 16 : index
    %c0_58 = arith.constant 0 : index
    %120 = vector.load %arg12[%c0_56, %c16_57, %c0_58] : memref<2x48x512xbf16, #tpu.memory_space<vmem>>, vector<2x16x512xbf16>
    %121 = arith.extf %120 : vector<2x16x512xbf16> to vector<2x16x512xf32>
    %122 = vector.extract_strided_slice %82 {offsets = [4, 0], sizes = [1, 512], strides = [1, 1]} : vector<9x512xf32> to vector<1x512xf32>
    %123 = vector.shape_cast %122 : vector<1x512xf32> to vector<512xf32>
    %124 = vector.shape_cast %123 : vector<512xf32> to vector<1x1x512xf32>
    %125 = vector.broadcast %124 : vector<1x1x512xf32> to vector<2x16x512xf32>
    %126 = arith.mulf %121, %125 : vector<2x16x512xf32>
    %cst_59 = arith.constant dense<0.000000e+00> : vector<2x16xf32>
    %127 = vector.multi_reduction <add>, %126, %cst_59 [2] : vector<2x16x512xf32> to vector<2x16xf32>
    %128 = arith.addf %119, %127 : vector<2x16xf32>
    %c0_60 = arith.constant 0 : index
    %c17 = arith.constant 17 : index
    %c0_61 = arith.constant 0 : index
    %129 = vector.load %arg12[%c0_60, %c17, %c0_61] : memref<2x48x512xbf16, #tpu.memory_space<vmem>>, vector<2x16x512xbf16>
    %130 = arith.extf %129 : vector<2x16x512xbf16> to vector<2x16x512xf32>
    %131 = vector.extract_strided_slice %82 {offsets = [5, 0], sizes = [1, 512], strides = [1, 1]} : vector<9x512xf32> to vector<1x512xf32>
    %132 = vector.shape_cast %131 : vector<1x512xf32> to vector<512xf32>
    %133 = vector.shape_cast %132 : vector<512xf32> to vector<1x1x512xf32>
    %134 = vector.broadcast %133 : vector<1x1x512xf32> to vector<2x16x512xf32>
    %135 = arith.mulf %130, %134 : vector<2x16x512xf32>
    %cst_62 = arith.constant dense<0.000000e+00> : vector<2x16xf32>
    %136 = vector.multi_reduction <add>, %135, %cst_62 [2] : vector<2x16x512xf32> to vector<2x16xf32>
    %137 = arith.addf %128, %136 : vector<2x16xf32>
    %c0_63 = arith.constant 0 : index
    %c18 = arith.constant 18 : index
    %c0_64 = arith.constant 0 : index
    %138 = vector.load %arg12[%c0_63, %c18, %c0_64] : memref<2x48x512xbf16, #tpu.memory_space<vmem>>, vector<2x16x512xbf16>
    %139 = arith.extf %138 : vector<2x16x512xbf16> to vector<2x16x512xf32>
    %140 = vector.extract_strided_slice %82 {offsets = [6, 0], sizes = [1, 512], strides = [1, 1]} : vector<9x512xf32> to vector<1x512xf32>
    %141 = vector.shape_cast %140 : vector<1x512xf32> to vector<512xf32>
    %142 = vector.shape_cast %141 : vector<512xf32> to vector<1x1x512xf32>
    %143 = vector.broadcast %142 : vector<1x1x512xf32> to vector<2x16x512xf32>
    %144 = arith.mulf %139, %143 : vector<2x16x512xf32>
    %cst_65 = arith.constant dense<0.000000e+00> : vector<2x16xf32>
    %145 = vector.multi_reduction <add>, %144, %cst_65 [2] : vector<2x16x512xf32> to vector<2x16xf32>
    %146 = arith.addf %137, %145 : vector<2x16xf32>
    %c0_66 = arith.constant 0 : index
    %c19 = arith.constant 19 : index
    %c0_67 = arith.constant 0 : index
    %147 = vector.load %arg12[%c0_66, %c19, %c0_67] : memref<2x48x512xbf16, #tpu.memory_space<vmem>>, vector<2x16x512xbf16>
    %148 = arith.extf %147 : vector<2x16x512xbf16> to vector<2x16x512xf32>
    %149 = vector.extract_strided_slice %82 {offsets = [7, 0], sizes = [1, 512], strides = [1, 1]} : vector<9x512xf32> to vector<1x512xf32>
    %150 = vector.shape_cast %149 : vector<1x512xf32> to vector<512xf32>
    %151 = vector.shape_cast %150 : vector<512xf32> to vector<1x1x512xf32>
    %152 = vector.broadcast %151 : vector<1x1x512xf32> to vector<2x16x512xf32>
    %153 = arith.mulf %148, %152 : vector<2x16x512xf32>
    %cst_68 = arith.constant dense<0.000000e+00> : vector<2x16xf32>
    %154 = vector.multi_reduction <add>, %153, %cst_68 [2] : vector<2x16x512xf32> to vector<2x16xf32>
    %155 = arith.addf %146, %154 : vector<2x16xf32>
    %c0_69 = arith.constant 0 : index
    %c20 = arith.constant 20 : index
    %c0_70 = arith.constant 0 : index
    %156 = vector.load %arg12[%c0_69, %c20, %c0_70] : memref<2x48x512xbf16, #tpu.memory_space<vmem>>, vector<2x16x512xbf16>
    %157 = arith.extf %156 : vector<2x16x512xbf16> to vector<2x16x512xf32>
    %158 = vector.extract_strided_slice %82 {offsets = [8, 0], sizes = [1, 512], strides = [1, 1]} : vector<9x512xf32> to vector<1x512xf32>
    %159 = vector.shape_cast %158 : vector<1x512xf32> to vector<512xf32>
    %160 = vector.shape_cast %159 : vector<512xf32> to vector<1x1x512xf32>
    %161 = vector.broadcast %160 : vector<1x1x512xf32> to vector<2x16x512xf32>
    %162 = arith.mulf %157, %161 : vector<2x16x512xf32>
    %cst_71 = arith.constant dense<0.000000e+00> : vector<2x16xf32>
    %163 = vector.multi_reduction <add>, %162, %cst_71 [2] : vector<2x16x512xf32> to vector<2x16xf32>
    %164 = arith.addf %155, %163 : vector<2x16xf32>
    %165 = vector.shape_cast %164 : vector<2x16xf32> to vector<1x2x16xf32>
    %cst_72 = arith.constant dense<0.000000e+00> : vector<1xf32>
    %166 = vector.multi_reduction <add>, %165, %cst_72 [1, 2] : vector<1x2x16xf32> to vector<1xf32>
    %167 = vector.shape_cast %166 : vector<1xf32> to vector<1x1x1xf32>
    %168 = vector.extract %167[0, 0, 0] : f32 from vector<1x1x1xf32>
    %cst_73 = arith.constant 3.200000e+01 : f32
    %169 = arith.divf %168, %cst_73 : f32
    %170 = arith.mulf %164, %164 : vector<2x16xf32>
    %171 = vector.shape_cast %170 : vector<2x16xf32> to vector<1x2x16xf32>
    %cst_74 = arith.constant dense<0.000000e+00> : vector<1xf32>
    %172 = vector.multi_reduction <add>, %171, %cst_74 [1, 2] : vector<1x2x16xf32> to vector<1xf32>
    %173 = vector.shape_cast %172 : vector<1xf32> to vector<1x1x1xf32>
    %174 = vector.extract %173[0, 0, 0] : f32 from vector<1x1x1xf32>
    %cst_75 = arith.constant 3.200000e+01 : f32
    %175 = arith.divf %174, %cst_75 : f32
    %176 = arith.mulf %169, %169 : f32
    %177 = arith.subf %175, %176 : f32
    %cst_76 = arith.constant 0.000000e+00 : f32
    %178 = arith.maximumf %177, %cst_76 : f32
    %c0_77 = arith.constant 0 : index
    %c0_78 = arith.constant 0 : index
    %179 = vector.load %arg10[%c0_77, %c0_78] : memref<2x1xf32, #tpu.memory_space<vmem>>, vector<2x1xf32>
    %180 = vector.broadcast %169 : f32 to vector<2x16xf32>
    %181 = arith.subf %164, %180 : vector<2x16xf32>
    %cst_79 = arith.constant 9.99999974E-6 : f32
    %182 = arith.addf %178, %cst_79 : f32
    %183 = math.rsqrt %182 : f32
    %184 = vector.broadcast %183 : f32 to vector<2x16xf32>
    %185 = arith.mulf %181, %184 : vector<2x16xf32>
    %186 = vector.extract_strided_slice %179 {offsets = [0, 0], sizes = [1, 1], strides = [1, 1]} : vector<2x1xf32> to vector<1x1xf32>
    %187 = vector.broadcast %186 : vector<1x1xf32> to vector<2x16xf32>
    %188 = arith.mulf %185, %187 : vector<2x16xf32>
    %189 = vector.extract_strided_slice %179 {offsets = [1, 0], sizes = [1, 1], strides = [1, 1]} : vector<2x1xf32> to vector<1x1xf32>
    %190 = vector.broadcast %189 : vector<1x1xf32> to vector<2x16xf32>
    %191 = arith.addf %188, %190 : vector<2x16xf32>
    %c0_80 = arith.constant 0 : index
    %c0_81 = arith.constant 0 : index
    %192 = vector.load %arg11[%c0_80, %c0_81] : memref<2x16xf32, #tpu.memory_space<vmem>>, vector<2x16xf32>
    tpu.vector_store %arg11[%c0_80, %c0_81], %191 {strides = array<i32>} : memref<2x16xf32, #tpu.memory_space<vmem>>, vector<2x16xf32>,
    return
  }
}

module attributes {stable_mosaic.version = 11 : i64} {
  func.func @_stack_kernel(%arg0: i32, %arg1: memref<2x16x128xbf16, #tpu.memory_space<any>>, %arg2: memref<4x7x128x128xbf16, #tpu.memory_space<vmem>>, %arg3: memref<4x2x128xf32, #tpu.memory_space<vmem>>, %arg4: memref<2x16x128xbf16, #tpu.memory_space<vmem>>, %arg5: memref<2x48x128xbf16, #tpu.memory_space<vmem>>, %arg6: memref<!tpu.dma_semaphore, #tpu.memory_space<semaphore_mem>>) attributes {dimension_semantics = [#tpu.dimension_semantics<arbitrary>], iteration_bounds = array<i64: 25>, scalar_prefetch = 0 : i64, scratch_operands = 2 : i64, tpu.core_type = #tpu.core_type<tc>, window_params = [{}, {transform_indices = @transform_1, window_bounds = array<i64: 4, 7, 128, 128>}, {transform_indices = @transform_2, window_bounds = array<i64: 4, 2, 128>}, {pipeline_mode = #tpu.pipeline_mode<synchronous>, transform_indices = @transform_3, window_bounds = array<i64: 2, 16, 128>}]} {
    %c0_i32 = arith.constant 0 : i32
    %0 = arith.cmpi eq, %arg0, %c0_i32 : i32
    %1 = arith.extui %0 : i1 to i32
    %c0_i32_0 = arith.constant 0 : i32
    %2 = arith.cmpi ne, %1, %c0_i32_0 : i32
    scf.if %2 {
      %cst_147 = arith.constant 0.000000e+00 : bf16
      %214 = vector.broadcast %cst_147 : bf16 to vector<2x16x128xbf16>
      %c0_148 = arith.constant 0 : index
      %c0_149 = arith.constant 0 : index
      %c0_150 = arith.constant 0 : index
      %215 = vector.load %arg5[%c0_148, %c0_149, %c0_150] : memref<2x48x128xbf16, #tpu.memory_space<vmem>>, vector<2x16x128xbf16>
      tpu.vector_store %arg5[%c0_148, %c0_149, %c0_150], %214 {strides = array<i32>} : memref<2x48x128xbf16, #tpu.memory_space<vmem>>, vector<2x16x128xbf16>,
      %c0_151 = arith.constant 0 : index
      %c32 = arith.constant 32 : index
      %c0_152 = arith.constant 0 : index
      %216 = vector.load %arg5[%c0_151, %c32, %c0_152] : memref<2x48x128xbf16, #tpu.memory_space<vmem>>, vector<2x16x128xbf16>
      tpu.vector_store %arg5[%c0_151, %c32, %c0_152], %214 {strides = array<i32>} : memref<2x48x128xbf16, #tpu.memory_space<vmem>>, vector<2x16x128xbf16>,
      %c0_i32_153 = arith.constant 0 : i32
      %c16_i32 = arith.constant 16 : i32
      %c0_i32_154 = arith.constant 0 : i32
      %217 = tpu.memref_slice %arg5[%c0_i32_153, %c16_i32, %c0_i32_154] : memref<2x48x128xbf16, #tpu.memory_space<vmem>> -> memref<2x16x128xbf16, #tpu.memory_space<vmem>>
      tpu.enqueue_dma source(%arg1 : memref<2x16x128xbf16, #tpu.memory_space<any>>) target(%217 : memref<2x16x128xbf16, #tpu.memory_space<vmem>>) target_semaphore(%arg6 : memref<!tpu.dma_semaphore, #tpu.memory_space<semaphore_mem>>)
      %c0_i32_155 = arith.constant 0 : i32
      %c16_i32_156 = arith.constant 16 : i32
      %c0_i32_157 = arith.constant 0 : i32
      %218 = tpu.memref_slice %arg5[%c0_i32_155, %c16_i32_156, %c0_i32_157] : memref<2x48x128xbf16, #tpu.memory_space<vmem>> -> memref<2x16x128xbf16, #tpu.memory_space<vmem>>
      tpu.wait_dma2 semaphore(%arg6 : memref<!tpu.dma_semaphore, #tpu.memory_space<semaphore_mem>>) src(%arg1 : memref<2x16x128xbf16, #tpu.memory_space<any>>) dst(%218 : memref<2x16x128xbf16, #tpu.memory_space<vmem>>)
    } else {
    }
    %c0 = arith.constant 0 : index
    %c1 = arith.constant 1 : index
    %c0_1 = arith.constant 0 : index
    %3 = vector.load %arg5[%c0, %c1, %c0_1] : memref<2x48x128xbf16, #tpu.memory_space<vmem>>, vector<2x16x128xbf16>
    %4 = vector.shape_cast %3 : vector<2x16x128xbf16> to vector<32x128xbf16>
    %c0_2 = arith.constant 0 : index
    %c6 = arith.constant 6 : index
    %c0_3 = arith.constant 0 : index
    %5 = vector.load %arg5[%c0_2, %c6, %c0_3] : memref<2x48x128xbf16, #tpu.memory_space<vmem>>, vector<2x16x128xbf16>
    %6 = vector.shape_cast %5 : vector<2x16x128xbf16> to vector<32x128xbf16>
    %c0_4 = arith.constant 0 : index
    %c11 = arith.constant 11 : index
    %c0_5 = arith.constant 0 : index
    %7 = vector.load %arg5[%c0_4, %c11, %c0_5] : memref<2x48x128xbf16, #tpu.memory_space<vmem>>, vector<2x16x128xbf16>
    %8 = vector.shape_cast %7 : vector<2x16x128xbf16> to vector<32x128xbf16>
    %c0_6 = arith.constant 0 : index
    %c16 = arith.constant 16 : index
    %c0_7 = arith.constant 0 : index
    %9 = vector.load %arg5[%c0_6, %c16, %c0_7] : memref<2x48x128xbf16, #tpu.memory_space<vmem>>, vector<2x16x128xbf16>
    %10 = vector.shape_cast %9 : vector<2x16x128xbf16> to vector<32x128xbf16>
    %c0_8 = arith.constant 0 : index
    %c21 = arith.constant 21 : index
    %c0_9 = arith.constant 0 : index
    %11 = vector.load %arg5[%c0_8, %c21, %c0_9] : memref<2x48x128xbf16, #tpu.memory_space<vmem>>, vector<2x16x128xbf16>
    %12 = vector.shape_cast %11 : vector<2x16x128xbf16> to vector<32x128xbf16>
    %c0_10 = arith.constant 0 : index
    %c26 = arith.constant 26 : index
    %c0_11 = arith.constant 0 : index
    %13 = vector.load %arg5[%c0_10, %c26, %c0_11] : memref<2x48x128xbf16, #tpu.memory_space<vmem>>, vector<2x16x128xbf16>
    %14 = vector.shape_cast %13 : vector<2x16x128xbf16> to vector<32x128xbf16>
    %c0_12 = arith.constant 0 : index
    %c31 = arith.constant 31 : index
    %c0_13 = arith.constant 0 : index
    %15 = vector.load %arg5[%c0_12, %c31, %c0_13] : memref<2x48x128xbf16, #tpu.memory_space<vmem>>, vector<2x16x128xbf16>
    %16 = vector.shape_cast %15 : vector<2x16x128xbf16> to vector<32x128xbf16>
    %17 = tpu.concatenate %4, %6, %8, %10, %12, %14, %16 in 1 : vector<32x128xbf16>, vector<32x128xbf16>, vector<32x128xbf16>, vector<32x128xbf16>, vector<32x128xbf16>, vector<32x128xbf16>, vector<32x128xbf16> -> vector<32x896xbf16>
    %c0_14 = arith.constant 0 : index
    %c0_15 = arith.constant 0 : index
    %c0_16 = arith.constant 0 : index
    %c0_17 = arith.constant 0 : index
    %18 = vector.load %arg2[%c0_14, %c0_15, %c0_16, %c0_17] : memref<4x7x128x128xbf16, #tpu.memory_space<vmem>>, vector<1x7x128x128xbf16>
    %19 = vector.shape_cast %18 : vector<1x7x128x128xbf16> to vector<7x128x128xbf16>
    %20 = vector.shape_cast %19 : vector<7x128x128xbf16> to vector<896x128xbf16>
    %cst = arith.constant dense<0.000000e+00> : vector<32x128xf32>
    %21 = tpu.matmul %17, %20, %cst {dimension_numbers = #tpu.dot_dimension_numbers<[1], [0], [0], [1], [0, 0, 1, 1], [], []>} : vector<32x896xbf16>, vector<896x128xbf16>, vector<32x128xf32> -> vector<32x128xf32>
    %c0_18 = arith.constant 0 : index
    %c0_19 = arith.constant 0 : index
    %c0_20 = arith.constant 0 : index
    %22 = vector.load %arg3[%c0_18, %c0_19, %c0_20] : memref<4x2x128xf32, #tpu.memory_space<vmem>>, vector<1x2x128xf32>
    %23 = vector.shape_cast %22 : vector<1x2x128xf32> to vector<2x128xf32>
    %24 = vector.extract_strided_slice %23 {offsets = [0, 0], sizes = [1, 128], strides = [1, 1]} : vector<2x128xf32> to vector<1x128xf32>
    %25 = vector.extract_strided_slice %23 {offsets = [1, 0], sizes = [1, 128], strides = [1, 1]} : vector<2x128xf32> to vector<1x128xf32>
    %cst_21 = arith.constant dense<0.000000e+00> : vector<128xf32>
    %26 = vector.multi_reduction <add>, %21, %cst_21 [0] : vector<32x128xf32> to vector<128xf32>
    %27 = vector.shape_cast %26 : vector<128xf32> to vector<1x128xf32>
    %28 = arith.mulf %21, %21 : vector<32x128xf32>
    %cst_22 = arith.constant dense<0.000000e+00> : vector<128xf32>
    %29 = vector.multi_reduction <add>, %28, %cst_22 [0] : vector<32x128xf32> to vector<128xf32>
    %30 = vector.shape_cast %29 : vector<128xf32> to vector<1x128xf32>
    %cst_23 = arith.constant 3.125000e-02 : f32
    %31 = vector.broadcast %cst_23 : f32 to vector<1x128xf32>
    %32 = arith.mulf %27, %31 : vector<1x128xf32>
    %cst_24 = arith.constant 3.125000e-02 : f32
    %33 = vector.broadcast %cst_24 : f32 to vector<1x128xf32>
    %34 = arith.mulf %30, %33 : vector<1x128xf32>
    %35 = arith.mulf %32, %32 : vector<1x128xf32>
    %36 = arith.subf %34, %35 : vector<1x128xf32>
    %cst_25 = arith.constant 0.000000e+00 : f32
    %37 = vector.broadcast %cst_25 : f32 to vector<1x128xf32>
    %38 = arith.maximumf %36, %37 : vector<1x128xf32>
    %39 = vector.broadcast %32 : vector<1x128xf32> to vector<32x128xf32>
    %40 = arith.subf %21, %39 : vector<32x128xf32>
    %cst_26 = arith.constant 9.99999974E-6 : f32
    %41 = vector.broadcast %cst_26 : f32 to vector<1x128xf32>
    %42 = arith.addf %38, %41 : vector<1x128xf32>
    %43 = math.rsqrt %42 : vector<1x128xf32>
    %44 = vector.broadcast %43 : vector<1x128xf32> to vector<32x128xf32>
    %45 = arith.mulf %40, %44 : vector<32x128xf32>
    %46 = vector.broadcast %24 : vector<1x128xf32> to vector<32x128xf32>
    %47 = arith.mulf %45, %46 : vector<32x128xf32>
    %48 = vector.broadcast %25 : vector<1x128xf32> to vector<32x128xf32>
    %49 = arith.addf %47, %48 : vector<32x128xf32>
    %cst_27 = arith.constant 0.000000e+00 : f32
    %50 = vector.broadcast %cst_27 : f32 to vector<32x128xf32>
    %51 = arith.maximumf %49, %50 : vector<32x128xf32>
    %52 = arith.truncf %51 : vector<32x128xf32> to vector<32x128xbf16>
    %53 = vector.shape_cast %52 : vector<32x128xbf16> to vector<2x16x128xbf16>
    %c0_28 = arith.constant 0 : index
    %c16_29 = arith.constant 16 : index
    %c0_30 = arith.constant 0 : index
    %54 = vector.load %arg5[%c0_28, %c16_29, %c0_30] : memref<2x48x128xbf16, #tpu.memory_space<vmem>>, vector<2x16x128xbf16>
    tpu.vector_store %arg5[%c0_28, %c16_29, %c0_30], %53 {strides = array<i32>} : memref<2x48x128xbf16, #tpu.memory_space<vmem>>, vector<2x16x128xbf16>,
    %c0_31 = arith.constant 0 : index
    %c1_32 = arith.constant 1 : index
    %c0_33 = arith.constant 0 : index
    %55 = vector.load %arg5[%c0_31, %c1_32, %c0_33] : memref<2x48x128xbf16, #tpu.memory_space<vmem>>, vector<2x16x128xbf16>
    %56 = vector.shape_cast %55 : vector<2x16x128xbf16> to vector<32x128xbf16>
    %c0_34 = arith.constant 0 : index
    %c6_35 = arith.constant 6 : index
    %c0_36 = arith.constant 0 : index
    %57 = vector.load %arg5[%c0_34, %c6_35, %c0_36] : memref<2x48x128xbf16, #tpu.memory_space<vmem>>, vector<2x16x128xbf16>
    %58 = vector.shape_cast %57 : vector<2x16x128xbf16> to vector<32x128xbf16>
    %c0_37 = arith.constant 0 : index
    %c11_38 = arith.constant 11 : index
    %c0_39 = arith.constant 0 : index
    %59 = vector.load %arg5[%c0_37, %c11_38, %c0_39] : memref<2x48x128xbf16, #tpu.memory_space<vmem>>, vector<2x16x128xbf16>
    %60 = vector.shape_cast %59 : vector<2x16x128xbf16> to vector<32x128xbf16>
    %c0_40 = arith.constant 0 : index
    %c16_41 = arith.constant 16 : index
    %c0_42 = arith.constant 0 : index
    %61 = vector.load %arg5[%c0_40, %c16_41, %c0_42] : memref<2x48x128xbf16, #tpu.memory_space<vmem>>, vector<2x16x128xbf16>
    %62 = vector.shape_cast %61 : vector<2x16x128xbf16> to vector<32x128xbf16>
    %c0_43 = arith.constant 0 : index
    %c21_44 = arith.constant 21 : index
    %c0_45 = arith.constant 0 : index
    %63 = vector.load %arg5[%c0_43, %c21_44, %c0_45] : memref<2x48x128xbf16, #tpu.memory_space<vmem>>, vector<2x16x128xbf16>
    %64 = vector.shape_cast %63 : vector<2x16x128xbf16> to vector<32x128xbf16>
    %c0_46 = arith.constant 0 : index
    %c26_47 = arith.constant 26 : index
    %c0_48 = arith.constant 0 : index
    %65 = vector.load %arg5[%c0_46, %c26_47, %c0_48] : memref<2x48x128xbf16, #tpu.memory_space<vmem>>, vector<2x16x128xbf16>
    %66 = vector.shape_cast %65 : vector<2x16x128xbf16> to vector<32x128xbf16>
    %c0_49 = arith.constant 0 : index
    %c31_50 = arith.constant 31 : index
    %c0_51 = arith.constant 0 : index
    %67 = vector.load %arg5[%c0_49, %c31_50, %c0_51] : memref<2x48x128xbf16, #tpu.memory_space<vmem>>, vector<2x16x128xbf16>
    %68 = vector.shape_cast %67 : vector<2x16x128xbf16> to vector<32x128xbf16>
    %69 = tpu.concatenate %56, %58, %60, %62, %64, %66, %68 in 1 : vector<32x128xbf16>, vector<32x128xbf16>, vector<32x128xbf16>, vector<32x128xbf16>, vector<32x128xbf16>, vector<32x128xbf16>, vector<32x128xbf16> -> vector<32x896xbf16>
    %c1_52 = arith.constant 1 : index
    %c0_53 = arith.constant 0 : index
    %c0_54 = arith.constant 0 : index
    %c0_55 = arith.constant 0 : index
    %70 = vector.load %arg2[%c1_52, %c0_53, %c0_54, %c0_55] : memref<4x7x128x128xbf16, #tpu.memory_space<vmem>>, vector<1x7x128x128xbf16>
    %71 = vector.shape_cast %70 : vector<1x7x128x128xbf16> to vector<7x128x128xbf16>
    %72 = vector.shape_cast %71 : vector<7x128x128xbf16> to vector<896x128xbf16>
    %cst_56 = arith.constant dense<0.000000e+00> : vector<32x128xf32>
    %73 = tpu.matmul %69, %72, %cst_56 {dimension_numbers = #tpu.dot_dimension_numbers<[1], [0], [0], [1], [0, 0, 1, 1], [], []>} : vector<32x896xbf16>, vector<896x128xbf16>, vector<32x128xf32> -> vector<32x128xf32>
    %c1_57 = arith.constant 1 : index
    %c0_58 = arith.constant 0 : index
    %c0_59 = arith.constant 0 : index
    %74 = vector.load %arg3[%c1_57, %c0_58, %c0_59] : memref<4x2x128xf32, #tpu.memory_space<vmem>>, vector<1x2x128xf32>
    %75 = vector.shape_cast %74 : vector<1x2x128xf32> to vector<2x128xf32>
    %76 = vector.extract_strided_slice %75 {offsets = [0, 0], sizes = [1, 128], strides = [1, 1]} : vector<2x128xf32> to vector<1x128xf32>
    %77 = vector.extract_strided_slice %75 {offsets = [1, 0], sizes = [1, 128], strides = [1, 1]} : vector<2x128xf32> to vector<1x128xf32>
    %cst_60 = arith.constant dense<0.000000e+00> : vector<128xf32>
    %78 = vector.multi_reduction <add>, %73, %cst_60 [0] : vector<32x128xf32> to vector<128xf32>
    %79 = vector.shape_cast %78 : vector<128xf32> to vector<1x128xf32>
    %80 = arith.mulf %73, %73 : vector<32x128xf32>
    %cst_61 = arith.constant dense<0.000000e+00> : vector<128xf32>
    %81 = vector.multi_reduction <add>, %80, %cst_61 [0] : vector<32x128xf32> to vector<128xf32>
    %82 = vector.shape_cast %81 : vector<128xf32> to vector<1x128xf32>
    %cst_62 = arith.constant 3.125000e-02 : f32
    %83 = vector.broadcast %cst_62 : f32 to vector<1x128xf32>
    %84 = arith.mulf %79, %83 : vector<1x128xf32>
    %cst_63 = arith.constant 3.125000e-02 : f32
    %85 = vector.broadcast %cst_63 : f32 to vector<1x128xf32>
    %86 = arith.mulf %82, %85 : vector<1x128xf32>
    %87 = arith.mulf %84, %84 : vector<1x128xf32>
    %88 = arith.subf %86, %87 : vector<1x128xf32>
    %cst_64 = arith.constant 0.000000e+00 : f32
    %89 = vector.broadcast %cst_64 : f32 to vector<1x128xf32>
    %90 = arith.maximumf %88, %89 : vector<1x128xf32>
    %91 = vector.broadcast %84 : vector<1x128xf32> to vector<32x128xf32>
    %92 = arith.subf %73, %91 : vector<32x128xf32>
    %cst_65 = arith.constant 9.99999974E-6 : f32
    %93 = vector.broadcast %cst_65 : f32 to vector<1x128xf32>
    %94 = arith.addf %90, %93 : vector<1x128xf32>
    %95 = math.rsqrt %94 : vector<1x128xf32>
    %96 = vector.broadcast %95 : vector<1x128xf32> to vector<32x128xf32>
    %97 = arith.mulf %92, %96 : vector<32x128xf32>
    %98 = vector.broadcast %76 : vector<1x128xf32> to vector<32x128xf32>
    %99 = arith.mulf %97, %98 : vector<32x128xf32>
    %100 = vector.broadcast %77 : vector<1x128xf32> to vector<32x128xf32>
    %101 = arith.addf %99, %100 : vector<32x128xf32>
    %cst_66 = arith.constant 0.000000e+00 : f32
    %102 = vector.broadcast %cst_66 : f32 to vector<32x128xf32>
    %103 = arith.maximumf %101, %102 : vector<32x128xf32>
    %104 = arith.truncf %103 : vector<32x128xf32> to vector<32x128xbf16>
    %105 = vector.shape_cast %104 : vector<32x128xbf16> to vector<2x16x128xbf16>
    %c0_67 = arith.constant 0 : index
    %c16_68 = arith.constant 16 : index
    %c0_69 = arith.constant 0 : index
    %106 = vector.load %arg5[%c0_67, %c16_68, %c0_69] : memref<2x48x128xbf16, #tpu.memory_space<vmem>>, vector<2x16x128xbf16>
    tpu.vector_store %arg5[%c0_67, %c16_68, %c0_69], %105 {strides = array<i32>} : memref<2x48x128xbf16, #tpu.memory_space<vmem>>, vector<2x16x128xbf16>,
    %c0_70 = arith.constant 0 : index
    %c1_71 = arith.constant 1 : index
    %c0_72 = arith.constant 0 : index
    %107 = vector.load %arg5[%c0_70, %c1_71, %c0_72] : memref<2x48x128xbf16, #tpu.memory_space<vmem>>, vector<2x16x128xbf16>
    %108 = vector.shape_cast %107 : vector<2x16x128xbf16> to vector<32x128xbf16>
    %c0_73 = arith.constant 0 : index
    %c6_74 = arith.constant 6 : index
    %c0_75 = arith.constant 0 : index
    %109 = vector.load %arg5[%c0_73, %c6_74, %c0_75] : memref<2x48x128xbf16, #tpu.memory_space<vmem>>, vector<2x16x128xbf16>
    %110 = vector.shape_cast %109 : vector<2x16x128xbf16> to vector<32x128xbf16>
    %c0_76 = arith.constant 0 : index
    %c11_77 = arith.constant 11 : index
    %c0_78 = arith.constant 0 : index
    %111 = vector.load %arg5[%c0_76, %c11_77, %c0_78] : memref<2x48x128xbf16, #tpu.memory_space<vmem>>, vector<2x16x128xbf16>
    %112 = vector.shape_cast %111 : vector<2x16x128xbf16> to vector<32x128xbf16>
    %c0_79 = arith.constant 0 : index
    %c16_80 = arith.constant 16 : index
    %c0_81 = arith.constant 0 : index
    %113 = vector.load %arg5[%c0_79, %c16_80, %c0_81] : memref<2x48x128xbf16, #tpu.memory_space<vmem>>, vector<2x16x128xbf16>
    %114 = vector.shape_cast %113 : vector<2x16x128xbf16> to vector<32x128xbf16>
    %c0_82 = arith.constant 0 : index
    %c21_83 = arith.constant 21 : index
    %c0_84 = arith.constant 0 : index
    %115 = vector.load %arg5[%c0_82, %c21_83, %c0_84] : memref<2x48x128xbf16, #tpu.memory_space<vmem>>, vector<2x16x128xbf16>
    %116 = vector.shape_cast %115 : vector<2x16x128xbf16> to vector<32x128xbf16>
    %c0_85 = arith.constant 0 : index
    %c26_86 = arith.constant 26 : index
    %c0_87 = arith.constant 0 : index
    %117 = vector.load %arg5[%c0_85, %c26_86, %c0_87] : memref<2x48x128xbf16, #tpu.memory_space<vmem>>, vector<2x16x128xbf16>
    %118 = vector.shape_cast %117 : vector<2x16x128xbf16> to vector<32x128xbf16>
    %c0_88 = arith.constant 0 : index
    %c31_89 = arith.constant 31 : index
    %c0_90 = arith.constant 0 : index
    %119 = vector.load %arg5[%c0_88, %c31_89, %c0_90] : memref<2x48x128xbf16, #tpu.memory_space<vmem>>, vector<2x16x128xbf16>
    %120 = vector.shape_cast %119 : vector<2x16x128xbf16> to vector<32x128xbf16>
    %121 = tpu.concatenate %108, %110, %112, %114, %116, %118, %120 in 1 : vector<32x128xbf16>, vector<32x128xbf16>, vector<32x128xbf16>, vector<32x128xbf16>, vector<32x128xbf16>, vector<32x128xbf16>, vector<32x128xbf16> -> vector<32x896xbf16>
    %c2 = arith.constant 2 : index
    %c0_91 = arith.constant 0 : index
    %c0_92 = arith.constant 0 : index
    %c0_93 = arith.constant 0 : index
    %122 = vector.load %arg2[%c2, %c0_91, %c0_92, %c0_93] : memref<4x7x128x128xbf16, #tpu.memory_space<vmem>>, vector<1x7x128x128xbf16>
    %123 = vector.shape_cast %122 : vector<1x7x128x128xbf16> to vector<7x128x128xbf16>
    %124 = vector.shape_cast %123 : vector<7x128x128xbf16> to vector<896x128xbf16>
    %cst_94 = arith.constant dense<0.000000e+00> : vector<32x128xf32>
    %125 = tpu.matmul %121, %124, %cst_94 {dimension_numbers = #tpu.dot_dimension_numbers<[1], [0], [0], [1], [0, 0, 1, 1], [], []>} : vector<32x896xbf16>, vector<896x128xbf16>, vector<32x128xf32> -> vector<32x128xf32>
    %c2_95 = arith.constant 2 : index
    %c0_96 = arith.constant 0 : index
    %c0_97 = arith.constant 0 : index
    %126 = vector.load %arg3[%c2_95, %c0_96, %c0_97] : memref<4x2x128xf32, #tpu.memory_space<vmem>>, vector<1x2x128xf32>
    %127 = vector.shape_cast %126 : vector<1x2x128xf32> to vector<2x128xf32>
    %128 = vector.extract_strided_slice %127 {offsets = [0, 0], sizes = [1, 128], strides = [1, 1]} : vector<2x128xf32> to vector<1x128xf32>
    %129 = vector.extract_strided_slice %127 {offsets = [1, 0], sizes = [1, 128], strides = [1, 1]} : vector<2x128xf32> to vector<1x128xf32>
    %cst_98 = arith.constant dense<0.000000e+00> : vector<128xf32>
    %130 = vector.multi_reduction <add>, %125, %cst_98 [0] : vector<32x128xf32> to vector<128xf32>
    %131 = vector.shape_cast %130 : vector<128xf32> to vector<1x128xf32>
    %132 = arith.mulf %125, %125 : vector<32x128xf32>
    %cst_99 = arith.constant dense<0.000000e+00> : vector<128xf32>
    %133 = vector.multi_reduction <add>, %132, %cst_99 [0] : vector<32x128xf32> to vector<128xf32>
    %134 = vector.shape_cast %133 : vector<128xf32> to vector<1x128xf32>
    %cst_100 = arith.constant 3.125000e-02 : f32
    %135 = vector.broadcast %cst_100 : f32 to vector<1x128xf32>
    %136 = arith.mulf %131, %135 : vector<1x128xf32>
    %cst_101 = arith.constant 3.125000e-02 : f32
    %137 = vector.broadcast %cst_101 : f32 to vector<1x128xf32>
    %138 = arith.mulf %134, %137 : vector<1x128xf32>
    %139 = arith.mulf %136, %136 : vector<1x128xf32>
    %140 = arith.subf %138, %139 : vector<1x128xf32>
    %cst_102 = arith.constant 0.000000e+00 : f32
    %141 = vector.broadcast %cst_102 : f32 to vector<1x128xf32>
    %142 = arith.maximumf %140, %141 : vector<1x128xf32>
    %143 = vector.broadcast %136 : vector<1x128xf32> to vector<32x128xf32>
    %144 = arith.subf %125, %143 : vector<32x128xf32>
    %cst_103 = arith.constant 9.99999974E-6 : f32
    %145 = vector.broadcast %cst_103 : f32 to vector<1x128xf32>
    %146 = arith.addf %142, %145 : vector<1x128xf32>
    %147 = math.rsqrt %146 : vector<1x128xf32>
    %148 = vector.broadcast %147 : vector<1x128xf32> to vector<32x128xf32>
    %149 = arith.mulf %144, %148 : vector<32x128xf32>
    %150 = vector.broadcast %128 : vector<1x128xf32> to vector<32x128xf32>
    %151 = arith.mulf %149, %150 : vector<32x128xf32>
    %152 = vector.broadcast %129 : vector<1x128xf32> to vector<32x128xf32>
    %153 = arith.addf %151, %152 : vector<32x128xf32>
    %cst_104 = arith.constant 0.000000e+00 : f32
    %154 = vector.broadcast %cst_104 : f32 to vector<32x128xf32>
    %155 = arith.maximumf %153, %154 : vector<32x128xf32>
    %156 = arith.truncf %155 : vector<32x128xf32> to vector<32x128xbf16>
    %157 = vector.shape_cast %156 : vector<32x128xbf16> to vector<2x16x128xbf16>
    %c0_105 = arith.constant 0 : index
    %c16_106 = arith.constant 16 : index
    %c0_107 = arith.constant 0 : index
    %158 = vector.load %arg5[%c0_105, %c16_106, %c0_107] : memref<2x48x128xbf16, #tpu.memory_space<vmem>>, vector<2x16x128xbf16>
    tpu.vector_store %arg5[%c0_105, %c16_106, %c0_107], %157 {strides = array<i32>} : memref<2x48x128xbf16, #tpu.memory_space<vmem>>, vector<2x16x128xbf16>,
    %c0_108 = arith.constant 0 : index
    %c1_109 = arith.constant 1 : index
    %c0_110 = arith.constant 0 : index
    %159 = vector.load %arg5[%c0_108, %c1_109, %c0_110] : memref<2x48x128xbf16, #tpu.memory_space<vmem>>, vector<2x16x128xbf16>
    %160 = vector.shape_cast %159 : vector<2x16x128xbf16> to vector<32x128xbf16>
    %c0_111 = arith.constant 0 : index
    %c6_112 = arith.constant 6 : index
    %c0_113 = arith.constant 0 : index
    %161 = vector.load %arg5[%c0_111, %c6_112, %c0_113] : memref<2x48x128xbf16, #tpu.memory_space<vmem>>, vector<2x16x128xbf16>
    %162 = vector.shape_cast %161 : vector<2x16x128xbf16> to vector<32x128xbf16>
    %c0_114 = arith.constant 0 : index
    %c11_115 = arith.constant 11 : index
    %c0_116 = arith.constant 0 : index
    %163 = vector.load %arg5[%c0_114, %c11_115, %c0_116] : memref<2x48x128xbf16, #tpu.memory_space<vmem>>, vector<2x16x128xbf16>
    %164 = vector.shape_cast %163 : vector<2x16x128xbf16> to vector<32x128xbf16>
    %c0_117 = arith.constant 0 : index
    %c16_118 = arith.constant 16 : index
    %c0_119 = arith.constant 0 : index
    %165 = vector.load %arg5[%c0_117, %c16_118, %c0_119] : memref<2x48x128xbf16, #tpu.memory_space<vmem>>, vector<2x16x128xbf16>
    %166 = vector.shape_cast %165 : vector<2x16x128xbf16> to vector<32x128xbf16>
    %c0_120 = arith.constant 0 : index
    %c21_121 = arith.constant 21 : index
    %c0_122 = arith.constant 0 : index
    %167 = vector.load %arg5[%c0_120, %c21_121, %c0_122] : memref<2x48x128xbf16, #tpu.memory_space<vmem>>, vector<2x16x128xbf16>
    %168 = vector.shape_cast %167 : vector<2x16x128xbf16> to vector<32x128xbf16>
    %c0_123 = arith.constant 0 : index
    %c26_124 = arith.constant 26 : index
    %c0_125 = arith.constant 0 : index
    %169 = vector.load %arg5[%c0_123, %c26_124, %c0_125] : memref<2x48x128xbf16, #tpu.memory_space<vmem>>, vector<2x16x128xbf16>
    %170 = vector.shape_cast %169 : vector<2x16x128xbf16> to vector<32x128xbf16>
    %c0_126 = arith.constant 0 : index
    %c31_127 = arith.constant 31 : index
    %c0_128 = arith.constant 0 : index
    %171 = vector.load %arg5[%c0_126, %c31_127, %c0_128] : memref<2x48x128xbf16, #tpu.memory_space<vmem>>, vector<2x16x128xbf16>
    %172 = vector.shape_cast %171 : vector<2x16x128xbf16> to vector<32x128xbf16>
    %173 = tpu.concatenate %160, %162, %164, %166, %168, %170, %172 in 1 : vector<32x128xbf16>, vector<32x128xbf16>, vector<32x128xbf16>, vector<32x128xbf16>, vector<32x128xbf16>, vector<32x128xbf16>, vector<32x128xbf16> -> vector<32x896xbf16>
    %c3 = arith.constant 3 : index
    %c0_129 = arith.constant 0 : index
    %c0_130 = arith.constant 0 : index
    %c0_131 = arith.constant 0 : index
    %174 = vector.load %arg2[%c3, %c0_129, %c0_130, %c0_131] : memref<4x7x128x128xbf16, #tpu.memory_space<vmem>>, vector<1x7x128x128xbf16>
    %175 = vector.shape_cast %174 : vector<1x7x128x128xbf16> to vector<7x128x128xbf16>
    %176 = vector.shape_cast %175 : vector<7x128x128xbf16> to vector<896x128xbf16>
    %cst_132 = arith.constant dense<0.000000e+00> : vector<32x128xf32>
    %177 = tpu.matmul %173, %176, %cst_132 {dimension_numbers = #tpu.dot_dimension_numbers<[1], [0], [0], [1], [0, 0, 1, 1], [], []>} : vector<32x896xbf16>, vector<896x128xbf16>, vector<32x128xf32> -> vector<32x128xf32>
    %c3_133 = arith.constant 3 : index
    %c0_134 = arith.constant 0 : index
    %c0_135 = arith.constant 0 : index
    %178 = vector.load %arg3[%c3_133, %c0_134, %c0_135] : memref<4x2x128xf32, #tpu.memory_space<vmem>>, vector<1x2x128xf32>
    %179 = vector.shape_cast %178 : vector<1x2x128xf32> to vector<2x128xf32>
    %180 = vector.extract_strided_slice %179 {offsets = [0, 0], sizes = [1, 128], strides = [1, 1]} : vector<2x128xf32> to vector<1x128xf32>
    %181 = vector.extract_strided_slice %179 {offsets = [1, 0], sizes = [1, 128], strides = [1, 1]} : vector<2x128xf32> to vector<1x128xf32>
    %cst_136 = arith.constant dense<0.000000e+00> : vector<128xf32>
    %182 = vector.multi_reduction <add>, %177, %cst_136 [0] : vector<32x128xf32> to vector<128xf32>
    %183 = vector.shape_cast %182 : vector<128xf32> to vector<1x128xf32>
    %184 = arith.mulf %177, %177 : vector<32x128xf32>
    %cst_137 = arith.constant dense<0.000000e+00> : vector<128xf32>
    %185 = vector.multi_reduction <add>, %184, %cst_137 [0] : vector<32x128xf32> to vector<128xf32>
    %186 = vector.shape_cast %185 : vector<128xf32> to vector<1x128xf32>
    %cst_138 = arith.constant 3.125000e-02 : f32
    %187 = vector.broadcast %cst_138 : f32 to vector<1x128xf32>
    %188 = arith.mulf %183, %187 : vector<1x128xf32>
    %cst_139 = arith.constant 3.125000e-02 : f32
    %189 = vector.broadcast %cst_139 : f32 to vector<1x128xf32>
    %190 = arith.mulf %186, %189 : vector<1x128xf32>
    %191 = arith.mulf %188, %188 : vector<1x128xf32>
    %192 = arith.subf %190, %191 : vector<1x128xf32>
    %cst_140 = arith.constant 0.000000e+00 : f32
    %193 = vector.broadcast %cst_140 : f32 to vector<1x128xf32>
    %194 = arith.maximumf %192, %193 : vector<1x128xf32>
    %195 = vector.broadcast %188 : vector<1x128xf32> to vector<32x128xf32>
    %196 = arith.subf %177, %195 : vector<32x128xf32>
    %cst_141 = arith.constant 9.99999974E-6 : f32
    %197 = vector.broadcast %cst_141 : f32 to vector<1x128xf32>
    %198 = arith.addf %194, %197 : vector<1x128xf32>
    %199 = math.rsqrt %198 : vector<1x128xf32>
    %200 = vector.broadcast %199 : vector<1x128xf32> to vector<32x128xf32>
    %201 = arith.mulf %196, %200 : vector<32x128xf32>
    %202 = vector.broadcast %180 : vector<1x128xf32> to vector<32x128xf32>
    %203 = arith.mulf %201, %202 : vector<32x128xf32>
    %204 = vector.broadcast %181 : vector<1x128xf32> to vector<32x128xf32>
    %205 = arith.addf %203, %204 : vector<32x128xf32>
    %cst_142 = arith.constant 0.000000e+00 : f32
    %206 = vector.broadcast %cst_142 : f32 to vector<32x128xf32>
    %207 = arith.maximumf %205, %206 : vector<32x128xf32>
    %208 = arith.truncf %207 : vector<32x128xf32> to vector<32x128xbf16>
    %209 = vector.shape_cast %208 : vector<32x128xbf16> to vector<2x16x128xbf16>
    %c0_143 = arith.constant 0 : index
    %c16_144 = arith.constant 16 : index
    %c0_145 = arith.constant 0 : index
    %210 = vector.load %arg5[%c0_143, %c16_144, %c0_145] : memref<2x48x128xbf16, #tpu.memory_space<vmem>>, vector<2x16x128xbf16>
    tpu.vector_store %arg5[%c0_143, %c16_144, %c0_145], %209 {strides = array<i32>} : memref<2x48x128xbf16, #tpu.memory_space<vmem>>, vector<2x16x128xbf16>,
    %c24_i32 = arith.constant 24 : i32
    %211 = arith.cmpi eq, %arg0, %c24_i32 : i32
    %212 = arith.extui %211 : i1 to i32
    %c0_i32_146 = arith.constant 0 : i32
    %213 = arith.cmpi ne, %212, %c0_i32_146 : i32
    scf.if %213 {
      %c0_147 = arith.constant 0 : index
      %c16_148 = arith.constant 16 : index
      %c0_149 = arith.constant 0 : index
      %214 = vector.load %arg5[%c0_147, %c16_148, %c0_149] : memref<2x48x128xbf16, #tpu.memory_space<vmem>>, vector<2x16x128xbf16>
      %c0_150 = arith.constant 0 : index
      %c0_151 = arith.constant 0 : index
      %c0_152 = arith.constant 0 : index
      %215 = vector.load %arg4[%c0_150, %c0_151, %c0_152] : memref<2x16x128xbf16, #tpu.memory_space<vmem>>, vector<2x16x128xbf16>
      tpu.vector_store %arg4[%c0_150, %c0_151, %c0_152], %214 {strides = array<i32>} : memref<2x16x128xbf16, #tpu.memory_space<vmem>>, vector<2x16x128xbf16>,
    } else {
    }
    return
  }
  func.func @transform_1(%arg0: i32) -> (i32, i32, i32, i32) {
    %c0_i32 = arith.constant 0 : i32
    %c0_i32_0 = arith.constant 0 : i32
    %c0_i32_1 = arith.constant 0 : i32
    %c0_i32_2 = arith.constant 0 : i32
    return %arg0, %c0_i32, %c0_i32_0, %c0_i32_1 : i32, i32, i32, i32
  }
  func.func @transform_2(%arg0: i32) -> (i32, i32, i32) {
    %c0_i32 = arith.constant 0 : i32
    %c0_i32_0 = arith.constant 0 : i32
    %c0_i32_1 = arith.constant 0 : i32
    return %arg0, %c0_i32, %c0_i32_0 : i32, i32, i32
  }
  func.func @transform_3(%arg0: i32) -> (i32, i32, i32) {
    %c0_i32 = arith.constant 0 : i32
    %c0_i32_0 = arith.constant 0 : i32
    %c0_i32_1 = arith.constant 0 : i32
    %c0_i32_2 = arith.constant 0 : i32
    return %c0_i32, %c0_i32_0, %c0_i32_1 : i32, i32, i32
  }
}

module attributes {stable_mosaic.version = 11 : i64} {
  func.func @_head_kernel(%arg0: memref<2x16x128xf32, #tpu.memory_space<vmem>>, %arg1: memref<3x128x128xbf16, #tpu.memory_space<vmem>>, %arg2: memref<2x128xf32, #tpu.memory_space<vmem>>, %arg3: memref<128x64xf32, #tpu.memory_space<vmem>>, %arg4: memref<1x64xf32, #tpu.memory_space<vmem>>, %arg5: memref<64x128xf32, #tpu.memory_space<vmem>>, %arg6: memref<1x128xf32, #tpu.memory_space<vmem>>, %arg7: memref<1x128xf32, #tpu.memory_space<vmem>>, %arg8: memref<1x1xf32, #tpu.memory_space<vmem>>, %arg9: memref<2x16x128xbf16, #tpu.memory_space<vmem>>, %arg10: memref<2x48x128xbf16, #tpu.memory_space<vmem>>) attributes {dimension_semantics = [], scalar_prefetch = 0 : i64, scratch_operands = 1 : i64, tpu.core_type = #tpu.core_type<tc>} {
    %cst = arith.constant 0.000000e+00 : bf16
    %0 = vector.broadcast %cst : bf16 to vector<2x16x128xbf16>
    %c0 = arith.constant 0 : index
    %c0_0 = arith.constant 0 : index
    %c0_1 = arith.constant 0 : index
    %1 = vector.load %arg10[%c0, %c0_0, %c0_1] : memref<2x48x128xbf16, #tpu.memory_space<vmem>>, vector<2x16x128xbf16>
    tpu.vector_store %arg10[%c0, %c0_0, %c0_1], %0 {strides = array<i32>} : memref<2x48x128xbf16, #tpu.memory_space<vmem>>, vector<2x16x128xbf16>,
    %c0_2 = arith.constant 0 : index
    %c32 = arith.constant 32 : index
    %c0_3 = arith.constant 0 : index
    %2 = vector.load %arg10[%c0_2, %c32, %c0_3] : memref<2x48x128xbf16, #tpu.memory_space<vmem>>, vector<2x16x128xbf16>
    tpu.vector_store %arg10[%c0_2, %c32, %c0_3], %0 {strides = array<i32>} : memref<2x48x128xbf16, #tpu.memory_space<vmem>>, vector<2x16x128xbf16>,
    %c0_4 = arith.constant 0 : index
    %c0_5 = arith.constant 0 : index
    %c0_6 = arith.constant 0 : index
    %3 = vector.load %arg0[%c0_4, %c0_5, %c0_6] : memref<2x16x128xf32, #tpu.memory_space<vmem>>, vector<2x16x128xf32>
    %4 = arith.truncf %3 : vector<2x16x128xf32> to vector<2x16x128xbf16>
    %c0_7 = arith.constant 0 : index
    %c16 = arith.constant 16 : index
    %c0_8 = arith.constant 0 : index
    %5 = vector.load %arg10[%c0_7, %c16, %c0_8] : memref<2x48x128xbf16, #tpu.memory_space<vmem>>, vector<2x16x128xbf16>
    tpu.vector_store %arg10[%c0_7, %c16, %c0_8], %4 {strides = array<i32>} : memref<2x48x128xbf16, #tpu.memory_space<vmem>>, vector<2x16x128xbf16>,
    %c0_9 = arith.constant 0 : index
    %c15 = arith.constant 15 : index
    %c0_10 = arith.constant 0 : index
    %6 = vector.load %arg10[%c0_9, %c15, %c0_10] : memref<2x48x128xbf16, #tpu.memory_space<vmem>>, vector<2x16x128xbf16>
    %7 = vector.shape_cast %6 : vector<2x16x128xbf16> to vector<32x128xbf16>
    %c0_11 = arith.constant 0 : index
    %c16_12 = arith.constant 16 : index
    %c0_13 = arith.constant 0 : index
    %8 = vector.load %arg10[%c0_11, %c16_12, %c0_13] : memref<2x48x128xbf16, #tpu.memory_space<vmem>>, vector<2x16x128xbf16>
    %9 = vector.shape_cast %8 : vector<2x16x128xbf16> to vector<32x128xbf16>
    %c0_14 = arith.constant 0 : index
    %c17 = arith.constant 17 : index
    %c0_15 = arith.constant 0 : index
    %10 = vector.load %arg10[%c0_14, %c17, %c0_15] : memref<2x48x128xbf16, #tpu.memory_space<vmem>>, vector<2x16x128xbf16>
    %11 = vector.shape_cast %10 : vector<2x16x128xbf16> to vector<32x128xbf16>
    %12 = tpu.concatenate %7, %9, %11 in 1 : vector<32x128xbf16>, vector<32x128xbf16>, vector<32x128xbf16> -> vector<32x384xbf16>
    %c0_16 = arith.constant 0 : index
    %c0_17 = arith.constant 0 : index
    %c0_18 = arith.constant 0 : index
    %13 = vector.load %arg1[%c0_16, %c0_17, %c0_18] : memref<3x128x128xbf16, #tpu.memory_space<vmem>>, vector<3x128x128xbf16>
    %14 = vector.shape_cast %13 : vector<3x128x128xbf16> to vector<384x128xbf16>
    %cst_19 = arith.constant dense<0.000000e+00> : vector<32x128xf32>
    %15 = tpu.matmul %12, %14, %cst_19 {dimension_numbers = #tpu.dot_dimension_numbers<[1], [0], [0], [1], [0, 0, 1, 1], [], []>} : vector<32x384xbf16>, vector<384x128xbf16>, vector<32x128xf32> -> vector<32x128xf32>
    %c0_20 = arith.constant 0 : index
    %c0_21 = arith.constant 0 : index
    %16 = vector.load %arg2[%c0_20, %c0_21] : memref<2x128xf32, #tpu.memory_space<vmem>>, vector<2x128xf32>
    %17 = vector.extract_strided_slice %16 {offsets = [0, 0], sizes = [1, 128], strides = [1, 1]} : vector<2x128xf32> to vector<1x128xf32>
    %18 = vector.extract_strided_slice %16 {offsets = [1, 0], sizes = [1, 128], strides = [1, 1]} : vector<2x128xf32> to vector<1x128xf32>
    %cst_22 = arith.constant dense<0.000000e+00> : vector<128xf32>
    %19 = vector.multi_reduction <add>, %15, %cst_22 [0] : vector<32x128xf32> to vector<128xf32>
    %20 = vector.shape_cast %19 : vector<128xf32> to vector<1x128xf32>
    %21 = arith.mulf %15, %15 : vector<32x128xf32>
    %cst_23 = arith.constant dense<0.000000e+00> : vector<128xf32>
    %22 = vector.multi_reduction <add>, %21, %cst_23 [0] : vector<32x128xf32> to vector<128xf32>
    %23 = vector.shape_cast %22 : vector<128xf32> to vector<1x128xf32>
    %cst_24 = arith.constant 3.125000e-02 : f32
    %24 = vector.broadcast %cst_24 : f32 to vector<1x128xf32>
    %25 = arith.mulf %20, %24 : vector<1x128xf32>
    %cst_25 = arith.constant 3.125000e-02 : f32
    %26 = vector.broadcast %cst_25 : f32 to vector<1x128xf32>
    %27 = arith.mulf %23, %26 : vector<1x128xf32>
    %28 = arith.mulf %25, %25 : vector<1x128xf32>
    %29 = arith.subf %27, %28 : vector<1x128xf32>
    %cst_26 = arith.constant 0.000000e+00 : f32
    %30 = vector.broadcast %cst_26 : f32 to vector<1x128xf32>
    %31 = arith.maximumf %29, %30 : vector<1x128xf32>
    %32 = vector.broadcast %25 : vector<1x128xf32> to vector<32x128xf32>
    %33 = arith.subf %15, %32 : vector<32x128xf32>
    %cst_27 = arith.constant 9.99999974E-6 : f32
    %34 = vector.broadcast %cst_27 : f32 to vector<1x128xf32>
    %35 = arith.addf %31, %34 : vector<1x128xf32>
    %36 = math.rsqrt %35 : vector<1x128xf32>
    %37 = vector.broadcast %36 : vector<1x128xf32> to vector<32x128xf32>
    %38 = arith.mulf %33, %37 : vector<32x128xf32>
    %39 = vector.broadcast %17 : vector<1x128xf32> to vector<32x128xf32>
    %40 = arith.mulf %38, %39 : vector<32x128xf32>
    %41 = vector.broadcast %18 : vector<1x128xf32> to vector<32x128xf32>
    %42 = arith.addf %40, %41 : vector<32x128xf32>
    %cst_28 = arith.constant 0.000000e+00 : f32
    %43 = vector.broadcast %cst_28 : f32 to vector<32x128xf32>
    %44 = arith.maximumf %42, %43 : vector<32x128xf32>
    %45 = vector.shape_cast %44 : vector<32x128xf32> to vector<2x16x128xf32>
    %c0_29 = arith.constant 0 : index
    %c0_30 = arith.constant 0 : index
    %46 = vector.load %arg3[%c0_29, %c0_30] : memref<128x64xf32, #tpu.memory_space<vmem>>, vector<128x64xf32>
    %c0_31 = arith.constant 0 : index
    %c0_32 = arith.constant 0 : index
    %47 = vector.load %arg4[%c0_31, %c0_32] : memref<1x64xf32, #tpu.memory_space<vmem>>, vector<1x64xf32>
    %c0_33 = arith.constant 0 : index
    %c0_34 = arith.constant 0 : index
    %48 = vector.load %arg5[%c0_33, %c0_34] : memref<64x128xf32, #tpu.memory_space<vmem>>, vector<64x128xf32>
    %c0_35 = arith.constant 0 : index
    %c0_36 = arith.constant 0 : index
    %49 = vector.load %arg6[%c0_35, %c0_36] : memref<1x128xf32, #tpu.memory_space<vmem>>, vector<1x128xf32>
    %c0_37 = arith.constant 0 : index
    %c0_38 = arith.constant 0 : index
    %50 = vector.load %arg7[%c0_37, %c0_38] : memref<1x128xf32, #tpu.memory_space<vmem>>, vector<1x128xf32>
    %c0_39 = arith.constant 0 : index
    %c0_40 = arith.constant 0 : index
    %51 = vector.load %arg8[%c0_39, %c0_40] : memref<1x1xf32, #tpu.memory_space<vmem>>, vector<1x1xf32>
    %cst_41 = arith.constant dense<0.000000e+00> : vector<2x128xf32>
    %52 = vector.multi_reduction <add>, %45, %cst_41 [1] : vector<2x16x128xf32> to vector<2x128xf32>
    %cst_42 = arith.constant 1.600000e+01 : f32
    %53 = vector.broadcast %cst_42 : f32 to vector<2x128xf32>
    %54 = arith.divf %52, %53 : vector<2x128xf32>
    %cst_43 = arith.constant dense<0.000000e+00> : vector<2x64xf32>
    %55 = tpu.matmul %54, %46, %cst_43 {dimension_numbers = #tpu.dot_dimension_numbers<[1], [0], [0], [1], [0, 0, 1, 1], [], []>} : vector<2x128xf32>, vector<128x64xf32>, vector<2x64xf32> -> vector<2x64xf32>
    %56 = vector.broadcast %47 : vector<1x64xf32> to vector<2x64xf32>
    %57 = arith.addf %55, %56 : vector<2x64xf32>
    %cst_44 = arith.constant 0.000000e+00 : f32
    %58 = vector.broadcast %cst_44 : f32 to vector<2x64xf32>
    %59 = arith.maximumf %57, %58 : vector<2x64xf32>
    %cst_45 = arith.constant dense<0.000000e+00> : vector<2x128xf32>
    %60 = tpu.matmul %59, %48, %cst_45 {dimension_numbers = #tpu.dot_dimension_numbers<[1], [0], [0], [1], [0, 0, 1, 1], [], []>} : vector<2x64xf32>, vector<64x128xf32>, vector<2x128xf32> -> vector<2x128xf32>
    %61 = vector.broadcast %49 : vector<1x128xf32> to vector<2x128xf32>
    %62 = arith.addf %60, %61 : vector<2x128xf32>
    %63 = arith.negf %62 : vector<2x128xf32>
    %64 = math.exp %63 : vector<2x128xf32>
    %cst_46 = arith.constant 1.000000e+00 : f32
    %65 = vector.broadcast %cst_46 : f32 to vector<2x128xf32>
    %66 = arith.addf %65, %64 : vector<2x128xf32>
    %67 = arith.divf %65, %66 : vector<2x128xf32>
    %68 = vector.shape_cast %67 : vector<2x128xf32> to vector<2x1x128xf32>
    %69 = vector.broadcast %68 : vector<2x1x128xf32> to vector<2x16x128xf32>
    %70 = arith.mulf %45, %69 : vector<2x16x128xf32>
    %71 = vector.shape_cast %50 : vector<1x128xf32> to vector<1x1x128xf32>
    %72 = vector.broadcast %71 : vector<1x1x128xf32> to vector<2x16x128xf32>
    %73 = arith.mulf %45, %72 : vector<2x16x128xf32>
    %cst_47 = arith.constant dense<0.000000e+00> : vector<2x16xf32>
    %74 = vector.multi_reduction <add>, %73, %cst_47 [2] : vector<2x16x128xf32> to vector<2x16xf32>
    %75 = vector.shape_cast %74 : vector<2x16xf32> to vector<2x16x1xf32>
    %76 = vector.shape_cast %51 : vector<1x1xf32> to vector<1x1x1xf32>
    %77 = vector.broadcast %76 : vector<1x1x1xf32> to vector<2x16x1xf32>
    %78 = arith.addf %75, %77 : vector<2x16x1xf32>
    %79 = arith.negf %78 : vector<2x16x1xf32>
    %80 = math.exp %79 : vector<2x16x1xf32>
    %cst_48 = arith.constant 1.000000e+00 : f32
    %81 = vector.broadcast %cst_48 : f32 to vector<2x16x1xf32>
    %82 = arith.addf %81, %80 : vector<2x16x1xf32>
    %83 = arith.divf %81, %82 : vector<2x16x1xf32>
    %84 = vector.broadcast %83 : vector<2x16x1xf32> to vector<2x16x128xf32>
    %85 = arith.mulf %45, %84 : vector<2x16x128xf32>
    %86 = arith.addf %70, %85 : vector<2x16x128xf32>
    %87 = arith.truncf %86 : vector<2x16x128xf32> to vector<2x16x128xbf16>
    %c0_49 = arith.constant 0 : index
    %c0_50 = arith.constant 0 : index
    %c0_51 = arith.constant 0 : index
    %88 = vector.load %arg9[%c0_49, %c0_50, %c0_51] : memref<2x16x128xbf16, #tpu.memory_space<vmem>>, vector<2x16x128xbf16>
    tpu.vector_store %arg9[%c0_49, %c0_50, %c0_51], %87 {strides = array<i32>} : memref<2x16x128xbf16, #tpu.memory_space<vmem>>, vector<2x16x128xbf16>,
    return
  }
}

</mosaic_0001>

<bundles_post_ra>
// kernel: dcnn_forward.3
= control target key start
LH: loop header
LB: loop body
LE: loop exit
PB: predicated region body
PF: predicated region fallthrough
CT: control target
= control target key end

     0   :  { %s1580_s0 = inlined_call_operand.vmem [shape: f32[2,16,128], index: 0, kind: input, shape index: {}]   ;;  %s1581_s1 = inlined_call_operand.hbm [shape: bf16[3,128,128], index: 1, kind: input, shape index: {}]   ;;  %s1582_s2 = inlined_call_operand.hbm [shape: f32[2,128], index: 2, kind: input, shape index: {}]   ;;  %s1583_s3 = inlined_call_operand.vmem [shape: f32[128,64], index: 3, kind: input, shape index: {}]   ;;  %s1584_s4 = inlined_call_operand.hbm [shape: f32[1,64], index: 4, kind: input, shape index: {}]   ;;  %s1585_s5 = inlined_call_operand.hbm [shape: f32[64,128], index: 5, kind: input, shape index: {}]   ;;  %s1586_s6 = inlined_call_operand.hbm [shape: f32[1,128], index: 6, kind: input, shape index: {}]   ;;  %s1587_s7 = inlined_call_operand.hbm [shape: f32[1,128], index: 7, kind: input, shape index: {}]   ;;  %s1588_s8 = inlined_call_operand.<no memory space> [shape: f32[1,1], index: 8, kind: input, shape index: {}]   ;;  %s1589_s9 = inlined_call_operand.vmem [shape: bf16[2,16,128], index: 9, kind: output, shape index: {}]  }
   0x1   :  { %v14_v0 = vstv %s1588_s8 }
   0x2   :  { %15 = vst [vmem:[#allocation3] sm:$0x1] %v14_v0 }
   0x3   :  { %16 = vsyncpa [#allocation5], 0 }
   0x4   :  { %17 = vsyncpa [#allocation7], 0 }
   0x5   :  { %18 = vsyncpa [#allocation10], 0 }
   0x6   :  { %19 = vsyncpa [#allocation13], 0  ;;  %s1319_s11 = smov [#allocation6]   ;;  %s1320_s13 = smov [#allocation9]  }
   0x7   :  { %s40_s12 = sshll.u32 %s1319_s11, 4  ;;  %s61_s14 = sshll.u32 %s1320_s13, 4  ;;  %s41_s12 = int_to_ptr.vmem [resolvable:$true] %s40_s12  ;;  %s1387_s14 = int_to_ptr.vmem [resolvable:$true] %s61_s14 }
   0x8   :  { %s1179_s17 = scalar_lea.hbm %s1582_s2, 32 }
   0x9   :  { %p1180_p0 = scmp.ne.s32.totalorder %s1582_s2, %s1179_s17  ;;  %p1183_p1 = scmp.lt.u32.totalorder %s1179_s17, %s1582_s2 }
   0xb   :  { %p1185_p2 = pnand %p1183_p1, %p1180_p0 }
   0xd   :  { %1188 = shalt.err (!%p1185_p2)
}
   0xe   :  { %s1189_s21 = scalar_lea.vmem %s41_s12, 32  ;;  %p1194_p4 = scmp.lt.s32.totalorder %s41_s12, %s41_s12 }
   0xf   :  { %p1190_p3 = scmp.ne.s32.totalorder %s41_s12, %s1189_s21  ;;  %p1195_p5 = scmp.lt.s32.totalorder %s1189_s21, %s1189_s21 }
  0x11   :  { %p1196_p6 = por %p1195_p5, %p1194_p4 }
  0x13   :  { %p1197_p7 = pnand %p1196_p6, %p1190_p3 }
  0x15   :  { %1200 = shalt.err (!%p1197_p7)
}
  0x16   :  { %43 = dma.hbm_to_vmem [thread:$0]  %s1582_s2, 32, %s41_s12, [#allocation7]  }
  0x17   :  { %s1201_s26 = scalar_lea.hbm %s1585_s5, 1024 }
  0x18   :  { %p1202_p8 = scmp.ne.s32.totalorder %s1585_s5, %s1201_s26  ;;  %p1205_p9 = scmp.lt.u32.totalorder %s1201_s26, %s1585_s5 }
  0x1a   :  { %p1207_p10 = pnand %p1205_p9, %p1202_p8 }
  0x1c   :  { %1210 = shalt.err (!%p1207_p10)
}
  0x1d   :  { %s1211_s10 = scalar_lea.vmem %s1387_s14, 1024  ;;  %p1216_p12 = scmp.lt.s32.totalorder %s1387_s14, %s1387_s14 }
  0x1e   :  { %p1212_p11 = scmp.ne.s32.totalorder %s1387_s14, %s1211_s10  ;;  %p1217_p13 = scmp.lt.s32.totalorder %s1211_s10, %s1211_s10 }
  0x20   :  { %p1218_p0 = por %p1217_p13, %p1216_p12 }
  0x22   :  { %p1219_p1 = pnand %p1218_p0, %p1212_p11 }
  0x24   :  { %1222 = shalt.err (!%p1219_p1)
}
  0x25   :  { %s1321_s2 = smov 128   ;;  %s1322_s11 = smov 8  }
  0x26   :  { %67 = dma.hbm_to_vmem [thread:$0]  %s1585_s5, 1024, %s1387_s14, [#allocation10], %s1321_s2, %s1321_s2, %s1322_s11  }
  0x27   :  { %s1323_s15 = smov [#allocation4]   ;;  %s1223_s19 = scalar_lea.hbm %s1581_s1, 3072 }
  0x28   :  { %s27_s16 = sshll.u32 %s1323_s15, 4  ;;  %p1224_p2 = scmp.ne.s32.totalorder %s1581_s1, %s1223_s19  ;;  %s28_s16 = int_to_ptr.vmem [resolvable:$true] %s27_s16 }
  0x29   :  { %p1227_p3 = scmp.lt.u32.totalorder %s1223_s19, %s1581_s1 }
  0x2b   :  { %p1229_p4 = pnand %p1227_p3, %p1224_p2 }
  0x2d   :  { %1232 = shalt.err (!%p1229_p4)
}
  0x2e   :  { %s1233_s23 = scalar_lea.vmem %s28_s16, 3072  ;;  %p1238_p6 = scmp.lt.s32.totalorder %s28_s16, %s28_s16 }
  0x2f   :  { %p1234_p5 = scmp.ne.s32.totalorder %s28_s16, %s1233_s23  ;;  %p1239_p7 = scmp.lt.s32.totalorder %s1233_s23, %s1233_s23 }
  0x31   :  { %p1240_p8 = por %p1239_p7, %p1238_p6 }
  0x33   :  { %p1241_p9 = pnand %p1240_p8, %p1234_p5 }
  0x35   :  { %1244 = shalt.err (!%p1241_p9)
}
  0x36   :  { %s1324_s5 = smov 64   ;;  %s1325_s14 = smov 4  }
  0x37   :  { %33 = dma.hbm_to_vmem [thread:$0]  %s1581_s1, 3072, %s28_s16, [#allocation5], %s1324_s5, %s1324_s5, %s1325_s14  }
  0x38   :  { %s1326_s26 = smov [#allocation8]   ;;  %s1327_s28 = smov [#allocation11]  }
  0x39   :  { %s52_s27 = sshll.u32 %s1326_s26, 4  ;;  %s74_s29 = sshll.u32 %s1327_s28, 4  ;;  %s53_s27 = int_to_ptr.vmem [resolvable:$true] %s52_s27  ;;  %s75_s29 = int_to_ptr.vmem [resolvable:$true] %s74_s29 }
  0x3a   :  { %s1245_s2 = scalar_lea.hbm %s1584_s4, 16 }
  0x3b   :  { %p1246_p10 = scmp.ne.s32.totalorder %s1584_s4, %s1245_s2  ;;  %p1249_p11 = scmp.lt.u32.totalorder %s1245_s2, %s1584_s4 }
  0x3d   :  { %p1251_p12 = pnand %p1249_p11, %p1246_p10 }
  0x3f   :  { %1254 = shalt.err (!%p1251_p12)
}
  0x40   :  { %s1255_s1 = scalar_lea.vmem %s53_s27, 16  ;;  %s1259_s16 = scalar_lea.vmem %s53_s27, 32 }
  0x41   :  { %p1256_p13 = scmp.ne.s32.totalorder %s53_s27, %s1255_s1  ;;  %p1260_p0 = scmp.lt.s32.totalorder %s53_s27, %s53_s27 }
  0x42   :  { %p1261_p1 = scmp.lt.s32.totalorder %s1259_s16, %s1255_s1 }
  0x44   :  { %p1262_p2 = por %p1261_p1, %p1260_p0 }
  0x46   :  { %p1263_p3 = pnand %p1262_p2, %p1256_p13 }
  0x48   :  { %1266 = shalt.err (!%p1263_p3)
}
  0x49   :  { %55 = dma.hbm_to_vmem [thread:$0]  %s1584_s4, 16, %s53_s27, [#allocation7]  }
  0x4a   :  { %s1267_s20 = scalar_lea.hbm %s1586_s6, 16 }
  0x4b   :  { %p1268_p4 = scmp.ne.s32.totalorder %s1586_s6, %s1267_s20  ;;  %p1271_p5 = scmp.lt.u32.totalorder %s1267_s20, %s1586_s6 }
  0x4d   :  { %p1273_p6 = pnand %p1271_p5, %p1268_p4 }
  0x4f   :  { %1276 = shalt.err (!%p1273_p6)
}
  0x50   :  { %s1277_s14 = scalar_lea.vmem %s75_s29, 16  ;;  %s1281_s24 = scalar_lea.vmem %s75_s29, 32 }
  0x51   :  { %p1278_p7 = scmp.ne.s32.totalorder %s75_s29, %s1277_s14  ;;  %p1282_p8 = scmp.lt.s32.totalorder %s75_s29, %s75_s29 }
  0x52   :  { %p1283_p9 = scmp.lt.s32.totalorder %s1281_s24, %s1277_s14 }
  0x54   :  { %p1284_p10 = por %p1283_p9, %p1282_p8 }
  0x56   :  { %p1285_p11 = pnand %p1284_p10, %p1278_p7 }
  0x58   :  { %1288 = shalt.err (!%p1285_p11)
}
  0x59   :  { %77 = dma.hbm_to_vmem [thread:$0]  %s1586_s6, 16, %s75_s29, [#allocation10]  }
  0x5a   :  { %s1328_s26 = smov [#allocation12]   ;;  %s1289_s10 = scalar_lea.hbm %s1587_s7, 16 }
  0x5b   :  { %s84_s27 = sshll.u32 %s1328_s26, 4  ;;  %p1290_p12 = scmp.ne.s32.totalorder %s1587_s7, %s1289_s10  ;;  %s85_s27 = int_to_ptr.vmem [resolvable:$true] %s84_s27 }
  0x5c   :  { %p1293_p13 = scmp.lt.u32.totalorder %s1289_s10, %s1587_s7 }
  0x5e   :  { %p1295_p0 = pnand %p1293_p13, %p1290_p12 }
  0x60   :  { %1298 = shalt.err (!%p1295_p0)
}
  0x61   :  { %s1299_s15 = scalar_lea.vmem %s85_s27, 16  ;;  %s1303_s6 = scalar_lea.vmem %s85_s27, 32 }
  0x62   :  { %p1300_p1 = scmp.ne.s32.totalorder %s85_s27, %s1299_s15  ;;  %p1304_p2 = scmp.lt.s32.totalorder %s85_s27, %s85_s27 }
  0x63   :  { %p1305_p3 = scmp.lt.s32.totalorder %s1303_s6, %s1299_s15 }
  0x65   :  { %p1306_p4 = por %p1305_p3, %p1304_p2 }
  0x67   :  { %p1307_p5 = pnand %p1306_p4, %p1300_p1 }
  0x69   :  { %1310 = shalt.err (!%p1307_p5)
}
  0x6a   :  { %87 = dma.hbm_to_vmem [thread:$0]  %s1587_s7, 16, %s85_s27, [#allocation13]  }
  0x6b   :  { %1311 = dma.done.wait [#allocation5], 3072  }
  0x6c   :  { %1312 = vsyncadd [#allocation5], 4294964224 }
  0x6d   :  { %1313 = dma.done.wait [#allocation7], 48  }
  0x6e   :  { %1314 = vsyncadd [#allocation7], 4294967248 }
  0x6f   :  { %1315 = dma.done.wait [#allocation10], 1040  }
  0x70   :  { %1316 = vsyncadd [#allocation10], 4294966256 }
  0x71   :  { %1317 = dma.done.wait [#allocation13], 16  }
  0x72   :  { %1318 = vsyncadd [#allocation13], 4294967280  ;;  %v1329_v1 = vmov 0   ;;  %v1133_v2 = vld [vmem:[#allocation4 + $0x40] sm:$0xff]   ;;  %v1136_v5 = vld [vmem:[#allocation4 + $0x48] sm:$0xff]   ;;  %v1330_v63 = vmov 0.0|0.0  }
  0x73   :  { %109 = vst [vmem:[#allocation2] sm:$0xff] %v1329_v1  ;;  %110 = vst [vmem:[#allocation2 + $0x18] sm:$0xff] %v1329_v1  ;;  %1131 = vset.pattern.permute.xlu0 %v1329_v1  ;;  %1132 = vset.pattern.permute.xlu1 %v1329_v1  ;;  %v1134_v3 = vld [vmem:[#allocation4] sm:$0xff]   ;;  %v1137_v6 = vld [vmem:[#allocation4 + $0x8] sm:$0xff]   ;;  %vm125_vm0 = vsmask.f32 256 }
  0x74   :  { %111 = vst [vmem:[#allocation2 + $0x10] sm:$0xff] %v1329_v1  ;;  %112 = vst [vmem:[#allocation2 + $0x28] sm:$0xff] %v1329_v1  ;;  %942 = vmatprep.subr.bf16.mxu0 %v1133_v2  ;;  %v1135_v4 = vld [vmem:[#allocation4 + $0x80] sm:$0xff]   ;;  %v1138_v7 = vld [vmem:[#allocation4 + $0x88] sm:$0xff]   ;;  %vm156_vm1 = vsmask.f32 7424 }
  0x75   :  { %943 = vmatpush3.bf16.msra.mxu0 %v1134_v3  ;;  %1006 = vmatprep.subr.bf16.mxu1 %v1135_v4  ;;  %v1139_v8 = vld [vmem:[#allocation4 + $0x50] sm:$0xff]   ;;  %v1142_v11 = vld [vmem:[#allocation4 + $0x58] sm:$0xff]   ;;  %v1145_v14 = vld [vmem:[#allocation4 + $0x60] sm:$0xff]   ;;  %vm1331_vm2 = vmmov 0   ;;  %vm584_vm3 = vcmask 1041409   ;;  %vm664_vm4 = vcmask 523264  }
  0x76   :  { %1007 = vmatpush3.bf16.msra.mxu1 %v1135_v4  ;;  %944 = vmatprep.subr.bf16.mxu0 %v1136_v5  ;;  %v1140_v9 = vld [vmem:[#allocation4 + $0x10] sm:$0xff]   ;;  %v1143_v12 = vld [vmem:[#allocation4 + $0x18] sm:$0xff]   ;;  %v1147_v15 = vld [vmem:[#allocation4 + $0xa0] sm:$0xff]  }
  0x77   :  { %1008 = vmatprep.subr.bf16.mxu1 %v1138_v7  ;;  %v1141_v10 = vld [vmem:[#allocation4 + $0x90] sm:$0xff]   ;;  %v1144_v13 = vld [vmem:[#allocation4 + $0x98] sm:$0xff]   ;;  %v1146_v16 = vld [vmem:[#allocation4 + $0x20] sm:$0xff]  }
  0x78   :  { %v1148_v17 = vld [vmem:[#allocation4 + $0x68] sm:$0xff]   ;;  %v1151_v20 = vld [vmem:[#allocation4 + $0x70] sm:$0xff]   ;;  %v1154_v23 = vld [vmem:[#allocation4 + $0x78] sm:$0xff]  }
  0x79   :  { %945 = vmatpush3.bf16.msra.mxu0 %v1137_v6  ;;  %v1150_v18 = vld [vmem:[#allocation4 + $0xa8] sm:$0xff]   ;;  %v1152_v21 = vld [vmem:[#allocation4 + $0x30] sm:$0xff]   ;;  %v116_v31 = vld [vmem:[%s1580_s0 + $0x18] sm:$0xff] }
  0x7a   :  { %946 = vmatprep.subr.bf16.mxu0 %v1139_v8  ;;  %1009 = vmatpush3.bf16.msra.mxu1 %v1138_v7  ;;  %v1149_v19 = vld [vmem:[#allocation4 + $0x28] sm:$0xff]   ;;  %v1153_v22 = vld [vmem:[#allocation4 + $0xb0] sm:$0xff]   ;;  %v1156_v32 = vld [vmem:[#allocation4 + $0xb8] sm:$0xff]  }
  0x7b   :  { %1010 = vmatprep.subr.bf16.mxu1 %v1141_v10  ;;  %v113_v24 = vld [vmem:[%s1580_s0] sm:$0xff]  ;;  %v114_v25 = vld [vmem:[%s1580_s0 + $0x8] sm:$0xff]  ;;  %v153_v29 = vld [vmem:[#allocation2 + $0x10] sm:$0x1] }
  0x7c   :  { %v121_v26 = vld [vmem:[#allocation2] sm:$0x80]  ;;  %v117_v27 = vpack.c.bf16 %v114_v25, %v113_v24  ;;  %v115_v30 = vld [vmem:[%s1580_s0 + $0x10] sm:$0xff]  ;;  %v165_v33 = vshll.u32 %v153_v29, 16  ;;  %v123_v42 = vld [vmem:[#allocation2 + $0x18] sm:$0x80] }
  0x7d   :  { %947 = vmatpush3.bf16.msra.mxu0 %v1140_v9  ;;  %v127_v28 = vshrl.u32 %v121_v26, 16  ;;  %v118_v34 = vpack.c.bf16 %v116_v31, %v115_v30  ;;  %v155_v35 = vld [vmem:[#allocation2 + $0x28] sm:$0x1]  ;;  %v1155_v36 = vld [vmem:[#allocation4 + $0x38] sm:$0xff]   ;;  %v139_v52 = vshrl.u32 %v123_v42, 16  ;;  %v531_v60 = vld [vmem:[%s1583_s3] sm:$0xff] }
  0x7e   :  { %948 = vmatprep.subr.bf16.mxu0 %v1142_v11  ;;  %1011 = vmatpush3.bf16.msra.mxu1 %v1141_v10  ;;  %v131_v37 = vshrl.u32 %v117_v27, 16  ;;  %v134_v38 = vshll.u32 %v117_v27, 16  ;;  %v177_v39 = vshll.u32 %v155_v35, 16  ;;  %v167_v46 = vrot.slane %v165_v33, 1  ;;  %v532_v61 = vld [vmem:[%s1583_s3 + $0x8] sm:$0xff]  ;;  %v533_v0 = vld [vmem:[%s1583_s3 + $0x10] sm:$0xff] }
  0x7f   :  { %1012 = vmatprep.subr.bf16.mxu1 %v1144_v13  ;;  %407 = vmatprep.mubr.bf16.mxu0 %v117_v27  ;;  %v170_v40 = vshrl.u32 %v118_v34, 16  ;;  %v172_v41 = vshll.u32 %v118_v34, 16  ;;  %v129_v44 = vrot.slane %v127_v28, 7  ;;  %v141_v58 = vrot.slane %v139_v52, 7  ;;  %v534_v1 = vld [vmem:[%s1583_s3 + $0x18] sm:$0xff]  ;;  %v535_v3 = vld [vmem:[%s1583_s3 + $0x20] sm:$0xff] }
  0x80   :  { %v133_v43 = vrot.slane %v131_v37, 7  ;;  %v162_v45 = vrot.slane %v134_v38, 1  ;;  %v179_v48 = vrot.slane %v177_v39, 1  ;;  %v1081_v62 = vpack.c.bf16 %v532_v61, %v531_v60  ;;  %v536_v4 = vld [vmem:[%s1583_s3 + $0x28] sm:$0xff]  ;;  %v537_v6 = vld [vmem:[%s1583_s3 + $0x30] sm:$0xff]  ;;  %v538_v7 = vld [vmem:[%s1583_s3 + $0x38] sm:$0xff] }
  0x81   :  { %949 = vmatpush3.bf16.msra.mxu0 %v1143_v12  ;;  %v174_v47 = vrot.slane %v172_v41, 1  ;;  %v145_v51 = vrot.slane %v170_v40, 7  ;;  %v1084_v2 = vpack.c.bf16 %v534_v1, %v533_v0  ;;  %v1087_v5 = vpack.c.bf16 %v536_v4, %v535_v3  ;;  %v539_v9 = vld [vmem:[%s1583_s3 + $0x40] sm:$0xff]  ;;  %v540_v10 = vld [vmem:[%s1583_s3 + $0x48] sm:$0xff]  ;;  %v541_v12 = vld [vmem:[%s1583_s3 + $0x50] sm:$0xff] }
  0x82   :  { %950 = vmatprep.subr.bf16.mxu0 %v1145_v14  ;;  %1013 = vmatpush3.bf16.msra.mxu1 %v1144_v13  ;;  %v136_v49 = vor.u32 %v134_v38, %v133_v43  ;;  %v163_v50 = vor.u32 %v162_v45, %v131_v37  ;;  %v1090_v8 = vpack.c.bf16 %v538_v7, %v537_v6  ;;  %v542_v13 = vld [vmem:[%s1583_s3 + $0x58] sm:$0xff] }
  0x83   :  { %1014 = vmatprep.subr.bf16.mxu1 %v1147_v15  ;;  %v175_v53 = vor.u32 %v174_v47, %v170_v40  ;;  %v148_v57 = vor.u32 %v172_v41, %v145_v51  ;;  %v1093_v11 = vpack.c.bf16 %v540_v10, %v539_v9  ;;  %v1096_v14 = vpack.c.bf16 %v542_v13, %v541_v12 }
  0x84   :  { %v137_v54 = vsel %vm125_vm0, %v129_v44, %v136_v49  ;;  %v168_v55 = vsel %vm156_vm1, %v163_v50, %v167_v46  ;;  %v511_v10 = vlaneseq }
  0x85   :  { %951 = vmatpush3.bf16.msra.mxu0 %v1146_v16  ;;  %1022 = vmatprep.mubr.bf16.mxu1 %v168_v55  ;;  %v180_v56 = vsel %vm156_vm1, %v175_v53, %v179_v48  ;;  %v149_v59 = vsel %vm125_vm0, %v141_v58, %v148_v57  ;;  %v544_v16 = vld [vmem:[%s1583_s3 + $0x68] sm:$0xff] }
  0x86   :  { %952 = vmatprep.subr.bf16.mxu0 %v1148_v17  ;;  %1015 = vmatpush3.bf16.msra.mxu1 %v1147_v15  ;;  %v543_v15 = vld [vmem:[%s1583_s3 + $0x60] sm:$0xff]  ;;  %v1537_v12 = vshrl.u32 %v511_v10, 7 }
  0x87   :  { %1016 = vmatprep.subr.bf16.mxu1 %v1150_v18  ;;  %v1099_v17 = vpack.c.bf16 %v544_v16, %v543_v15 }
  0x88   :  { %v1540_v13 = vsub.s32 0, %v1537_v12  ;;  %v521_v15 = vsub.s32 1, %v1537_v12 }
  0x89   :  { %953 = vmatpush3.bf16.msra.mxu0 %v1149_v19  ;;  %v546_v19 = vld [vmem:[%s1583_s3 + $0x78] sm:$0xff] }
  0x8a   :  { %954 = vmatprep.subr.bf16.mxu0 %v1151_v20  ;;  %1017 = vmatpush3.bf16.msra.mxu1 %v1150_v18  ;;  %v545_v18 = vld [vmem:[%s1583_s3 + $0x70] sm:$0xff]  ;;  %v1332_v20 = vmov 0.0  }
  0x8b   :  { %1018 = vmatprep.subr.bf16.mxu1 %v1153_v22 }
  0x8d   :  { %955 = vmatpush3.bf16.msra.mxu0 %v1152_v21  ;;  %v1102_v21 = vpack.c.bf16 %v546_v19, %v545_v18 }
  0x8e   :  { %956 = vmatprep.subr.bf16.mxu0 %v1154_v23  ;;  %1019 = vmatpush3.bf16.msra.mxu1 %v1153_v22 }
  0x8f   :  { %1020 = vmatprep.subr.bf16.mxu1 %v1156_v32 }
  0x91   :  { %957 = vmatpush3.bf16.msra.mxu0 %v1155_v36 }
  0x92   :  { %1021 = vmatpush3.bf16.msra.mxu1 %v1156_v32  ;;  %1080 = vmatprep.subr.bf16.mxu0 %v1330_v63 }
  0x93   :  { %1104 = vmatprep.subr.bf16.mxu1 %v1330_v63 }
  0x94   :  { %408 = vmatmul.mubr.bf16.vlgmr.msra.gmra.mrb[0].mxu0 %v137_v54 }
  0x95   :  { %415 = vmatprep.mubr.bf16.mxu0 %v118_v34  ;;  %1023 = vmatmul.mubr.bf16.vlgmr.msra.gmra.mrb[0].mxu1 %v180_v56 }
  0x96   :  { %1082 = vmatpush3.bf16.msra.mxu0 %v1081_v62  ;;  %1077 = vmatprep.mubr.msk.f32.mxu1 %vm1331_vm2, %v1332_v20 }
  0x97   :  { %1083 = vmatprep.subr.bf16.mxu0 %v1330_v63 }
  0x9a   :  { %1085 = vmatpush3.bf16.msra.mxu0 %v1084_v2 }
  0x9b   :  { %1086 = vmatprep.subr.bf16.mxu0 %v1330_v63 }
  0x9c   :  { %416 = vmatmul.mubr.bf16.gmra.mrb[4].mxu0 %v149_v59 }
  0x9d   :  { %1058 = vmatprep.mubr.msk.f32.mxu0 %vm1331_vm2, %v1332_v20 }
  0x9e   :  { %1088 = vmatpush3.bf16.msra.mxu0 %v1087_v5 }
  0x9f   :  { %1089 = vmatprep.subr.bf16.mxu0 %v1330_v63 }
  0xa2   :  { %1091 = vmatpush3.bf16.msra.mxu0 %v1090_v8 }
  0xa3   :  { %1092 = vmatprep.subr.bf16.mxu0 %v1330_v63 }
  0xa6   :  { %1094 = vmatpush3.bf16.msra.mxu0 %v1093_v11 }
  0xa7   :  { %1095 = vmatprep.subr.bf16.mxu0 %v1330_v63 }
  0xaa   :  { %1097 = vmatpush3.bf16.msra.mxu0 %v1096_v14  ;;  %v473_v14 = vld [vmem:[#allocation6] sm:$0x3] }
  0xab   :  { %1098 = vmatprep.subr.bf16.mxu0 %v1330_v63  ;;  %v514_v16 = vrot.slane %v473_v14, %v1540_v13  ;;  %v522_v18 = vrot.slane %v473_v14, %v521_v15 }
  0xae   :  { %1100 = vmatpush3.bf16.msra.mxu0 %v1099_v17 }
  0xaf   :  { %1101 = vmatprep.subr.bf16.mxu0 %v1330_v63 }
  0xb2   :  { %1103 = vmatpush3.bf16.msra.mxu0 %v1102_v21 }
 0x167   :  { %v958_v22 = vpop.f32.mrb[0].mxu0 }
 0x168   :  { %v959_v23 = vpop.f32.mrb[1].mxu0  ;;  %v1024_v26 = vpop.f32.mrb[0].mxu1 }
 0x169   :  { %v960_v24 = vadd.f32 %v959_v23, %v958_v22  ;;  %v961_v25 = vpop.f32.mrb[2].mxu0  ;;  %v458_v28 = vpop.f32.mrb[1].mxu1 }
 0x16a   :  { %v962_v27 = vpop.f32.mrb[3].mxu0  ;;  %v1025_v31 = vpop.f32.mrb[2].mxu1 }
 0x16b   :  { %v963_v29 = vadd.f32 %v962_v27, %v961_v25  ;;  %v459_v30 = vadd.f32 %v960_v24, %v458_v28  ;;  %v461_v32 = vpop.f32.mrb[3].mxu1 }
 0x16d   :  { %v462_v33 = vadd.f32 %v963_v29, %v461_v32  ;;  %v483_v34 = vmul.f32 %v459_v30, %v459_v30 }
 0x16f   :  { %v474_v35 = vadd.f32 %v462_v33, %v459_v30  ;;  %v484_v36 = vmul.f32 %v462_v33, %v462_v33  ;;  %v964_v37 = vpop.f32.mrb[4].mxu0 }
 0x170   :  { %v965_v38 = vpop.f32.mrb[5].mxu0 }
 0x171   :  { %v487_v39 = vadd.f32 %v484_v36, %v483_v34  ;;  %v966_v40 = vadd.f32 %v965_v38, %v964_v37  ;;  %v967_v41 = vpop.f32.mrb[6].mxu0 }
 0x172   :  { %v968_v42 = vpop.f32.mrb[7].mxu0 }
 0x173   :  { %v467_v43 = vadd.f32 %v1024_v26, %v966_v40  ;;  %v969_v44 = vadd.f32 %v968_v42, %v967_v41 }
 0x175   :  { %v475_v45 = vadd.f32 %v474_v35, %v467_v43  ;;  %v485_v46 = vmul.f32 %v467_v43, %v467_v43  ;;  %v470_v47 = vadd.f32 %v1025_v31, %v969_v44  ;;  %v917_v31 = vld [vmem:[#allocation12] ss:$0 sm:$0xff] }
 0x177   :  { %v488_v48 = vadd.f32 %v487_v39, %v485_v46  ;;  %v476_v49 = vadd.f32 %v475_v45, %v470_v47  ;;  %v486_v50 = vmul.f32 %v470_v47, %v470_v47 }
 0x179   :  { %v477_v51 = vrot.slane %v476_v49, 4  ;;  %v489_v52 = vadd.f32 %v488_v48, %v486_v50 }
 0x17b   :  { %v478_v53 = vadd.f32 %v477_v51, %v476_v49  ;;  %v490_v54 = vrot.slane %v489_v52, 4 }
 0x17d   :  { %v479_v55 = vrot.slane %v478_v53, 2  ;;  %v491_v56 = vadd.f32 %v490_v54, %v489_v52 }
 0x17f   :  { %v480_v57 = vadd.f32 %v479_v55, %v478_v53  ;;  %v492_v58 = vrot.slane %v491_v56, 2 }
 0x181   :  { %v481_v59 = vrot.slane %v480_v57, 1  ;;  %v493_v60 = vadd.f32 %v492_v58, %v491_v56  ;;  %v549_v58 = vld [vmem:[#allocation9 + $0x8] sm:$0xff] }
 0x183   :  { %v482_v61 = vadd.f32 %v481_v59, %v480_v57  ;;  %v494_v62 = vrot.slane %v493_v60, 1  ;;  %v548_v57 = vld [vmem:[#allocation9] sm:$0xff]  ;;  %v550_v59 = vld [vmem:[#allocation9 + $0x10] sm:$0xff] }
 0x185   :  { %v495_v0 = vadd.f32 %v494_v62, %v493_v60  ;;  %v496_v1 = vmul.f32 0.03125, %v482_v61  ;;  %v1105_v60 = vpack.c.bf16 %v549_v58, %v548_v57  ;;  %v551_v61 = vld [vmem:[#allocation9 + $0x18] sm:$0xff] }
 0x186   :  { %v1108_v62 = vpack.c.bf16 %v551_v61, %v550_v59 }
 0x187   :  { %v497_v2 = vmul.f32 0.03125, %v495_v0  ;;  %v498_v3 = vmul.f32 %v496_v1, %v496_v1  ;;  %v504_v4 = vsub.f32 %v470_v47, %v496_v1  ;;  %v503_v5 = vsub.f32 %v467_v43, %v496_v1  ;;  %1106 = vmatpush3.bf16.msra.mxu1 %v1105_v60  ;;  %v552_v0 = vld [vmem:[#allocation9 + $0x20] sm:$0xff] }
 0x188   :  { %v501_v6 = vsub.f32 %v459_v30, %v496_v1  ;;  %v502_v7 = vsub.f32 %v462_v33, %v496_v1  ;;  %1107 = vmatprep.subr.bf16.mxu1 %v1330_v63  ;;  %v553_v1 = vld [vmem:[#allocation9 + $0x28] sm:$0xff] }
 0x189   :  { %v499_v8 = vsub.f32 %v497_v2, %v498_v3  ;;  %v1111_v2 = vpack.c.bf16 %v553_v1, %v552_v0  ;;  %v554_v3 = vld [vmem:[#allocation9 + $0x30] sm:$0xff] }
 0x18b   :  { %v500_v9 = vmax.f32 %v499_v8, 0.0  ;;  %1109 = vmatpush3.bf16.msra.mxu1 %v1108_v62 }
 0x18c   :  { %1110 = vmatprep.subr.bf16.mxu1 %v1330_v63 }
 0x18d   :  { %v505_v11 = vadd.f32 1e-05, %v500_v9 }
 0x18f   :  { %1157 = vrsqrt.f32 %v505_v11  ;;  %1112 = vmatpush3.bf16.msra.mxu1 %v1111_v2 }
 0x190   :  { %1113 = vmatprep.subr.bf16.mxu1 %v1330_v63 }
 0x199   :  { %v1158_v17 = vpop.eup %1157 }
 0x19a   :  { %v510_v19 = vmul.f32 %v1158_v17, %v504_v4  ;;  %v509_v20 = vmul.f32 %v1158_v17, %v503_v5  ;;  %v507_v21 = vmul.f32 %v1158_v17, %v501_v6  ;;  %v508_v22 = vmul.f32 %v1158_v17, %v502_v7  ;;  %v555_v4 = vld [vmem:[#allocation9 + $0x38] sm:$0xff] }
 0x19b   :  { %v1114_v5 = vpack.c.bf16 %v555_v4, %v554_v3  ;;  %v918_v6 = vld [vmem:[#allocation3] ss:$0 sm:$0xff] }
 0x19c   :  { %v518_v23 = vmul.f32 %v514_v16, %v510_v19  ;;  %v517_v24 = vmul.f32 %v514_v16, %v509_v20  ;;  %v515_v25 = vmul.f32 %v514_v16, %v507_v21  ;;  %v516_v26 = vmul.f32 %v514_v16, %v508_v22 }
 0x19d   :  { %1115 = vmatpush3.bf16.msra.mxu1 %v1114_v5 }
 0x19e   :  { %v525_v27 = vadd.f32 %v522_v18, %v517_v24  ;;  %v523_v28 = vadd.f32 %v522_v18, %v515_v25  ;;  %v526_v29 = vadd.f32 %v522_v18, %v518_v23  ;;  %v524_v30 = vadd.f32 %v522_v18, %v516_v26 }
 0x1a0   :  { %v1544_v32 = vmax.f32 %v525_v27, 0.0  ;;  %v1546_v33 = vmax.f32 %v523_v28, 0.0  ;;  %v1548_v34 = vmax.f32 %v526_v29, 0.0  ;;  %v1550_v35 = vmax.f32 %v524_v30, 0.0 }
 0x1a2   :  { %v789_v36 = vmul.f32 %v917_v31, %v1544_v32  ;;  %v787_v37 = vmul.f32 %v917_v31, %v1546_v33  ;;  %v559_v38 = vadd.f32 %v1550_v35, %v1546_v33  ;;  %v566_v39 = vadd.f32 %v1548_v34, %v1544_v32 }
 0x1a3   :  { %v790_v42 = vmul.f32 %v917_v31, %v1548_v34  ;;  %v788_v43 = vmul.f32 %v917_v31, %v1550_v35 }
 0x1a4   :  { %795 = vadd.xlane.f32.xlu1 %v789_v36  ;;  %791 = vadd.xlane.f32.xlu0 %v787_v37  ;;  %v560_v40 = vrot.slane %v559_v38, 4  ;;  %v567_v41 = vrot.slane %v566_v39, 4  ;;  %v913_v36 = vld [vmem:[#allocation8] ss:$0 sm:$0xff] }
 0x1a6   :  { %v561_v44 = vadd.f32 %v560_v40, %v559_v38  ;;  %v568_v45 = vadd.f32 %v567_v41, %v566_v39  ;;  %v914_v41 = vld [vmem:[#allocation11] ss:$0 sm:$0xff] }
 0x1a8   :  { %797 = vadd.xlane.f32.xlu1 %v790_v42  ;;  %793 = vadd.xlane.f32.xlu0 %v788_v43  ;;  %v562_v46 = vrot.slane %v561_v44, 2  ;;  %v569_v47 = vrot.slane %v568_v45, 2 }
 0x1aa   :  { %v563_v48 = vadd.f32 %v562_v46, %v561_v44  ;;  %v570_v49 = vadd.f32 %v569_v47, %v568_v45 }
 0x1ac   :  { %v564_v50 = vrot.slane %v563_v48, 1  ;;  %v571_v51 = vrot.slane %v570_v49, 1 }
 0x1ae   :  { %v565_v52 = vadd.f32 %v564_v50, %v563_v48  ;;  %v572_v53 = vadd.f32 %v571_v51, %v570_v49  ;;  %v1333_v48 = vmov 1966171168  }
 0x1af   :  { %v746_v49 = vunpack.c.l.s4 %v1333_v48 }
 0x1b0   :  { %v574_v54 = vmul.f32 0.0625, %v565_v52  ;;  %v575_v55 = vmul.f32 0.0625, %v572_v53 }
 0x1b1   :  { %v747_v51 = vunpack.c.0.s8 %v746_v49 }
 0x1b2   :  { %v585_v56 = vsel %vm584_vm3, %v575_v55, %v574_v54 }
 0x1b3   :  { %1059 = vmatmul.mubr.f32.vlgmr.msra.gmra.mrb[8].mxu0 %v585_v56  ;;  %v750_v52 = vsub.s32 %v747_v51, %v1537_v12 }
 0x231   :  { %v796_v7 = vpop.xlane.xlu1 %795  ;;  %v792_v8 = vpop.xlane.xlu0 %791 }
 0x232   :  { %v807_v9 = vadd.f32 %v918_v6, %v796_v7  ;;  %v805_v10 = vadd.f32 %v918_v6, %v792_v8 }
 0x234   :  { %v919_v11 = vmul.f32 -1.442695, %v805_v10  ;;  %v921_v16 = vmul.f32 -1.442695, %v807_v9 }
 0x235   :  { %v798_v14 = vpop.xlane.xlu1 %797  ;;  %v794_v15 = vpop.xlane.xlu0 %793 }
 0x236   :  { %v806_v17 = vadd.f32 %v918_v6, %v794_v15  ;;  %1159 = vpow2.f32 %v919_v11  ;;  %v808_v18 = vadd.f32 %v918_v6, %v798_v14 }
 0x237   :  { %1161 = vpow2.f32 %v921_v16 }
 0x238   :  { %v920_v19 = vmul.f32 -1.442695, %v806_v17  ;;  %v922_v20 = vmul.f32 -1.442695, %v808_v18 }
 0x23a   :  { %1163 = vpow2.f32 %v920_v19 }
 0x23b   :  { %1165 = vpow2.f32 %v922_v20 }
 0x240   :  { %v1160_v63 = vpop.eup %1159 }
 0x241   :  { %v821_v21 = vadd.f32 1.0, %v1160_v63  ;;  %v1162_v22 = vpop.eup %1161 }
 0x242   :  { %v823_v25 = vadd.f32 1.0, %v1162_v22 }
 0x243   :  { %1167 = vrcp.f32 %v821_v21 }
 0x244   :  { %v1164_v23 = vpop.eup %1163 }
 0x245   :  { %v822_v24 = vadd.f32 1.0, %v1164_v23  ;;  %v1166_v26 = vpop.eup %1165 }
 0x246   :  { %v824_v27 = vadd.f32 1.0, %v1166_v26 }
 0x247   :  { %1169 = vrcp.f32 %v822_v24 }
 0x248   :  { %1171 = vrcp.f32 %v823_v25 }
 0x249   :  { %1173 = vrcp.f32 %v824_v27 }
 0x24d   :  { %v1168_v28 = vpop.eup %1167 }
 0x24e   :  { %835 = vperm.xlu0 %1131, %v1168_v28  }
 0x251   :  { %v1170_v29 = vpop.eup %1169 }
 0x252   :  { %840 = vperm.xlu1 %1132, %v1170_v29   ;;  %v1172_v30 = vpop.eup %1171 }
 0x253   :  { %v1174_v31 = vpop.eup %1173 }
 0x256   :  { %845 = vperm.xlu1 %1132, %v1172_v30  }
 0x25a   :  { %850 = vperm.xlu1 %1132, %v1174_v31  }
 0x286   :  { %v653_v37 = vpop.f32.mrb[8].mxu0 }
 0x287   :  { %v654_v38 = vadd.f32 %v913_v36, %v653_v37  ;;  %v1060_v39 = vpop.f32.mrb[9].mxu0 }
 0x289   :  { %v657_v40 = vmax.f32 %v654_v38, 0.0 }
 0x28b   :  { %1078 = vmatmul.mubr.msk.f32.vlgmr.msra.gmra.mrb[4].mxu1 %vm664_vm4, %v657_v40 }
 0x2cd   :  { %v836_v56 = vpop.permute.xlu0 %835 }
 0x2ce   :  { %v853_v62 = vmul.f32 %v836_v56, %v1546_v33 }
 0x2d1   :  { %v841_v50 = vpop.permute.xlu1 %840 }
 0x2d2   :  { %v854_v0 = vmul.f32 %v841_v50, %v1550_v35 }
 0x2d5   :  { %v846_v53 = vpop.permute.xlu1 %845 }
 0x2d6   :  { %v855_v3 = vmul.f32 %v846_v53, %v1544_v32 }
 0x2d9   :  { %v851_v59 = vpop.permute.xlu1 %850 }
 0x2da   :  { %v856_v4 = vmul.f32 %v851_v59, %v1548_v34 }
 0x35e   :  { %v734_v42 = vpop.f32.mrb[4].mxu1 }
 0x35f   :  { %v735_v43 = vadd.f32 %v914_v41, %v734_v42  ;;  %v1079_v44 = vpop.f32.mrb[5].mxu1 }
 0x361   :  { %v916_v45 = vmul.f32 -1.442695, %v735_v43 }
 0x363   :  { %1175 = vpow2.f32 %v916_v45 }
 0x36d   :  { %v1176_v46 = vpop.eup %1175 }
 0x36e   :  { %v741_v47 = vadd.f32 1.0, %v1176_v46 }
 0x370   :  { %1177 = vrcp.f32 %v741_v47 }
 0x37a   :  { %v1178_v54 = vpop.eup %1177 }
 0x37b   :  { %v751_v55 = vrot.slane %v1178_v54, %v750_v52 }
 0x37d   :  { %v752_v57 = vcombine.high %v751_v55, %v751_v55  ;;  %v759_v58 = vrot.slane %v751_v55, %v750_v52 }
 0x37f   :  { %v766_v60 = vrot.slane %v752_v57, %v750_v52  ;;  %v770_v61 = vrot.slane %v759_v58, %v1540_v13 }
 0x381   :  { %v774_v1 = vrot.slane %v766_v60, %v1540_v13  ;;  %v777_v2 = vmul.f32 %v770_v61, %v1546_v33  ;;  %v778_v12 = vmul.f32 %v770_v61, %v1550_v35 }
 0x383   :  { %v779_v5 = vmul.f32 %v774_v1, %v1544_v32  ;;  %v780_v6 = vmul.f32 %v774_v1, %v1548_v34  ;;  %v857_v7 = vadd.f32 %v853_v62, %v777_v2  ;;  %v858_v8 = vadd.f32 %v854_v0, %v778_v12 }
 0x385   :  { %v859_v9 = vadd.f32 %v855_v3, %v779_v5  ;;  %v860_v10 = vadd.f32 %v856_v4, %v780_v6  ;;  %v934_v11 = vpack.c.bf16 %v858_v8, %v857_v7 }
 0x387   :  { %935 = vst [vmem:[%s1589_s9] sm:$0xff] %v934_v11   ;;  %v939_v13 = vpack.c.bf16 %v860_v10, %v859_v9 }
 0x389   :  { %941 = vst [vmem:[%s1589_s9 + $0x8] sm:$0xff] %v939_v13  }
 0x38a   :  { %885 = vsyncpa [#allocation5], 1 }
 0x38b   :  { %886 = vsyncpa [#allocation7], 1 }
 0x38c   :  { %887 = vsyncpa [#allocation10], 1 }
 0x38d   :  { %888 = vsyncpa [#allocation13], 1 }

// kernel: dcnn_forward.5
= control target key start
LH: loop header
LB: loop body
LE: loop exit
PB: predicated region body
PF: predicated region fallthrough
CT: control target
= control target key end

     0   :  { %s4751_s0 = inlined_call_operand.vmem [shape: bf16[2,16,128], index: 0, kind: input, shape index: {}]   ;;  %s4752_s1 = inlined_call_operand.vmem [shape: f32[128,64], index: 1, kind: input, shape index: {}]   ;;  %s4753_s2 = inlined_call_operand.vmem [shape: f32[1,64], index: 2, kind: input, shape index: {}]   ;;  %s4754_s3 = inlined_call_operand.vmem [shape: f32[64,128], index: 3, kind: input, shape index: {}]   ;;  %s4755_s4 = inlined_call_operand.vmem [shape: f32[1,128], index: 4, kind: input, shape index: {}]   ;;  %s4756_s5 = inlined_call_operand.vmem [shape: f32[1,128], index: 5, kind: input, shape index: {}]   ;;  %s4757_s6 = inlined_call_operand.<no memory space> [shape: f32[1,1], index: 6, kind: input, shape index: {}]   ;;  %s4758_s7 = inlined_call_operand.vmem [shape: bf16[128,512], index: 7, kind: input, shape index: {}]   ;;  %s4759_s8 = inlined_call_operand.vmem [shape: f32[2,512], index: 8, kind: input, shape index: {}]   ;;  %s4760_s9 = inlined_call_operand.vmem [shape: f32[9,512], index: 9, kind: input, shape index: {}]   ;;  %s4761_s10 = inlined_call_operand.vmem [shape: f32[2,1], index: 10, kind: input, shape index: {}]   ;;  %s4762_s11 = inlined_call_operand.hbm [shape: f32[2,16], index: 11, kind: output, shape index: {}]  }
   0x1   :  { %v16_v0 = vstv %s4757_s6 }
   0x2   :  { %17 = vst [vmem:[#allocation3] sm:$0x1] %v16_v0 }
   0x3   :  { %v50_v1 = vld [vmem:[%s4752_s1] sm:$0xff]  ;;  %v51_v2 = vld [vmem:[%s4752_s1 + $0x8] sm:$0xff]  ;;  %v52_v3 = vld [vmem:[%s4752_s1 + $0x10] sm:$0xff]  ;;  %v2916_v4 = vmov 0.0|0.0   ;;  %vm2917_vm0 = vmmov 0   ;;  %v2918_v7 = vmov 0.0  }
   0x4   :  { %2759 = vmatprep.subr.bf16.mxu0 %v2916_v4  ;;  %v2760_v5 = vpack.c.bf16 %v51_v2, %v50_v1  ;;  %v53_v6 = vld [vmem:[%s4752_s1 + $0x18] sm:$0xff]  ;;  %2737 = vmatprep.mubr.msk.f32.mxu0 %vm2917_vm0, %v2918_v7  ;;  %v54_v9 = vld [vmem:[%s4752_s1 + $0x20] sm:$0xff]  ;;  %v55_v10 = vld [vmem:[%s4752_s1 + $0x28] sm:$0xff] }
   0x5   :  { %2783 = vmatprep.subr.bf16.mxu1 %v2916_v4  ;;  %2756 = vmatprep.mubr.msk.f32.mxu1 %vm2917_vm0, %v2918_v7  ;;  %v2763_v8 = vpack.c.bf16 %v53_v6, %v52_v3  ;;  %v2671_v11 = vld [vmem:[%s4751_s0] sm:$0xff]   ;;  %v2678_v12 = vld [vmem:[%s4751_s0 + $0x8] sm:$0xff]   ;;  %v56_v13 = vld [vmem:[%s4752_s1 + $0x30] sm:$0xff]  ;;  %v2766_v20 = vpack.c.bf16 %v55_v10, %v54_v9 }
   0x6   :  { %2761 = vmatpush3.bf16.msra.mxu0 %v2760_v5  ;;  %v3016_v14 = vunpack.c.l.bf16 %v2671_v11  ;;  %v3018_v15 = vunpack.c.h.bf16 %v2671_v11  ;;  %v3020_v16 = vunpack.c.l.bf16 %v2678_v12  ;;  %v2628_v17 = vld [vmem:[%s4756_s5] ss:$0 sm:$0xff]  ;;  %v68_v19 = vld [vmem:[%s4754_s3 + $0x8] sm:$0xff]  ;;  %v57_v21 = vld [vmem:[%s4752_s1 + $0x38] sm:$0xff]  ;;  %v3034_v22 = vunpack.c.h.bf16 %v2678_v12 }
   0x7   :  { %2762 = vmatprep.subr.bf16.mxu0 %v2916_v4  ;;  %v67_v18 = vld [vmem:[%s4754_s3] sm:$0xff]  ;;  %v69_v24 = vld [vmem:[%s4754_s3 + $0x10] sm:$0xff]  ;;  %v70_v25 = vld [vmem:[%s4754_s3 + $0x18] sm:$0xff]  ;;  %v2769_v38 = vpack.c.bf16 %v57_v21, %v56_v13 }
   0x8   :  { %v2784_v23 = vpack.c.bf16 %v68_v19, %v67_v18  ;;  %v78_v26 = vadd.f32 %v3018_v15, %v3016_v14  ;;  %v306_v27 = vmul.f32 %v3016_v14, %v2628_v17  ;;  %v308_v28 = vmul.f32 %v3020_v16, %v2628_v17  ;;  %v71_v29 = vld [vmem:[%s4754_s3 + $0x20] sm:$0xff]  ;;  %v72_v30 = vld [vmem:[%s4754_s3 + $0x28] sm:$0xff]  ;;  %v60_v43 = vld [vmem:[%s4752_s1 + $0x50] sm:$0xff] }
   0x9   :  { %v85_v31 = vadd.f32 %v3034_v22, %v3020_v16  ;;  %v2787_v32 = vpack.c.bf16 %v70_v25, %v69_v24  ;;  %v58_v33 = vld [vmem:[%s4752_s1 + $0x40] sm:$0xff]  ;;  %v59_v34 = vld [vmem:[%s4752_s1 + $0x48] sm:$0xff]  ;;  %v307_v36 = vmul.f32 %v3018_v15, %v2628_v17  ;;  %v309_v37 = vmul.f32 %v3034_v22, %v2628_v17  ;;  %v61_v44 = vld [vmem:[%s4752_s1 + $0x58] sm:$0xff] }
   0xa   :  { %2764 = vmatpush3.bf16.msra.mxu0 %v2763_v8  ;;  %2785 = vmatpush3.bf16.msra.mxu1 %v2784_v23  ;;  %v79_v35 = vrot.slane %v78_v26, 4  ;;  %v2790_v42 = vpack.c.bf16 %v72_v30, %v71_v29  ;;  %v2772_v46 = vpack.c.bf16 %v59_v34, %v58_v33  ;;  %v2775_v50 = vpack.c.bf16 %v61_v44, %v60_v43 }
   0xb   :  { %2765 = vmatprep.subr.bf16.mxu0 %v2916_v4  ;;  %310 = vadd.xlane.f32.xlu0 %v306_v27  ;;  %v86_v39 = vrot.slane %v85_v31, 4 }
   0xc   :  { %314 = vadd.xlane.f32.xlu1 %v308_v28  ;;  %2786 = vmatprep.subr.bf16.mxu1 %v2916_v4  ;;  %v80_v40 = vadd.f32 %v79_v35, %v78_v26 }
   0xd   :  { %v87_v41 = vadd.f32 %v86_v39, %v85_v31 }
   0xe   :  { %2767 = vmatpush3.bf16.msra.mxu0 %v2766_v20  ;;  %2788 = vmatpush3.bf16.msra.mxu1 %v2787_v32  ;;  %v81_v45 = vrot.slane %v80_v40, 2 }
   0xf   :  { %2768 = vmatprep.subr.bf16.mxu0 %v2916_v4  ;;  %312 = vadd.xlane.f32.xlu0 %v307_v36  ;;  %v88_v47 = vrot.slane %v87_v41, 2 }
  0x10   :  { %316 = vadd.xlane.f32.xlu1 %v309_v37  ;;  %2789 = vmatprep.subr.bf16.mxu1 %v2916_v4  ;;  %v82_v48 = vadd.f32 %v81_v45, %v80_v40 }
  0x11   :  { %v89_v49 = vadd.f32 %v88_v47, %v87_v41 }
  0x12   :  { %2770 = vmatpush3.bf16.msra.mxu0 %v2769_v38  ;;  %2791 = vmatpush3.bf16.msra.mxu1 %v2790_v42  ;;  %v83_v51 = vrot.slane %v82_v48, 1 }
  0x13   :  { %2771 = vmatprep.subr.bf16.mxu0 %v2916_v4  ;;  %2792 = vmatprep.subr.bf16.mxu1 %v2916_v4  ;;  %v90_v52 = vrot.slane %v89_v49, 1 }
  0x16   :  { %2773 = vmatpush3.bf16.msra.mxu0 %v2772_v46 }
  0x17   :  { %18 = vsyncpa [#allocation5], 0  ;;  %2774 = vmatprep.subr.bf16.mxu0 %v2916_v4  ;;  %v62_v53 = vld [vmem:[%s4752_s1 + $0x60] sm:$0xff]  ;;  %v63_v54 = vld [vmem:[%s4752_s1 + $0x68] sm:$0xff]  ;;  %v84_v56 = vadd.f32 %v83_v51, %v82_v48  ;;  %v91_v57 = vadd.f32 %v90_v52, %v89_v49  ;;  %vm103_vm1 = vcmask 1041409   ;;  %v2919_v3 = vmov 0  }
  0x18   :  { %v2778_v55 = vpack.c.bf16 %v63_v54, %v62_v53  ;;  %v64_v58 = vld [vmem:[%s4752_s1 + $0x70] sm:$0xff]  ;;  %v65_v59 = vld [vmem:[%s4752_s1 + $0x78] sm:$0xff]  ;;  %2813 = vset.pattern.permute.xlu1 %v2919_v3  ;;  %950 = vst [vmem:[#allocation2] sm:$0xff] %v2919_v3  ;;  %951 = vst [vmem:[#allocation2 + $0x8] sm:$0xff] %v2919_v3  ;;  %2812 = vset.pattern.permute.xlu0 %v2919_v3  ;;  %vm183_vm2 = vcmask 523264   ;;  %vm1914_vm3 = vcmask 1040384  }
  0x19   :  { %v2781_v60 = vpack.c.bf16 %v65_v59, %v64_v58  ;;  %v93_v61 = vmul.f32 0.0625, %v84_v56  ;;  %v94_v62 = vmul.f32 0.0625, %v91_v57  ;;  %v73_v0 = vld [vmem:[%s4754_s3 + $0x30] sm:$0xff]  ;;  %v74_v1 = vld [vmem:[%s4754_s3 + $0x38] sm:$0xff]  ;;  %952 = vst [vmem:[#allocation2 + $0x10] sm:$0xff] %v2919_v3  ;;  %953 = vst [vmem:[#allocation2 + $0x18] sm:$0xff] %v2919_v3 }
  0x1a   :  { %2776 = vmatpush3.bf16.msra.mxu0 %v2775_v50  ;;  %v2793_v2 = vpack.c.bf16 %v74_v1, %v73_v0  ;;  %954 = vst [vmem:[#allocation2 + $0x60] sm:$0xff] %v2919_v3  ;;  %955 = vst [vmem:[#allocation2 + $0x68] sm:$0xff] %v2919_v3  ;;  %v2624_v33 = vld [vmem:[%s4753_s2] ss:$0 sm:$0xff]  ;;  %v2816_v38 = vld [vmem:[%s4758_s7 + $0x4] ss:$16 sps:$4 sm:$0xff]  }
  0x1b   :  { %2777 = vmatprep.subr.bf16.mxu0 %v2916_v4  ;;  %v104_v63 = vsel %vm103_vm1, %v94_v62, %v93_v61  ;;  %956 = vst [vmem:[#allocation2 + $0x70] sm:$0xff] %v2919_v3  ;;  %957 = vst [vmem:[#allocation2 + $0x78] sm:$0xff] %v2919_v3  ;;  %v2819_v39 = vld [vmem:[%s4758_s7 + $0xc] ss:$16 sps:$4 sm:$0xff]   ;;  %v2814_v40 = vld [vmem:[%s4758_s7] ss:$16 sps:$4 sm:$0xff]  }
  0x1c   :  { %2794 = vmatpush3.bf16.msra.mxu1 %v2793_v2  ;;  %958 = vst [vmem:[#allocation2 + $0x40] sm:$0xff] %v2919_v3  ;;  %959 = vst [vmem:[#allocation2 + $0x48] sm:$0xff] %v2919_v3  ;;  %v2817_v41 = vld [vmem:[%s4758_s7 + $0x8] ss:$16 sps:$4 sm:$0xff]   ;;  %v2822_v42 = vld [vmem:[%s4758_s7 + $0x24] ss:$16 sps:$4 sm:$0xff]  }
  0x1d   :  { %960 = vst [vmem:[#allocation2 + $0x50] sm:$0xff] %v2919_v3  ;;  %961 = vst [vmem:[#allocation2 + $0x58] sm:$0xff] %v2919_v3  ;;  %574 = vmatprep.subr.bf16.mxu1 %v2816_v38  ;;  %v2825_v43 = vld [vmem:[%s4758_s7 + $0x2c] ss:$16 sps:$4 sm:$0xff]   ;;  %v2820_v44 = vld [vmem:[%s4758_s7 + $0x20] ss:$16 sps:$4 sm:$0xff]  }
  0x1e   :  { %2779 = vmatpush3.bf16.msra.mxu0 %v2778_v55  ;;  %962 = vst [vmem:[#allocation2 + $0xa0] sm:$0xff] %v2919_v3  ;;  %963 = vst [vmem:[#allocation2 + $0xa8] sm:$0xff] %v2919_v3  ;;  %v2823_v45 = vld [vmem:[%s4758_s7 + $0x28] ss:$16 sps:$4 sm:$0xff]   ;;  %v2828_v46 = vld [vmem:[%s4758_s7 + $0x44] ss:$16 sps:$4 sm:$0xff]  }
  0x1f   :  { %2780 = vmatprep.subr.bf16.mxu0 %v2916_v4  ;;  %964 = vst [vmem:[#allocation2 + $0xb0] sm:$0xff] %v2919_v3  ;;  %965 = vst [vmem:[#allocation2 + $0xb8] sm:$0xff] %v2919_v3  ;;  %v2629_v4 = vld [vmem:[#allocation3] ss:$0 sm:$0xff]  ;;  %v2831_v47 = vld [vmem:[%s4758_s7 + $0x4c] ss:$16 sps:$4 sm:$0xff]  }
  0x20   :  { %v2826_v48 = vld [vmem:[%s4758_s7 + $0x40] ss:$16 sps:$4 sm:$0xff]   ;;  %v2829_v49 = vld [vmem:[%s4758_s7 + $0x48] ss:$16 sps:$4 sm:$0xff]   ;;  %v2834_v51 = vld [vmem:[%s4758_s7 + $0x64] ss:$16 sps:$4 sm:$0xff]  }
  0x21   :  { %v2832_v50 = vld [vmem:[%s4758_s7 + $0x60] ss:$16 sps:$4 sm:$0xff]   ;;  %v2835_v52 = vld [vmem:[%s4758_s7 + $0x68] ss:$16 sps:$4 sm:$0xff]   ;;  %v2837_v53 = vld [vmem:[%s4758_s7 + $0x6c] ss:$16 sps:$4 sm:$0xff]  }
  0x22   :  { %2782 = vmatpush3.bf16.msra.mxu0 %v2781_v60  ;;  %v2840_v54 = vld [vmem:[%s4758_s7 + $0x84] ss:$16 sps:$4 sm:$0xff]   ;;  %v2843_v55 = vld [vmem:[%s4758_s7 + $0x8c] ss:$16 sps:$4 sm:$0xff]   ;;  %v2838_v56 = vld [vmem:[%s4758_s7 + $0x80] ss:$16 sps:$4 sm:$0xff]  }
  0x23   :  { %627 = vmatprep.subr.bf16.mxu0 %v2819_v39  ;;  %v2841_v57 = vld [vmem:[%s4758_s7 + $0x88] ss:$16 sps:$4 sm:$0xff]   ;;  %v2846_v58 = vld [vmem:[%s4758_s7 + $0xa4] ss:$16 sps:$4 sm:$0xff]   ;;  %v2849_v59 = vld [vmem:[%s4758_s7 + $0xac] ss:$16 sps:$4 sm:$0xff]  }
  0x24   :  { %v2844_v60 = vld [vmem:[%s4758_s7 + $0xa0] ss:$16 sps:$4 sm:$0xff]   ;;  %v2847_v61 = vld [vmem:[%s4758_s7 + $0xa8] ss:$16 sps:$4 sm:$0xff]   ;;  %v2852_v62 = vld [vmem:[%s4758_s7 + $0xc4] ss:$16 sps:$4 sm:$0xff]  }
  0x25   :  { %2738 = vmatmul.mubr.f32.vlgmr.msra.gmra.mrb[0].mxu0 %v104_v63  ;;  %v2855_v63 = vld [vmem:[%s4758_s7 + $0xcc] ss:$16 sps:$4 sm:$0xff]   ;;  %v2850_v0 = vld [vmem:[%s4758_s7 + $0xc0] ss:$16 sps:$4 sm:$0xff]   ;;  %v2853_v1 = vld [vmem:[%s4758_s7 + $0xc8] ss:$16 sps:$4 sm:$0xff]  }
  0x26   :  { %659 = vmatprep.mubr.bf16.mxu0 %v2919_v3  ;;  %628 = vmatpush1.bf16.msra.mxu0 %v2817_v41  ;;  %v2858_v2 = vld [vmem:[%s4758_s7 + $0xe4] ss:$16 sps:$4 sm:$0xff]   ;;  %vm2055_vm4 = vcmask 1041408   ;;  %vm1899_vm5 = vcmask 1047553   ;;  %vm2040_vm6 = vcmask 1047554   ;;  %vm2172_vm7 = vcmask 1047555  }
  0x27   :  { %629 = vmatprep.subr.bf16.mxu0 %v2825_v43  ;;  %vm1022_vm8 = vcmask 1043456   ;;  %vm1308_vm9 = vcmask 1044480   ;;  %vm1481_vm10 = vcmask 1045504   ;;  %vm1347_vm11 = vcmask 1046528   ;;  %s2921_s19 = smov 0.0  }
  0x28   :  { %vm1466_vm12 = vcmask 1047558   ;;  %vm1127_vm13 = vcmask 1047556   ;;  %vm1654_vm14 = vcmask 1047559   ;;  %vm1293_vm15 = vcmask 1047557  }
  0x29   :  { %vm1953_vm0 = vcmask 1042432  }
  0x2a   :  { %630 = vmatpush1.bf16.msra.mxu0 %v2823_v45 }
  0x2b   :  { %631 = vmatprep.subr.bf16.mxu0 %v2831_v47 }
  0x2e   :  { %632 = vmatpush1.bf16.msra.mxu0 %v2829_v49  ;;  %v1823_v49 = vld [vmem:[#allocation2 + $0x40] sm:$0x1] }
  0x2f   :  { %633 = vmatprep.subr.bf16.mxu0 %v2837_v53  ;;  %v1831_v53 = vld [vmem:[#allocation2 + $0xa0] sm:$0x1] }
  0x32   :  { %634 = vmatpush1.bf16.msra.mxu0 %v2835_v52 }
  0x33   :  { %635 = vmatprep.subr.bf16.mxu0 %v2843_v55 }
  0x36   :  { %636 = vmatpush1.bf16.msra.mxu0 %v2841_v57  ;;  %v1825_v57 = vld [vmem:[#allocation2 + $0x50] sm:$0x1] }
  0x37   :  { %637 = vmatprep.subr.bf16.mxu0 %v2849_v59  ;;  %v1833_v59 = vld [vmem:[#allocation2 + $0xb0] sm:$0x1] }
  0x3a   :  { %638 = vmatpush1.bf16.msra.mxu0 %v2847_v61 }
  0x3b   :  { %639 = vmatprep.subr.bf16.mxu0 %v2855_v63 }
  0x3e   :  { %640 = vmatpush1.bf16.msra.mxu0 %v2853_v1  ;;  %v1857_v1 = vunpack.c.l.bf16 %v1833_v59 }
  0x98   :  { %v311_v5 = vpop.xlane.xlu0 %310 }
  0x99   :  { %v315_v6 = vpop.xlane.xlu1 %314  ;;  %v324_v7 = vadd.f32 %v2629_v4, %v311_v5  ;;  %v2856_v5 = vld [vmem:[%s4758_s7 + $0xe0] ss:$16 sps:$4 sm:$0xff]  }
  0x9a   :  { %v326_v8 = vadd.f32 %v2629_v4, %v315_v6  ;;  %v2859_v6 = vld [vmem:[%s4758_s7 + $0xe8] ss:$16 sps:$4 sm:$0xff]  }
  0x9b   :  { %v2630_v9 = vmul.f32 -1.442695, %v324_v7  ;;  %v2625_v7 = vld [vmem:[%s4755_s4] ss:$0 sm:$0xff] }
  0x9c   :  { %v2632_v10 = vmul.f32 -1.442695, %v326_v8  ;;  %v313_v11 = vpop.xlane.xlu0 %312 }
  0x9d   :  { %v317_v12 = vpop.xlane.xlu1 %316  ;;  %2862 = vpow2.f32 %v2630_v9  ;;  %v325_v13 = vadd.f32 %v2629_v4, %v313_v11 }
  0x9e   :  { %v327_v17 = vadd.f32 %v2629_v4, %v317_v12  ;;  %2864 = vpow2.f32 %v2632_v10  ;;  %v2861_v4 = vld [vmem:[%s4758_s7 + $0xec] ss:$16 sps:$4 sm:$0xff]  }
  0x9f   :  { %v2631_v18 = vmul.f32 -1.442695, %v325_v13  ;;  %641 = vmatprep.subr.bf16.mxu0 %v2861_v4  ;;  %v1826_v4 = vld [vmem:[#allocation2 + $0x58] sm:$0x1] }
  0xa0   :  { %v2633_v19 = vmul.f32 -1.442695, %v327_v17  ;;  %642 = vmatpush1.bf16.msra.mxu0 %v2859_v6  ;;  %v2920_v17 = vmov 1966171168   ;;  %v1834_v6 = vld [vmem:[#allocation2 + $0xb8] sm:$0x1] }
  0xa1   :  { %2866 = vpow2.f32 %v2631_v18  ;;  %v265_v18 = vunpack.c.l.s4 %v2920_v17  ;;  %v1858_v17 = vunpack.c.l.bf16 %v1834_v6  ;;  %v680_v6 = vld [vmem:[%s4759_s8] sm:$0xff] }
  0xa2   :  { %2868 = vpow2.f32 %v2633_v19  ;;  %v4763_v19 = vlaneseq }
  0xa7   :  { %v2863_v20 = vpop.eup %2862 }
  0xa8   :  { %v340_v21 = vadd.f32 1.0, %v2863_v20  ;;  %v2865_v23 = vpop.eup %2864  ;;  %v266_v20 = vunpack.c.0.s8 %v265_v18 }
  0xa9   :  { %v342_v26 = vadd.f32 1.0, %v2865_v23 }
  0xaa   :  { %2870 = vrcp.f32 %v340_v21  ;;  %v3219_v21 = vshrl.u32 %v4763_v19, 7 }
  0xab   :  { %v2867_v24 = vpop.eup %2866 }
  0xac   :  { %v341_v25 = vadd.f32 1.0, %v2867_v24  ;;  %v2869_v27 = vpop.eup %2868  ;;  %4852 = vst [vmem:[#allocation7_spill] sm:$0xff] %v3219_v21  ;;  %v269_v23 = vsub.s32 %v266_v20, %v3219_v21  ;;  %v3259_v55 = vsub.s32 6, %v3219_v21 }
  0xad   :  { %v343_v28 = vadd.f32 1.0, %v2869_v27 }
  0xae   :  { %2872 = vrcp.f32 %v341_v25 }
  0xaf   :  { %2874 = vrcp.f32 %v342_v26  ;;  %v3223_v26 = vsub.s32 0, %v3219_v21 }
  0xb0   :  { %2876 = vrcp.f32 %v343_v28 }
  0xb4   :  { %v2871_v29 = vpop.eup %2870 }
  0xb5   :  { %354 = vperm.xlu0 %2812, %v2871_v29  }
  0xb8   :  { %v2873_v30 = vpop.eup %2872 }
  0xb9   :  { %359 = vperm.xlu1 %2813, %v2873_v30   ;;  %v2875_v31 = vpop.eup %2874 }
  0xba   :  { %v2877_v32 = vpop.eup %2876 }
  0xbd   :  { %364 = vperm.xlu1 %2813, %v2875_v31  }
  0xc1   :  { %369 = vperm.xlu1 %2813, %v2877_v32  }
  0xf8   :  { %v172_v34 = vpop.f32.mrb[0].mxu0 }
  0xf9   :  { %v173_v35 = vadd.f32 %v2624_v33, %v172_v34  ;;  %v2739_v36 = vpop.f32.mrb[1].mxu0 }
  0xfb   :  { %v176_v37 = vmax.f32 %v173_v35, 0.0 }
  0xfd   :  { %2757 = vmatmul.mubr.msk.f32.vlgmr.msra.gmra.mrb[0].mxu1 %vm183_vm2, %v176_v37  ;;  %vm2399_vm2 = vcmask 97312  }
  0xfe   :  { %606 = vmatprep.mubr.bf16.mxu1 %v2919_v3  ;;  %575 = vmatpush1.bf16.msra.mxu1 %v2814_v40 }
  0xff   :  { %576 = vmatprep.subr.bf16.mxu1 %v2822_v42 }
 0x102   :  { %577 = vmatpush1.bf16.msra.mxu1 %v2820_v44 }
 0x103   :  { %578 = vmatprep.subr.bf16.mxu1 %v2828_v46 }
 0x106   :  { %579 = vmatpush1.bf16.msra.mxu1 %v2826_v48  ;;  %v3238_v48 = vsub.s32 5, %v3219_v21 }
 0x107   :  { %580 = vmatprep.subr.bf16.mxu1 %v2834_v51 }
 0x10a   :  { %581 = vmatpush1.bf16.msra.mxu1 %v2832_v50  ;;  %v1843_v50 = vunpack.c.l.bf16 %v1823_v49 }
 0x10b   :  { %582 = vmatprep.subr.bf16.mxu1 %v2840_v54  ;;  %v1832_v54 = vld [vmem:[#allocation2 + $0xa8] sm:$0x1] }
 0x10c   :  { %v1856_v61 = vunpack.c.l.bf16 %v1832_v54 }
 0x10e   :  { %583 = vmatpush1.bf16.msra.mxu1 %v2838_v56  ;;  %v3264_v56 = vld [vmem:[%s4760_s9 + $0x10] sm:$0xff] }
 0x10f   :  { %584 = vmatprep.subr.bf16.mxu1 %v2846_v58  ;;  %v3268_v63 = vrot.slane %v3264_v56, %v3238_v48 }
 0x111   :  { %4855 = vst [vmem:[#allocation10_spill] sm:$0xff] %v3268_v63  ;;  %v1897_v18 = vmul.f32 %v3268_v63, %v1857_v1 }
 0x112   :  { %585 = vmatpush1.bf16.msra.mxu1 %v2844_v60  ;;  %v1855_v60 = vunpack.c.l.bf16 %v1831_v53 }
 0x113   :  { %586 = vmatprep.subr.bf16.mxu1 %v2852_v62  ;;  %v1845_v62 = vunpack.c.l.bf16 %v1825_v57 }
 0x116   :  { %587 = vmatpush1.bf16.msra.mxu1 %v2850_v0 }
 0x117   :  { %588 = vmatprep.subr.bf16.mxu1 %v2858_v2  ;;  %v3274_v2 = vld [vmem:[%s4760_s9 + $0x18] sm:$0xff] }
 0x11a   :  { %589 = vmatpush1.bf16.msra.mxu1 %v2856_v5 }
 0x134   :  { %v355_v31 = vpop.permute.xlu0 %354 }
 0x135   :  { %v372_v38 = vmul.f32 %v3016_v14, %v355_v31 }
 0x138   :  { %v360_v24 = vpop.permute.xlu1 %359 }
 0x139   :  { %v373_v33 = vmul.f32 %v3018_v15, %v360_v24 }
 0x13c   :  { %v365_v30 = vpop.permute.xlu1 %364 }
 0x13d   :  { %v374_v45 = vmul.f32 %v3020_v16, %v365_v30  ;;  %v1941_v30 = vsel %vm1914_vm3, %v1897_v18, 0.0 }
 0x140   :  { %v370_v41 = vpop.permute.xlu1 %369 }
 0x141   :  { %v375_v46 = vmul.f32 %v3034_v22, %v370_v41 }
 0x1d0   :  { %v253_v8 = vpop.f32.mrb[0].mxu1 }
 0x1d1   :  { %v254_v9 = vadd.f32 %v2625_v7, %v253_v8  ;;  %v2758_v10 = vpop.f32.mrb[1].mxu1 }
 0x1d2   :  { %v3281_v10 = vrot.slane %v3274_v2, %v3238_v48 }
 0x1d3   :  { %v2627_v11 = vmul.f32 -1.442695, %v254_v9  ;;  %v1846_v9 = vunpack.c.l.bf16 %v1826_v4  ;;  %v3328_v4 = vsub.s32 1, %v3219_v21 }
 0x1d4   :  { %4856 = vst [vmem:[#allocation11_spill] sm:$0xff] %v3281_v10 }
 0x1d5   :  { %2878 = vpow2.f32 %v2627_v11  ;;  %v1885_v11 = vmul.f32 %v3268_v63, %v1845_v62 }
 0x1df   :  { %v2879_v12 = vpop.eup %2878 }
 0x1e0   :  { %v260_v13 = vadd.f32 1.0, %v2879_v12 }
 0x1e2   :  { %2880 = vrcp.f32 %v260_v13 }
 0x1ec   :  { %v2881_v25 = vpop.eup %2880 }
 0x1ed   :  { %v270_v27 = vrot.slane %v2881_v25, %v269_v23  ;;  %v1918_v25 = vsel %vm1914_vm3, %v1885_v11, 0.0  ;;  %v893_v11 = vrot.slane %v680_v6, %v3238_v48 }
 0x1ef   :  { %v278_v28 = vrot.slane %v270_v27, %v269_v23  ;;  %v271_v29 = vcombine.high %v270_v27, %v270_v27 }
 0x1f1   :  { %v289_v32 = vrot.slane %v278_v28, %v3223_v26  ;;  %v285_v34 = vrot.slane %v271_v29, %v269_v23  ;;  %v1886_v23 = vmul.f32 %v3281_v10, %v1846_v9  ;;  %v1898_v28 = vmul.f32 %v3281_v10, %v1858_v17 }
 0x1f3   :  { %v297_v35 = vmul.f32 %v3018_v15, %v289_v32  ;;  %v293_v36 = vrot.slane %v285_v34, %v3223_v26  ;;  %v296_v37 = vmul.f32 %v3016_v14, %v289_v32 }
 0x1f5   :  { %v377_v39 = vadd.f32 %v373_v33, %v297_v35  ;;  %v376_v40 = vadd.f32 %v372_v38, %v296_v37  ;;  %v298_v42 = vmul.f32 %v3020_v16, %v293_v36  ;;  %v299_v44 = vmul.f32 %v3034_v22, %v293_v36  ;;  %v3243_v16 = vld [vmem:[%s4760_s9] sm:$0xff]  ;;  %v3248_v22 = vld [vmem:[%s4760_s9 + $0x8] sm:$0xff] }
 0x1f6   :  { %v3252_v51 = vrot.slane %v3243_v16, %v3238_v48  ;;  %v3256_v52 = vrot.slane %v3248_v22, %v3238_v48  ;;  %v3295_v31 = vrot.slane %v3243_v16, %v3259_v55  ;;  %v1920_v33 = vsel %vm1914_vm3, %v1886_v23, 0.0 }
 0x1f7   :  { %v380_v43 = vpack.c.bf16 %v377_v39, %v376_v40  ;;  %v378_v15 = vadd.f32 %v374_v45, %v298_v42  ;;  %v379_v14 = vadd.f32 %v375_v46, %v299_v44  ;;  %v3300_v34 = vrot.slane %v3248_v22, %v3259_v55 }
 0x1f8   :  { %4853 = vst [vmem:[#allocation8_spill] sm:$0xff] %v3252_v51  ;;  %4854 = vst [vmem:[#allocation9_spill] sm:$0xff] %v3256_v52  ;;  %v1883_v0 = vmul.f32 %v3252_v51, %v1843_v50  ;;  %v1895_v7 = vmul.f32 %v3252_v51, %v1855_v60  ;;  %v1896_v8 = vmul.f32 %v3256_v52, %v1856_v61  ;;  %v1943_v37 = vsel %vm1914_vm3, %v1898_v28, 0.0 }
 0x1f9   :  { %607 = vmatmul.mubr.bf16.vlgmr.msra.gmra.mrb[4].mxu1 %v380_v43  ;;  %660 = vmatmul.mubr.bf16.vlgmr.msra.gmra.mrb[4].mxu0 %v380_v43  ;;  %v381_v47 = vpack.c.bf16 %v379_v14, %v378_v15  ;;  %4857 = vst [vmem:[#allocation12_spill] sm:$0xff] %v3295_v31  ;;  %4858 = vst [vmem:[#allocation13_spill] sm:$0xff] %v3300_v34  ;;  %v3304_v35 = vrot.slane %v3264_v56, %v3259_v55 }
 0x1fa   :  { %616 = vmatprep.mubr.bf16.mxu1 %v2919_v3  ;;  %669 = vmatprep.mubr.bf16.mxu0 %v2919_v3  ;;  %v1824_v3 = vld [vmem:[#allocation2 + $0x48] sm:$0x1]  ;;  %v1915_v12 = vsel %vm1914_vm3, %v1883_v0, 0.0  ;;  %v1938_v20 = vsel %vm1914_vm3, %v1895_v7, 0.0  ;;  %v1939_v27 = vsel %vm1914_vm3, %v1896_v8, 0.0  ;;  %v3309_v38 = vrot.slane %v3274_v2, %v3259_v55 }
 0x1fb   :  { %v1844_v58 = vunpack.c.l.bf16 %v1824_v3  ;;  %v1940_v29 = vadd.f32 %v1939_v27, %v1938_v20  ;;  %4859 = vst [vmem:[#allocation14_spill] sm:$0xff] %v3304_v35  ;;  %v2024_v39 = vmul.f32 %v3295_v31, %v1843_v50  ;;  %v2026_v42 = vmul.f32 %v3304_v35, %v1845_v62 }
 0x1fc   :  { %4860 = vst [vmem:[#allocation15_spill] sm:$0xff] %v3309_v38  ;;  %v2027_v44 = vmul.f32 %v3309_v38, %v1846_v9  ;;  %v2036_v46 = vmul.f32 %v3295_v31, %v1855_v60  ;;  %v2038_v49 = vmul.f32 %v3304_v35, %v1857_v1  ;;  %v2039_v50 = vmul.f32 %v3309_v38, %v1858_v17 }
 0x1fd   :  { %v1884_v5 = vmul.f32 %v3256_v52, %v1844_v58  ;;  %v1942_v36 = vadd.f32 %v1941_v30, %v1940_v29  ;;  %v2025_v41 = vmul.f32 %v3300_v34, %v1844_v58  ;;  %v2056_v45 = vsel %vm2055_vm4, %v2024_v39, 0.0 }
 0x1fe   :  { %v2059_v14 = vsel %vm2055_vm4, %v2026_v42, 0.0  ;;  %v2079_v53 = vsel %vm2055_vm4, %v2036_v46, 0.0  ;;  %v2061_v54 = vsel %vm2055_vm4, %v2027_v44, 0.0  ;;  %v2082_v58 = vsel %vm2055_vm4, %v2038_v49, 0.0 }
 0x1ff   :  { %v1916_v13 = vsel %vm1914_vm3, %v1884_v5, 0.0  ;;  %v1944_v43 = vadd.f32 %v1943_v37, %v1942_v36  ;;  %v2057_v15 = vsel %vm2055_vm4, %v2025_v41, 0.0  ;;  %v2084_v62 = vsel %vm2055_vm4, %v2039_v50, 0.0 }
 0x200   :  { %v1917_v24 = vadd.f32 %v1916_v13, %v1915_v12  ;;  %v2058_v3 = vadd.f32 %v2057_v15, %v2056_v45  ;;  %v840_v5 = vsub.s32 4, %v3219_v21  ;;  %v833_v7 = vrot.slane %v680_v6, %v3223_v26 }
 0x201   :  { %617 = vmatmul.mubr.bf16.gmra.mrb[8].mxu1 %v381_v47  ;;  %670 = vmatmul.mubr.bf16.gmra.mrb[8].mxu0 %v381_v47  ;;  %v2037_v47 = vmul.f32 %v3300_v34, %v1856_v61  ;;  %v885_v8 = vrot.slane %v680_v6, %v3328_v4  ;;  %v3338_v12 = vsub.s32 2, %v3219_v21  ;;  %v3341_v13 = vsub.s32 3, %v3219_v21 }
 0x202   :  { %v1919_v32 = vadd.f32 %v1918_v25, %v1917_v24  ;;  %1945 = vadd.xlane.f32.xlu1 %v1944_v43  ;;  %v2060_v59 = vadd.f32 %v2059_v14, %v2058_v3  ;;  %v841_v9 = vrot.slane %v680_v6, %v840_v5  ;;  %v3344_v17 = vsub.s32 7, %v3219_v21 }
 0x203   :  { %v2080_v57 = vsel %vm2055_vm4, %v2037_v47, 0.0  ;;  %v3351_v23 = vrot.slane %v833_v7, %v3223_v26  ;;  %v3354_v24 = vrot.slane %v885_v8, %v3328_v4  ;;  %v3360_v25 = vrot.slane %v893_v11, %v3328_v4 }
 0x204   :  { %v1921_v40 = vadd.f32 %v1920_v33, %v1919_v32  ;;  %v2081_v60 = vadd.f32 %v2080_v57, %v2079_v53  ;;  %v2062_v0 = vadd.f32 %v2061_v54, %v2060_v59  ;;  %v3357_v48 = vrot.slane %v841_v9, %v3223_v26  ;;  %v3410_v59 = vld [vmem:[#allocation2 + $0x10] sm:$0xc0] }
 0x205   :  { %v837_v29 = vrot.slane %v680_v6, %v3338_v12  ;;  %v889_v30 = vrot.slane %v680_v6, %v3341_v13  ;;  %v845_v32 = vrot.slane %v680_v6, %v3259_v55  ;;  %v897_v33 = vrot.slane %v680_v6, %v3344_v17  ;;  %4862 = vst [vmem:[#allocation17_spill] sm:$0xff] %v3410_v59 }
 0x206   :  { %1922 = vadd.xlane.f32.xlu0 %v1921_v40  ;;  %v2083_v61 = vadd.f32 %v2082_v58, %v2081_v60  ;;  %v3408_v58 = vld [vmem:[#allocation2] sm:$0xc0]  ;;  %v3422_v6 = vrot.slane %v3248_v22, %v840_v5  ;;  %v3425_v7 = vrot.slane %v3264_v56, %v840_v5  ;;  %v3428_v8 = vrot.slane %v3274_v2, %v840_v5 }
 0x207   :  { %v3403_v54 = vrot.slane %v837_v29, %v3223_v26  ;;  %v3406_v57 = vrot.slane %v889_v30, %v3328_v4  ;;  %4861 = vst [vmem:[#allocation16_spill] sm:$0xff] %v3408_v58  ;;  %v3436_v29 = vrot.slane %v3243_v16, %v3344_v17  ;;  %v3440_v30 = vrot.slane %v3264_v56, %v3344_v17 }
 0x208   :  { %v2085_v1 = vadd.f32 %v2084_v62, %v2083_v61  ;;  %v3416_v61 = vrot.slane %v897_v33, %v3328_v4  ;;  %4866 = vst [vmem:[#allocation21_spill] sm:$0xff] %v3422_v6  ;;  %4867 = vst [vmem:[#allocation22_spill] sm:$0xff] %v3425_v7 }
 0x209   :  { %4868 = vst [vmem:[#allocation23_spill] sm:$0xff] %v3428_v8  ;;  %4869 = vst [vmem:[#allocation24_spill] sm:$0xff] %v3436_v29 }
 0x20a   :  { %2063 = vadd.xlane.f32.xlu0 %v2062_v0  ;;  %2086 = vadd.xlane.f32.xlu1 %v2085_v1  ;;  %v3413_v0 = vrot.slane %v845_v32, %v3223_v26  ;;  %4864 = vst [vmem:[#allocation19_spill] sm:$0xff] %v3416_v61  ;;  %v3419_v1 = vrot.slane %v3243_v16, %v840_v5  ;;  %4870 = vst [vmem:[#allocation25_spill] sm:$0xff] %v3440_v30 }
 0x20c   :  { %4863 = vst [vmem:[#allocation18_spill] sm:$0xff] %v3413_v0  ;;  %4865 = vst [vmem:[#allocation20_spill] sm:$0xff] %v3419_v1 }
 0x2cc   :  { %v3346_v18 = vpop.f32.mrb[4].mxu1  ;;  %v3348_v20 = vpop.f32.mrb[4].mxu0 }
 0x2cd   :  { %v3362_v27 = vpop.f32.mrb[5].mxu1  ;;  %v3364_v28 = vpop.f32.mrb[5].mxu0  ;;  %v717_v36 = vmul.f32 %v3346_v18, %v3346_v18  ;;  %v719_v37 = vmul.f32 %v3348_v20, %v3348_v20 }
 0x2ce   :  { %v718_v39 = vmul.f32 %v3362_v27, %v3362_v27  ;;  %v720_v40 = vmul.f32 %v3364_v28, %v3364_v28  ;;  %v3378_v41 = vpop.f32.mrb[6].mxu1  ;;  %v3380_v42 = vpop.f32.mrb[6].mxu0 }
 0x2cf   :  { %v681_v55 = vadd.f32 %v3378_v41, %v3346_v18  ;;  %v721_v43 = vmul.f32 %v3378_v41, %v3378_v41  ;;  %v699_v44 = vadd.f32 %v3380_v42, %v3348_v20  ;;  %v723_v45 = vmul.f32 %v3380_v42, %v3380_v42  ;;  %v3390_v46 = vpop.f32.mrb[7].mxu1  ;;  %v3392_v15 = vpop.f32.mrb[7].mxu0 }
 0x2d0   :  { %v690_v14 = vadd.f32 %v3390_v46, %v3362_v27  ;;  %v722_v47 = vmul.f32 %v3390_v46, %v3390_v46  ;;  %v708_v49 = vadd.f32 %v3392_v15, %v3364_v28  ;;  %v724_v3 = vmul.f32 %v3392_v15, %v3392_v15 }
 0x2d1   :  { %v733_v50 = vadd.f32 %v721_v43, %v717_v36  ;;  %v751_v53 = vadd.f32 %v723_v45, %v719_v37 }
 0x2d2   :  { %v742_v60 = vadd.f32 %v722_v47, %v718_v39  ;;  %v760_v62 = vadd.f32 %v724_v3, %v720_v40 }
 0x2d4   :  { %v3430_v9 = vpop.f32.mrb[8].mxu1  ;;  %v3432_v11 = vpop.f32.mrb[8].mxu0 }
 0x2d5   :  { %v682_v36 = vadd.f32 %v681_v55, %v3430_v9  ;;  %v725_v5 = vmul.f32 %v3430_v9, %v3430_v9  ;;  %v700_v37 = vadd.f32 %v699_v44, %v3432_v11  ;;  %v727_v39 = vmul.f32 %v3432_v11, %v3432_v11  ;;  %v3450_v40 = vpop.f32.mrb[9].mxu1  ;;  %v3452_v43 = vpop.f32.mrb[9].mxu0 }
 0x2d6   :  { %v691_v45 = vadd.f32 %v690_v14, %v3450_v40  ;;  %v726_v47 = vmul.f32 %v3450_v40, %v3450_v40  ;;  %v709_v3 = vadd.f32 %v708_v49, %v3452_v43  ;;  %v728_v55 = vmul.f32 %v3452_v43, %v3452_v43  ;;  %v3460_v19 = vpop.f32.mrb[10].mxu1  ;;  %v3462_v44 = vpop.f32.mrb[10].mxu0 }
 0x2d7   :  { %v734_v33 = vadd.f32 %v733_v50, %v725_v5  ;;  %v752_v32 = vadd.f32 %v751_v53, %v727_v39  ;;  %v683_v21 = vadd.f32 %v682_v36, %v3460_v19  ;;  %v729_v59 = vmul.f32 %v3460_v19, %v3460_v19  ;;  %v3467_v14 = vpop.f32.mrb[11].mxu1  ;;  %v3469_v58 = vpop.f32.mrb[11].mxu0 }
 0x2d8   :  { %v743_v30 = vadd.f32 %v742_v60, %v726_v47  ;;  %v761_v49 = vadd.f32 %v760_v62, %v728_v55  ;;  %v701_v29 = vadd.f32 %v700_v37, %v3462_v44  ;;  %v731_v38 = vmul.f32 %v3462_v44, %v3462_v44 }
 0x2d9   :  { %v684_v35 = vrot.slane %v683_v21, 4  ;;  %v735_v34 = vadd.f32 %v734_v33, %v729_v59  ;;  %v692_v50 = vadd.f32 %v691_v45, %v3467_v14  ;;  %v730_v53 = vmul.f32 %v3467_v14, %v3467_v14 }
 0x2da   :  { %v702_v36 = vrot.slane %v701_v29, 4  ;;  %v753_v5 = vadd.f32 %v752_v32, %v731_v38  ;;  %v710_v39 = vadd.f32 %v709_v3, %v3469_v58  ;;  %v732_v60 = vmul.f32 %v3469_v58, %v3469_v58 }
 0x2db   :  { %v685_v62 = vadd.f32 %v684_v35, %v683_v21  ;;  %v736_v47 = vrot.slane %v735_v34, 4  ;;  %v693_v37 = vrot.slane %v692_v50, 4  ;;  %v744_v55 = vadd.f32 %v743_v30, %v730_v53 }
 0x2dc   :  { %v703_v31 = vadd.f32 %v702_v36, %v701_v29  ;;  %v754_v10 = vrot.slane %v753_v5, 4  ;;  %v711_v63 = vrot.slane %v710_v39, 4  ;;  %v762_v59 = vadd.f32 %v761_v49, %v732_v60 }
 0x2dd   :  { %v686_v33 = vrot.slane %v685_v62, 2  ;;  %v737_v45 = vadd.f32 %v736_v47, %v735_v34  ;;  %v694_v52 = vadd.f32 %v693_v37, %v692_v50  ;;  %v745_v51 = vrot.slane %v744_v55, 4 }
 0x2de   :  { %v704_v8 = vrot.slane %v703_v31, 2  ;;  %v755_v6 = vadd.f32 %v754_v10, %v753_v5  ;;  %v712_v38 = vadd.f32 %v711_v63, %v710_v39  ;;  %v763_v32 = vrot.slane %v762_v59, 4 }
 0x2df   :  { %v687_v3 = vadd.f32 %v686_v33, %v685_v62  ;;  %v738_v7 = vrot.slane %v737_v45, 2  ;;  %v695_v1 = vrot.slane %v694_v52, 2  ;;  %v746_v61 = vadd.f32 %v745_v51, %v744_v55 }
 0x2e0   :  { %v705_v21 = vadd.f32 %v704_v8, %v703_v31  ;;  %v756_v35 = vrot.slane %v755_v6, 2  ;;  %v713_v0 = vrot.slane %v712_v38, 2  ;;  %v764_v30 = vadd.f32 %v763_v32, %v762_v59 }
 0x2e1   :  { %v688_v29 = vrot.slane %v687_v3, 1  ;;  %v739_v53 = vadd.f32 %v738_v7, %v737_v45  ;;  %v696_v36 = vadd.f32 %v695_v1, %v694_v52  ;;  %v747_v49 = vrot.slane %v746_v61, 2 }
 0x2e2   :  { %v706_v60 = vrot.slane %v705_v21, 1  ;;  %v757_v34 = vadd.f32 %v756_v35, %v755_v6  ;;  %v714_v50 = vadd.f32 %v713_v0, %v712_v38  ;;  %v765_v47 = vrot.slane %v764_v30, 2 }
 0x2e3   :  { %v689_v37 = vadd.f32 %v688_v29, %v687_v3  ;;  %v740_v10 = vrot.slane %v739_v53, 1  ;;  %v697_v63 = vrot.slane %v696_v36, 1  ;;  %v748_v5 = vadd.f32 %v747_v49, %v746_v61  ;;  %v3570_v49 = vld [vmem:[#allocation2 + $0x10] sm:$0x80] }
 0x2e4   :  { %v707_v39 = vadd.f32 %v706_v60, %v705_v21  ;;  %v758_v62 = vrot.slane %v757_v34, 1  ;;  %v715_v33 = vrot.slane %v714_v50, 1  ;;  %v766_v51 = vadd.f32 %v765_v47, %v764_v30  ;;  %v3496_v30 = vld [vmem:[#allocation2 + $0x8] sm:$0xc0] }
 0x2e5   :  { %v741_v31 = vadd.f32 %v740_v10, %v739_v53  ;;  %v3480_v8 = vmul.f32 0.03125, %v689_v37  ;;  %v698_v55 = vadd.f32 %v697_v63, %v696_v36  ;;  %v749_v59 = vrot.slane %v748_v5, 1 }
 0x2e6   :  { %v759_v7 = vadd.f32 %v758_v62, %v757_v34  ;;  %v3482_v52 = vmul.f32 0.03125, %v707_v39  ;;  %v716_v1 = vadd.f32 %v715_v33, %v714_v50  ;;  %v767_v6 = vrot.slane %v766_v51, 1  ;;  %v3541_v39 = vld [vmem:[#allocation2 + $0x60] sm:$0x80] }
 0x2e7   :  { %v773_v0 = vmul.f32 0.03125, %v741_v31  ;;  %v777_v45 = vmul.f32 %v3480_v8, %v3480_v8  ;;  %v750_v50 = vadd.f32 %v749_v59, %v748_v5  ;;  %v3506_v47 = vmul.f32 0.03125, %v698_v55  ;;  %v3521_v59 = vld [vmem:[#allocation2 + $0x18] sm:$0xc0] }
 0x2e8   :  { %v775_v21 = vmul.f32 0.03125, %v759_v7  ;;  %v779_v35 = vmul.f32 %v3482_v52, %v3482_v52  ;;  %v768_v10 = vadd.f32 %v767_v6, %v766_v51  ;;  %v3508_v63 = vmul.f32 0.03125, %v716_v1  ;;  %v3564_v7 = vld [vmem:[#allocation2] sm:$0x80]  ;;  %v3584_v51 = vld [vmem:[#allocation2 + $0x8] sm:$0x80] }
 0x2e9   :  { %v781_v29 = vsub.f32 %v773_v0, %v777_v45  ;;  %v774_v33 = vmul.f32 0.03125, %v750_v50  ;;  %v778_v31 = vmul.f32 %v3506_v47, %v3506_v47  ;;  %v3551_v50 = vrot.slane %v3274_v2, %v3344_v17 }
 0x2ea   :  { %v783_v60 = vsub.f32 %v775_v21, %v779_v35  ;;  %v776_v45 = vmul.f32 0.03125, %v768_v10  ;;  %v780_v21 = vmul.f32 %v3508_v63, %v3508_v63  ;;  %v3525_v35 = vld [vmem:[#allocation2 + $0x60] sm:$0xc0]  ;;  %v3537_v10 = vld [vmem:[#allocation2 + $0x78] sm:$0xc0]  ;;  %v3561_v55 = vrot.slane %v3243_v16, %v3328_v4 }
 0x2eb   :  { %v785_v37 = vmax.f32 %v781_v29, 0.0  ;;  %v782_v6 = vsub.f32 %v774_v33, %v778_v31  ;;  %v3543_v29 = vld [vmem:[#allocation2 + $0x70] sm:$0x80]  ;;  %4872 = vst [vmem:[#allocation27_spill] sm:$0xff] %v3551_v50  ;;  %v3578_v5 = vrot.slane %v3264_v56, %v3328_v4  ;;  %v3593_v53 = vrot.slane %v3243_v16, %v3338_v12 }
 0x2ec   :  { %v787_v62 = vmax.f32 %v783_v60, 0.0  ;;  %v784_v31 = vsub.f32 %v776_v45, %v780_v21  ;;  %v3547_v60 = vrot.slane %v3248_v22, %v3344_v17  ;;  %v3557_v45 = vld [vmem:[#allocation2 + $0x78] sm:$0x80]  ;;  %4873 = vst [vmem:[#allocation28_spill] sm:$0xff] %v3561_v55  ;;  %v3582_v17 = vrot.slane %v3274_v2, %v3328_v4 }
 0x2ed   :  { %v805_v0 = vadd.f32 1e-05, %v785_v37  ;;  %v3533_v37 = vld [vmem:[#allocation2 + $0x68] sm:$0xc0]  ;;  %v786_v33 = vmax.f32 %v782_v6, 0.0  ;;  %4875 = vst [vmem:[#allocation30_spill] sm:$0xff] %v3578_v5  ;;  %v3597_v3 = vrot.slane %v3248_v22, %v3338_v12  ;;  %v3612_v32 = vrot.slane %v3243_v16, %v3223_v26 }
 0x2ee   :  { %v807_v1 = vadd.f32 1e-05, %v787_v62  ;;  %v3535_v62 = vld [vmem:[#allocation2 + $0x70] sm:$0xc0]  ;;  %4871 = vst [vmem:[#allocation26_spill] sm:$0xff] %v3547_v60  ;;  %4876 = vst [vmem:[#allocation31_spill] sm:$0xff] %v3582_v17  ;;  %v3616_v38 = vrot.slane %v3248_v22, %v3223_v26  ;;  %v3620_v61 = vrot.slane %v3264_v56, %v3223_v26  ;;  %v3628_v34 = vrot.slane %v3243_v16, %v3341_v13 }
 0x2ef   :  { %2882 = vrsqrt.f32 %v805_v0  ;;  %v3555_v6 = vld [vmem:[#allocation2 + $0x68] sm:$0x80]  ;;  %v806_v21 = vadd.f32 1e-05, %v786_v33  ;;  %v788_v0 = vmax.f32 %v784_v31, 0.0  ;;  %v3574_v31 = vrot.slane %v3248_v22, %v3328_v4  ;;  %4877 = vst [vmem:[#allocation32_spill] sm:$0xff] %v3612_v32 }
 0x2f0   :  { %2884 = vrsqrt.f32 %v807_v1  ;;  %v3586_v1 = vld [vmem:[#allocation2 + $0x18] sm:$0x80]  ;;  %v3601_v4 = vrot.slane %v3264_v56, %v3338_v12  ;;  %4878 = vst [vmem:[#allocation33_spill] sm:$0xff] %v3616_v38  ;;  %4879 = vst [vmem:[#allocation34_spill] sm:$0xff] %v3620_v61  ;;  %v3632_v36 = vrot.slane %v3248_v22, %v3341_v13  ;;  %v3640_v61 = vrot.slane %v3274_v2, %v3341_v13 }
 0x2f1   :  { %v808_v33 = vadd.f32 1e-05, %v788_v0  ;;  %4874 = vst [vmem:[#allocation29_spill] sm:$0xff] %v3574_v31  ;;  %2886 = vrsqrt.f32 %v806_v21  ;;  %v3605_v21 = vrot.slane %v3274_v2, %v3338_v12  ;;  %v3624_v12 = vrot.slane %v3274_v2, %v3223_v26  ;;  %4881 = vst [vmem:[#allocation36_spill] sm:$0xff] %v3628_v34 }
 0x2f2   :  { %4882 = vst [vmem:[#allocation37_spill] sm:$0xff] %v3632_v36  ;;  %v3636_v0 = vrot.slane %v3264_v56, %v3341_v13  ;;  %4884 = vst [vmem:[#allocation39_spill] sm:$0xff] %v3640_v61  ;;  %v4885_v26 = vsub.f32 %v3346_v18, %v3480_v8  ;;  %v4886_v16 = vsub.f32 %v3378_v41, %v3480_v8 }
 0x2f3   :  { %2888 = vrsqrt.f32 %v808_v33  ;;  %4880 = vst [vmem:[#allocation35_spill] sm:$0xff] %v3624_v12  ;;  %v4887_v22 = vsub.f32 %v3430_v9, %v3480_v8  ;;  %v4888_v56 = vsub.f32 %v3460_v19, %v3480_v8  ;;  %v4889_v2 = vsub.f32 %v3348_v20, %v3482_v52 }
 0x2f4   :  { %4883 = vst [vmem:[#allocation38_spill] sm:$0xff] %v3636_v0  ;;  %v4890_v18 = vsub.f32 %v3380_v42, %v3482_v52  ;;  %v4891_v41 = vsub.f32 %v3432_v11, %v3482_v52  ;;  %v4892_v9 = vsub.f32 %v3462_v44, %v3482_v52 }
 0x2f9   :  { %v2883_v33 = vpop.eup %2882 }
 0x2fa   :  { %v2885_v38 = vpop.eup %2884  ;;  %v813_v12 = vmul.f32 %v2883_v33, %v4885_v26  ;;  %v817_v34 = vmul.f32 %v2883_v33, %v4886_v16  ;;  %v821_v36 = vmul.f32 %v2883_v33, %v4887_v22  ;;  %v825_v0 = vmul.f32 %v2883_v33, %v4888_v56 }
 0x2fb   :  { %v815_v13 = vmul.f32 %v2885_v38, %v4889_v2  ;;  %v819_v26 = vmul.f32 %v2885_v38, %v4890_v18  ;;  %v823_v16 = vmul.f32 %v2885_v38, %v4891_v41  ;;  %v827_v22 = vmul.f32 %v2885_v38, %v4892_v9 }
 0x2fc   :  { %v866_v61 = vmul.f32 %v3351_v23, %v813_v12  ;;  %v870_v19 = vmul.f32 %v3351_v23, %v817_v34  ;;  %v874_v8 = vmul.f32 %v3351_v23, %v821_v36  ;;  %v878_v20 = vmul.f32 %v3351_v23, %v825_v0  ;;  %v2887_v34 = vpop.eup %2886 }
 0x2fd   :  { %v868_v33 = vmul.f32 %v3357_v48, %v815_v13  ;;  %v872_v42 = vmul.f32 %v3357_v48, %v819_v26  ;;  %v876_v56 = vmul.f32 %v3357_v48, %v823_v16  ;;  %v880_v11 = vmul.f32 %v3357_v48, %v827_v22 }
 0x2fe   :  { %v918_v2 = vadd.f32 %v3354_v24, %v866_v61  ;;  %v922_v44 = vadd.f32 %v3354_v24, %v870_v19  ;;  %v926_v52 = vadd.f32 %v3354_v24, %v874_v8  ;;  %v930_v38 = vadd.f32 %v3354_v24, %v878_v20  ;;  %v2889_v61 = vpop.eup %2888 }
 0x2ff   :  { %v920_v36 = vadd.f32 %v3360_v25, %v868_v33  ;;  %v924_v23 = vadd.f32 %v3360_v25, %v872_v42  ;;  %v928_v0 = vadd.f32 %v3360_v25, %v876_v56  ;;  %v932_v12 = vadd.f32 %v3360_v25, %v880_v11 }
 0x300   :  { %v934_v13 = vmax.f32 %v918_v2, 0.0  ;;  %v938_v18 = vmax.f32 %v922_v44, 0.0  ;;  %v942_v48 = vmax.f32 %v926_v52, 0.0  ;;  %v946_v26 = vmax.f32 %v930_v38, 0.0 }
 0x301   :  { %v936_v41 = vmax.f32 %v920_v36, 0.0  ;;  %v940_v16 = vmax.f32 %v924_v23, 0.0  ;;  %v944_v9 = vmax.f32 %v928_v0, 0.0  ;;  %v948_v22 = vmax.f32 %v932_v12, 0.0 }
 0x302   :  { %v3682_v19 = vpack.c.bf16 %v938_v18, %v934_v13  ;;  %v3684_v24 = vpack.c.bf16 %v946_v26, %v942_v48  ;;  %v4895_v8 = vsub.f32 %v3362_v27, %v3506_v47  ;;  %v4896_v25 = vsub.f32 %v3390_v46, %v3506_v47  ;;  %v4905_v18 = vld [vmem:[#allocation18_spill] sm:$0xff] }
 0x303   :  { %v3692_v42 = vpack.c.bf16 %v940_v16, %v936_v41  ;;  %v3694_v56 = vpack.c.bf16 %v948_v22, %v944_v9  ;;  %v4899_v11 = vsub.f32 %v3450_v40, %v3506_v47  ;;  %v4900_v44 = vsub.f32 %v3467_v14, %v3506_v47 }
 0x304   :  { %4893 = vst [vmem:[#allocation40_spill] sm:$0xff] %v3682_v19  ;;  %4894 = vst [vmem:[#allocation41_spill] sm:$0xff] %v3684_v24  ;;  %v814_v20 = vmul.f32 %v2887_v34, %v4895_v8  ;;  %v818_v33 = vmul.f32 %v2887_v34, %v4896_v25  ;;  %v4901_v38 = vsub.f32 %v3364_v28, %v3508_v63 }
 0x305   :  { %4897 = vst [vmem:[#allocation42_spill] sm:$0xff] %v3692_v42  ;;  %4898 = vst [vmem:[#allocation43_spill] sm:$0xff] %v3694_v56  ;;  %v822_v2 = vmul.f32 %v2887_v34, %v4899_v11  ;;  %v826_v52 = vmul.f32 %v2887_v34, %v4900_v44  ;;  %v4902_v40 = vsub.f32 %v3392_v15, %v3508_v63  ;;  %v1733_v44 = vunpack.c.h.bf16 %v3682_v19 }
 0x306   :  { %974 = vst [vmem:[#allocation2 + $0x20] sm:$0xff] %v3682_v19  ;;  %978 = vst [vmem:[#allocation2 + $0x80] sm:$0xff] %v3684_v24  ;;  %v867_v27 = vmul.f32 %v3403_v54, %v814_v20  ;;  %v871_v46 = vmul.f32 %v3403_v54, %v818_v33  ;;  %v816_v36 = vmul.f32 %v2889_v61, %v4901_v38  ;;  %v1735_v38 = vunpack.c.h.bf16 %v3692_v42 }
 0x307   :  { %v820_v23 = vmul.f32 %v2889_v61, %v4902_v40  ;;  %976 = vst [vmem:[#allocation2 + $0x30] sm:$0xff] %v3692_v42  ;;  %980 = vst [vmem:[#allocation2 + $0x90] sm:$0xff] %v3694_v56  ;;  %v875_v14 = vmul.f32 %v3403_v54, %v822_v2  ;;  %v879_v47 = vmul.f32 %v3403_v54, %v826_v52 }
 0x308   :  { %v4903_v34 = vsub.f32 %v3452_v43, %v3508_v63  ;;  %v4904_v28 = vsub.f32 %v3469_v58, %v3508_v63  ;;  %v919_v13 = vadd.f32 %v3406_v57, %v867_v27  ;;  %v923_v15 = vadd.f32 %v3406_v57, %v871_v46  ;;  %v4906_v58 = vld [vmem:[#allocation19_spill] sm:$0xff] }
 0x309   :  { %v869_v48 = vmul.f32 %v4905_v18, %v816_v36  ;;  %v873_v26 = vmul.f32 %v4905_v18, %v820_v23  ;;  %v927_v41 = vadd.f32 %v3406_v57, %v875_v14  ;;  %v931_v54 = vadd.f32 %v3406_v57, %v879_v47  ;;  %v4910_v23 = vld [vmem:[#allocation20_spill] sm:$0xff] }
 0x30a   :  { %v824_v0 = vmul.f32 %v2889_v61, %v4903_v34  ;;  %v828_v12 = vmul.f32 %v2889_v61, %v4904_v28  ;;  %v935_v9 = vmax.f32 %v919_v13, 0.0  ;;  %v939_v22 = vmax.f32 %v923_v15, 0.0 }
 0x30b   :  { %v921_v63 = vadd.f32 %v4906_v58, %v869_v48  ;;  %v925_v61 = vadd.f32 %v4906_v58, %v873_v26  ;;  %v943_v8 = vmax.f32 %v927_v41, 0.0  ;;  %v947_v20 = vmax.f32 %v931_v54, 0.0 }
 0x30c   :  { %v877_v16 = vmul.f32 %v4905_v18, %v824_v0  ;;  %v881_v43 = vmul.f32 %v4905_v18, %v828_v12  ;;  %v3734_v11 = vpack.c.bf16 %v939_v22, %v935_v9  ;;  %v1765_v14 = vmul.f32 %v4910_v23, %v1733_v44  ;;  %v4912_v0 = vld [vmem:[#allocation22_spill] sm:$0xff]  ;;  %v4913_v18 = vld [vmem:[#allocation21_spill] sm:$0xff]  ;;  %v4914_v22 = vld [vmem:[#allocation23_spill] sm:$0xff] }
 0x30d   :  { %v937_v2 = vmax.f32 %v921_v63, 0.0  ;;  %v941_v57 = vmax.f32 %v925_v61, 0.0  ;;  %v3737_v52 = vpack.c.bf16 %v947_v20, %v943_v8  ;;  %v1729_v47 = vunpack.c.l.bf16 %v3682_v19 }
 0x30e   :  { %v929_v25 = vadd.f32 %v4906_v58, %v877_v16  ;;  %v933_v33 = vadd.f32 %v4906_v58, %v881_v43  ;;  %4907 = vst [vmem:[#allocation18_spill] sm:$0xff] %v3734_v11  ;;  %975 = vst [vmem:[#allocation2 + $0x28] sm:$0xff] %v3734_v11  ;;  %v1734_v40 = vunpack.c.h.bf16 %v3734_v11  ;;  %v1767_v28 = vmul.f32 %v4912_v0, %v1735_v38 }
 0x30f   :  { %4908 = vst [vmem:[#allocation19_spill] sm:$0xff] %v3737_v52  ;;  %v3741_v36 = vpack.c.bf16 %v941_v57, %v937_v2  ;;  %979 = vst [vmem:[#allocation2 + $0x88] sm:$0xff] %v3737_v52  ;;  %v1730_v12 = vunpack.c.l.bf16 %v3734_v11  ;;  %v1731_v13 = vunpack.c.l.bf16 %v3692_v42  ;;  %v1761_v41 = vmul.f32 %v4910_v23, %v1729_v47  ;;  %v4915_v11 = vld [vmem:[#allocation8_spill] sm:$0xff] }
 0x310   :  { %v945_v27 = vmax.f32 %v929_v25, 0.0  ;;  %v949_v46 = vmax.f32 %v933_v33, 0.0  ;;  %v1766_v48 = vmul.f32 %v4913_v18, %v1734_v40  ;;  %v1741_v33 = vunpack.c.h.bf16 %v3684_v24 }
 0x311   :  { %4909 = vst [vmem:[#allocation44_spill] sm:$0xff] %v3741_v36  ;;  %977 = vst [vmem:[#allocation2 + $0x38] sm:$0xff] %v3741_v36  ;;  %v1736_v15 = vunpack.c.h.bf16 %v3741_v36  ;;  %v1732_v26 = vunpack.c.l.bf16 %v3741_v36  ;;  %v1762_v54 = vmul.f32 %v4913_v18, %v1730_v12  ;;  %v1763_v16 = vmul.f32 %v4912_v0, %v1731_v13 }
 0x312   :  { %v3747_v34 = vpack.c.bf16 %v949_v46, %v945_v27  ;;  %v1782_v63 = vadd.f32 %v1766_v48, %v1765_v14  ;;  %v1742_v2 = vunpack.c.h.bf16 %v3737_v52  ;;  %v1743_v27 = vunpack.c.h.bf16 %v3694_v56 }
 0x313   :  { %v1768_v58 = vmul.f32 %v4914_v22, %v1736_v15  ;;  %v1764_v61 = vmul.f32 %v4914_v22, %v1732_v26  ;;  %v1777_v20 = vadd.f32 %v1762_v54, %v1761_v41  ;;  %v1737_v9 = vunpack.c.l.bf16 %v3684_v24 }
 0x314   :  { %4911 = vst [vmem:[#allocation20_spill] sm:$0xff] %v3747_v34  ;;  %981 = vst [vmem:[#allocation2 + $0x98] sm:$0xff] %v3747_v34  ;;  %v1783_v57 = vadd.f32 %v1782_v63, %v1767_v28  ;;  %v1744_v46 = vunpack.c.h.bf16 %v3747_v34  ;;  %v1773_v14 = vmul.f32 %v4910_v23, %v1741_v33  ;;  %v1774_v48 = vmul.f32 %v4913_v18, %v1742_v2 }
 0x315   :  { %v1778_v43 = vadd.f32 %v1777_v20, %v1763_v16  ;;  %v1738_v41 = vunpack.c.l.bf16 %v3737_v52  ;;  %v1775_v25 = vmul.f32 %v4912_v0, %v1743_v27  ;;  %v1739_v28 = vunpack.c.l.bf16 %v3694_v56  ;;  %v4917_v56 = vld [vmem:[#allocation10_spill] sm:$0xff] }
 0x316   :  { %v1784_v54 = vadd.f32 %v1783_v57, %v1768_v58  ;;  %v1776_v8 = vmul.f32 %v4914_v22, %v1744_v46  ;;  %v1792_v36 = vadd.f32 %v1774_v48, %v1773_v14  ;;  %v1740_v42 = vunpack.c.l.bf16 %v3747_v34  ;;  %v4916_v58 = vld [vmem:[#allocation9_spill] sm:$0xff] }
 0x317   :  { %v1779_v63 = vadd.f32 %v1778_v43, %v1764_v61  ;;  %v1769_v24 = vmul.f32 %v4910_v23, %v1737_v9  ;;  %v1770_v16 = vmul.f32 %v4913_v18, %v1738_v41  ;;  %v1771_v20 = vmul.f32 %v4912_v0, %v1739_v28  ;;  %v4918_v61 = vld [vmem:[#allocation11_spill] sm:$0xff] }
 0x318   :  { %1785 = vadd.xlane.f32.xlu1 %v1784_v54  ;;  %v1879_v52 = vmul.f32 %v4915_v11, %v1733_v44  ;;  %v1880_v57 = vmul.f32 %v4916_v58, %v1734_v40  ;;  %v1793_v19 = vadd.f32 %v1792_v36, %v1775_v25  ;;  %v1772_v32 = vmul.f32 %v4914_v22, %v1740_v42 }
 0x319   :  { %1780 = vadd.xlane.f32.xlu0 %v1779_v63  ;;  %v1881_v43 = vmul.f32 %v4917_v56, %v1735_v38  ;;  %v1882_v14 = vmul.f32 %v4918_v61, %v1736_v15  ;;  %v1787_v48 = vadd.f32 %v1770_v16, %v1769_v24  ;;  %v1875_v23 = vmul.f32 %v4915_v11, %v1729_v47 }
 0x31a   :  { %v1909_v34 = vadd.f32 %v1880_v57, %v1879_v52  ;;  %v1876_v18 = vmul.f32 %v4916_v58, %v1730_v12  ;;  %v1794_v54 = vadd.f32 %v1793_v19, %v1776_v8  ;;  %v1877_v0 = vmul.f32 %v4917_v56, %v1731_v13  ;;  %v3796_v12 = vld [vmem:[#allocation2 + $0x20] sm:$0xfe]  ;;  %v3798_v13 = vld [vmem:[#allocation2 + $0x28] sm:$0xfe]  ;;  %v3804_v57 = vld [vmem:[#allocation2 + $0x30] sm:$0xfe] }
 0x31b   :  { %v1878_v44 = vmul.f32 %v4918_v61, %v1732_v26  ;;  %v1891_v40 = vmul.f32 %v4915_v11, %v1741_v33  ;;  %v1788_v36 = vadd.f32 %v1787_v48, %v1771_v20  ;;  %v1900_v22 = vsel %vm1899_vm5, %v1875_v23, 0.0  ;;  %v3808_v48 = vld [vmem:[#allocation2 + $0x38] sm:$0xfe]  ;;  %v4919_v23 = vld [vmem:[#allocation12_spill] sm:$0xff] }
 0x31c   :  { %v1910_v25 = vadd.f32 %v1909_v34, %v1881_v43  ;;  %v1901_v38 = vsel %vm1899_vm5, %v1876_v18, 0.0  ;;  %1795 = vadd.xlane.f32.xlu1 %v1794_v54  ;;  %v1903_v52 = vsel %vm1899_vm5, %v1877_v0, 0.0  ;;  %v1892_v19 = vmul.f32 %v4916_v58, %v1742_v2  ;;  %v4920_v54 = vld [vmem:[#allocation13_spill] sm:$0xff] }
 0x31d   :  { %v1902_v24 = vadd.f32 %v1901_v38, %v1900_v22  ;;  %v1905_v47 = vsel %vm1899_vm5, %v1878_v44, 0.0  ;;  %v1789_v15 = vadd.f32 %v1788_v36, %v1772_v32  ;;  %v1893_v34 = vmul.f32 %v4917_v56, %v1743_v27  ;;  %v3820_v44 = vld [vmem:[#allocation2 + $0x80] sm:$0xfe] }
 0x31e   :  { %v1911_v26 = vadd.f32 %v1910_v25, %v1882_v14  ;;  %v1894_v8 = vmul.f32 %v4918_v61, %v1744_v46  ;;  %v1933_v63 = vadd.f32 %v1892_v19, %v1891_v40  ;;  %v1887_v16 = vmul.f32 %v4915_v11, %v1737_v9  ;;  %v4921_v36 = vld [vmem:[#allocation14_spill] sm:$0xff] }
 0x31f   :  { %v1904_v33 = vadd.f32 %v1903_v52, %v1902_v24  ;;  %v1888_v20 = vmul.f32 %v4916_v58, %v1738_v41  ;;  %1790 = vadd.xlane.f32.xlu0 %v1789_v15  ;;  %v1889_v2 = vmul.f32 %v4917_v56, %v1739_v28  ;;  %v1890_v43 = vmul.f32 %v4918_v61, %v1740_v42  ;;  %v3825_v24 = vld [vmem:[#allocation2 + $0x88] sm:$0xfe] }
 0x320   :  { %v1988_v32 = vunpack.c.h.bf16 %v3796_v12  ;;  %v1989_v27 = vunpack.c.h.bf16 %v3798_v13  ;;  %1912 = vadd.xlane.f32.xlu1 %v1911_v26  ;;  %v1934_v14 = vadd.f32 %v1933_v63, %v1893_v34  ;;  %v1924_v11 = vsel %vm1899_vm5, %v1887_v16, 0.0  ;;  %v4922_v52 = vld [vmem:[#allocation15_spill] sm:$0xff]  ;;  %v3830_v34 = vld [vmem:[#allocation2 + $0x90] sm:$0xfe] }
 0x321   :  { %v1906_v46 = vadd.f32 %v1905_v47, %v1904_v33  ;;  %v1925_v9 = vsel %vm1899_vm5, %v1888_v20, 0.0  ;;  %v1927_v58 = vsel %vm1899_vm5, %v1889_v2, 0.0  ;;  %v1929_v56 = vsel %vm1899_vm5, %v1890_v43, 0.0 }
 0x322   :  { %v1926_v41 = vadd.f32 %v1925_v9, %v1924_v11  ;;  %v1990_v42 = vunpack.c.h.bf16 %v3804_v57  ;;  %v1935_v28 = vadd.f32 %v1934_v14, %v1894_v8  ;;  %v1991_v61 = vunpack.c.h.bf16 %v3808_v48  ;;  %v3832_v8 = vld [vmem:[#allocation2 + $0x98] sm:$0xfe] }
 0x323   :  { %v2020_v18 = vmul.f32 %v4919_v23, %v1988_v32  ;;  %v2021_v0 = vmul.f32 %v4920_v54, %v1989_v27  ;;  %1907 = vadd.xlane.f32.xlu0 %v1906_v46  ;;  %v1984_v22 = vunpack.c.l.bf16 %v3796_v12  ;;  %v1985_v38 = vunpack.c.l.bf16 %v3798_v13 }
 0x324   :  { %v1928_v40 = vadd.f32 %v1927_v58, %v1926_v41  ;;  %v2022_v25 = vmul.f32 %v4921_v36, %v1990_v42  ;;  %1936 = vadd.xlane.f32.xlu1 %v1935_v28  ;;  %v2023_v47 = vmul.f32 %v4922_v52, %v1991_v61  ;;  %v1986_v15 = vunpack.c.l.bf16 %v3804_v57 }
 0x325   :  { %v2050_v19 = vadd.f32 %v2021_v0, %v2020_v18  ;;  %v1987_v26 = vunpack.c.l.bf16 %v3808_v48  ;;  %v2016_v63 = vmul.f32 %v4919_v23, %v1984_v22  ;;  %v2017_v12 = vmul.f32 %v4920_v54, %v1985_v38 }
 0x326   :  { %v1930_v33 = vadd.f32 %v1929_v56, %v1928_v40  ;;  %v1996_v13 = vunpack.c.h.bf16 %v3820_v44  ;;  %v2018_v20 = vmul.f32 %v4921_v36, %v1986_v15  ;;  %v1997_v57 = vunpack.c.h.bf16 %v3825_v24 }
 0x327   :  { %v2051_v16 = vadd.f32 %v2050_v19, %v2022_v25  ;;  %v2019_v2 = vmul.f32 %v4922_v52, %v1987_v26  ;;  %v2041_v43 = vsel %vm2040_vm6, %v2016_v63, 0.0  ;;  %v2042_v48 = vsel %vm2040_vm6, %v2017_v12, 0.0  ;;  %v4923_v12 = vld [vmem:[#allocation24_spill] sm:$0xff] }
 0x328   :  { %1931 = vadd.xlane.f32.xlu0 %v1930_v33  ;;  %v1998_v46 = vunpack.c.h.bf16 %v3830_v34  ;;  %v1999_v14 = vunpack.c.h.bf16 %v3832_v8  ;;  %v2043_v9 = vadd.f32 %v2042_v48, %v2041_v43  ;;  %v2044_v41 = vsel %vm2040_vm6, %v2018_v20, 0.0 }
 0x329   :  { %v2052_v11 = vadd.f32 %v2051_v16, %v2023_v47  ;;  %v2046_v58 = vsel %vm2040_vm6, %v2019_v2, 0.0  ;;  %v2032_v56 = vmul.f32 %v4919_v23, %v1996_v13  ;;  %v2033_v28 = vmul.f32 %v4920_v54, %v1997_v57 }
 0x32a   :  { %v2034_v18 = vmul.f32 %v4921_v36, %v1998_v46  ;;  %v2035_v0 = vmul.f32 %v4922_v52, %v1999_v14  ;;  %v2045_v40 = vadd.f32 %v2044_v41, %v2043_v9  ;;  %v1992_v25 = vunpack.c.l.bf16 %v3820_v44 }
 0x32b   :  { %2053 = vadd.xlane.f32.xlu1 %v2052_v11  ;;  %v1993_v19 = vunpack.c.l.bf16 %v3825_v24  ;;  %v1994_v47 = vunpack.c.l.bf16 %v3830_v34  ;;  %v2074_v33 = vadd.f32 %v2033_v28, %v2032_v56  ;;  %v1995_v63 = vunpack.c.l.bf16 %v3832_v8  ;;  %v4924_v24 = vld [vmem:[#allocation25_spill] sm:$0xff] }
 0x32c   :  { %v2152_v16 = vmul.f32 %v4923_v12, %v1988_v32  ;;  %v2153_v20 = vmul.f32 %v3547_v60, %v1989_v27  ;;  %v2047_v2 = vadd.f32 %v2046_v58, %v2045_v40  ;;  %v2028_v43 = vmul.f32 %v4919_v23, %v1992_v25 }
 0x32d   :  { %v2029_v48 = vmul.f32 %v4920_v54, %v1993_v19  ;;  %v2030_v11 = vmul.f32 %v4921_v36, %v1994_v47  ;;  %v2075_v9 = vadd.f32 %v2074_v33, %v2034_v18  ;;  %v2031_v44 = vmul.f32 %v4922_v52, %v1995_v63 }
 0x32e   :  { %v2154_v41 = vmul.f32 %v4924_v24, %v1990_v42  ;;  %v2155_v34 = vmul.f32 %v3551_v50, %v1991_v61  ;;  %2048 = vadd.xlane.f32.xlu0 %v2047_v2  ;;  %v2065_v8 = vsel %vm2040_vm6, %v2028_v43, 0.0  ;;  %v2182_v58 = vadd.f32 %v2153_v20, %v2152_v16  ;;  %v1181_v16 = vld [vmem:[#allocation2 + $0x20] sm:$0x7f]  ;;  %v1182_v2 = vld [vmem:[#allocation2 + $0x28] sm:$0x7f] }
 0x32f   :  { %v2066_v32 = vsel %vm2040_vm6, %v2029_v48, 0.0  ;;  %v2068_v27 = vsel %vm2040_vm6, %v2030_v11, 0.0  ;;  %v2076_v23 = vadd.f32 %v2075_v9, %v2035_v0  ;;  %v2070_v54 = vsel %vm2040_vm6, %v2031_v44, 0.0 }
 0x330   :  { %v2067_v56 = vadd.f32 %v2066_v32, %v2065_v8  ;;  %v2148_v36 = vmul.f32 %v4923_v12, %v1984_v22  ;;  %v2183_v28 = vadd.f32 %v2182_v58, %v2154_v41  ;;  %v2149_v52 = vmul.f32 %v3547_v60, %v1985_v38  ;;  %v1183_v41 = vld [vmem:[#allocation2 + $0x30] sm:$0x7f]  ;;  %v1184_v32 = vld [vmem:[#allocation2 + $0x38] sm:$0x7f] }
 0x331   :  { %v2150_v42 = vmul.f32 %v4924_v24, %v1986_v15  ;;  %v2151_v61 = vmul.f32 %v3551_v50, %v1987_v26  ;;  %2077 = vadd.xlane.f32.xlu1 %v2076_v23  ;;  %v2164_v33 = vmul.f32 %v4923_v12, %v1996_v13  ;;  %v2165_v0 = vmul.f32 %v3547_v60, %v1997_v57 }
 0x332   :  { %v2069_v18 = vadd.f32 %v2068_v27, %v2067_v56  ;;  %v2173_v40 = vsel %vm2172_vm7, %v2148_v36, 0.0  ;;  %v2184_v20 = vadd.f32 %v2183_v28, %v2155_v34  ;;  %v2174_v22 = vsel %vm2172_vm7, %v2149_v52, 0.0 }
 0x333   :  { %v2176_v38 = vsel %vm2172_vm7, %v2150_v42, 0.0  ;;  %v2178_v15 = vsel %vm2172_vm7, %v2151_v61, 0.0  ;;  %v2175_v43 = vadd.f32 %v2174_v22, %v2173_v40  ;;  %v2166_v48 = vmul.f32 %v4924_v24, %v1998_v46 }
 0x334   :  { %v2071_v26 = vadd.f32 %v2070_v54, %v2069_v18  ;;  %v2167_v11 = vmul.f32 %v3551_v50, %v1999_v14  ;;  %v2205_v9 = vadd.f32 %v2165_v0, %v2164_v33  ;;  %v2160_v13 = vmul.f32 %v4923_v12, %v1992_v25  ;;  %v4925_v18 = vld [vmem:[#allocation16_spill] sm:$0xff] }
 0x335   :  { %v2161_v57 = vmul.f32 %v3547_v60, %v1993_v19  ;;  %v2162_v44 = vmul.f32 %v4924_v24, %v1994_v47  ;;  %2185 = vadd.xlane.f32.xlu1 %v2184_v20  ;;  %v2177_v34 = vadd.f32 %v2176_v38, %v2175_v43  ;;  %v2163_v8 = vmul.f32 %v3551_v50, %v1995_v63  ;;  %v4952_v50 = vld [vmem:[#allocation33_spill] sm:$0xff]  ;;  %v4958_v24 = vld [vmem:[#allocation18_spill] sm:$0xff] }
 0x336   :  { %2072 = vadd.xlane.f32.xlu0 %v2071_v26  ;;  %v3882_v27 = vrot.slane %v1181_v16, 4  ;;  %v3884_v58 = vrot.slane %v1182_v2, 4  ;;  %v2206_v46 = vadd.f32 %v2205_v9, %v2166_v48  ;;  %v2196_v14 = vsel %vm2172_vm7, %v2160_v13, 0.0  ;;  %v4959_v60 = vld [vmem:[#allocation42_spill] sm:$0xff] }
 0x337   :  { %v2197_v25 = vsel %vm2172_vm7, %v2161_v57, 0.0  ;;  %v2199_v19 = vsel %vm2172_vm7, %v2162_v44, 0.0  ;;  %v2179_v23 = vadd.f32 %v2178_v15, %v2177_v34  ;;  %v2201_v56 = vsel %vm2172_vm7, %v2163_v8, 0.0  ;;  %v4928_v15 = vld [vmem:[#allocation17_spill] sm:$0xff]  ;;  %v1185_v57 = vld [vmem:[#allocation2 + $0x80] sm:$0x7f] }
 0x338   :  { %v2198_v47 = vadd.f32 %v2197_v25, %v2196_v14  ;;  %v3890_v54 = vrot.slane %v1183_v41, 4  ;;  %v2207_v36 = vadd.f32 %v2206_v46, %v2167_v11  ;;  %v3892_v63 = vrot.slane %v1184_v32, 4  ;;  %v1186_v32 = vld [vmem:[#allocation2 + $0x88] sm:$0x7f] }
 0x339   :  { %v1237_v28 = vunpack.c.l.bf16 %v3882_v27  ;;  %v1238_v52 = vunpack.c.l.bf16 %v3884_v58  ;;  %v4926_v40 = vrot.slane %v4925_v18, 4  ;;  %v4927_v0 = vrot.slane %v3496_v30, 4 }
 0x33a   :  { %2180 = vadd.xlane.f32.xlu0 %v2179_v23  ;;  %v2200_v42 = vadd.f32 %v2199_v19, %v2198_v47  ;;  %v1239_v61 = vunpack.c.l.bf16 %v3890_v54  ;;  %2208 = vadd.xlane.f32.xlu1 %v2207_v36  ;;  %v1240_v20 = vunpack.c.l.bf16 %v3892_v63  ;;  %v4929_v2 = vrot.slane %v4928_v15, 4  ;;  %v1187_v23 = vld [vmem:[#allocation2 + $0x90] sm:$0x7f]  ;;  %v1188_v47 = vld [vmem:[#allocation2 + $0x98] sm:$0x7f] }
 0x33b   :  { %v3901_v33 = vsel %vm1022_vm8, %v4926_v40, %v3882_v27  ;;  %v3907_v16 = vsel %vm1022_vm8, %v4927_v0, %v3884_v58  ;;  %v1277_v22 = vmul.f32 %v3561_v55, %v1237_v28  ;;  %v1278_v38 = vmul.f32 %v3574_v31, %v1238_v52 }
 0x33c   :  { %v3916_v26 = vsel %vm1022_vm8, %v4929_v2, %v3890_v54  ;;  %v2202_v43 = vadd.f32 %v2201_v56, %v2200_v42  ;;  %v1279_v48 = vmul.f32 %v3578_v5, %v1239_v61  ;;  %v4930_v11 = vrot.slane %v3521_v59, 4 }
 0x33d   :  { %v1233_v13 = vunpack.c.h.bf16 %v3901_v33  ;;  %v1280_v44 = vmul.f32 %v3582_v17, %v1240_v20  ;;  %v1309_v41 = vsel %vm1308_vm9, %v1277_v22, 0.0  ;;  %v1310_v34 = vsel %vm1308_vm9, %v1278_v38, 0.0 }
 0x33e   :  { %v3923_v9 = vsel %vm1022_vm8, %v4930_v11, %v3892_v63  ;;  %v1234_v8 = vunpack.c.h.bf16 %v3907_v16  ;;  %2203 = vadd.xlane.f32.xlu0 %v2202_v43  ;;  %v1311_v46 = vadd.f32 %v1310_v34, %v1309_v41  ;;  %v1312_v14 = vsel %vm1308_vm9, %v1279_v48, 0.0 }
 0x33f   :  { %v1235_v25 = vunpack.c.h.bf16 %v3916_v26  ;;  %v1236_v19 = vunpack.c.h.bf16 %v3923_v9  ;;  %v1314_v56 = vsel %vm1308_vm9, %v1280_v44, 0.0  ;;  %v1273_v36 = vmul.f32 %v3561_v55, %v1233_v13 }
 0x340   :  { %v1274_v42 = vmul.f32 %v3574_v31, %v1234_v8  ;;  %v3936_v40 = vrot.slane %v1185_v57, 4  ;;  %v1313_v0 = vadd.f32 %v1312_v14, %v1311_v46  ;;  %v3940_v2 = vrot.slane %v1186_v32, 4 }
 0x341   :  { %v1275_v22 = vmul.f32 %v3578_v5, %v1235_v25  ;;  %v1276_v38 = vmul.f32 %v3582_v17, %v1236_v19  ;;  %v4931_v48 = vrot.slane %v3525_v35, 4  ;;  %v3948_v44 = vrot.slane %v1187_v23, 4 }
 0x342   :  { %v1303_v43 = vadd.f32 %v1274_v42, %v1273_v36  ;;  %v3950_v13 = vrot.slane %v1188_v47, 4  ;;  %v1315_v57 = vadd.f32 %v1314_v56, %v1313_v0  ;;  %v4933_v41 = vrot.slane %v3533_v37, 4 }
 0x343   :  { %v3946_v11 = vsel %vm1022_vm8, %v4931_v48, %v3936_v40  ;;  %v1450_v32 = vmul.f32 %v3593_v53, %v1237_v28  ;;  %v4935_v14 = vrot.slane %v3535_v62, 4  ;;  %v4937_v19 = vrot.slane %v3537_v10, 4 }
 0x344   :  { %4932 = vst [vmem:[#allocation22_spill] sm:$0xff] %v3946_v11  ;;  %v3956_v34 = vsel %vm1022_vm8, %v4933_v41, %v3940_v2  ;;  %v1245_v8 = vunpack.c.h.bf16 %v3946_v11  ;;  %v1304_v46 = vadd.f32 %v1303_v43, %v1275_v22  ;;  %1316 = vadd.xlane.f32.xlu1 %v1315_v57  ;;  %v1451_v42 = vmul.f32 %v3597_v3, %v1238_v52  ;;  %v4953_v11 = vld [vmem:[#allocation34_spill] sm:$0xff] }
 0x345   :  { %4934 = vst [vmem:[#allocation21_spill] sm:$0xff] %v3956_v34  ;;  %v3964_v25 = vsel %vm1022_vm8, %v4935_v14, %v3948_v44  ;;  %v3970_v23 = vsel %vm1022_vm8, %v4937_v19, %v3950_v13  ;;  %v1246_v47 = vunpack.c.h.bf16 %v3956_v34  ;;  %v1452_v43 = vmul.f32 %v3601_v4, %v1239_v61 }
 0x346   :  { %4936 = vst [vmem:[#allocation23_spill] sm:$0xff] %v3964_v25  ;;  %4938 = vst [vmem:[#allocation8_spill] sm:$0xff] %v3970_v23  ;;  %v1247_v56 = vunpack.c.h.bf16 %v3964_v25  ;;  %v1248_v28 = vunpack.c.h.bf16 %v3970_v23  ;;  %v1285_v36 = vmul.f32 %v3561_v55, %v1245_v8  ;;  %v1305_v0 = vadd.f32 %v1304_v46, %v1276_v38 }
 0x347   :  { %v1286_v22 = vmul.f32 %v3574_v31, %v1246_v47  ;;  %v1453_v48 = vmul.f32 %v3605_v21, %v1240_v20  ;;  %v1482_v57 = vsel %vm1481_vm10, %v1450_v32, 0.0  ;;  %v1483_v19 = vsel %vm1481_vm10, %v1451_v42, 0.0 }
 0x348   :  { %v1287_v41 = vmul.f32 %v3578_v5, %v1247_v56  ;;  %v1288_v14 = vmul.f32 %v3582_v17, %v1248_v28  ;;  %1306 = vadd.xlane.f32.xlu0 %v1305_v0  ;;  %v1484_v8 = vadd.f32 %v1483_v19, %v1482_v57  ;;  %v1485_v52 = vsel %vm1481_vm10, %v1452_v43, 0.0 }
 0x349   :  { %v1327_v23 = vadd.f32 %v1286_v22, %v1285_v36  ;;  %v1487_v38 = vsel %vm1481_vm10, %v1453_v48, 0.0  ;;  %v1249_v46 = vunpack.c.l.bf16 %v3936_v40  ;;  %v1250_v61 = vunpack.c.l.bf16 %v3940_v2 }
 0x34a   :  { %v4820_v20 = vunpack.c.l.bf16 %v3948_v44  ;;  %v4819_v47 = vunpack.c.l.bf16 %v3950_v13  ;;  %v1486_v28 = vadd.f32 %v1485_v52, %v1484_v8  ;;  %v4939_v32 = vrot.slane %v3541_v39, 4 }
 0x34b   :  { %v1328_v56 = vadd.f32 %v1327_v23, %v1287_v41  ;;  %v4941_v42 = vrot.slane %v3555_v6, 4  ;;  %v1289_v22 = vmul.f32 %v3561_v55, %v1249_v46  ;;  %v1290_v43 = vmul.f32 %v3574_v31, %v1250_v61 }
 0x34c   :  { %v3994_v36 = vsel %vm1022_vm8, %v4939_v32, %v3936_v40  ;;  %v1291_v23 = vmul.f32 %v3578_v5, %v4820_v20  ;;  %v1292_v48 = vmul.f32 %v3582_v17, %v4819_v47  ;;  %v1488_v41 = vadd.f32 %v1487_v38, %v1486_v28  ;;  %v4053_v20 = vld [vmem:[#allocation2 + $0x28] sm:$0x3f] }
 0x34d   :  { %4940 = vst [vmem:[#allocation9_spill] sm:$0xff] %v3994_v36  ;;  %v4000_v0 = vsel %vm1022_vm8, %v4941_v42, %v3940_v2  ;;  %v1329_v40 = vadd.f32 %v1328_v56, %v1288_v14  ;;  %v4943_v57 = vrot.slane %v3543_v29, 4  ;;  %v4945_v19 = vrot.slane %v3557_v45, 4  ;;  %v4970_v17 = vld [vmem:[#allocation43_spill] sm:$0xff] }
 0x34e   :  { %4942 = vst [vmem:[#allocation10_spill] sm:$0xff] %v4000_v0  ;;  %v1332_v52 = vsel %vm1308_vm9, %v1289_v22, 0.0  ;;  %v1333_v32 = vsel %vm1308_vm9, %v1290_v43, 0.0  ;;  %v1335_v42 = vsel %vm1308_vm9, %v1291_v23, 0.0  ;;  %v1337_v14 = vsel %vm1308_vm9, %v1292_v48, 0.0  ;;  %1489 = vadd.xlane.f32.xlu0 %v1488_v41 }
 0x34f   :  { %v4014_v2 = vsel %vm1022_vm8, %v4943_v57, %v3948_v44  ;;  %v4020_v8 = vsel %vm1022_vm8, %v4945_v19, %v3950_v13  ;;  %1330 = vadd.xlane.f32.xlu1 %v1329_v40  ;;  %v1334_v38 = vadd.f32 %v1333_v32, %v1332_v52  ;;  %v1422_v56 = vunpack.c.h.bf16 %v3994_v36 }
 0x350   :  { %4944 = vst [vmem:[#allocation11_spill] sm:$0xff] %v4014_v2  ;;  %4946 = vst [vmem:[#allocation12_spill] sm:$0xff] %v4020_v8  ;;  %v1423_v28 = vunpack.c.h.bf16 %v4000_v0  ;;  %v1424_v57 = vunpack.c.h.bf16 %v4014_v2  ;;  %v1425_v19 = vunpack.c.h.bf16 %v4020_v8  ;;  %v4947_v22 = vrot.slane %v3564_v7, 4  ;;  %v4068_v2 = vld [vmem:[#allocation2 + $0x38] sm:$0x3f] }
 0x351   :  { %v4948_v23 = vrot.slane %v3584_v51, 4  ;;  %v4949_v40 = vrot.slane %v3570_v49, 4  ;;  %v1336_v52 = vadd.f32 %v1335_v42, %v1334_v38  ;;  %v1458_v32 = vmul.f32 %v3593_v53, %v1422_v56  ;;  %v4064_v38 = vld [vmem:[#allocation2 + $0x30] sm:$0x3f] }
 0x352   :  { %v4034_v43 = vsel %vm1022_vm8, %v4947_v22, %v3882_v27  ;;  %v1459_v47 = vmul.f32 %v3597_v3, %v1423_v28  ;;  %v1460_v27 = vmul.f32 %v3601_v4, %v1424_v57  ;;  %v4051_v22 = vld [vmem:[#allocation2 + $0x20] sm:$0x3f]  ;;  %v4971_v5 = vrot.slane %v4970_v17, 4 }
 0x353   :  { %v4040_v48 = vsel %vm1022_vm8, %v4948_v23, %v3884_v58  ;;  %v4046_v41 = vsel %vm1022_vm8, %v4949_v40, %v3890_v54  ;;  %v1461_v58 = vmul.f32 %v3605_v21, %v1425_v19  ;;  %v4950_v23 = vrot.slane %v3586_v1, 4 }
 0x354   :  { %v1414_v54 = vunpack.c.h.bf16 %v4034_v43  ;;  %v1415_v42 = vunpack.c.h.bf16 %v4040_v48  ;;  %v1338_v56 = vadd.f32 %v1337_v14, %v1336_v52  ;;  %v1500_v28 = vadd.f32 %v1459_v47, %v1458_v32 }
 0x355   :  { %v4060_v8 = vsel %vm1022_vm8, %v4950_v23, %v3892_v63  ;;  %v1416_v57 = vunpack.c.h.bf16 %v4046_v41  ;;  %v4829_v63 = vrot.slane %v4051_v22, 4  ;;  %v4831_v23 = vrot.slane %v4053_v20, 4 }
 0x356   :  { %v1417_v40 = vunpack.c.h.bf16 %v4060_v8  ;;  %v1446_v19 = vmul.f32 %v3593_v53, %v1414_v54  ;;  %v1447_v0 = vmul.f32 %v3597_v3, %v1415_v42  ;;  %1339 = vadd.xlane.f32.xlu1 %v1338_v56  ;;  %v1501_v36 = vadd.f32 %v1500_v28, %v1460_v27 }
 0x357   :  { %v1448_v25 = vmul.f32 %v3601_v4, %v1416_v57  ;;  %v4832_v14 = vrot.slane %v4064_v38, 4  ;;  %v4833_v32 = vrot.slane %v4068_v2, 4  ;;  %v1071_v54 = vunpack.c.l.bf16 %v4829_v63 }
 0x358   :  { %v1449_v47 = vmul.f32 %v3605_v21, %v1417_v40  ;;  %v1476_v52 = vadd.f32 %v1447_v0, %v1446_v19  ;;  %v1072_v42 = vunpack.c.l.bf16 %v4831_v23  ;;  %v1502_v34 = vadd.f32 %v1501_v36, %v1461_v58  ;;  %v4951_v40 = vld [vmem:[#allocation32_spill] sm:$0xff] }
 0x359   :  { %v1073_v56 = vunpack.c.l.bf16 %v4832_v14  ;;  %v1462_v27 = vmul.f32 %v3593_v53, %v1249_v46  ;;  %v1463_v28 = vmul.f32 %v3597_v3, %v1250_v61  ;;  %v1074_v0 = vunpack.c.l.bf16 %v4833_v32  ;;  %v4956_v14 = vld [vmem:[#allocation35_spill] sm:$0xff] }
 0x35a   :  { %v1477_v57 = vadd.f32 %v1476_v52, %v1448_v25  ;;  %v1111_v19 = vmul.f32 %v4951_v40, %v1071_v54  ;;  %v1112_v63 = vmul.f32 %v4952_v50, %v1072_v42  ;;  %1503 = vadd.xlane.f32.xlu0 %v1502_v34  ;;  %v4954_v36 = vunpack.c.l.bf16 %v3948_v44 }
 0x35b   :  { %v1113_v23 = vmul.f32 %v4953_v11, %v1073_v56  ;;  %v4955_v46 = vunpack.c.l.bf16 %v3950_v13  ;;  %v1505_v25 = vsel %vm1481_vm10, %v1462_v27, 0.0  ;;  %v1114_v32 = vmul.f32 %v4956_v14, %v1074_v0 }
 0x35c   :  { %v1464_v58 = vmul.f32 %v3601_v4, %v4954_v36  ;;  %v1478_v52 = vadd.f32 %v1477_v57, %v1449_v47  ;;  %v1143_v54 = vsel %vm1022_vm8, %v1111_v19, 0.0  ;;  %v1144_v42 = vsel %vm1022_vm8, %v1112_v63, 0.0  ;;  %v4957_v47 = vld [vmem:[#allocation40_spill] sm:$0xff] }
 0x35d   :  { %v1465_v61 = vmul.f32 %v3605_v21, %v4955_v46  ;;  %v1145_v34 = vadd.f32 %v1144_v42, %v1143_v54  ;;  %v1146_v56 = vsel %vm1022_vm8, %v1113_v23, 0.0  ;;  %v1506_v44 = vsel %vm1481_vm10, %v1463_v28, 0.0  ;;  %v4960_v54 = vld [vmem:[#allocation44_spill] sm:$0xff] }
 0x35e   :  { %v1508_v36 = vsel %vm1481_vm10, %v1464_v58, 0.0  ;;  %1479 = vadd.xlane.f32.xlu1 %v1478_v52  ;;  %v1148_v13 = vsel %vm1022_vm8, %v1114_v32, 0.0  ;;  %v1507_v46 = vadd.f32 %v1506_v44, %v1505_v25  ;;  %v4837_v57 = vrot.slane %v4957_v47, 4  ;;  %v4961_v58 = vld [vmem:[#allocation41_spill] sm:$0xff] }
 0x35f   :  { %v1510_v27 = vsel %vm1481_vm10, %v1465_v61, 0.0  ;;  %v1147_v0 = vadd.f32 %v1146_v56, %v1145_v34  ;;  %v4843_v19 = vrot.slane %v4958_v24, 4  ;;  %v4844_v42 = vrot.slane %v4960_v54, 4  ;;  %v4964_v61 = vld [vmem:[#allocation19_spill] sm:$0xff] }
 0x360   :  { %v1509_v23 = vadd.f32 %v1508_v36, %v1507_v46  ;;  %v1598_v28 = vunpack.c.l.bf16 %v4837_v57  ;;  %v4962_v52 = vrot.slane %v4961_v58, 4  ;;  %v4963_v32 = vrot.slane %v3541_v39, 4 }
 0x361   :  { %v4965_v44 = vrot.slane %v4964_v61, 4  ;;  %v4966_v34 = vrot.slane %v3555_v6, 4  ;;  %v1149_v63 = vadd.f32 %v1148_v13, %v1147_v0  ;;  %v1599_v36 = vunpack.c.l.bf16 %v4843_v19  ;;  %v4974_v13 = vld [vmem:[#allocation20_spill] sm:$0xff] }
 0x362   :  { %v4117_v25 = vsel %vm1022_vm8, %v4963_v32, %v4962_v52  ;;  %v4968_v46 = vrot.slane %v4959_v60, 4  ;;  %v1601_v39 = vunpack.c.l.bf16 %v4844_v42  ;;  %v1511_v12 = vadd.f32 %v1510_v27, %v1509_v23  ;;  %v4969_v52 = vld [vmem:[#allocation36_spill] sm:$0xff]  ;;  %v4979_v27 = vld [vmem:[#allocation38_spill] sm:$0xff] }
 0x363   :  { %v4124_v56 = vsel %vm1022_vm8, %v4966_v34, %v4965_v44  ;;  %v1638_v32 = vmul.f32 %v4969_v52, %v1598_v28  ;;  %v4972_v6 = vrot.slane %v3543_v29, 4  ;;  %v4975_v0 = vrot.slane %v4974_v13, 4  ;;  %1150 = vadd.xlane.f32.xlu0 %v1149_v63  ;;  %v4980_v28 = vld [vmem:[#allocation39_spill] sm:$0xff] }
 0x364   :  { %4967 = vst [vmem:[#allocation13_spill] sm:$0xff] %v4124_v56  ;;  %v1600_v57 = vunpack.c.l.bf16 %v4968_v46  ;;  %v4976_v34 = vrot.slane %v3557_v45, 4  ;;  %v4978_v46 = vld [vmem:[#allocation37_spill] sm:$0xff]  ;;  %v1641_v31 = vmul.f32 %v4980_v28, %v1601_v39  ;;  %v1606_v55 = vunpack.c.h.bf16 %v4117_v25  ;;  %1512 = vadd.xlane.f32.xlu1 %v1511_v12 }
 0x365   :  { %v4138_v44 = vsel %vm1022_vm8, %v4972_v6, %v4971_v5  ;;  %v1639_v42 = vmul.f32 %v4978_v46, %v1599_v36  ;;  %v1669_v5 = vsel %vm1347_vm11, %v1638_v32, 0.0  ;;  %v1607_v29 = vunpack.c.h.bf16 %v4124_v56 }
 0x366   :  { %4973 = vst [vmem:[#allocation14_spill] sm:$0xff] %v4138_v44  ;;  %v4145_v19 = vsel %vm1022_vm8, %v4976_v34, %v4975_v0  ;;  %v1640_v23 = vmul.f32 %v4979_v27, %v1600_v57  ;;  %v1608_v45 = vunpack.c.h.bf16 %v4138_v44  ;;  %v1674_v57 = vsel %vm1347_vm11, %v1641_v31, 0.0 }
 0x367   :  { %4977 = vst [vmem:[#allocation15_spill] sm:$0xff] %v4145_v19  ;;  %v1609_v6 = vunpack.c.h.bf16 %v4145_v19  ;;  %v1670_v63 = vsel %vm1347_vm11, %v1639_v42, 0.0  ;;  %v1646_v39 = vmul.f32 %v4969_v52, %v1606_v55  ;;  %v1647_v34 = vmul.f32 %v4978_v46, %v1607_v29 }
 0x368   :  { %v1672_v36 = vsel %vm1347_vm11, %v1640_v23, 0.0  ;;  %v1671_v0 = vadd.f32 %v1670_v63, %v1669_v5  ;;  %v1648_v12 = vmul.f32 %v4979_v27, %v1608_v45  ;;  %v4981_v56 = vrot.slane %v4051_v22, 4 }
 0x369   :  { %v1649_v32 = vmul.f32 %v4980_v28, %v1609_v6  ;;  %v4982_v44 = vrot.slane %v4925_v18, 4  ;;  %v4983_v42 = vrot.slane %v4053_v20, 4  ;;  %v4984_v31 = vrot.slane %v3496_v30, 4 }
 0x36a   :  { %v4985_v23 = vrot.slane %v4064_v38, 4  ;;  %v4986_v5 = vrot.slane %v4928_v15, 4  ;;  %v4987_v22 = vrot.slane %v4068_v2, 4  ;;  %v4988_v18 = vrot.slane %v3521_v59, 4 }
 0x36b   :  { %v4167_v19 = vsel %vm1022_vm8, %v4982_v44, %v4981_v56  ;;  %v4174_v55 = vsel %vm1022_vm8, %v4984_v31, %v4983_v42  ;;  %v1673_v20 = vadd.f32 %v1672_v36, %v1671_v0  ;;  %v1687_v44 = vadd.f32 %v1647_v34, %v1646_v39  ;;  %v1002_v36 = vld [vmem:[#allocation2 + $0x80] sm:$0x3f]  ;;  %v1003_v39 = vld [vmem:[#allocation2 + $0x88] sm:$0x3f] }
 0x36c   :  { %v4181_v29 = vsel %vm1022_vm8, %v4986_v5, %v4985_v23  ;;  %v4188_v56 = vsel %vm1022_vm8, %v4988_v18, %v4987_v22  ;;  %v1067_v30 = vunpack.c.h.bf16 %v4167_v19  ;;  %v1068_v45 = vunpack.c.h.bf16 %v4174_v55  ;;  %v1004_v22 = vld [vmem:[#allocation2 + $0x90] sm:$0x3f] }
 0x36d   :  { %v1069_v38 = vunpack.c.h.bf16 %v4181_v29  ;;  %v1070_v15 = vunpack.c.h.bf16 %v4188_v56  ;;  %v1410_v6 = vunpack.c.l.bf16 %v4034_v43  ;;  %v1411_v63 = vunpack.c.l.bf16 %v4040_v48 }
 0x36e   :  { %v1675_v2 = vadd.f32 %v1674_v57, %v1673_v20  ;;  %v1688_v42 = vadd.f32 %v1687_v44, %v1648_v12  ;;  %v1107_v59 = vmul.f32 %v4951_v40, %v1067_v30  ;;  %v1108_v31 = vmul.f32 %v4952_v50, %v1068_v45  ;;  %v1005_v44 = vld [vmem:[#allocation2 + $0x98] sm:$0x3f] }
 0x36f   :  { %v1109_v0 = vmul.f32 %v4953_v11, %v1069_v38  ;;  %v1110_v34 = vmul.f32 %v4956_v14, %v1070_v15  ;;  %v1412_v23 = vunpack.c.l.bf16 %v4046_v41  ;;  %v1413_v5 = vunpack.c.l.bf16 %v4060_v8 }
 0x370   :  { %1676 = vadd.xlane.f32.xlu0 %v1675_v2  ;;  %v1689_v43 = vadd.f32 %v1688_v42, %v1649_v32  ;;  %v1137_v48 = vadd.f32 %v1108_v31, %v1107_v59  ;;  %v1442_v57 = vmul.f32 %v3593_v53, %v1410_v6  ;;  %v1443_v12 = vmul.f32 %v3597_v3, %v1411_v63 }
 0x371   :  { %v1444_v18 = vmul.f32 %v3601_v4, %v1412_v23  ;;  %v1445_v20 = vmul.f32 %v3605_v21, %v1413_v5  ;;  %v1036_v30 = vrot.slane %v1002_v36, 4  ;;  %v1039_v45 = vrot.slane %v1003_v39, 4 }
 0x372   :  { %v1138_v38 = vadd.f32 %v1137_v48, %v1109_v0  ;;  %v1467_v41 = vsel %vm1466_vm12, %v1442_v57, 0.0  ;;  %v1468_v8 = vsel %vm1466_vm12, %v1443_v12, 0.0  ;;  %v1042_v15 = vrot.slane %v1004_v22, 4 }
 0x373   :  { %v1469_v2 = vadd.f32 %v1468_v8, %v1467_v41  ;;  %v1470_v32 = vsel %vm1466_vm12, %v1444_v18, 0.0  ;;  %v1472_v6 = vsel %vm1466_vm12, %v1445_v20, 0.0  ;;  %v4989_v63 = vrot.slane %v3525_v35, 4 }
 0x374   :  { %1690 = vadd.xlane.f32.xlu0 %v1689_v43  ;;  %v1139_v59 = vadd.f32 %v1138_v38, %v1110_v34  ;;  %v4990_v31 = vrot.slane %v3533_v37, 4  ;;  %v4991_v39 = vrot.slane %v3535_v62, 4  ;;  %v1045_v23 = vrot.slane %v1005_v44, 4 }
 0x375   :  { %v4213_v42 = vsel %vm1022_vm8, %v4989_v63, %v1036_v30  ;;  %v1471_v5 = vadd.f32 %v1470_v32, %v1469_v2  ;;  %v4992_v37 = vrot.slane %v3537_v10, 4  ;;  %v1083_v43 = vunpack.c.l.bf16 %v1036_v30 }
 0x376   :  { %v4218_v36 = vsel %vm1022_vm8, %v4990_v31, %v1039_v45  ;;  %v4223_v0 = vsel %vm1022_vm8, %v4991_v39, %v1042_v15  ;;  %v1079_v22 = vunpack.c.h.bf16 %v4213_v42  ;;  %1140 = vadd.xlane.f32.xlu1 %v1139_v59  ;;  %v1084_v62 = vunpack.c.l.bf16 %v1039_v45 }
 0x377   :  { %v1080_v35 = vunpack.c.h.bf16 %v4218_v36  ;;  %v1081_v48 = vunpack.c.h.bf16 %v4223_v0  ;;  %v4231_v34 = vsel %vm1022_vm8, %v4992_v37, %v1045_v23  ;;  %v1085_v57 = vunpack.c.l.bf16 %v1042_v15 }
 0x378   :  { %v1473_v12 = vadd.f32 %v1472_v6, %v1471_v5  ;;  %v1082_v18 = vunpack.c.h.bf16 %v4231_v34  ;;  %v1119_v20 = vmul.f32 %v4951_v40, %v1079_v22  ;;  %v1086_v41 = vunpack.c.l.bf16 %v1045_v23 }
 0x379   :  { %v1120_v44 = vmul.f32 %v4952_v50, %v1080_v35  ;;  %v1121_v38 = vmul.f32 %v4953_v11, %v1081_v48  ;;  %v1123_v8 = vmul.f32 %v4951_v40, %v1083_v43  ;;  %v1124_v10 = vmul.f32 %v4952_v50, %v1084_v62 }
 0x37a   :  { %1474 = vadd.xlane.f32.xlu0 %v1473_v12  ;;  %v1122_v2 = vmul.f32 %v4956_v14, %v1082_v18  ;;  %v1125_v45 = vmul.f32 %v4953_v11, %v1085_v57  ;;  %v1063_v15 = vunpack.c.l.bf16 %v4167_v19  ;;  %v1126_v32 = vmul.f32 %v4956_v14, %v1086_v41 }
 0x37b   :  { %v1161_v30 = vadd.f32 %v1120_v44, %v1119_v20  ;;  %v1166_v6 = vsel %vm1022_vm8, %v1123_v8, 0.0  ;;  %v1167_v63 = vsel %vm1022_vm8, %v1124_v10, 0.0  ;;  %v1064_v59 = vunpack.c.l.bf16 %v4174_v55 }
 0x37c   :  { %v1168_v39 = vadd.f32 %v1167_v63, %v1166_v6  ;;  %v1169_v23 = vsel %vm1022_vm8, %v1125_v45, 0.0  ;;  %v1065_v5 = vunpack.c.l.bf16 %v4181_v29  ;;  %v1171_v22 = vsel %vm1022_vm8, %v1126_v32, 0.0 }
 0x37d   :  { %v1162_v31 = vadd.f32 %v1161_v30, %v1121_v38  ;;  %v1066_v35 = vunpack.c.l.bf16 %v4188_v56  ;;  %v1103_v19 = vmul.f32 %v4951_v40, %v1063_v15  ;;  %v1104_v48 = vmul.f32 %v4952_v50, %v1064_v59 }
 0x37e   :  { %v1170_v43 = vadd.f32 %v1169_v23, %v1168_v39  ;;  %v1105_v62 = vmul.f32 %v4953_v11, %v1065_v5  ;;  %v4993_v55 = vrot.slane %v4957_v47, 4  ;;  %v4994_v57 = vrot.slane %v3564_v7, 4 }
 0x37f   :  { %v1163_v37 = vadd.f32 %v1162_v31, %v1122_v2  ;;  %v1106_v29 = vmul.f32 %v4956_v14, %v1066_v35  ;;  %v1128_v18 = vsel %vm1127_vm13, %v1103_v19, 0.0  ;;  %v1129_v56 = vsel %vm1127_vm13, %v1104_v48, 0.0 }
 0x380   :  { %v1559_v12 = vsel %vm1022_vm8, %v4994_v57, %v4993_v55  ;;  %v4995_v20 = vrot.slane %v4958_v24, 4  ;;  %v4996_v44 = vrot.slane %v3584_v51, 4  ;;  %v1172_v41 = vadd.f32 %v1171_v22, %v1170_v43 }
 0x381   :  { %1164 = vadd.xlane.f32.xlu1 %v1163_v37  ;;  %v1130_v8 = vadd.f32 %v1129_v56, %v1128_v18  ;;  %v1131_v47 = vsel %vm1127_vm13, %v1105_v62, 0.0  ;;  %v4997_v7 = vrot.slane %v4959_v60, 4  ;;  %v4998_v10 = vrot.slane %v3570_v49, 4 }
 0x382   :  { %v1561_v38 = vsel %vm1022_vm8, %v4996_v44, %v4995_v20  ;;  %v1133_v30 = vsel %vm1127_vm13, %v1106_v29, 0.0  ;;  %v4999_v45 = vrot.slane %v4960_v54, 4  ;;  %v5000_v24 = vrot.slane %v3586_v1, 4 }
 0x383   :  { %v1563_v2 = vsel %vm1022_vm8, %v4998_v10, %v4997_v7  ;;  %v1594_v15 = vunpack.c.h.bf16 %v1559_v12  ;;  %v1595_v32 = vunpack.c.h.bf16 %v1561_v38  ;;  %v1132_v6 = vadd.f32 %v1131_v47, %v1130_v8 }
 0x384   :  { %v1565_v51 = vsel %vm1022_vm8, %v5000_v24, %v4999_v45  ;;  %v1596_v63 = vunpack.c.h.bf16 %v1563_v2  ;;  %v1075_v31 = vunpack.c.l.bf16 %v4213_v42  ;;  %v1076_v39 = vunpack.c.l.bf16 %v4218_v36 }
 0x385   :  { %v1597_v59 = vunpack.c.h.bf16 %v1565_v51  ;;  %v1634_v60 = vmul.f32 %v4969_v52, %v1594_v15  ;;  %v1635_v49 = vmul.f32 %v4978_v46, %v1595_v32  ;;  %v1077_v23 = vunpack.c.l.bf16 %v4223_v0  ;;  %1173 = vadd.xlane.f32.xlu1 %v1172_v41 }
 0x386   :  { %v1134_v54 = vadd.f32 %v1133_v30, %v1132_v6  ;;  %v1636_v1 = vmul.f32 %v4979_v27, %v1596_v63  ;;  %v1078_v22 = vunpack.c.l.bf16 %v4231_v34  ;;  %v1115_v19 = vmul.f32 %v4951_v40, %v1075_v31 }
 0x387   :  { %v1637_v5 = vmul.f32 %v4980_v28, %v1597_v59  ;;  %v1664_v35 = vadd.f32 %v1635_v49, %v1634_v60  ;;  %v1116_v42 = vmul.f32 %v4952_v50, %v1076_v39  ;;  %v1117_v48 = vmul.f32 %v4953_v11, %v1077_v23 }
 0x388   :  { %1135 = vadd.xlane.f32.xlu0 %v1134_v54  ;;  %v1118_v36 = vmul.f32 %v4956_v14, %v1078_v22  ;;  %v5001_v0 = vrot.slane %v4961_v58, 4  ;;  %v5002_v43 = vrot.slane %v4964_v61, 4  ;;  %v5003_v55 = vrot.slane %v4970_v17, 4  ;;  %v4321_v54 = vld [vmem:[#allocation2 + $0x40] sm:$0x3] }
 0x389   :  { %v1665_v34 = vadd.f32 %v1664_v35, %v1636_v1  ;;  %v1152_v29 = vsel %vm1127_vm13, %v1115_v19, 0.0  ;;  %v1153_v40 = vsel %vm1127_vm13, %v1116_v42, 0.0  ;;  %v1155_v50 = vsel %vm1127_vm13, %v1117_v48, 0.0  ;;  %v5005_v35 = vld [vmem:[#allocation28_spill] sm:$0xff]  ;;  %v4325_v42 = vld [vmem:[#allocation2 + $0x48] sm:$0x3] }
 0x38a   :  { %v1610_v37 = vunpack.c.l.bf16 %v5001_v0  ;;  %v1611_v62 = vunpack.c.l.bf16 %v5002_v43  ;;  %v1612_v57 = vunpack.c.l.bf16 %v5003_v55  ;;  %v1154_v11 = vadd.f32 %v1153_v40, %v1152_v29  ;;  %v5008_v43 = vld [vmem:[#allocation31_spill] sm:$0xff] }
 0x38b   :  { %v1157_v18 = vsel %vm1127_vm13, %v1118_v36, 0.0  ;;  %v5004_v14 = vrot.slane %v4974_v13, 4  ;;  %v1666_v61 = vadd.f32 %v1665_v34, %v1637_v5  ;;  %v1590_v44 = vunpack.c.l.bf16 %v1559_v12  ;;  %v5007_v36 = vld [vmem:[#allocation30_spill] sm:$0xff] }
 0x38c   :  { %v1650_v56 = vmul.f32 %v4969_v52, %v1610_v37  ;;  %v1651_v20 = vmul.f32 %v4978_v46, %v1611_v62  ;;  %v1652_v17 = vmul.f32 %v4979_v27, %v1612_v57  ;;  %v1156_v41 = vadd.f32 %v1155_v50, %v1154_v11  ;;  %v4331_v37 = vld [vmem:[#allocation2 + $0x58] sm:$0x3] }
 0x38d   :  { %v1613_v58 = vunpack.c.l.bf16 %v5004_v14  ;;  %v1591_v7 = vunpack.c.l.bf16 %v1561_v38  ;;  %1667 = vadd.xlane.f32.xlu1 %v1666_v61  ;;  %v1592_v30 = vunpack.c.l.bf16 %v1563_v2  ;;  %v1593_v45 = vunpack.c.l.bf16 %v1565_v51  ;;  %v5010_v61 = vld [vmem:[#allocation26_spill] sm:$0xff] }
 0x38e   :  { %v1692_v47 = vsel %vm1347_vm11, %v1650_v56, 0.0  ;;  %v1693_v10 = vsel %vm1347_vm11, %v1651_v20, 0.0  ;;  %v1695_v13 = vsel %vm1347_vm11, %v1652_v17, 0.0  ;;  %v1158_v24 = vadd.f32 %v1157_v18, %v1156_v41  ;;  %v5011_v17 = vld [vmem:[#allocation25_spill] sm:$0xff]  ;;  %v5012_v41 = vld [vmem:[#allocation22_spill] sm:$0xff] }
 0x38f   :  { %v1653_v8 = vmul.f32 %v4980_v28, %v1613_v58  ;;  %v1694_v15 = vadd.f32 %v1693_v10, %v1692_v47  ;;  %v1630_v6 = vmul.f32 %v4969_v52, %v1590_v44  ;;  %v1631_v12 = vmul.f32 %v4978_v46, %v1591_v7  ;;  %v5009_v58 = vld [vmem:[#allocation24_spill] sm:$0xff]  ;;  %v5013_v7 = vld [vmem:[#allocation27_spill] sm:$0xff] }
 0x390   :  { %v1632_v63 = vmul.f32 %v4979_v27, %v1592_v30  ;;  %v1633_v59 = vmul.f32 %v4980_v28, %v1593_v45  ;;  %1159 = vadd.xlane.f32.xlu0 %v1158_v24  ;;  %v1229_v2 = vunpack.c.l.bf16 %v3901_v33  ;;  %v1230_v51 = vunpack.c.l.bf16 %v3907_v16  ;;  %v4327_v33 = vld [vmem:[#allocation2 + $0x50] sm:$0x3]  ;;  %v5006_v16 = vld [vmem:[#allocation29_spill] sm:$0xff]  ;;  %v5015_v45 = vld [vmem:[#allocation23_spill] sm:$0xff] }
 0x391   :  { %v1697_v32 = vsel %vm1347_vm11, %v1653_v8, 0.0  ;;  %v1696_v38 = vadd.f32 %v1695_v13, %v1694_v15  ;;  %v1655_v31 = vsel %vm1654_vm14, %v1630_v6, 0.0  ;;  %v1656_v60 = vsel %vm1654_vm14, %v1631_v12, 0.0  ;;  %v5014_v13 = vld [vmem:[#allocation21_spill] sm:$0xff]  ;;  %v4357_v15 = vld [vmem:[#allocation2 + $0x20] sm:$0xfc] }
 0x392   :  { %v1658_v49 = vsel %vm1654_vm14, %v1632_v63, 0.0  ;;  %v1660_v39 = vsel %vm1654_vm14, %v1633_v59, 0.0  ;;  %v1231_v23 = vunpack.c.l.bf16 %v3916_v26  ;;  %v1657_v5 = vadd.f32 %v1656_v60, %v1655_v31  ;;  %v5016_v59 = vld [vmem:[#allocation8_spill] sm:$0xff] }
 0x393   :  { %v1698_v1 = vadd.f32 %v1697_v32, %v1696_v38  ;;  %v1232_v22 = vunpack.c.l.bf16 %v3923_v9  ;;  %v1269_v19 = vmul.f32 %v5005_v35, %v1229_v2  ;;  %v1270_v48 = vmul.f32 %v5006_v16, %v1230_v51  ;;  %v4359_v32 = vld [vmem:[#allocation2 + $0x30] sm:$0xfc]  ;;  %v4365_v31 = vld [vmem:[#allocation2 + $0x28] sm:$0xfc] }
 0x394   :  { %v1271_v0 = vmul.f32 %v5007_v36, %v1231_v23  ;;  %v1659_v26 = vadd.f32 %v1658_v49, %v1657_v5  ;;  %v2124_v55 = vunpack.c.l.bf16 %v4321_v54  ;;  %v2125_v29 = vunpack.c.l.bf16 %v4325_v42 }
 0x395   :  { %1699 = vadd.xlane.f32.xlu1 %v1698_v1  ;;  %v1272_v62 = vmul.f32 %v5008_v43, %v1232_v22  ;;  %v1294_v9 = vsel %vm1293_vm15, %v1269_v19, 0.0  ;;  %v1295_v57 = vsel %vm1293_vm15, %v1270_v48, 0.0  ;;  %v2126_v40 = vunpack.c.l.bf16 %v4327_v33  ;;  %v4377_v22 = vld [vmem:[%s4760_s9 + $0x20] ss:$0 sm:$0xff]  ;;  %v4382_v19 = vld [vmem:[%s4760_s9 + $0x28] ss:$0 sm:$0xff] }
 0x396   :  { %v1297_v34 = vsel %vm1293_vm15, %v1271_v0, 0.0  ;;  %v1661_v50 = vadd.f32 %v1660_v39, %v1659_v26  ;;  %v1296_v11 = vadd.f32 %v1295_v57, %v1294_v9  ;;  %v2127_v14 = vunpack.c.l.bf16 %v4331_v37  ;;  %v4369_v39 = vld [vmem:[#allocation2 + $0x38] sm:$0xfc]  ;;  %v4394_v0 = vld [vmem:[%s4760_s9 + $0x38] ss:$0 sm:$0xff] }
 0x397   :  { %v1299_v18 = vsel %vm1293_vm15, %v1272_v62, 0.0  ;;  %v2156_v56 = vmul.f32 %v5009_v58, %v2124_v55  ;;  %v2157_v20 = vmul.f32 %v5010_v61, %v2125_v29  ;;  %v2158_v44 = vmul.f32 %v5011_v17, %v2126_v40 }
 0x398   :  { %v1241_v8 = vunpack.c.l.bf16 %v5012_v41  ;;  %1662 = vadd.xlane.f32.xlu0 %v1661_v50  ;;  %v1298_v47 = vadd.f32 %v1297_v34, %v1296_v11  ;;  %v2159_v10 = vmul.f32 %v5013_v7, %v2127_v14  ;;  %v1242_v30 = vunpack.c.l.bf16 %v5014_v13  ;;  %v5017_v41 = vld [vmem:[#allocation9_spill] sm:$0xff] }
 0x399   :  { %v1243_v24 = vunpack.c.l.bf16 %v5015_v45  ;;  %v2187_v6 = vsel %vm1953_vm0, %v2156_v56, 0.0  ;;  %v2188_v12 = vsel %vm1953_vm0, %v2157_v20, 0.0  ;;  %v2190_v63 = vsel %vm1953_vm0, %v2158_v44, 0.0 }
 0x39a   :  { %v1244_v38 = vunpack.c.l.bf16 %v5016_v59  ;;  %v1300_v2 = vadd.f32 %v1299_v18, %v1298_v47  ;;  %v2189_v51 = vadd.f32 %v2188_v12, %v2187_v6  ;;  %v2192_v60 = vsel %vm1953_vm0, %v2159_v10, 0.0  ;;  %v5018_v47 = vld [vmem:[#allocation10_spill] sm:$0xff] }
 0x39b   :  { %v1281_v49 = vmul.f32 %v5005_v35, %v1241_v8  ;;  %v1282_v23 = vmul.f32 %v5006_v16, %v1242_v30  ;;  %v1283_v1 = vmul.f32 %v5007_v36, %v1243_v24  ;;  %v2255_v35 = vunpack.c.l.bf16 %v4357_v15  ;;  %v4389_v36 = vld [vmem:[%s4760_s9 + $0x30] ss:$0 sm:$0xff]  ;;  %v4411_v12 = vld [vmem:[#allocation2 + $0x80] sm:$0xfc] }
 0x39c   :  { %v1284_v5 = vmul.f32 %v5008_v43, %v1244_v38  ;;  %1301 = vadd.xlane.f32.xlu1 %v1300_v2  ;;  %v2191_v48 = vadd.f32 %v2190_v63, %v2189_v51  ;;  %v2256_v26 = vunpack.c.l.bf16 %v4365_v31  ;;  %v2257_v43 = vunpack.c.l.bf16 %v4359_v32  ;;  %v5019_v24 = vld [vmem:[#allocation11_spill] sm:$0xff]  ;;  %v5020_v51 = vld [vmem:[#allocation12_spill] sm:$0xff] }
 0x39d   :  { %v1318_v16 = vsel %vm1293_vm15, %v1281_v49, 0.0  ;;  %v1319_v62 = vsel %vm1293_vm15, %v1282_v23, 0.0  ;;  %v1321_v9 = vsel %vm1293_vm15, %v1283_v1, 0.0  ;;  %v2258_v34 = vunpack.c.l.bf16 %v4369_v39  ;;  %v4413_v63 = vld [vmem:[#allocation2 + $0x88] sm:$0xfc] }
 0x39e   :  { %v1323_v57 = vsel %vm1293_vm15, %v1284_v5, 0.0  ;;  %v2193_v50 = vadd.f32 %v2192_v60, %v2191_v48  ;;  %v1320_v11 = vadd.f32 %v1319_v62, %v1318_v16  ;;  %v2287_v18 = vmul.f32 %v4377_v22, %v2255_v35  ;;  %v4418_v49 = vld [vmem:[#allocation2 + $0x90] sm:$0xfc]  ;;  %v4423_v48 = vld [vmem:[#allocation2 + $0x98] sm:$0xfc] }
 0x39f   :  { %v2288_v56 = vmul.f32 %v4382_v19, %v2256_v26  ;;  %v2289_v20 = vmul.f32 %v4389_v36, %v2257_v43  ;;  %v2290_v44 = vmul.f32 %v4394_v0, %v2258_v34  ;;  %v1418_v8 = vunpack.c.l.bf16 %v5017_v41  ;;  %v4432_v34 = vpop.xlane.xlu1 %1945  ;;  %v4440_v41 = vpop.xlane.xlu0 %1922 }
 0x3a0   :  { %v1419_v10 = vunpack.c.l.bf16 %v5018_v47  ;;  %2194 = vadd.xlane.f32.xlu0 %v2193_v50  ;;  %v1322_v13 = vadd.f32 %v1321_v9, %v1320_v11  ;;  %v2311_v30 = vsel %vm1127_vm13, %v2287_v18, 0.0  ;;  %v1420_v6 = vunpack.c.l.bf16 %v5019_v24 }
 0x3a1   :  { %v2312_v45 = vsel %vm1127_vm13, %v2288_v56, 0.0  ;;  %v2314_v38 = vsel %vm1127_vm13, %v2289_v20, 0.0  ;;  %v2316_v2 = vsel %vm1127_vm13, %v2290_v44, 0.0  ;;  %v1421_v60 = vunpack.c.l.bf16 %v5020_v51 }
 0x3a2   :  { %v2313_v59 = vadd.f32 %v2312_v45, %v2311_v30  ;;  %v1324_v23 = vadd.f32 %v1323_v57, %v1322_v13  ;;  %v1454_v1 = vmul.f32 %v3593_v53, %v1418_v8  ;;  %v1455_v5 = vmul.f32 %v3597_v3, %v1419_v10  ;;  %v5021_v10 = vld [vmem:[#allocation13_spill] sm:$0xff]  ;;  %v5022_v30 = vld [vmem:[#allocation14_spill] sm:$0xff] }
 0x3a3   :  { %v1456_v35 = vmul.f32 %v3601_v4, %v1420_v6  ;;  %v1457_v26 = vmul.f32 %v3605_v21, %v1421_v60  ;;  %v2263_v43 = vunpack.c.l.bf16 %v4411_v12  ;;  %v2264_v62 = vunpack.c.l.bf16 %v4413_v63  ;;  %v4474_v42 = vpop.xlane.xlu0 %2063 }
 0x3a4   :  { %v2315_v16 = vadd.f32 %v2314_v38, %v2313_v59  ;;  %1325 = vadd.xlane.f32.xlu1 %v1324_v23  ;;  %v1491_v9 = vsel %vm1466_vm12, %v1454_v1, 0.0  ;;  %v1492_v57 = vsel %vm1466_vm12, %v1455_v5, 0.0  ;;  %v2265_v3 = vunpack.c.l.bf16 %v4418_v49  ;;  %v5023_v38 = vld [vmem:[#allocation15_spill] sm:$0xff] }
 0x3a5   :  { %v1494_v53 = vsel %vm1466_vm12, %v1456_v35, 0.0  ;;  %v1493_v50 = vadd.f32 %v1492_v57, %v1491_v9  ;;  %v1496_v11 = vsel %vm1466_vm12, %v1457_v26, 0.0  ;;  %v2266_v21 = vunpack.c.l.bf16 %v4423_v48  ;;  %v2120_v26 = vld [vmem:[#allocation2 + $0xa0] sm:$0x3] }
 0x3a6   :  { %v2317_v4 = vadd.f32 %v2316_v2, %v2315_v16  ;;  %v2299_v18 = vmul.f32 %v4377_v22, %v2263_v43  ;;  %v2300_v56 = vmul.f32 %v4382_v19, %v2264_v62  ;;  %v2301_v20 = vmul.f32 %v4389_v36, %v2265_v3  ;;  %v4457_v43 = vpop.xlane.xlu1 %2086  ;;  %v4472_v3 = vld [vmem:[#allocation2 + $0xb8] sm:$0x3] }
 0x3a7   :  { %v1602_v44 = vunpack.c.l.bf16 %v4117_v25  ;;  %v1495_v8 = vadd.f32 %v1494_v53, %v1493_v50  ;;  %v2302_v47 = vmul.f32 %v4394_v0, %v2266_v21  ;;  %v1603_v13 = vunpack.c.l.bf16 %v5021_v10 }
 0x3a8   :  { %2318 = vadd.xlane.f32.xlu0 %v2317_v4  ;;  %v1604_v45 = vunpack.c.l.bf16 %v5022_v30  ;;  %v2334_v24 = vsel %vm1127_vm13, %v2299_v18, 0.0  ;;  %v2335_v6 = vsel %vm1127_vm13, %v2300_v56, 0.0  ;;  %v2337_v59 = vsel %vm1127_vm13, %v2301_v20, 0.0 }
 0x3a9   :  { %v1605_v2 = vunpack.c.l.bf16 %v5023_v38  ;;  %v1497_v51 = vadd.f32 %v1496_v11, %v1495_v8  ;;  %v2336_v25 = vadd.f32 %v2335_v6, %v2334_v24  ;;  %v2339_v60 = vsel %vm1127_vm13, %v2302_v47, 0.0 }
 0x3aa   :  { %v1642_v23 = vmul.f32 %v4969_v52, %v1602_v44  ;;  %v1643_v1 = vmul.f32 %v4978_v46, %v1603_v13  ;;  %v1644_v5 = vmul.f32 %v4979_v27, %v1604_v45  ;;  %v2295_v16 = vmul.f32 %v4377_v22, %v2124_v55  ;;  %v2121_v27 = vld [vmem:[#allocation2 + $0xa8] sm:$0x3]  ;;  %v4484_v13 = vpop.xlane.xlu1 %1785 }
 0x3ab   :  { %v1645_v35 = vmul.f32 %v4980_v28, %v1605_v2  ;;  %1498 = vadd.xlane.f32.xlu1 %v1497_v51  ;;  %v2338_v62 = vadd.f32 %v2337_v59, %v2336_v25  ;;  %v2296_v52 = vmul.f32 %v4382_v19, %v2125_v29  ;;  %v2297_v46 = vmul.f32 %v4389_v36, %v2126_v40  ;;  %v2122_v28 = vld [vmem:[#allocation2 + $0xb0] sm:$0x3]  ;;  %v4491_v51 = vpop.xlane.xlu0 %1780 }
 0x3ac   :  { %v1678_v9 = vsel %vm1654_vm14, %v1642_v23, 0.0  ;;  %v1679_v54 = vsel %vm1654_vm14, %v1643_v1, 0.0  ;;  %v1681_v55 = vsel %vm1654_vm14, %v1644_v5, 0.0  ;;  %v2298_v53 = vmul.f32 %v4394_v0, %v2127_v14 }
 0x3ad   :  { %v1683_v57 = vsel %vm1654_vm14, %v1645_v35, 0.0  ;;  %v2340_v29 = vadd.f32 %v2339_v60, %v2338_v62  ;;  %v1680_v33 = vadd.f32 %v1679_v54, %v1678_v9  ;;  %v2325_v40 = vsel %vm1022_vm8, %v2295_v16, 0.0 }
 0x3ae   :  { %v2326_v4 = vsel %vm1022_vm8, %v2296_v52, 0.0  ;;  %v2328_v11 = vsel %vm1022_vm8, %v2297_v46, 0.0  ;;  %v2330_v21 = vsel %vm1022_vm8, %v2298_v53, 0.0  ;;  %v2128_v18 = vunpack.c.l.bf16 %v2120_v26  ;;  %v4503_v5 = vpop.xlane.xlu1 %1795 }
 0x3af   :  { %v2327_v50 = vadd.f32 %v2326_v4, %v2325_v40  ;;  %2341 = vadd.xlane.f32.xlu0 %v2340_v29  ;;  %v1682_v37 = vadd.f32 %v1681_v55, %v1680_v33  ;;  %v2129_v56 = vunpack.c.l.bf16 %v2121_v27  ;;  %v2130_v14 = vunpack.c.l.bf16 %v2122_v28  ;;  %v4511_v27 = vpop.xlane.xlu0 %1790 }
 0x3b0   :  { %v2131_v20 = vunpack.c.l.bf16 %v4472_v3  ;;  %v2168_v8 = vmul.f32 %v5009_v58, %v2128_v18  ;;  %v2259_v47 = vunpack.c.h.bf16 %v4357_v15  ;;  %v2260_v10 = vunpack.c.h.bf16 %v4365_v31 }
 0x3b1   :  { %v2329_v44 = vadd.f32 %v2328_v11, %v2327_v50  ;;  %v1684_v30 = vadd.f32 %v1683_v57, %v1682_v37  ;;  %v2169_v45 = vmul.f32 %v5010_v61, %v2129_v56  ;;  %v2170_v24 = vmul.f32 %v5011_v17, %v2130_v14 }
 0x3b2   :  { %v2171_v6 = vmul.f32 %v5013_v7, %v2131_v20  ;;  %v2210_v38 = vsel %vm1953_vm0, %v2168_v8, 0.0  ;;  %v2261_v2 = vunpack.c.h.bf16 %v4359_v32  ;;  %v2291_v31 = vmul.f32 %v4377_v22, %v2259_v47  ;;  %v1913_v57 = vpop.xlane.xlu1 %1912 }
 0x3b3   :  { %v2331_v59 = vadd.f32 %v2330_v21, %v2329_v44  ;;  %1685 = vadd.xlane.f32.xlu1 %v1684_v30  ;;  %v2211_v58 = vsel %vm1953_vm0, %v2169_v45, 0.0  ;;  %v2213_v15 = vsel %vm1953_vm0, %v2170_v24, 0.0  ;;  %v2262_v7 = vunpack.c.h.bf16 %v4369_v39  ;;  %v4523_v11 = vpop.xlane.xlu0 %1907 }
 0x3b4   :  { %v2212_v61 = vadd.f32 %v2211_v58, %v2210_v38  ;;  %v2215_v17 = vsel %vm1953_vm0, %v2171_v6, 0.0  ;;  %v2292_v25 = vmul.f32 %v4382_v19, %v2260_v10  ;;  %v2293_v60 = vmul.f32 %v4389_v36, %v2261_v2 }
 0x3b5   :  { %2332 = vadd.xlane.f32.xlu0 %v2331_v59  ;;  %v2267_v32 = vunpack.c.h.bf16 %v4411_v12  ;;  %v2268_v23 = vunpack.c.h.bf16 %v4413_v63  ;;  %v2269_v1 = vunpack.c.h.bf16 %v4418_v49  ;;  %v2307_v26 = vmul.f32 %v4377_v22, %v2128_v18 }
 0x3b6   :  { %v2214_v35 = vadd.f32 %v2213_v15, %v2212_v61  ;;  %v2320_v16 = vadd.f32 %v2292_v25, %v2291_v31  ;;  %v2308_v62 = vmul.f32 %v4382_v19, %v2129_v56  ;;  %v2294_v46 = vmul.f32 %v4394_v0, %v2262_v7  ;;  %v1937_v56 = vpop.xlane.xlu1 %1936 }
 0x3b7   :  { %v2303_v39 = vmul.f32 %v4377_v22, %v2267_v32  ;;  %v2304_v9 = vmul.f32 %v4382_v19, %v2268_v23  ;;  %v2309_v63 = vmul.f32 %v4389_v36, %v2130_v14  ;;  %v2270_v49 = vunpack.c.h.bf16 %v4423_v48  ;;  %v4551_v30 = vpop.xlane.xlu0 %1931 }
 0x3b8   :  { %v2216_v52 = vadd.f32 %v2215_v17, %v2214_v35  ;;  %v2321_v12 = vadd.f32 %v2320_v16, %v2293_v60  ;;  %v2348_v54 = vsel %vm1022_vm8, %v2307_v26, 0.0  ;;  %v2349_v55 = vsel %vm1022_vm8, %v2308_v62, 0.0 }
 0x3b9   :  { %v2343_v28 = vadd.f32 %v2304_v9, %v2303_v39  ;;  %v2305_v22 = vmul.f32 %v4389_v36, %v2269_v1  ;;  %v2350_v19 = vadd.f32 %v2349_v55, %v2348_v54  ;;  %v2310_v3 = vmul.f32 %v4394_v0, %v2131_v20 }
 0x3ba   :  { %2217 = vadd.xlane.f32.xlu1 %v2216_v52  ;;  %v2322_v53 = vadd.f32 %v2321_v12, %v2294_v46  ;;  %v2351_v29 = vsel %vm1022_vm8, %v2309_v63, 0.0  ;;  %v1957_v33 = vrot.slane %v4440_v41, 5  ;;  %v1802_v48 = vrot.slane %v4484_v13, 4  ;;  %v4559_v59 = vpop.xlane.xlu1 %2053 }
 0x3bb   :  { %v2344_v40 = vadd.f32 %v2343_v28, %v2305_v22  ;;  %v1801_v4 = vrot.slane %v4491_v51, 4  ;;  %v1805_v50 = vrot.slane %v4503_v5, 4  ;;  %v2306_v21 = vmul.f32 %v4394_v0, %v2270_v49  ;;  %v4561_v38 = vpop.xlane.xlu0 %2048 }
 0x3bc   :  { %v1804_v36 = vrot.slane %v4511_v27, 4  ;;  %v1955_v18 = vrot.slane %v1913_v57, 5  ;;  %v1954_v37 = vrot.slane %v4523_v11, 5  ;;  %v2352_v14 = vadd.f32 %v2351_v29, %v2350_v19 }
 0x3bd   :  { %v1962_v41 = vrot.slane %v4432_v34, 5  ;;  %v4532_v20 = vsel %vm1022_vm8, %v1801_v4, %v1802_v48  ;;  %v1960_v44 = vrot.slane %v1937_v56, 5  ;;  %v2353_v8 = vsel %vm1022_vm8, %v2310_v3, 0.0 }
 0x3be   :  { %2323 = vadd.xlane.f32.xlu1 %v2322_v53  ;;  %v4540_v0 = vsel %vm1022_vm8, %v1804_v36, %v1805_v50  ;;  %v1958_v47 = vsel %vm1953_vm0, %v1955_v18, %v1957_v33  ;;  %v4546_v34 = vsel %vm1953_vm0, %v1954_v37, %v1955_v18  ;;  %v2345_v10 = vadd.f32 %v2344_v40, %v2306_v21  ;;  %v2078_v2 = vpop.xlane.xlu1 %2077 }
 0x3bf   :  { %v4549_v13 = vsel %vm1953_vm0, %v1960_v44, %v1962_v41  ;;  %v1959_v45 = vrot.slane %v4551_v30, 5  ;;  %v2354_v24 = vadd.f32 %v2353_v8, %v2352_v14  ;;  %v2102_v58 = vrot.slane %v4457_v43, 6 }
 0x3c0   :  { %v2100_v15 = vrot.slane %v2078_v2, 6  ;;  %v2095_v53 = vrot.slane %v4559_v59, 6  ;;  %v2097_v29 = vrot.slane %v4474_v42, 6  ;;  %vm2608_vm5 = vcmask 128004  }
 0x3c1   :  { %v4557_v6 = vsel %vm1953_vm0, %v1959_v45, %v1960_v44 }
 0x3c2   :  { %2346 = vadd.xlane.f32.xlu1 %v2345_v10  ;;  %v4565_v31 = vsel %vm2055_vm4, %v2100_v15, %v2102_v58  ;;  %v4569_v17 = vpop.xlane.xlu1 %2185  ;;  %v2098_v40 = vsel %vm2055_vm4, %v2095_v53, %v2097_v29 }
 0x3c3   :  { %v4567_v61 = vpop.xlane.xlu0 %2072 }
 0x3c4   :  { %v2099_v7 = vrot.slane %v4567_v61, 6 }
 0x3c6   :  { %2355 = vadd.xlane.f32.xlu1 %v2354_v24  ;;  %v4575_v25 = vsel %vm2055_vm4, %v2099_v7, %v2100_v15 }
 0x3c7   :  { %v4577_v60 = vpop.xlane.xlu0 %2180  ;;  %v4579_v32 = vpop.xlane.xlu1 %2208 }
 0x3c8   :  { %v2231_v43 = vrot.slane %v4579_v32, 7 }
 0x3cb   :  { %v4582_v23 = vpop.xlane.xlu0 %2203 }
 0x3cc   :  { %v2230_v1 = vrot.slane %v4582_v23, 7 }
 0x3ce   :  { %v4590_v35 = vsel %vm1914_vm3, %v2230_v1, %v2231_v43 }
 0x3d1   :  { %v1317_v26 = vpop.xlane.xlu1 %1316 }
 0x3d2   :  { %v1351_v12 = vrot.slane %v1317_v26, 1 }
 0x3d5   :  { %v4592_v16 = vpop.xlane.xlu0 %1306 }
 0x3d6   :  { %v1349_v41 = vrot.slane %v4592_v16, 1 }
 0x3d8   :  { %v1352_v10 = vsel %vm1347_vm11, %v1349_v41, %v1351_v12 }
 0x3db   :  { %v1490_v62 = vpop.xlane.xlu0 %1489 }
 0x3dc   :  { %v4594_v39 = vpop.xlane.xlu1 %1330  ;;  %v1523_v28 = vrot.slane %v1490_v62, 2 }
 0x3dd   :  { %v1354_v58 = vrot.slane %v4594_v39, 1  ;;  %v2225_v39 = vrot.slane %v4577_v60, 7 }
 0x3e3   :  { %v1340_v52 = vpop.xlane.xlu1 %1339 }
 0x3e4   :  { %v1356_v59 = vrot.slane %v1340_v52, 1 }
 0x3e6   :  { %v1357_v16 = vsel %vm1347_vm11, %v1354_v58, %v1356_v59 }
 0x3e7   :  { %v4596_v9 = vpop.xlane.xlu0 %1503 }
 0x3eb   :  { %v4598_v63 = vpop.xlane.xlu1 %1479 }
 0x3ec   :  { %v1521_v8 = vrot.slane %v4598_v63, 2 }
 0x3f0   :  { %v1151_v46 = vpop.xlane.xlu0 %1150 }
 0x3f1   :  { %v1366_v49 = vadd.f32 %v1351_v12, %v1151_v46  ;;  %v1513_v22 = vpop.xlane.xlu1 %1512  ;;  %v2094_v12 = vrot.slane %v4561_v38, 6 }
 0x3f2   :  { %v1528_v26 = vrot.slane %v1513_v22, 2 }
 0x3f3   :  { %v1538_v55 = vadd.f32 %v1523_v28, %v1366_v49  ;;  %v2096_v38 = vsel %vm2055_vm4, %v2094_v12, %v2095_v53  ;;  %vm2424_vm4 = vcmask 123904  }
 0x3fd   :  { %v1677_v54 = vpop.xlane.xlu0 %1676 }
 0x3fe   :  { %v1710_v57 = vrot.slane %v1677_v54, 3  ;;  %v1526_v54 = vrot.slane %v4596_v9, 2 }
 0x400   :  { %v1725_v19 = vadd.f32 %v1710_v57, %v1538_v55  ;;  %v1529_v22 = vsel %vm1481_vm10, %v1526_v54, %v1528_v26 }
 0x401   :  { %v4605_v14 = vpop.xlane.xlu0 %1690 }
 0x402   :  { %v1815_v3 = vadd.f32 %v1802_v48, %v1725_v19 }
 0x403   :  { %v1141_v21 = vpop.xlane.xlu1 %1140 }
 0x404   :  { %v1972_v33 = vadd.f32 %v1958_v47, %v1815_v3  ;;  %v1365_v48 = vadd.f32 %v1352_v10, %v1141_v21  ;;  %v1524_v47 = vsel %vm1481_vm10, %v1521_v8, %v1523_v28  ;;  %v2226_v28 = vrot.slane %v4569_v17, 7 }
 0x406   :  { %v4603_v18 = vadd.f32 %v2098_v40, %v1972_v33  ;;  %v1537_v15 = vadd.f32 %v1524_v47, %v1365_v48  ;;  %v2227_v60 = vsel %vm1914_vm3, %v2225_v39, %v2226_v28 }
 0x407   :  { %v1475_v24 = vpop.xlane.xlu0 %1474 }
 0x40e   :  { %v1165_v56 = vpop.xlane.xlu1 %1164 }
 0x40f   :  { %v1368_v52 = vadd.f32 %v1357_v16, %v1165_v56 }
 0x411   :  { %v1540_v40 = vadd.f32 %v1529_v22, %v1368_v52 }
 0x412   :  { %v1174_v44 = vpop.xlane.xlu1 %1173 }
 0x413   :  { %v1369_v49 = vadd.f32 %v1356_v59, %v1174_v44 }
 0x415   :  { %v1136_v62 = vpop.xlane.xlu0 %1135  ;;  %v1541_v3 = vadd.f32 %v1528_v26, %v1369_v49 }
 0x41a   :  { %v1668_v42 = vpop.xlane.xlu1 %1667 }
 0x41b   :  { %v1708_v2 = vrot.slane %v1668_v42, 3  ;;  %v1520_v42 = vrot.slane %v1475_v24, 2 }
 0x41d   :  { %v1711_v46 = vsel %vm1308_vm9, %v1708_v2, %v1710_v57  ;;  %v1713_v57 = vrot.slane %v4605_v14, 3  ;;  %v1160_v9 = vpop.xlane.xlu0 %1159 }
 0x41e   :  { %v1724_v63 = vadd.f32 %v1711_v46, %v1537_v15 }
 0x420   :  { %v1814_v55 = vadd.f32 %v4532_v20, %v1724_v63 }
 0x422   :  { %v1700_v19 = vpop.xlane.xlu1 %1699  ;;  %v1971_v33 = vadd.f32 %v4546_v34, %v1814_v55 }
 0x423   :  { %v1715_v29 = vrot.slane %v1700_v19, 3 }
 0x424   :  { %v2111_v56 = vadd.f32 %v2096_v38, %v1971_v33 }
 0x425   :  { %v1716_v21 = vsel %vm1308_vm9, %v1713_v57, %v1715_v29  ;;  %v1728_v20 = vadd.f32 %v1715_v29, %v1541_v3  ;;  %v1663_v34 = vpop.xlane.xlu0 %1662 }
 0x426   :  { %v1727_v17 = vadd.f32 %v1716_v21, %v1540_v40  ;;  %v2242_v10 = vadd.f32 %v2227_v60, %v2111_v56  ;;  %v1707_v46 = vrot.slane %v1663_v34, 3 }
 0x427   :  { %v1818_v44 = vadd.f32 %v1805_v50, %v1728_v20 }
 0x428   :  { %v1817_v14 = vadd.f32 %v4540_v0, %v1727_v17  ;;  %v1522_v0 = vsel %vm1481_vm10, %v1520_v42, %v1521_v8 }
 0x429   :  { %v1975_v48 = vadd.f32 %v4549_v13, %v1818_v44  ;;  %v1302_v59 = vpop.xlane.xlu1 %1301  ;;  %v1709_v13 = vsel %vm1308_vm9, %v1707_v46, %v1708_v2 }
 0x42a   :  { %v1974_v53 = vadd.f32 %v4557_v6, %v1817_v14  ;;  %v1348_v47 = vrot.slane %v1302_v59, 1 }
 0x42b   :  { %v2115_v15 = vadd.f32 %v4565_v31, %v1975_v48  ;;  %v5024_v48 = vlaneseq }
 0x42c   :  { %v2114_v26 = vadd.f32 %v4575_v25, %v1974_v53  ;;  %v1350_v16 = vsel %vm1347_vm11, %v1348_v47, %v1349_v41 }
 0x42d   :  { %v1364_v5 = vadd.f32 %v1350_v16, %v1136_v62  ;;  %v2195_v63 = vpop.xlane.xlu0 %2194  ;;  %v2388_v34 = vand.u32 127, %v5024_v48  ;;  %v2514_v48 = vld [vmem:[%s4761_s10] sm:$0x3]  ;;  %s2922_s10 = smov [#allocation4]  }
 0x42e   :  { %v2245_v50 = vadd.f32 %v4590_v35, %v2114_v26  ;;  %v2228_v62 = vrot.slane %v2195_v63, 7  ;;  %v5025_v26 = vld [vmem:[#allocation7_spill] sm:$0xff]  ;;  %s2616_s24 = sshll.u32 %s2922_s10, 4  ;;  %s2617_s24 = int_to_ptr.vmem [resolvable:$true] %s2616_s24 }
 0x42f   :  { %v1536_v49 = vadd.f32 %v1522_v0, %v1364_v5  ;;  %v2394_v59 = vadd.s32 4294967292, %v2388_v34  ;;  %v2389_v53 = vadd.s32 4, %v2388_v34  ;;  %s2892_s25 = scalar_lea.vmem %s2617_s24, 32  ;;  %p2897_p1 = scmp.lt.s32.totalorder %s2617_s24, %s2617_s24 }
 0x430   :  { %v2229_v2 = vsel %vm1914_vm3, %v2226_v28, %v2228_v62  ;;  %p2893_p0 = scmp.ne.s32.totalorder %s2617_s24, %s2892_s25  ;;  %p2898_p2 = scmp.lt.s32.totalorder %s2892_s25, %s2892_s25 }
 0x431   :  { %v1723_v52 = vadd.f32 %v1709_v13, %v1536_v49  ;;  %v1326_v6 = vpop.xlane.xlu1 %1325  ;;  %v4688_v46 = vsub.s32 %v2394_v59, %v5025_v26  ;;  %v4691_v16 = vsub.s32 %v2389_v53, %v5025_v26 }
 0x432   :  { %v1353_v22 = vrot.slane %v1326_v6, 1  ;;  %p2899_p3 = por %p2898_p2, %p2897_p1 }
 0x433   :  { %v1813_v24 = vadd.f32 %v1801_v4, %v1723_v52  ;;  %v2243_v4 = vadd.f32 %v2229_v2, %v4603_v18 }
 0x434   :  { %v1355_v3 = vsel %vm1347_vm11, %v1353_v22, %v1354_v58  ;;  %p2900_p4 = pnand %p2899_p3, %p2893_p0 }
 0x435   :  { %v1970_v31 = vadd.f32 %v1954_v37, %v1813_v24  ;;  %v2319_v25 = vpop.xlane.xlu0 %2318  ;;  %v1367_v33 = vadd.f32 %v1355_v3, %v1160_v9 }
 0x437   :  { %v2110_v55 = vadd.f32 %v2094_v12, %v1970_v31 }
 0x438   :  { %v1499_v41 = vpop.xlane.xlu1 %1498 }
 0x439   :  { %v2241_v35 = vadd.f32 %v2225_v39, %v2110_v55  ;;  %v1525_v19 = vrot.slane %v1499_v41, 2 }
 0x43b   :  { %v1527_v29 = vsel %vm1481_vm10, %v1525_v19, %v1526_v54 }
 0x43c   :  { %v2342_v8 = vpop.xlane.xlu0 %2341  ;;  %v1539_v38 = vadd.f32 %v1527_v29, %v1367_v33 }
 0x440   :  { %v1686_v51 = vpop.xlane.xlu1 %1685 }
 0x441   :  { %v1712_v11 = vrot.slane %v1686_v51, 3 }
 0x442   :  { %v2333_v37 = vpop.xlane.xlu0 %2332 }
 0x443   :  { %v4644_v12 = vadd.f32 %v2333_v37, %v2243_v4  ;;  %v1714_v40 = vsel %vm1308_vm9, %v1712_v11, %v1713_v57 }
 0x444   :  { %v1726_v39 = vadd.f32 %v1714_v40, %v1539_v38 }
 0x445   :  { %2376 = vperm.xlu1 %2813, %v4644_v12  }
 0x446   :  { %v1816_v58 = vadd.f32 %v1804_v36, %v1726_v39 }
 0x447   :  { %v2218_v28 = vpop.xlane.xlu1 %2217 }
 0x448   :  { %v2233_v21 = vrot.slane %v2218_v28, 7  ;;  %v1973_v54 = vadd.f32 %v1959_v45, %v1816_v58  ;;  %v4664_v45 = vadd.f32 %v2319_v25, %v2241_v35 }
 0x44a   :  { %v2234_v18 = vsel %vm1914_vm3, %v2231_v43, %v2233_v21  ;;  %v2113_v9 = vadd.f32 %v2099_v7, %v1973_v54  ;;  %v2438_v61 = vmul.f32 %v4664_v45, %v4664_v45  ;;  %vm2406_vm3 = vcmask 162912  }
 0x44b   :  { %v2324_v20 = vpop.xlane.xlu1 %2323  ;;  %v2246_v57 = vadd.f32 %v2234_v18, %v2115_v15  ;;  %v2401_v15 = vadd.s32 4294967284, %v2388_v34  ;;  %v2543_v34 = vrot.slane %v2514_v48, 1 }
 0x44c   :  { %v4657_v56 = vadd.f32 %v2324_v20, %v2242_v10  ;;  %v2244_v27 = vadd.f32 %v2230_v1, %v2113_v9  ;;  %v2440_v1 = vmul.f32 %v4644_v12, %v4644_v12 }
 0x44d   :  { %v4695_v0 = vsub.s32 %v2401_v15, %v5025_v26 }
 0x44e   :  { %2373 = vperm.xlu1 %2813, %v4657_v56   ;;  %v4662_v36 = vadd.f32 %v2342_v8, %v2244_v27  ;;  %v2439_v17 = vmul.f32 %v4657_v56, %v4657_v56 }
 0x44f   :  { %v2347_v30 = vpop.xlane.xlu1 %2346 }
 0x450   :  { %v4672_v7 = vadd.f32 %v2347_v30, %v2245_v50  ;;  %v2441_v23 = vmul.f32 %v4662_v36, %v4662_v36 }
 0x452   :  { %2379 = vperm.xlu1 %2813, %v4662_v36   ;;  %v2442_v60 = vmul.f32 %v4672_v7, %v4672_v7 }
 0x453   :  { %v2356_v32 = vpop.xlane.xlu1 %2355 }
 0x454   :  { %v4667_v43 = vadd.f32 %v2356_v32, %v2246_v57 }
 0x456   :  { %2385 = vperm.xlu0 %2812, %v4667_v43   ;;  %2451 = vperm.xlu1 %2813, %v2438_v61   ;;  %v2443_v44 = vmul.f32 %v4667_v43, %v4667_v43 }
 0x45a   :  { %2382 = vperm.xlu0 %2812, %v4672_v7   ;;  %2460 = vperm.xlu1 %2813, %v2441_v23  }
 0x45e   :  { %2370 = vperm.xlu0 %2812, %v4664_v45   ;;  %2457 = vperm.xlu1 %2813, %v2440_v1  }
 0x462   :  { %2454 = vperm.xlu0 %2812, %v2439_v17  }
 0x466   :  { %2463 = vperm.xlu0 %2812, %v2442_v60  }
 0x46a   :  { %2466 = vperm.xlu0 %2812, %v2443_v44  }
 0x4c4   :  { %v2377_v10 = vpop.permute.xlu1 %2376 }
 0x4c5   :  { %v2405_v31 = vrot.slane %v2377_v10, %v4695_v0 }
 0x4cd   :  { %v2374_v14 = vpop.permute.xlu1 %2373 }
 0x4ce   :  { %v2398_v52 = vrot.slane %v2374_v14, %v4688_v46 }
 0x4d1   :  { %v2380_v42 = vpop.permute.xlu1 %2379 }
 0x4d2   :  { %v2411_v13 = vrot.slane %v2380_v42, %v4691_v16 }
 0x4d5   :  { %v2386_v47 = vpop.permute.xlu0 %2385  ;;  %v2452_v49 = vpop.permute.xlu1 %2451 }
 0x4d6   :  { %v2420_v25 = vrot.slane %v2386_v47, %v4695_v0  ;;  %v2471_v29 = vrot.slane %v2452_v49, %v4691_v16 }
 0x4d9   :  { %v2383_v5 = vpop.permute.xlu0 %2382  ;;  %v2461_v41 = vpop.permute.xlu1 %2460 }
 0x4da   :  { %v2415_v50 = vrot.slane %v2383_v5, %v4688_v46  ;;  %v2485_v4 = vrot.slane %v2461_v41, %v4691_v16 }
 0x4dc   :  { %v2416_v6 = vsel %vm2399_vm2, %v2415_v50, %v2411_v13 }
 0x4dd   :  { %v2371_v63 = vpop.permute.xlu0 %2370  ;;  %v2421_v35 = vsel %vm2406_vm3, %v2420_v25, %v2416_v6  ;;  %v2458_v33 = vpop.permute.xlu1 %2457 }
 0x4de   :  { %v2393_v24 = vrot.slane %v2371_v63, %v4691_v16  ;;  %v2480_v38 = vrot.slane %v2458_v33, %v4695_v0 }
 0x4e0   :  { %v2400_v55 = vsel %vm2399_vm2, %v2398_v52, %v2393_v24 }
 0x4e1   :  { %v2455_v62 = vpop.permute.xlu0 %2454  ;;  %v2407_v22 = vsel %vm2406_vm3, %v2405_v31, %v2400_v55 }
 0x4e2   :  { %v2422_v19 = vsel %vm103_vm1, %v2421_v35, %v2407_v22  ;;  %v2475_v3 = vrot.slane %v2455_v62, %v4688_v46 }
 0x4e3   :  { %v2425_v8 = vsel %vm2424_vm4, %v2422_v19, 0.0 }
 0x4e4   :  { %2426 = vadd.xlane.f32.xlu1 %v2425_v8  ;;  %v2476_v11 = vsel %vm2399_vm2, %v2475_v3, %v2471_v29 }
 0x4e5   :  { %v2464_v2 = vpop.permute.xlu0 %2463  ;;  %v2481_v58 = vsel %vm2406_vm3, %v2480_v38, %v2476_v11 }
 0x4e6   :  { %v2489_v51 = vrot.slane %v2464_v2, %v4688_v46 }
 0x4e8   :  { %v2490_v39 = vsel %vm2399_vm2, %v2489_v51, %v2485_v4 }
 0x4e9   :  { %v2467_v37 = vpop.permute.xlu0 %2466 }
 0x4ea   :  { %v2494_v40 = vrot.slane %v2467_v37, %v4695_v0 }
 0x4ec   :  { %v2495_v28 = vsel %vm2406_vm3, %v2494_v40, %v2490_v39 }
 0x4ed   :  { %v2496_v21 = vsel %vm103_vm1, %v2495_v28, %v2481_v58  ;;  %vm2605_vm1 = vcmask 1045509  }
 0x4ee   :  { %v2498_v54 = vsel %vm2424_vm4, %v2496_v21, 0.0 }
 0x4ef   :  { %2499 = vadd.xlane.f32.xlu0 %v2498_v54 }
 0x571   :  { %v2427_v18 = vpop.xlane.xlu1 %2426 }
 0x572   :  { %v2428_v9 = vrot.slane %v2427_v18, 4 }
 0x574   :  { %v2429_v20 = vadd.f32 %v2428_v9, %v2427_v18 }
 0x576   :  { %v2430_v57 = vrot.slane %v2429_v20, 2 }
 0x578   :  { %v2431_v27 = vadd.f32 %v2430_v57, %v2429_v20 }
 0x57a   :  { %v2432_v30 = vrot.slane %v2431_v27, 1 }
 0x57c   :  { %v2500_v32 = vpop.xlane.xlu0 %2499  ;;  %v2433_v61 = vadd.f32 %v2432_v30, %v2431_v27 }
 0x57d   :  { %v2501_v23 = vrot.slane %v2500_v32, 4 }
 0x57e   :  { %2795 = vpush %v2433_v61 }
 0x57f   :  { %v2502_v1 = vadd.f32 %v2501_v23, %v2500_v32 }
 0x581   :  { %v2503_v17 = vrot.slane %v2502_v1, 2 }
 0x583   :  { %v2504_v60 = vadd.f32 %v2503_v17, %v2502_v1 }
 0x585   :  { %v2505_v44 = vrot.slane %v2504_v60, 1 }
 0x587   :  { %v2506_v10 = vadd.f32 %v2505_v44, %v2504_v60 }
 0x589   :  { %2797 = vpush %v2506_v10 }
 0x5af   :  { %s2796_s9 = spop %2795 }
 0x5b0   :  { %s2437_s2 = smul.f32 0.03125, %s2796_s9 }
 0x5b2   :  { %s2511_s15 = smul.f32 %s2437_s2, %s2437_s2  ;;  %v2515_v53 = vstv %s2437_s2 }
 0x5b3   :  { %v2517_v42 = vsub.f32 %v4657_v56, %v2515_v53  ;;  %v2516_v47 = vsub.f32 %v4664_v45, %v2515_v53  ;;  %v2519_v15 = vsub.f32 %v4662_v36, %v2515_v53  ;;  %v2520_v5 = vsub.f32 %v4672_v7, %v2515_v53 }
 0x5b4   :  { %v2518_v24 = vsub.f32 %v4644_v12, %v2515_v53  ;;  %v2521_v31 = vsub.f32 %v4667_v43, %v2515_v53 }
 0x5ba   :  { %s2798_s16 = spop %2797 }
 0x5bb   :  { %s2510_s17 = smul.f32 0.03125, %s2798_s16 }
 0x5bd   :  { %s2512_s18 = ssub.f32 %s2510_s17, %s2511_s15 }
 0x5bf   :  { %s2513_s20 = smax.f32 %s2921_s19, %s2512_s18 }
 0x5c0   :  { %s2522_s21 = sadd.f32 1e-05, %s2513_s20 }
 0x5c2   :  { %v2523_v14 = vstv %s2522_s21 }
 0x5c3   :  { %2890 = vrsqrt.f32 %v2523_v14 }
 0x5cd   :  { %v2891_v59 = vpop.eup %2890 }
 0x5ce   :  { %2799 = vpush %v2891_v59 }
 0x5cf   :  { %2801 = vpush %v2514_v48 }
 0x5d0   :  { %2803 = vpush %v2543_v34 }
 0x5ff   :  { %s2800_s4 = spop %2799 }
 0x600   :  { %v2526_v26 = vstv %s2800_s4  ;;  %s2802_s7 = spop %2801 }
 0x601   :  { %v2535_v50 = vstv %s2802_s7  ;;  %s2804_s23 = spop %2803  ;;  %v2528_v49 = vmul.f32 %v2526_v26, %v2517_v42  ;;  %v2527_v13 = vmul.f32 %v2526_v26, %v2516_v47  ;;  %v2530_v63 = vmul.f32 %v2526_v26, %v2519_v15 }
 0x602   :  { %v2545_v52 = vstv %s2804_s23  ;;  %v2531_v6 = vmul.f32 %v2526_v26, %v2520_v5  ;;  %v2529_v45 = vmul.f32 %v2526_v26, %v2518_v24  ;;  %v2532_v55 = vmul.f32 %v2526_v26, %v2521_v31 }
 0x603   :  { %v2538_v56 = vmul.f32 %v2535_v50, %v2528_v49  ;;  %v2537_v25 = vmul.f32 %v2535_v50, %v2527_v13  ;;  %v2540_v62 = vmul.f32 %v2535_v50, %v2530_v63 }
 0x604   :  { %v2541_v22 = vmul.f32 %v2535_v50, %v2531_v6  ;;  %v2539_v19 = vmul.f32 %v2535_v50, %v2529_v45  ;;  %v2542_v8 = vmul.f32 %v2535_v50, %v2532_v55 }
 0x605   :  { %v2548_v36 = vadd.f32 %v2545_v52, %v2538_v56  ;;  %v2547_v41 = vadd.f32 %v2545_v52, %v2537_v25  ;;  %v2550_v7 = vadd.f32 %v2545_v52, %v2540_v62 }
 0x606   :  { %v2551_v35 = vadd.f32 %v2545_v52, %v2541_v22  ;;  %v2549_v3 = vadd.f32 %v2545_v52, %v2539_v19  ;;  %v2552_v12 = vadd.f32 %v2545_v52, %v2542_v8 }
 0x607   :  { %2563 = vperm.xlu1 %2813, %v2548_v36   ;;  %2560 = vperm.xlu0 %2812, %v2547_v41  }
 0x60b   :  { %2569 = vperm.xlu1 %2813, %v2550_v7   ;;  %2572 = vperm.xlu0 %2812, %v2551_v35  }
 0x60f   :  { %2566 = vperm.xlu1 %2813, %v2549_v3   ;;  %2575 = vperm.xlu0 %2812, %v2552_v12  }
 0x686   :  { %v2564_v43 = vpop.permute.xlu1 %2563  ;;  %v2561_v2 = vpop.permute.xlu0 %2560 }
 0x687   :  { %v2584_v51 = vrot.slane %v2564_v43, %v4688_v46  ;;  %v2580_v4 = vrot.slane %v2561_v2, %v4691_v16 }
 0x689   :  { %v2585_v28 = vsel %vm2399_vm2, %v2584_v51, %v2580_v4 }
 0x68a   :  { %v2570_v29 = vpop.permute.xlu1 %2569  ;;  %v2573_v33 = vpop.permute.xlu0 %2572 }
 0x68b   :  { %v2594_v11 = vrot.slane %v2570_v29, %v4691_v16  ;;  %v2598_v37 = vrot.slane %v2573_v33, %v4688_v46 }
 0x68d   :  { %v2599_v21 = vsel %vm2399_vm2, %v2598_v37, %v2594_v11 }
 0x68e   :  { %v2567_v38 = vpop.permute.xlu1 %2566  ;;  %v2576_v40 = vpop.permute.xlu0 %2575 }
 0x68f   :  { %v2589_v39 = vrot.slane %v2567_v38, %v4695_v0  ;;  %v2603_v58 = vrot.slane %v2576_v40, %v4695_v0 }
 0x691   :  { %v2590_v54 = vsel %vm2406_vm3, %v2589_v39, %v2585_v28  ;;  %v2604_v16 = vsel %vm2406_vm3, %v2603_v58, %v2599_v21 }
 0x692   :  { %v2606_v46 = vsel %vm2605_vm1, %v2604_v16, %v2590_v54 }
 0x693   :  { %2609 = vst.msk [vmem:[#allocation4 - $0x4] sm:$0x30] %vm2608_vm5, %v2606_v46 }
 0x694   :  { %2903 = shalt.err (!%p2900_p4)
}
 0x695   :  { %s2904_s6 = scalar_lea.hbm %s4762_s11, 32 }
 0x696   :  { %p2905_p5 = scmp.ne.s32.totalorder %s4762_s11, %s2904_s6  ;;  %p2908_p6 = scmp.lt.u32.totalorder %s2904_s6, %s4762_s11 }
 0x698   :  { %p2910_p7 = pnand %p2908_p6, %p2905_p5 }
 0x69a   :  { %2913 = shalt.err (!%p2910_p7)
}
 0x69b   :  { %2619 = dma.vmem_to_hbm [thread:$0]  %s2617_s24, 32, %s4762_s11, [#allocation5]  }
 0x69c   :  { %2914 = dma.done.wait [#allocation5], 32  }
 0x69d   :  { %2915 = vsyncadd [#allocation5], 4294967264 }
 0x69e   :  { %2623 = vsyncpa [#allocation5], 1 }

// kernel: dcnn_forward.4
= control target key start
LH: loop header
LB: loop body
LE: loop exit
PB: predicated region body
PF: predicated region fallthrough
CT: control target
= control target key end

     0   :  { %8 = vsyncpa [#allocation5], 0  ;;  %s5858_s0 = inlined_call_operand.vmem [shape: bf16[2,16,128], index: 0, kind: input, shape index: {}]   ;;  %s5859_s1 = inlined_call_operand.hbm [shape: bf16[100,7,128,128], index: 1, kind: input, shape index: {}]   ;;  %s5860_s2 = inlined_call_operand.hbm [shape: f32[100,2,128], index: 2, kind: input, shape index: {}]   ;;  %s5861_s3 = inlined_call_operand.vmem [shape: bf16[2,16,128], index: 3, kind: output, shape index: {}]  }
   0x1   :  { %10 = vsyncpa [#allocation5 + $0x1], 0 }
   0x2   :  { %11 = vsyncpa [#allocation7], 0 }
   0x3   :  { %13 = vsyncpa [#allocation7 + $0x1], 0  ;;  %s5343_s12 = smov 0   ;;  %s5345_s13 = smov 0  }
   0x4   :  { %s5347_s14 = smov 0   ;;  %s5349_s15 = smov 0  }
   0x5 LB: > { %s5362_s16 = sadd.s32 4294967295, %s5314_s15   ;;  %s5365_s17 = sadd.s32 1, %s5314_s15   ;;  %s5314_s15 = sphi %s5349_s15, %s5871_s15   ;;  %s5310_s14 = sphi %s5347_s14, %s5870_s14   ;;  %s5306_s13 = sphi %s5345_s13, %s5869_s13   ;;  %s5302_s12 = sphi %s5343_s12, %s5868_s12  }
   0x6   : > { %s23_s18 = ssub.s32 %s5314_s15, %s5365_s17  ;;  %s26_s19 = sadd.s32 1, %s5310_s14 }
   0x7   : > { %p24_p0 = scmp.eq.s32.totalorder %s23_s18, 0  ;;  %p33_p1 = scmp.ne.s32.totalorder %s5310_s14, %s5306_s13 }
   0x8   : > { %p34_p2 = scmp.eq.s32.totalorder %s5314_s15, 0  ;;  %p39_p3 = scmp.ne.s32.totalorder %s5306_s13, %s5302_s12 }
   0x9   : > { %s5375_s20 = scalar_select %p24_p0, %s5310_s14, %s26_s19  }
   0xa   : > { %p35_p4 = por %p34_p2, %p33_p1  ;;  %p40_p5 = scmp.eq.s32.totalorder %s5362_s16, 0 }
   0xb   : > { %p4940_p6 = scmp.lt.s32.totalorder %s5314_s15, 25  ;;  %s5384_s22 = sand.u32 1, %s5310_s14  }
   0xc   : > { %p5379_p7 = por %p40_p5, %p39_p3  ;;  %s4926_s23 = smul.u32 1792, %s5384_s22 }
   0xd   : > { %s4927_s24 = smul.u32 28672, %s5314_s15  ;;  %p5388_p8 = pnand %p4940_p6, %p35_p4 }
   0xe   : > { %s5863_s21 = scalar_select %p5379_p7, 1, 0 }
   0xf   : > { %s5395_s28 = scalar_lea.hbm %s5859_s1, %s4927_s24  ;;  %s114_s29 = scalar_lea.vmem [#allocation4], %s4926_s23 }
  0x10   : > { %s122_s30 = sshll.u32 %s114_s29, 4  ;;  %s111_s4 = scalar_lea.sflag [#allocation5], %s5384_s22  ;;  %s5397_s30 = int_to_ptr.vmem [resolvable:$true] %s122_s30 }
  0x11   : > { %s5214_s5 = scalar_lea.hbm %s5395_s28, 28672  ;;  %p5216_p11 = pneg %p5388_p8 }
  0x12   : > { %p5215_p10 = scmp.ne.s32.totalorder %s5395_s28, %s5214_s5  ;;  %s5219_s8 = scalar_lea.hbm %s5859_s1, 716800 }
  0x13   : > { %p5220_p0 = scmp.lt.u32.totalorder %s5395_s28, %s5859_s1  ;;  %p5221_p1 = scmp.lt.u32.totalorder %s5219_s8, %s5214_s5 }
  0x14   : > { %p5217_p12 = pnand %p5216_p11, %p5215_p10  ;;  %p5223_p3 = scmp.lt.u32.totalorder %s5214_s5, %s5395_s28 }
  0x15   : > { %p5222_p2 = por %p5221_p1, %p5220_p0 }
  0x16   : > { %p5218_p13 = pneg %p5217_p12 }
  0x17   : > { %p5224_p4 = por %p5223_p3, %p5222_p2 }
  0x19   : > { %p5225_p5 = pnand %p5224_p4, %p5218_p13 }
  0x1b   : > { %5228 = shalt.err (!%p5225_p5)
}
  0x1c   : > { %s5229_s11 = scalar_lea.vmem %s5397_s30, 28672  ;;  %s5316_s12 = smov [#allocation4]  }
  0x1d   : > { %p5230_p6 = scmp.ne.s32.totalorder %s5397_s30, %s5229_s11  ;;  %s5234_s18 = sshll.u32 %s5316_s12, 4  ;;  %s5235_s18 = int_to_ptr.vmem [resolvable:$false] %s5234_s18 }
  0x1e   : > { %s5236_s19 = scalar_lea.vmem %s5235_s18, 57344  ;;  %p5237_p9 = scmp.lt.s32.totalorder %s5397_s30, %s5235_s18 }
  0x1f   : > { %p5232_p10 = pnand %p5230_p6, %p5216_p11  ;;  %p5238_p0 = scmp.lt.s32.totalorder %s5236_s19, %s5229_s11 }
  0x21   : > { %p5233_p12 = pneg %p5232_p10  ;;  %p5239_p1 = por %p5238_p0, %p5237_p9 }
  0x23   : > { %p5240_p2 = pnand %p5239_p1, %p5233_p12 }
  0x25   : > { %5243 = shalt.err (!%p5240_p2)
}
  0x26   : > { %s5317_s23 = smov 64   ;;  %s5318_s24 = smov 4  }
  0x27   : > { %4936 = dma.hbm_to_vmem [thread:$0]  (!%p5388_p8), %s5395_s28, 28672, %s5397_s30, %s111_s4, %s5317_s23, %s5317_s23, %s5318_s24  }
  0x28   : > { %p151_p13 = scmp.lt.s32.totalorder %s5314_s15, 26  ;;  %s3892_s26 = sshll.u32 %s5384_s22, 3 }
  0x29   : > { %s4469_s27 = sshll.u32 %s5314_s15, 7  ;;  %p5865_p9 = scmp.ge.s32.totalorder %s5314_s15, 1 }
  0x2a   : > { %s5440_s7 = scalar_lea.hbm %s5860_s2, %s4469_s27  ;;  %s136_s8 = scalar_lea.vmem [#allocation6], %s3892_s26 }
  0x2b   : > { %p5433_p3 = pnand %p5865_p9, %p151_p13  ;;  %s143_s9 = sshll.u32 %s136_s8, 4  ;;  %s5442_s9 = int_to_ptr.vmem [resolvable:$true] %s143_s9 }
  0x2c   : > { %s133_s28 = scalar_lea.sflag [#allocation7], %s5384_s22  ;;  %s5244_s30 = scalar_lea.hbm %s5440_s7, 128 }
  0x2d   : > { %p5245_p4 = scmp.ne.s32.totalorder %s5440_s7, %s5244_s30  ;;  %s5249_s10 = scalar_lea.hbm %s5860_s2, 3200 }
  0x2e   : > { %p5250_p10 = scmp.lt.u32.totalorder %s5440_s7, %s5860_s2  ;;  %p5251_p12 = scmp.lt.u32.totalorder %s5249_s10, %s5244_s30 }
  0x2f   : > { %p5247_p5 = pnand %p5245_p4, %p5216_p11  ;;  %p5253_p1 = scmp.lt.u32.totalorder %s5244_s30, %s5440_s7 }
  0x30   : > { %p5252_p0 = por %p5251_p12, %p5250_p10 }
  0x31   : > { %p5248_p6 = pneg %p5247_p5 }
  0x32   : > { %p5254_p2 = por %p5253_p1, %p5252_p0 }
  0x34   : > { %p5255_p13 = pnand %p5254_p2, %p5248_p6 }
  0x36   : > { %5258 = shalt.err (!%p5255_p13)
}
  0x37   : > { %s5259_s18 = scalar_lea.vmem %s5442_s9, 128  ;;  %s5319_s19 = smov [#allocation6]  }
  0x38   : > { %p5260_p9 = scmp.ne.s32.totalorder %s5442_s9, %s5259_s18  ;;  %s5264_s23 = sshll.u32 %s5319_s19, 4  ;;  %s5265_s23 = int_to_ptr.vmem [resolvable:$false] %s5264_s23 }
  0x39   : > { %s5266_s24 = scalar_lea.vmem %s5265_s23, 256  ;;  %p5267_p7 = scmp.lt.s32.totalorder %s5442_s9, %s5265_s23 }
  0x3a   : > { %p5262_p4 = pnand %p5260_p9, %p5216_p11  ;;  %p5268_p10 = scmp.lt.s32.totalorder %s5266_s24, %s5259_s18 }
  0x3c   : > { %p5263_p5 = pneg %p5262_p4  ;;  %p5269_p12 = por %p5268_p10, %p5267_p7 }
  0x3e   : > { %p5270_p0 = pnand %p5269_p12, %p5263_p5 }
  0x40   : > { %5273 = shalt.err (!%p5270_p0)
}
  0x41   : > { %s5320_s26 = smov 32   ;;  %s5321_s27 = smov 2  }
  0x42   : > { %4939 = dma.hbm_to_vmem [thread:$0]  (!%p5388_p8), %s5440_s7, 128, %s5442_s9, %s133_s28, %s5320_s26, %s5320_s26, %s5321_s27  }
  0x43   : > { %155 = sbr.rel (%p5433_p3) target bundleno = 1402 (0x57a), region = 28  ;;  %s157_s5 = sand.u32 (!%p5433_p3), 1, %s5306_s13  }
  0x44   : > { %s4928_s6 = smul.u32 (!%p5433_p3), 1792, %s157_s5  ;;  %s158_s8 = scalar_lea.sflag (!%p5433_p3), [#allocation5], %s157_s5 }
  0x45   : > { %p5867_p7 = scmp.ne.s32.totalorder (!%p5433_p3), %s5863_s21, 0 }
  0x46   : > { %s5473_s30 = scalar_lea.vmem (!%p5433_p3), [#allocation4], %s4928_s6 }
  0x4a   : > { %5291 = dma.done.wait (%p5867_p7), %s158_s8, 28672  }
  0x4b   : > { %5293 = vsyncadd (%p5867_p7), %s158_s8, 4294938624  ;;  %s3896_s15 = sshll.u32 %s157_s5, 3  ;;  %s167_s25 = scalar_lea.sflag [#allocation7], %s157_s5 }
  0x4c   : > { %s5479_s22 = scalar_lea.vmem [#allocation6], %s3896_s15 }
  0x4d   : > { %5295 = dma.done.wait (%p5867_p7), %s167_s25, 128  }
  0x4e   : > { %5297 = vsyncadd (%p5867_p7), %s167_s25, 4294967168  ;;  %p3897_p8 = scmp.ne.s32.totalorder %s5362_s16, 0 }
  0x4f   : > { %v237_v0 = vld [vmem:[%s5858_s0] sm:$0xff] (!%p3897_p8)  ;;  %v239_v1 = vld [vmem:[%s5858_s0 + $0x8] sm:$0xff] (!%p3897_p8)  ;;  %v5322_v2 = vmov (!%p3897_p8), 0  }
  0x50   : > { %197 = sbr.rel (%p3897_p8) target bundleno = 90 (0x5a), region = 40  ;;  %198 = vst [vmem:[#allocation2] sm:$0xff] (!%p3897_p8), %v5322_v2  ;;  %199 = vst [vmem:[#allocation2 + $0x18] sm:$0xff] (!%p3897_p8), %v5322_v2 }
  0x51   : > { %200 = vst [vmem:[#allocation2 + $0x10] sm:$0xff] (!%p3897_p8), %v5322_v2  ;;  %201 = vst [vmem:[#allocation2 + $0x28] sm:$0xff] (!%p3897_p8), %v5322_v2 }
  0x52   : > { %238 = vst [vmem:[#allocation2 + $0x8] sm:$0xff] (!%p3897_p8), %v237_v0  ;;  %240 = vst [vmem:[#allocation2 + $0x20] sm:$0xff] (!%p3897_p8), %v239_v1 }
  0x57   : > { %248 = vsyncadd [#allocation3], 256 }
  0x58   : > { %5298 = dma.done.wait [#allocation3], 256 }
  0x59   : > { %5299 = vsyncadd [#allocation3], 4294967040 }
  0x5a PF: > { %v4978_v3 = vld [vmem:[%s5473_s30 + $0x40] sm:$0xff]   ;;  %v4982_v7 = vld [vmem:[%s5473_s30 + $0x48] sm:$0xff]   ;;  %v4986_v11 = vld [vmem:[%s5473_s30 + $0x50] sm:$0xff]   ;;  %vm293_vm0 = vcmask 1044480   ;;  %vm258_vm1 = vsmask.f32 7424 }
  0x5b   : > { %v4979_v4 = vld [vmem:[%s5473_s30 + $0xc0] sm:$0xff]   ;;  %4470 = vmatprep.subr.bf16.mxu0 %v4978_v3  ;;  %v4983_v8 = vld [vmem:[%s5473_s30 + $0xc8] sm:$0xff]   ;;  %v4987_v12 = vld [vmem:[%s5473_s30 + $0xd0] sm:$0xff]   ;;  %vm306_vm2 = vsmask.f32 2304  ;;  %vm394_vm4 = vcmask 1042432  }
  0x5c   : > { %v4980_v5 = vld [vmem:[%s5473_s30] sm:$0xff]   ;;  %4498 = vmatprep.subr.bf16.mxu1 %v4979_v4  ;;  %v4984_v9 = vld [vmem:[%s5473_s30 + $0x8] sm:$0xff]   ;;  %v4988_v13 = vld [vmem:[%s5473_s30 + $0x10] sm:$0xff]   ;;  %vm349_vm3 = vsmask.f32 5376  ;;  %p4461_p11 = scmp.ne.s32.totalorder %s5362_s16, 24 }
  0x5d   : > { %v4981_v6 = vld [vmem:[%s5473_s30 + $0x80] sm:$0xff]   ;;  %4471 = vmatpush3.bf16.msra.mxu0 %v4980_v5  ;;  %v4985_v10 = vld [vmem:[%s5473_s30 + $0x88] sm:$0xff]   ;;  %v4989_v14 = vld [vmem:[%s5473_s30 + $0x90] sm:$0xff]   ;;  %vm407_vm5 = vsmask.f32 256 }
  0x5e   : > { %4499 = vmatpush3.bf16.msra.mxu1 %v4981_v6  ;;  %4472 = vmatprep.subr.bf16.mxu0 %v4982_v7  ;;  %v4990_v15 = vld [vmem:[%s5473_s30 + $0x58] sm:$0xff]   ;;  %v4994_v19 = vld [vmem:[%s5473_s30 + $0x60] sm:$0xff]   ;;  %v4998_v23 = vld [vmem:[%s5473_s30 + $0x68] sm:$0xff]  }
  0x5f   : > { %4500 = vmatprep.subr.bf16.mxu1 %v4983_v8  ;;  %v4991_v16 = vld [vmem:[%s5473_s30 + $0xd8] sm:$0xff]   ;;  %v4995_v20 = vld [vmem:[%s5473_s30 + $0xe0] sm:$0xff]   ;;  %v4999_v24 = vld [vmem:[%s5473_s30 + $0xe8] sm:$0xff]  }
  0x60   : > { %v4992_v17 = vld [vmem:[%s5473_s30 + $0x18] sm:$0xff]   ;;  %v4996_v21 = vld [vmem:[%s5473_s30 + $0x20] sm:$0xff]   ;;  %v5000_v25 = vld [vmem:[%s5473_s30 + $0x28] sm:$0xff]  }
  0x61   : > { %4473 = vmatpush3.bf16.msra.mxu0 %v4984_v9  ;;  %v4993_v18 = vld [vmem:[%s5473_s30 + $0x98] sm:$0xff]   ;;  %v4997_v22 = vld [vmem:[%s5473_s30 + $0xa0] sm:$0xff]   ;;  %v5001_v26 = vld [vmem:[%s5473_s30 + $0xa8] sm:$0xff]  }
  0x62   : > { %4501 = vmatpush3.bf16.msra.mxu1 %v4985_v10  ;;  %4474 = vmatprep.subr.bf16.mxu0 %v4986_v11  ;;  %v5002_v27 = vld [vmem:[%s5473_s30 + $0x70] sm:$0xff]   ;;  %v5006_v31 = vld [vmem:[%s5473_s30 + $0x78] sm:$0xff]   ;;  %v5010_v42 = vld [vmem:[%s5473_s30 + $0x140] sm:$0xff]  }
  0x63   : > { %4502 = vmatprep.subr.bf16.mxu1 %v4987_v12  ;;  %v5003_v28 = vld [vmem:[%s5473_s30 + $0xf0] sm:$0xff]   ;;  %v5007_v32 = vld [vmem:[%s5473_s30 + $0xf8] sm:$0xff]   ;;  %v5011_v53 = vld [vmem:[%s5473_s30 + $0x100] sm:$0xff]  }
  0x64   : > { %v5004_v29 = vld [vmem:[%s5473_s30 + $0x30] sm:$0xff]   ;;  %v5008_v33 = vld [vmem:[%s5473_s30 + $0x38] sm:$0xff]   ;;  %v5012_v61 = vld [vmem:[%s5473_s30 + $0x148] sm:$0xff]  }
  0x65   : > { %4475 = vmatpush3.bf16.msra.mxu0 %v4988_v13  ;;  %v5005_v30 = vld [vmem:[%s5473_s30 + $0xb0] sm:$0xff]   ;;  %v5009_v34 = vld [vmem:[%s5473_s30 + $0xb8] sm:$0xff]   ;;  %v5013_v62 = vld [vmem:[%s5473_s30 + $0x180] sm:$0xff]  }
  0x66   : > { %4503 = vmatpush3.bf16.msra.mxu1 %v4989_v14  ;;  %4476 = vmatprep.subr.bf16.mxu0 %v4990_v15  ;;  %v285_v35 = vld [vmem:[#allocation2] sm:$0xf8]  ;;  %v286_v36 = vld [vmem:[#allocation2 + $0x8] sm:$0x7]  ;;  %v5014_v2 = vld [vmem:[%s5473_s30 + $0x108] sm:$0xff]  }
  0x67   : > { %4504 = vmatprep.subr.bf16.mxu1 %v4991_v16  ;;  %v343_v37 = vld [vmem:[#allocation2 + $0x8] sm:$0xff]  ;;  %v294_v38 = vrot.slane %v285_v35, 3  ;;  %v295_v39 = vrot.slane %v286_v36, 3  ;;  %v254_v40 = vld [vmem:[#allocation2] sm:$0xff]  ;;  %v5016_v5 = vld [vmem:[%s5473_s30 + $0x188] sm:$0xff]  }
  0x68   : > { %963 = vmatprep.mubr.bf16.mxu1 %v343_v37  ;;  %v255_v41 = vld [vmem:[#allocation2 + $0x8] sm:$0x1]  ;;  %v260_v43 = vshrl.u32 %v254_v40, 16  ;;  %v262_v44 = vshll.u32 %v254_v40, 16  ;;  %v302_v47 = vld [vmem:[#allocation2] sm:$0xe0] }
  0x69   : > { %4477 = vmatpush3.bf16.msra.mxu0 %v4992_v17  ;;  %v267_v45 = vshll.u32 %v255_v41, 16  ;;  %v296_v46 = vsel %vm293_vm0, %v294_v38, %v295_v39  ;;  %v303_v48 = vld [vmem:[#allocation2 + $0x8] sm:$0x3f]  ;;  %v308_v51 = vshrl.u32 %v302_v47, 16  ;;  %v311_v52 = vshll.u32 %v302_v47, 16  ;;  %v5015_v3 = vld [vmem:[%s5473_s30 + $0x150] sm:$0xff]  }
  0x6a   : > { %4505 = vmatpush3.bf16.msra.mxu1 %v4993_v18  ;;  %4478 = vmatprep.subr.bf16.mxu0 %v4994_v19  ;;  %v264_v49 = vrot.slane %v262_v44, 1  ;;  %v316_v54 = vshrl.u32 %v303_v48, 16  ;;  %v319_v55 = vshll.u32 %v303_v48, 16  ;;  %v5017_v6 = vld [vmem:[%s5473_s30 + $0x110] sm:$0xff]   ;;  %v5018_v8 = vld [vmem:[%s5473_s30 + $0x158] sm:$0xff]   ;;  %v5021_v10 = vld [vmem:[%s5473_s30 + $0x160] sm:$0xff]  }
  0x6b   : > { %4506 = vmatprep.subr.bf16.mxu1 %v4995_v20  ;;  %914 = vmatprep.mubr.bf16.mxu0 %v296_v46  ;;  %v269_v50 = vrot.slane %v267_v45, 1  ;;  %v310_v57 = vrot.slane %v308_v51, 5  ;;  %v313_v58 = vrot.slane %v311_v52, 6  ;;  %v5019_v7 = vld [vmem:[%s5473_s30 + $0x190] sm:$0xff]   ;;  %v5020_v9 = vld [vmem:[%s5473_s30 + $0x118] sm:$0xff]   ;;  %v5023_v16 = vld [vmem:[%s5473_s30 + $0x120] sm:$0xff]  }
  0x6c   : > { %v5527_v56 = vor.u32 %v264_v49, %v260_v43  ;;  %v318_v59 = vrot.slane %v316_v54, 5  ;;  %v321_v60 = vrot.slane %v319_v55, 6  ;;  %v5022_v11 = vld [vmem:[%s5473_s30 + $0x198] sm:$0xff]   ;;  %v287_v12 = vld [vmem:[#allocation2 + $0x18] sm:$0xf8]  ;;  %v344_v15 = vld [vmem:[#allocation2 + $0x20] sm:$0xff] }
  0x6d   : > { %4479 = vmatpush3.bf16.msra.mxu0 %v4996_v21  ;;  %v314_v0 = vor.u32 %v313_v58, %v310_v57  ;;  %v288_v13 = vld [vmem:[#allocation2 + $0x20] sm:$0x7]  ;;  %v297_v14 = vrot.slane %v287_v12, 3  ;;  %v5025_v18 = vld [vmem:[%s5473_s30 + $0x1a0] sm:$0xff]   ;;  %v256_v19 = vld [vmem:[#allocation2 + $0x18] sm:$0xff] }
  0x6e   : > { %4507 = vmatpush3.bf16.msra.mxu1 %v4997_v22  ;;  %4480 = vmatprep.subr.bf16.mxu0 %v4998_v23  ;;  %v270_v63 = vsel %vm258_vm1, %v5527_v56, %v269_v50  ;;  %v322_v1 = vor.u32 %v321_v60, %v318_v59  ;;  %v298_v17 = vrot.slane %v288_v13, 3  ;;  %v257_v21 = vld [vmem:[#allocation2 + $0x20] sm:$0x1]  ;;  %v272_v22 = vshrl.u32 %v256_v19, 16  ;;  %v5028_v38 = vld [vmem:[%s5473_s30 + $0x1a8] sm:$0xff]   ;;  %v5030_v48 = vld [vmem:[%s5473_s30 + $0x178] sm:$0xff]  }
  0x6f   : > { %4508 = vmatprep.subr.bf16.mxu1 %v4999_v24  ;;  %v274_v23 = vshll.u32 %v256_v19, 16  ;;  %v304_v24 = vld [vmem:[#allocation2 + $0x18] sm:$0xe0]  ;;  %v5027_v37 = vld [vmem:[%s5473_s30 + $0x170] sm:$0xff]   ;;  %v386_v49 = vld [vmem:[#allocation2 + $0x8] sm:$0xe0] }
  0x70   : > { %v323_v4 = vsel %vm306_vm2, %v314_v0, %v322_v1  ;;  %v299_v20 = vsel %vm293_vm0, %v297_v14, %v298_v17  ;;  %v5029_v45 = vld [vmem:[%s5473_s30 + $0x130] sm:$0xff]   ;;  %v5032_v50 = vld [vmem:[%s5473_s30 + $0x138] sm:$0xff]   ;;  %v387_v51 = vld [vmem:[#allocation2 + $0x10] sm:$0x1f]  ;;  %v395_v52 = vrot.slane %v386_v49, 5 }
  0x71   : > { %4481 = vmatpush3.bf16.msra.mxu0 %v5000_v25  ;;  %v5024_v25 = vld [vmem:[%s5473_s30 + $0x168] sm:$0xff]   ;;  %v5031_v47 = vld [vmem:[%s5473_s30 + $0x1b0] sm:$0xff]   ;;  %v5033_v54 = vld [vmem:[%s5473_s30 + $0x1b8] sm:$0xff]   ;;  %v396_v55 = vrot.slane %v387_v51, 5 }
  0x72   : > { %4509 = vmatpush3.bf16.msra.mxu1 %v5001_v26  ;;  %4482 = vmatprep.subr.bf16.mxu0 %v5002_v27  ;;  %v279_v26 = vshll.u32 %v257_v21, 16  ;;  %v305_v27 = vld [vmem:[#allocation2 + $0x20] sm:$0x3f]  ;;  %v346_v57 = vld [vmem:[#allocation2 + $0x10] sm:$0x7]  ;;  %v5040_v49 = vld [vmem:[%s5473_s30 + $0x288] sm:$0xff]  }
  0x73   : > { %4510 = vmatprep.subr.bf16.mxu1 %v5003_v28  ;;  %v325_v28 = vshrl.u32 %v304_v24, 16  ;;  %v404_v60 = vld [vmem:[#allocation2 + $0x10] sm:$0xff]  ;;  %v388_v12 = vld [vmem:[#allocation2 + $0x20] sm:$0xe0]  ;;  %v389_v17 = vld [vmem:[#allocation2 + $0x28] sm:$0x1f] }
  0x74   : > { %v399_v21 = vrot.slane %v389_v17, 5  ;;  %v5042_v51 = vld [vmem:[%s5473_s30 + $0x210] sm:$0xff]  }
  0x75   : > { %4483 = vmatpush3.bf16.msra.mxu0 %v5004_v29  ;;  %v328_v29 = vshll.u32 %v304_v24, 16  ;;  %v327_v35 = vrot.slane %v325_v28, 5 }
  0x76   : > { %4511 = vmatpush3.bf16.msra.mxu1 %v5005_v30  ;;  %4484 = vmatprep.subr.bf16.mxu0 %v5006_v31  ;;  %v276_v30 = vrot.slane %v274_v23, 1  ;;  %v333_v31 = vshrl.u32 %v305_v27, 16 }
  0x77   : > { %4512 = vmatprep.subr.bf16.mxu1 %v5007_v32  ;;  %v336_v32 = vshll.u32 %v305_v27, 16  ;;  %v330_v36 = vrot.slane %v328_v29, 6 }
  0x78   : > { %v5550_v39 = vor.u32 %v276_v30, %v272_v22  ;;  %v335_v40 = vrot.slane %v333_v31, 5  ;;  %v347_v22 = vld [vmem:[#allocation2 + $0x20] sm:$0xfc] }
  0x79   : > { %4485 = vmatpush3.bf16.msra.mxu0 %v5008_v33  ;;  %v5026_v33 = vld [vmem:[%s5473_s30 + $0x128] sm:$0xff]   ;;  %v338_v41 = vrot.slane %v336_v32, 6  ;;  %v368_v27 = vshrl.u32 %v347_v22, 16  ;;  %v371_v29 = vshll.u32 %v347_v22, 16 }
  0x7a   : > { %4513 = vmatpush3.bf16.msra.mxu1 %v5009_v34  ;;  %4526 = vmatprep.subr.bf16.mxu0 %v5010_v42  ;;  %v281_v34 = vrot.slane %v279_v26, 1  ;;  %v331_v42 = vor.u32 %v330_v36, %v327_v35  ;;  %v348_v26 = vld [vmem:[#allocation2 + $0x28] sm:$0x7] }
  0x7b   : > { %4846 = vmatprep.subr.bf16.mxu1 %v5013_v62  ;;  %v339_v44 = vor.u32 %v338_v41, %v335_v40  ;;  %v376_v30 = vshrl.u32 %v348_v26, 16  ;;  %v379_v31 = vshll.u32 %v348_v26, 16  ;;  %v373_v35 = vrot.slane %v371_v29, 3 }
  0x7c   : > { %915 = vmatmul.mubr.bf16.vlgmr.msra.gmra.mrb[0].mxu0 %v270_v63  ;;  %v282_v43 = vsel %vm258_vm1, %v5550_v39, %v281_v34  ;;  %v397_v63 = vsel %vm394_vm4, %v395_v52, %v396_v55  ;;  %v370_v34 = vrot.slane %v368_v27, 2  ;;  %v5043_v52 = vld [vmem:[%s5473_s30 + $0x1d0] sm:$0xff]   ;;  %v5046_v55 = vld [vmem:[%s5473_s30 + $0x218] sm:$0xff]  }
  0x7d   : > { %4527 = vmatpush3.bf16.msra.mxu0 %v5011_v53  ;;  %964 = vmatmul.mubr.bf16.vlgmr.msra.gmra.mrb[0].mxu1 %v323_v4  ;;  %v340_v46 = vsel %vm306_vm2, %v331_v42, %v339_v44  ;;  %v345_v53 = vld [vmem:[#allocation2 + $0x8] sm:$0xfc]  ;;  %v378_v36 = vrot.slane %v376_v30, 2  ;;  %v5035_v44 = vld [vmem:[%s5473_s30 + $0x1c0] sm:$0xff]  }
  0x7e   : > { %4528 = vmatprep.subr.bf16.mxu0 %v5012_v61  ;;  %4847 = vmatpush3.bf16.msra.mxu1 %v5013_v62  ;;  %v351_v58 = vshrl.u32 %v345_v53, 16  ;;  %v354_v59 = vshll.u32 %v345_v53, 16  ;;  %v359_v61 = vshrl.u32 %v346_v57, 16  ;;  %v362_v62 = vshll.u32 %v346_v57, 16  ;;  %v5044_v53 = vld [vmem:[%s5473_s30 + $0x290] sm:$0xff]   ;;  %v5047_v57 = vld [vmem:[%s5473_s30 + $0x1d8] sm:$0xff]  }
  0x7f   : > { %4848 = vmatprep.subr.bf16.mxu1 %v5016_v5  ;;  %971 = vmatprep.mubr.bf16.mxu1 %v344_v15  ;;  %v374_v40 = vor.u32 %v373_v35, %v370_v34 }
  0x80   : > { %922 = vmatprep.mubr.bf16.mxu0 %v299_v20  ;;  %v353_v0 = vrot.slane %v351_v58, 2  ;;  %v356_v1 = vrot.slane %v354_v59, 3  ;;  %v364_v4 = vrot.slane %v362_v62, 3  ;;  %v398_v20 = vrot.slane %v388_v12, 5  ;;  %v5048_v58 = vld [vmem:[%s5473_s30 + $0x298] sm:$0xff]   ;;  %v5052_v62 = vld [vmem:[%s5473_s30 + $0x2a0] sm:$0xff]  }
  0x81   : > { %4529 = vmatpush3.bf16.msra.mxu0 %v5014_v2  ;;  %v403_v2 = vld [vmem:[#allocation2 + $0x8] sm:$0x80]  ;;  %v5066_v12 = vld [vmem:[%s5473_s30 + $0x300] sm:$0xff]  }
  0x82   : > { %4530 = vmatprep.subr.bf16.mxu0 %v5015_v3  ;;  %4849 = vmatpush3.bf16.msra.mxu1 %v5016_v5  ;;  %v361_v3 = vrot.slane %v359_v61, 2  ;;  %v409_v5 = vshrl.u32 %v403_v2, 16  ;;  %v400_v28 = vsel %vm394_vm4, %v398_v20, %v399_v21  ;;  %v5049_v59 = vld [vmem:[%s5473_s30 + $0x258] sm:$0xff]   ;;  %v5051_v61 = vld [vmem:[%s5473_s30 + $0x1e0] sm:$0xff]   ;;  %v5056_v2 = vld [vmem:[%s5473_s30 + $0x2a8] sm:$0xff]  }
  0x83   : > { %4850 = vmatprep.subr.bf16.mxu1 %v5019_v7 }
  0x84   : > { %923 = vmatmul.mubr.bf16.gmra.mrb[4].mxu0 %v282_v43  ;;  %v365_v13 = vor.u32 %v364_v4, %v361_v3  ;;  %v411_v14 = vrot.slane %v409_v5, 7  ;;  %v5034_v43 = vld [vmem:[%s5473_s30 + $0x200] sm:$0xff]   ;;  %v5058_v3 = vld [vmem:[%s5473_s30 + $0x230] sm:$0xff]   ;;  %v5057_v4 = vld [vmem:[%s5473_s30 + $0x268] sm:$0xff]  }
  0x85   : > { %4531 = vmatpush3.bf16.msra.mxu0 %v5017_v6  ;;  %972 = vmatmul.mubr.bf16.gmra.mrb[4].mxu1 %v340_v46  ;;  %v413_v6 = vshrl.u32 %v404_v60, 16  ;;  %v5037_v46 = vld [vmem:[%s5473_s30 + $0x240] sm:$0xff]   ;;  %v5060_v5 = vld [vmem:[%s5473_s30 + $0x2b0] sm:$0xff]  }
  0x86   : > { %4532 = vmatprep.subr.bf16.mxu0 %v5018_v8  ;;  %4851 = vmatpush3.bf16.msra.mxu1 %v5019_v7  ;;  %v405_v7 = vld [vmem:[#allocation2 + $0x20] sm:$0x80]  ;;  %v357_v8 = vor.u32 %v356_v1, %v353_v0  ;;  %v5054_v0 = vld [vmem:[%s5473_s30 + $0x228] sm:$0xff]  }
  0x87   : > { %4852 = vmatprep.subr.bf16.mxu1 %v5022_v11  ;;  %1012 = vmatprep.mubr.bf16.mxu0 %v397_v63  ;;  %v415_v15 = vrot.slane %v413_v6, 7  ;;  %v5053_v63 = vld [vmem:[%s5473_s30 + $0x260] sm:$0xff]   ;;  %v5055_v1 = vld [vmem:[%s5473_s30 + $0x1e8] sm:$0xff]   ;;  %v5059_v6 = vld [vmem:[%s5473_s30 + $0x1f0] sm:$0xff]  }
  0x88   : > { %v366_v23 = vsel %vm349_vm3, %v357_v8, %v365_v13  ;;  %v5061_v8 = vld [vmem:[%s5473_s30 + $0x270] sm:$0xff]   ;;  %v5606_v13 = vld [vmem:[%s5473_s30 + $0x340] sm:$0xff]  }
  0x89   : > { %4533 = vmatpush3.bf16.msra.mxu0 %v5020_v9  ;;  %v416_v9 = vshll.u32 %v404_v60, 16  ;;  %v5050_v60 = vld [vmem:[%s5473_s30 + $0x220] sm:$0xff]  }
  0x8a   : > { %4534 = vmatprep.subr.bf16.mxu0 %v5021_v10  ;;  %4853 = vmatpush3.bf16.msra.mxu1 %v5022_v11  ;;  %v406_v10 = vld [vmem:[#allocation2 + $0x28] sm:$0xff]  ;;  %v421_v11 = vshrl.u32 %v405_v7, 16 }
  0x8b   : > { %4854 = vmatprep.subr.bf16.mxu1 %v5025_v18  ;;  %v428_v19 = vshll.u32 %v406_v10, 16  ;;  %v5562_v24 = vor.u32 %v416_v9, %v415_v15  ;;  %v5062_v7 = vld [vmem:[%s5473_s30 + $0x238] sm:$0xff]  }
  0x8c   : > { %v5064_v9 = vld [vmem:[%s5473_s30 + $0x2b8] sm:$0xff]  }
  0x8d   : > { %4535 = vmatpush3.bf16.msra.mxu0 %v5023_v16  ;;  %v425_v16 = vshrl.u32 %v406_v10, 16  ;;  %v419_v32 = vsel %vm407_vm5, %v411_v14, %v5562_v24  ;;  %v5063_v10 = vld [vmem:[%s5473_s30 + $0x1f8] sm:$0xff]  }
  0x8e   : > { %4536 = vmatprep.subr.bf16.mxu0 %v5024_v25  ;;  %4855 = vmatpush3.bf16.msra.mxu1 %v5025_v18  ;;  %v423_v18 = vrot.slane %v421_v11, 7  ;;  %v5065_v11 = vld [vmem:[%s5473_s30 + $0x278] sm:$0xff]  }
  0x8f   : > { %4856 = vmatprep.subr.bf16.mxu1 %v5028_v38  ;;  %v427_v25 = vrot.slane %v425_v16, 7  ;;  %4862 = vmatprep.mubr.bf16.mxu1 %v419_v32 }
  0x91   : > { %4537 = vmatpush3.bf16.msra.mxu0 %v5026_v33  ;;  %v5567_v33 = vor.u32 %v428_v19, %v427_v25 }
  0x92   : > { %4538 = vmatprep.subr.bf16.mxu0 %v5027_v37  ;;  %4857 = vmatpush3.bf16.msra.mxu1 %v5028_v38  ;;  %v381_v37 = vrot.slane %v379_v31, 3 }
  0x93   : > { %4858 = vmatprep.subr.bf16.mxu1 %v5031_v47  ;;  %v431_v38 = vsel %vm407_vm5, %v423_v18, %v5567_v33 }
  0x94   : > { %v382_v41 = vor.u32 %v381_v37, %v378_v36 }
  0x95   : > { %4539 = vmatpush3.bf16.msra.mxu0 %v5029_v45  ;;  %v5036_v45 = vld [vmem:[%s5473_s30 + $0x280] sm:$0xff]  }
  0x96   : > { %4540 = vmatprep.subr.bf16.mxu0 %v5030_v48  ;;  %4859 = vmatpush3.bf16.msra.mxu1 %v5031_v47  ;;  %v383_v42 = vsel %vm349_vm3, %v374_v40, %v382_v41  ;;  %v5038_v47 = vld [vmem:[%s5473_s30 + $0x208] sm:$0xff]  }
  0x97   : > { %4860 = vmatprep.subr.bf16.mxu1 %v5033_v54  ;;  %v5039_v48 = vld [vmem:[%s5473_s30 + $0x1c8] sm:$0xff]  }
  0x99   : > { %4541 = vmatpush3.bf16.msra.mxu0 %v5032_v50  ;;  %v5041_v50 = vld [vmem:[%s5473_s30 + $0x248] sm:$0xff]  }
  0x9a   : > { %4861 = vmatpush3.bf16.msra.mxu1 %v5033_v54  ;;  %4564 = vmatprep.subr.bf16.mxu0 %v5034_v43  ;;  %v5045_v54 = vld [vmem:[%s5473_s30 + $0x250] sm:$0xff]  }
  0x9b   : > { %4592 = vmatprep.subr.bf16.mxu1 %v5036_v45 }
  0x9c   : > { %1013 = vmatmul.mubr.bf16.vlgmr.msra.gmra.mrb[8].mxu0 %v366_v23 }
  0x9d   : > { %1020 = vmatprep.mubr.bf16.mxu0 %v400_v28  ;;  %4863 = vmatmul.mubr.bf16.vlgmr.msra.gmra.mrb[8].mxu1 %v431_v38 }
  0x9e   : > { %4565 = vmatpush3.bf16.msra.mxu0 %v5035_v44  ;;  %4593 = vmatpush3.bf16.msra.mxu1 %v5037_v46 }
  0x9f   : > { %4566 = vmatprep.subr.bf16.mxu0 %v5038_v47  ;;  %4594 = vmatprep.subr.bf16.mxu1 %v5040_v49 }
  0xa2   : > { %4567 = vmatpush3.bf16.msra.mxu0 %v5039_v48  ;;  %4595 = vmatpush3.bf16.msra.mxu1 %v5041_v50 }
  0xa3   : > { %4568 = vmatprep.subr.bf16.mxu0 %v5042_v51  ;;  %4596 = vmatprep.subr.bf16.mxu1 %v5044_v53 }
  0xa4   : > { %1021 = vmatmul.mubr.bf16.gmra.mrb[12].mxu0 %v383_v42 }
  0xa6   : > { %4569 = vmatpush3.bf16.msra.mxu0 %v5043_v52  ;;  %4597 = vmatpush3.bf16.msra.mxu1 %v5045_v54 }
  0xa7   : > { %4570 = vmatprep.subr.bf16.mxu0 %v5046_v55  ;;  %4598 = vmatprep.subr.bf16.mxu1 %v5048_v58 }
  0xaa   : > { %4571 = vmatpush3.bf16.msra.mxu0 %v5047_v57  ;;  %4599 = vmatpush3.bf16.msra.mxu1 %v5049_v59 }
  0xab   : > { %4572 = vmatprep.subr.bf16.mxu0 %v5050_v60  ;;  %4600 = vmatprep.subr.bf16.mxu1 %v5052_v62 }
  0xae   : > { %4573 = vmatpush3.bf16.msra.mxu0 %v5051_v61  ;;  %4601 = vmatpush3.bf16.msra.mxu1 %v5053_v63 }
  0xaf   : > { %4574 = vmatprep.subr.bf16.mxu0 %v5054_v0  ;;  %4602 = vmatprep.subr.bf16.mxu1 %v5056_v2 }
  0xb2   : > { %4575 = vmatpush3.bf16.msra.mxu0 %v5055_v1  ;;  %4603 = vmatpush3.bf16.msra.mxu1 %v5057_v4 }
  0xb3   : > { %4576 = vmatprep.subr.bf16.mxu0 %v5058_v3  ;;  %4604 = vmatprep.subr.bf16.mxu1 %v5060_v5 }
  0xb6   : > { %4577 = vmatpush3.bf16.msra.mxu0 %v5059_v6  ;;  %4605 = vmatpush3.bf16.msra.mxu1 %v5061_v8 }
  0xb7   : > { %4578 = vmatprep.subr.bf16.mxu0 %v5062_v7  ;;  %4606 = vmatprep.subr.bf16.mxu1 %v5064_v9 }
  0xba   : > { %4579 = vmatpush3.bf16.msra.mxu0 %v5063_v10  ;;  %4607 = vmatpush3.bf16.msra.mxu1 %v5065_v11 }
  0xbb   : > { %4620 = vmatprep.subr.bf16.mxu0 %v5066_v12  ;;  %4866 = vmatprep.subr.bf16.mxu1 %v5606_v13 }
 0x14f   : > { %v4486_v14 = vpop.f32.mrb[0].mxu0 }
 0x150   : > { %v4487_v15 = vpop.f32.mrb[1].mxu0  ;;  %v4514_v18 = vpop.f32.mrb[0].mxu1 }
 0x151   : > { %v4488_v16 = vadd.f32 %v4487_v15, %v4486_v14  ;;  %v4489_v17 = vpop.f32.mrb[2].mxu0  ;;  %v4515_v20 = vpop.f32.mrb[1].mxu1 }
 0x152   : > { %v4490_v19 = vpop.f32.mrb[3].mxu0  ;;  %v4516_v22 = vadd.f32 %v4515_v20, %v4514_v18  ;;  %v4517_v23 = vpop.f32.mrb[2].mxu1 }
 0x153   : > { %v4491_v21 = vadd.f32 %v4490_v19, %v4489_v17  ;;  %v4518_v25 = vpop.f32.mrb[3].mxu1 }
 0x154   : > { %v966_v26 = vadd.f32 %v4516_v22, %v4488_v16  ;;  %v4519_v27 = vadd.f32 %v4518_v25, %v4517_v23 }
 0x156   : > { %v969_v28 = vadd.f32 %v4519_v27, %v4491_v21 }
 0x157   : > { %v4492_v29 = vpop.f32.mrb[4].mxu0 }
 0x158   : > { %v4493_v30 = vpop.f32.mrb[5].mxu0  ;;  %v4520_v31 = vpop.f32.mrb[4].mxu1 }
 0x159   : > { %v4494_v32 = vadd.f32 %v4493_v30, %v4492_v29  ;;  %v4495_v34 = vpop.f32.mrb[6].mxu0  ;;  %v4521_v35 = vpop.f32.mrb[5].mxu1 }
 0x15a   : > { %v4496_v36 = vpop.f32.mrb[7].mxu0  ;;  %v4522_v37 = vadd.f32 %v4521_v35, %v4520_v31  ;;  %v4523_v38 = vpop.f32.mrb[6].mxu1 }
 0x15b   : > { %v4497_v40 = vadd.f32 %v4496_v36, %v4495_v34  ;;  %v4524_v41 = vpop.f32.mrb[7].mxu1 }
 0x15c   : > { %v974_v42 = vadd.f32 %v4522_v37, %v4494_v32  ;;  %v4525_v43 = vadd.f32 %v4524_v41, %v4523_v38  ;;  %v1116_v41 = vlaneseq }
 0x15e   : > { %v977_v44 = vadd.f32 %v4525_v43, %v4497_v40  ;;  %v1117_v43 = vshrl.u32 %v1116_v41, 7 }
 0x16f   : > { %v4542_v45 = vpop.f32.mrb[8].mxu0 }
 0x170   : > { %v4543_v46 = vpop.f32.mrb[9].mxu0  ;;  %v4864_v51 = vpop.f32.mrb[8].mxu1 }
 0x171   : > { %v4544_v47 = vadd.f32 %v4543_v46, %v4542_v45  ;;  %v4545_v48 = vpop.f32.mrb[10].mxu0  ;;  %v1063_v53 = vpop.f32.mrb[9].mxu1  ;;  %v1078_v45 = vld [vmem:[%s5479_s22] sm:$0x3]  ;;  %v5612_v46 = vsub.s32 1, %v1117_v43 }
 0x172   : > { %v4546_v49 = vpop.f32.mrb[11].mxu0  ;;  %v4865_v55 = vpop.f32.mrb[10].mxu1 }
 0x173   : > { %v4547_v50 = vadd.f32 %v4546_v49, %v4545_v48  ;;  %v1015_v52 = vadd.f32 %v4544_v47, %v966_v26  ;;  %v1066_v58 = vpop.f32.mrb[11].mxu1  ;;  %v1127_v49 = vrot.slane %v1078_v45, %v5612_v46 }
 0x175   : > { %v1064_v54 = vadd.f32 %v1063_v53, %v1015_v52  ;;  %v1018_v57 = vadd.f32 %v4547_v50, %v969_v28 }
 0x177   : > { %v1067_v59 = vadd.f32 %v1066_v58, %v1018_v57  ;;  %v4548_v60 = vpop.f32.mrb[12].mxu0  ;;  %v1088_v62 = vmul.f32 %v1064_v54, %v1064_v54 }
 0x178   : > { %v4549_v61 = vpop.f32.mrb[13].mxu0 }
 0x179   : > { %v1079_v63 = vadd.f32 %v1067_v59, %v1064_v54  ;;  %v1089_v0 = vmul.f32 %v1067_v59, %v1067_v59  ;;  %v4550_v1 = vadd.f32 %v4549_v61, %v4548_v60  ;;  %v4551_v2 = vpop.f32.mrb[14].mxu0 }
 0x17a   : > { %v4552_v3 = vpop.f32.mrb[15].mxu0 }
 0x17b   : > { %v1092_v4 = vadd.f32 %v1089_v0, %v1088_v62  ;;  %v1023_v5 = vadd.f32 %v4550_v1, %v974_v42  ;;  %v4553_v6 = vadd.f32 %v4552_v3, %v4551_v2 }
 0x17d   : > { %v1072_v7 = vadd.f32 %v4864_v51, %v1023_v5  ;;  %v1026_v8 = vadd.f32 %v4553_v6, %v977_v44  ;;  %v5609_v44 = vsub.s32 0, %v1117_v43  ;;  %v1186_v5 = vld [vmem:[#allocation2] sm:$0xe0] }
 0x17e   : > { %v1170_v6 = vld [vmem:[#allocation2] sm:$0xf8] }
 0x17f   : > { %v1080_v9 = vadd.f32 %v1079_v63, %v1072_v7  ;;  %v1090_v10 = vmul.f32 %v1072_v7, %v1072_v7  ;;  %v1075_v11 = vadd.f32 %v4865_v55, %v1026_v8  ;;  %v1119_v47 = vrot.slane %v1078_v45, %v5609_v44 }
 0x180   : > { %v1194_v8 = vshll.u32 %v1186_v5, 16 }
 0x181   : > { %v1093_v12 = vadd.f32 %v1092_v4, %v1090_v10  ;;  %v1081_v14 = vadd.f32 %v1080_v9, %v1075_v11  ;;  %v1091_v15 = vmul.f32 %v1075_v11, %v1075_v11  ;;  %v1178_v9 = vrot.slane %v1170_v6, 3  ;;  %v1172_v10 = vld [vmem:[#allocation2 + $0x18] sm:$0xf8]  ;;  %v5077_v6 = vld [vmem:[%s5473_s30 + $0x358] sm:$0xff]  }
 0x183   : > { %v1082_v16 = vrot.slane %v1081_v14, 4  ;;  %v1094_v17 = vadd.f32 %v1093_v12, %v1091_v15  ;;  %v1196_v12 = vrot.slane %v1194_v8, 6  ;;  %v5078_v8 = vld [vmem:[%s5473_s30 + $0x320] sm:$0xff]  }
 0x185   : > { %v1083_v18 = vadd.f32 %v1082_v16, %v1081_v14  ;;  %v1095_v19 = vrot.slane %v1094_v17, 4  ;;  %v1188_v14 = vld [vmem:[#allocation2 + $0x18] sm:$0xe0] }
 0x187   : > { %v1084_v20 = vrot.slane %v1083_v18, 2  ;;  %v1096_v21 = vadd.f32 %v1095_v19, %v1094_v17 }
 0x189   : > { %v1085_v22 = vadd.f32 %v1084_v20, %v1083_v18  ;;  %v1097_v23 = vrot.slane %v1096_v21, 2 }
 0x18b   : > { %v1086_v25 = vrot.slane %v1085_v22, 1  ;;  %v1098_v26 = vadd.f32 %v1097_v23, %v1096_v21  ;;  %v1181_v21 = vrot.slane %v1172_v10, 3  ;;  %v5080_v10 = vld [vmem:[%s5473_s30 + $0x360] sm:$0xff]  }
 0x18d   : > { %v1087_v27 = vadd.f32 %v1086_v25, %v1085_v22  ;;  %v1099_v28 = vrot.slane %v1098_v26, 1 }
 0x18f   : > { %v1100_v29 = vadd.f32 %v1099_v28, %v1098_v26  ;;  %v1101_v30 = vmul.f32 0.03125, %v1087_v27 }
 0x191   : > { %v1102_v31 = vmul.f32 0.03125, %v1100_v29  ;;  %v1103_v32 = vmul.f32 %v1101_v30, %v1101_v30  ;;  %v1106_v34 = vsub.f32 %v1064_v54, %v1101_v30  ;;  %v1107_v35 = vsub.f32 %v1067_v59, %v1101_v30  ;;  %v5067_v29 = vld [vmem:[%s5473_s30 + $0x2c0] sm:$0xff]  }
 0x192   : > { %v1108_v36 = vsub.f32 %v1072_v7, %v1101_v30  ;;  %v1109_v37 = vsub.f32 %v1075_v11, %v1101_v30  ;;  %v1191_v7 = vshrl.u32 %v1186_v5, 16 }
 0x193   : > { %v1104_v38 = vsub.f32 %v1102_v31, %v1103_v32  ;;  %v1208_v31 = vshrl.u32 %v1188_v14, 16  ;;  %v1211_v32 = vshll.u32 %v1188_v14, 16  ;;  %v1229_v14 = vld [vmem:[#allocation2 + $0x10] sm:$0x7] }
 0x194   : > { %v1193_v11 = vrot.slane %v1191_v7, 5 }
 0x195   : > { %v1105_v40 = vmax.f32 %v1104_v38, 0.0 }
 0x197   : > { %v1110_v42 = vadd.f32 1e-05, %v1105_v40 }
 0x199   : > { %5202 = vrsqrt.f32 %v1110_v42 }
 0x1a3   : > { %v5203_v48 = vpop.eup %5202 }
 0x1a4   : > { %v1112_v50 = vmul.f32 %v5203_v48, %v1106_v34  ;;  %v1113_v51 = vmul.f32 %v5203_v48, %v1107_v35  ;;  %v1114_v52 = vmul.f32 %v5203_v48, %v1108_v36  ;;  %v1115_v53 = vmul.f32 %v5203_v48, %v1109_v37  ;;  %v5069_v37 = vld [vmem:[%s5473_s30 + $0x308] sm:$0xff]  }
 0x1a5   : > { %v1197_v34 = vor.u32 %v1196_v12, %v1193_v11  ;;  %v5081_v11 = vld [vmem:[%s5473_s30 + $0x328] sm:$0xff]  }
 0x1a6   : > { %v1120_v54 = vmul.f32 %v1119_v47, %v1112_v50  ;;  %v1121_v55 = vmul.f32 %v1119_v47, %v1113_v51  ;;  %v1122_v57 = vmul.f32 %v1119_v47, %v1114_v52  ;;  %v1123_v58 = vmul.f32 %v1119_v47, %v1115_v53  ;;  %v1269_v47 = vld [vmem:[#allocation2 + $0x10] sm:$0x1f]  ;;  %v5071_v50 = vld [vmem:[%s5473_s30 + $0x348] sm:$0xff]  }
 0x1a7   : > { %v1210_v52 = vrot.slane %v1208_v31, 5  ;;  %v1271_v31 = vld [vmem:[#allocation2 + $0x28] sm:$0x1f] }
 0x1a8   : > { %v1128_v59 = vadd.f32 %v1127_v49, %v1120_v54  ;;  %v1129_v60 = vadd.f32 %v1127_v49, %v1121_v55  ;;  %v1130_v61 = vadd.f32 %v1127_v49, %v1122_v57  ;;  %v1131_v62 = vadd.f32 %v1127_v49, %v1123_v58  ;;  %v5070_v49 = vld [vmem:[%s5473_s30 + $0x2c8] sm:$0xff]  }
 0x1a9   : > { %v1213_v54 = vrot.slane %v1211_v32, 6 }
 0x1aa   : > { %v1132_v63 = vmax.f32 %v1128_v59, 0.0  ;;  %v1133_v0 = vmax.f32 %v1129_v60, 0.0  ;;  %v1134_v1 = vmax.f32 %v1130_v61, 0.0  ;;  %v1135_v2 = vmax.f32 %v1131_v62, 0.0  ;;  %v5073_v62 = vld [vmem:[%s5473_s30 + $0x2d0] sm:$0xff]  }
 0x1ab   : > { %v1277_v61 = vrot.slane %v1269_v47, 5 }
 0x1ac   : > { %v1136_v3 = vpack.c.bf16 %v1133_v0, %v1132_v63  ;;  %v1137_v4 = vpack.c.bf16 %v1135_v2, %v1134_v1  ;;  %v5074_v63 = vld [vmem:[%s5473_s30 + $0x350] sm:$0xff]   ;;  %v1214_v0 = vor.u32 %v1213_v54, %v1210_v52  ;;  %v5075_v2 = vld [vmem:[%s5473_s30 + $0x318] sm:$0xff]  }
 0x1ae   : > { %1138 = vst [vmem:[#allocation2 + $0x8] sm:$0xff] %v1136_v3  ;;  %1139 = vst [vmem:[#allocation2 + $0x20] sm:$0xff] %v1137_v4  ;;  %1844 = vmatprep.mubr.bf16.mxu1 %v1136_v3 }
 0x1b5   : > { %v1171_v15 = vld [vmem:[#allocation2 + $0x8] sm:$0x7]  ;;  %v1173_v17 = vld [vmem:[#allocation2 + $0x20] sm:$0x7]  ;;  %v1284_v48 = vld [vmem:[#allocation2 + $0x8] sm:$0x80] }
 0x1b6   : > { %v1141_v16 = vld [vmem:[#allocation2 + $0x8] sm:$0x1]  ;;  %v1179_v18 = vrot.slane %v1171_v15, 3  ;;  %v1182_v22 = vrot.slane %v1173_v17, 3  ;;  %v1143_v26 = vld [vmem:[#allocation2 + $0x20] sm:$0x1] }
 0x1b7   : > { %v1152_v19 = vshll.u32 %v1141_v16, 16  ;;  %v1187_v20 = vld [vmem:[#allocation2 + $0x8] sm:$0x3f]  ;;  %v1189_v30 = vld [vmem:[#allocation2 + $0x20] sm:$0x3f]  ;;  %v1164_v41 = vshll.u32 %v1143_v26, 16 }
 0x1b8   : > { %v1199_v23 = vshrl.u32 %v1187_v20, 16  ;;  %v1202_v25 = vshll.u32 %v1187_v20, 16  ;;  %v1180_v27 = vsel %vm293_vm0, %v1178_v9, %v1179_v18  ;;  %v1216_v38 = vshrl.u32 %v1189_v30, 16  ;;  %v1268_v51 = vld [vmem:[#allocation2 + $0x8] sm:$0xe0]  ;;  %v5079_v9 = vld [vmem:[%s5473_s30 + $0x2e0] sm:$0xff]  }
 0x1b9   : > { %v1154_v28 = vrot.slane %v1152_v19, 1  ;;  %1795 = vmatprep.mubr.bf16.mxu0 %v1180_v27  ;;  %v1219_v42 = vshll.u32 %v1189_v30, 16  ;;  %v1183_v43 = vsel %vm293_vm0, %v1181_v21, %v1182_v22  ;;  %v1166_v58 = vrot.slane %v1164_v41, 1  ;;  %v1228_v12 = vld [vmem:[#allocation2 + $0x8] sm:$0xfc]  ;;  %v5082_v15 = vld [vmem:[%s5473_s30 + $0x2e8] sm:$0xff]  }
 0x1ba   : > { %v1201_v35 = vrot.slane %v1199_v23, 5  ;;  %v1204_v36 = vrot.slane %v1202_v25, 6  ;;  %v1218_v55 = vrot.slane %v1216_v38, 5  ;;  %v1289_v59 = vshrl.u32 %v1284_v48, 16  ;;  %v5083_v16 = vld [vmem:[%s5473_s30 + $0x368] sm:$0xff]   ;;  %v5085_v21 = vld [vmem:[%s5473_s30 + $0x2f0] sm:$0xff]  }
 0x1bb   : > { %v1155_v40 = vsel %vm258_vm1, %v5527_v56, %v1154_v28  ;;  %v5072_v56 = vld [vmem:[%s5473_s30 + $0x310] sm:$0xff]   ;;  %v1221_v57 = vrot.slane %v1219_v42, 6  ;;  %v1276_v60 = vrot.slane %v1268_v51, 5  ;;  %v1167_v3 = vsel %vm258_vm1, %v5550_v39, %v1166_v58  ;;  %v5087_v23 = vld [vmem:[%s5473_s30 + $0x338] sm:$0xff]  }
 0x1bc   : > { %1796 = vmatmul.mubr.bf16.vlgmr.msra.gmra.mrb[16].mxu0 %v1155_v40  ;;  %v1205_v45 = vor.u32 %v1204_v36, %v1201_v35  ;;  %v1291_v5 = vrot.slane %v1289_v59, 7  ;;  %v1233_v17 = vshrl.u32 %v1228_v12, 16  ;;  %v1236_v18 = vshll.u32 %v1228_v12, 16  ;;  %v5086_v22 = vld [vmem:[%s5473_s30 + $0x370] sm:$0xff]   ;;  %v1231_v25 = vld [vmem:[#allocation2 + $0x28] sm:$0x7] }
 0x1bd   : > { %4621 = vmatpush3.bf16.msra.mxu0 %v5067_v29  ;;  %1803 = vmatprep.mubr.bf16.mxu0 %v1183_v43  ;;  %v1222_v1 = vor.u32 %v1221_v57, %v1218_v55  ;;  %v1241_v19 = vshrl.u32 %v1229_v14, 16  ;;  %v1244_v20 = vshll.u32 %v1229_v14, 16  ;;  %v1286_v30 = vld [vmem:[#allocation2 + $0x20] sm:$0x80]  ;;  %v5089_v35 = vld [vmem:[%s5473_s30 + $0x378] sm:$0xff]   ;;  %v1258_v38 = vshrl.u32 %v1231_v25, 16 }
 0x1be   : > { %v1206_v53 = vsel %vm306_vm2, %v1197_v34, %v1205_v45  ;;  %4622 = vmatprep.subr.bf16.mxu0 %v5069_v37  ;;  %v1299_v39 = vsel %vm407_vm5, %v1291_v5, %v5562_v24  ;;  %v5084_v24 = vld [vmem:[%s5473_s30 + $0x330] sm:$0xff]   ;;  %v1235_v26 = vrot.slane %v1233_v17, 2  ;;  %v1238_v27 = vrot.slane %v1236_v18, 3  ;;  %v5088_v34 = vld [vmem:[%s5473_s30 + $0x2f8] sm:$0xff]   ;;  %v5110_v12 = vld [vmem:[%s5473_s30 + $0x3e8] sm:$0xff]  }
 0x1bf   : > { %1845 = vmatmul.mubr.bf16.vlgmr.msra.gmra.mrb[12].mxu1 %v1206_v53  ;;  %v1223_v7 = vsel %vm306_vm2, %v1214_v0, %v1222_v1  ;;  %v1243_v28 = vrot.slane %v1241_v19, 2  ;;  %v1246_v29 = vrot.slane %v1244_v20, 3  ;;  %v1230_v32 = vld [vmem:[#allocation2 + $0x20] sm:$0xfc]  ;;  %v1301_v37 = vshrl.u32 %v1286_v30, 16  ;;  %v5095_v0 = vld [vmem:[%s5473_s30 + $0x388] sm:$0xff]  }
 0x1c0   : > { %4867 = vmatpush3.bf16.msra.mxu1 %v5606_v13  ;;  %1852 = vmatprep.mubr.bf16.mxu1 %v1137_v4  ;;  %v1278_v13 = vsel %vm394_vm4, %v1276_v60, %v1277_v61  ;;  %v5076_v4 = vld [vmem:[%s5473_s30 + $0x2d8] sm:$0xff]   ;;  %v1270_v36 = vld [vmem:[#allocation2 + $0x20] sm:$0xe0]  ;;  %v1261_v40 = vshll.u32 %v1231_v25, 16  ;;  %v1239_v41 = vor.u32 %v1238_v27, %v1235_v26  ;;  %v1250_v43 = vshrl.u32 %v1230_v32, 16  ;;  %v5090_v60 = vld [vmem:[%s5473_s30 + $0x3c0] sm:$0xff]  }
 0x1c1   : > { %4623 = vmatpush3.bf16.msra.mxu0 %v5070_v49  ;;  %4868 = vmatprep.subr.bf16.mxu1 %v5071_v50  ;;  %v1247_v42 = vor.u32 %v1246_v29, %v1243_v28  ;;  %v1253_v45 = vshll.u32 %v1230_v32, 16  ;;  %v1279_v47 = vrot.slane %v1270_v36, 5  ;;  %v1280_v48 = vrot.slane %v1271_v31, 5  ;;  %v5091_v61 = vld [vmem:[%s5473_s30 + $0x380] sm:$0xff]   ;;  %v5096_v1 = vld [vmem:[%s5473_s30 + $0x448] sm:$0xff]   ;;  %v5099_v5 = vld [vmem:[%s5473_s30 + $0x390] sm:$0xff]  }
 0x1c2   : > { %4624 = vmatprep.subr.bf16.mxu0 %v5072_v56  ;;  %v1303_v49 = vrot.slane %v1301_v37, 7  ;;  %v1252_v52 = vrot.slane %v1250_v43, 2  ;;  %v1263_v56 = vrot.slane %v1261_v40, 3  ;;  %v5109_v14 = vld [vmem:[%s5473_s30 + $0x420] sm:$0xff]   ;;  %v5113_v17 = vld [vmem:[%s5473_s30 + $0x428] sm:$0xff]   ;;  %v5116_v18 = vld [vmem:[%s5473_s30 + $0x470] sm:$0xff]  }
 0x1c3   : > { %v1248_v51 = vsel %vm349_vm3, %v1239_v41, %v1247_v42  ;;  %v1255_v53 = vrot.slane %v1253_v45, 3  ;;  %v1281_v54 = vsel %vm394_vm4, %v1279_v47, %v1280_v48  ;;  %v5115_v19 = vld [vmem:[%s5473_s30 + $0x3b0] sm:$0xff]   ;;  %v5118_v20 = vld [vmem:[%s5473_s30 + $0x3f8] sm:$0xff]   ;;  %v5122_v25 = vld [vmem:[%s5473_s30 + $0x4c0] sm:$0xff]  }
 0x1c4   : > { %4869 = vmatpush3.bf16.msra.mxu1 %v5071_v50  ;;  %1804 = vmatmul.mubr.bf16.gmra.mrb[20].mxu0 %v1167_v3  ;;  %v1260_v50 = vrot.slane %v1258_v38, 2  ;;  %v1311_v55 = vsel %vm407_vm5, %v1303_v49, %v5567_v33  ;;  %v5094_v33 = vld [vmem:[%s5473_s30 + $0x3c8] sm:$0xff]   ;;  %v5098_v3 = vld [vmem:[%s5473_s30 + $0x3d0] sm:$0xff]   ;;  %v5121_v26 = vld [vmem:[%s5473_s30 + $0x438] sm:$0xff]  }
 0x1c5   : > { %4625 = vmatpush3.bf16.msra.mxu0 %v5073_v62  ;;  %1893 = vmatprep.mubr.bf16.mxu0 %v1278_v13  ;;  %v1256_v57 = vor.u32 %v1255_v53, %v1252_v52  ;;  %v5092_v62 = vld [vmem:[%s5473_s30 + $0x440] sm:$0xff]   ;;  %v5100_v13 = vld [vmem:[%s5473_s30 + $0x450] sm:$0xff]  }
 0x1c6   : > { %4870 = vmatprep.subr.bf16.mxu1 %v5074_v63  ;;  %4626 = vmatprep.subr.bf16.mxu0 %v5075_v2  ;;  %v1264_v58 = vor.u32 %v1263_v56, %v1260_v50  ;;  %v5097_v2 = vld [vmem:[%s5473_s30 + $0x408] sm:$0xff]   ;;  %v5689_v27 = vld [vmem:[%s5473_s30 + $0x500] sm:$0xff]  }
 0x1c7   : > { %1853 = vmatmul.mubr.bf16.gmra.mrb[16].mxu1 %v1223_v7  ;;  %v5103_v7 = vld [vmem:[%s5473_s30 + $0x398] sm:$0xff]  }
 0x1c8   : > { %4871 = vmatpush3.bf16.msra.mxu1 %v5074_v63  ;;  %4882 = vmatprep.mubr.bf16.mxu1 %v1299_v39  ;;  %v1265_v59 = vsel %vm349_vm3, %v1256_v57, %v1264_v58  ;;  %v5093_v63 = vld [vmem:[%s5473_s30 + $0x400] sm:$0xff]   ;;  %v5105_v39 = vld [vmem:[%s5473_s30 + $0x418] sm:$0xff]  }
 0x1c9   : > { %4627 = vmatpush3.bf16.msra.mxu0 %v5076_v4  ;;  %4872 = vmatprep.subr.bf16.mxu1 %v5077_v6  ;;  %v5101_v4 = vld [vmem:[%s5473_s30 + $0x410] sm:$0xff]  }
 0x1ca   : > { %4628 = vmatprep.subr.bf16.mxu0 %v5078_v8  ;;  %v5104_v8 = vld [vmem:[%s5473_s30 + $0x458] sm:$0xff]  }
 0x1cc   : > { %4873 = vmatpush3.bf16.msra.mxu1 %v5077_v6  ;;  %v5102_v6 = vld [vmem:[%s5473_s30 + $0x3d8] sm:$0xff]  }
 0x1cd   : > { %4629 = vmatpush3.bf16.msra.mxu0 %v5079_v9  ;;  %4874 = vmatprep.subr.bf16.mxu1 %v5080_v10  ;;  %v5106_v9 = vld [vmem:[%s5473_s30 + $0x3e0] sm:$0xff]  }
 0x1ce   : > { %4630 = vmatprep.subr.bf16.mxu0 %v5081_v11  ;;  %v5108_v11 = vld [vmem:[%s5473_s30 + $0x460] sm:$0xff]  }
 0x1d0   : > { %4875 = vmatpush3.bf16.msra.mxu1 %v5080_v10  ;;  %v5107_v10 = vld [vmem:[%s5473_s30 + $0x3a0] sm:$0xff]  }
 0x1d1   : > { %4631 = vmatpush3.bf16.msra.mxu0 %v5082_v15  ;;  %4876 = vmatprep.subr.bf16.mxu1 %v5083_v16  ;;  %v5112_v15 = vld [vmem:[%s5473_s30 + $0x468] sm:$0xff]  }
 0x1d2   : > { %4632 = vmatprep.subr.bf16.mxu0 %v5084_v24  ;;  %v5114_v24 = vld [vmem:[%s5473_s30 + $0x3f0] sm:$0xff]  }
 0x1d4   : > { %4877 = vmatpush3.bf16.msra.mxu1 %v5083_v16  ;;  %v5111_v16 = vld [vmem:[%s5473_s30 + $0x3a8] sm:$0xff]  }
 0x1d5   : > { %4633 = vmatpush3.bf16.msra.mxu0 %v5085_v21  ;;  %4878 = vmatprep.subr.bf16.mxu1 %v5086_v22  ;;  %v5117_v21 = vld [vmem:[%s5473_s30 + $0x430] sm:$0xff]  }
 0x1d6   : > { %4634 = vmatprep.subr.bf16.mxu0 %v5087_v23  ;;  %v5119_v23 = vld [vmem:[%s5473_s30 + $0x3b8] sm:$0xff]  }
 0x1d8   : > { %4879 = vmatpush3.bf16.msra.mxu1 %v5086_v22  ;;  %v5120_v22 = vld [vmem:[%s5473_s30 + $0x478] sm:$0xff]  }
 0x1d9   : > { %4635 = vmatpush3.bf16.msra.mxu0 %v5088_v34  ;;  %4880 = vmatprep.subr.bf16.mxu1 %v5089_v35 }
 0x1da   : > { %4658 = vmatprep.subr.bf16.mxu0 %v5090_v60 }
 0x1dc   : > { %4881 = vmatpush3.bf16.msra.mxu1 %v5089_v35  ;;  %1894 = vmatmul.mubr.bf16.vlgmr.msra.gmra.mrb[24].mxu0 %v1248_v51 }
 0x1dd   : > { %1901 = vmatprep.mubr.bf16.mxu0 %v1281_v54  ;;  %4659 = vmatpush3.bf16.msra.mxu0 %v5091_v61 }
 0x1de   : > { %4686 = vmatprep.subr.bf16.mxu1 %v5092_v62  ;;  %4660 = vmatprep.subr.bf16.mxu0 %v5094_v33 }
 0x1df   : > { %4883 = vmatmul.mubr.bf16.vlgmr.msra.gmra.mrb[20].mxu1 %v1311_v55 }
 0x1e0   : > { %4687 = vmatpush3.bf16.msra.mxu1 %v5093_v63 }
 0x1e1   : > { %4661 = vmatpush3.bf16.msra.mxu0 %v5095_v0  ;;  %4688 = vmatprep.subr.bf16.mxu1 %v5096_v1 }
 0x1e2   : > { %4662 = vmatprep.subr.bf16.mxu0 %v5098_v3 }
 0x1e4   : > { %1902 = vmatmul.mubr.bf16.gmra.mrb[28].mxu0 %v1265_v59  ;;  %4689 = vmatpush3.bf16.msra.mxu1 %v5097_v2 }
 0x1e5   : > { %4663 = vmatpush3.bf16.msra.mxu0 %v5099_v5  ;;  %4690 = vmatprep.subr.bf16.mxu1 %v5100_v13 }
 0x1e6   : > { %4664 = vmatprep.subr.bf16.mxu0 %v5102_v6 }
 0x1e8   : > { %4691 = vmatpush3.bf16.msra.mxu1 %v5101_v4 }
 0x1e9   : > { %4665 = vmatpush3.bf16.msra.mxu0 %v5103_v7  ;;  %4692 = vmatprep.subr.bf16.mxu1 %v5104_v8 }
 0x1ea   : > { %4666 = vmatprep.subr.bf16.mxu0 %v5106_v9 }
 0x1ec   : > { %4693 = vmatpush3.bf16.msra.mxu1 %v5105_v39 }
 0x1ed   : > { %4694 = vmatprep.subr.bf16.mxu1 %v5108_v11  ;;  %4667 = vmatpush3.bf16.msra.mxu0 %v5107_v10 }
 0x1ee   : > { %4668 = vmatprep.subr.bf16.mxu0 %v5110_v12 }
 0x1f0   : > { %4695 = vmatpush3.bf16.msra.mxu1 %v5109_v14 }
 0x1f1   : > { %4696 = vmatprep.subr.bf16.mxu1 %v5112_v15  ;;  %4669 = vmatpush3.bf16.msra.mxu0 %v5111_v16 }
 0x1f2   : > { %4670 = vmatprep.subr.bf16.mxu0 %v5114_v24 }
 0x1f4   : > { %4697 = vmatpush3.bf16.msra.mxu1 %v5113_v17 }
 0x1f5   : > { %4698 = vmatprep.subr.bf16.mxu1 %v5116_v18  ;;  %4671 = vmatpush3.bf16.msra.mxu0 %v5115_v19 }
 0x1f6   : > { %4672 = vmatprep.subr.bf16.mxu0 %v5118_v20 }
 0x1f8   : > { %4699 = vmatpush3.bf16.msra.mxu1 %v5117_v21 }
 0x1f9   : > { %4700 = vmatprep.subr.bf16.mxu1 %v5120_v22  ;;  %4673 = vmatpush3.bf16.msra.mxu0 %v5119_v23 }
 0x1fa   : > { %4714 = vmatprep.subr.bf16.mxu0 %v5122_v25 }
 0x1fc   : > { %4701 = vmatpush3.bf16.msra.mxu1 %v5121_v26 }
 0x1fd   : > { %4886 = vmatprep.subr.bf16.mxu1 %v5689_v27 }
 0x28f   : > { %v4580_v28 = vpop.f32.mrb[16].mxu0 }
 0x290   : > { %v4581_v29 = vpop.f32.mrb[17].mxu0 }
 0x291   : > { %v4582_v30 = vadd.f32 %v4581_v29, %v4580_v28  ;;  %v4583_v31 = vpop.f32.mrb[18].mxu0 }
 0x292   : > { %v4608_v32 = vpop.f32.mrb[12].mxu1  ;;  %v4584_v34 = vpop.f32.mrb[19].mxu0 }
 0x293   : > { %v4585_v35 = vadd.f32 %v4584_v34, %v4583_v31  ;;  %v4609_v36 = vpop.f32.mrb[13].mxu1 }
 0x294   : > { %v4610_v37 = vadd.f32 %v4609_v36, %v4608_v32  ;;  %v4611_v38 = vpop.f32.mrb[14].mxu1 }
 0x295   : > { %v4612_v40 = vpop.f32.mrb[15].mxu1 }
 0x296   : > { %v1847_v41 = vadd.f32 %v4610_v37, %v4582_v30  ;;  %v4613_v42 = vadd.f32 %v4612_v40, %v4611_v38 }
 0x297   : > { %v4586_v43 = vpop.f32.mrb[20].mxu0 }
 0x298   : > { %v1850_v45 = vadd.f32 %v4613_v42, %v4585_v35  ;;  %v4587_v47 = vpop.f32.mrb[21].mxu0 }
 0x299   : > { %v4588_v48 = vadd.f32 %v4587_v47, %v4586_v43  ;;  %v4589_v49 = vpop.f32.mrb[22].mxu0 }
 0x29a   : > { %v4614_v50 = vpop.f32.mrb[16].mxu1  ;;  %v4590_v51 = vpop.f32.mrb[23].mxu0 }
 0x29b   : > { %v4591_v52 = vadd.f32 %v4590_v51, %v4589_v49  ;;  %v4615_v53 = vpop.f32.mrb[17].mxu1 }
 0x29c   : > { %v4616_v56 = vadd.f32 %v4615_v53, %v4614_v50  ;;  %v4617_v54 = vpop.f32.mrb[18].mxu1 }
 0x29d   : > { %v4618_v55 = vpop.f32.mrb[19].mxu1 }
 0x29e   : > { %v1855_v57 = vadd.f32 %v4616_v56, %v4588_v48  ;;  %v4619_v58 = vadd.f32 %v4618_v55, %v4617_v54  ;;  %v4122_v54 = vld [vmem:[%s5479_s22 + $0x2] sm:$0x3] }
 0x29f   : > { %v2001_v55 = vrot.slane %v4122_v54, %v5609_v44 }
 0x2a0   : > { %v1858_v59 = vadd.f32 %v4619_v58, %v4591_v52  ;;  %v2009_v58 = vrot.slane %v4122_v54, %v5612_v46  ;;  %v5125_v54 = vld [vmem:[%s5473_s30 + $0x4c8] sm:$0xff]  }
 0x2af   : > { %v4636_v60 = vpop.f32.mrb[24].mxu0 }
 0x2b0   : > { %v4637_v61 = vpop.f32.mrb[25].mxu0 }
 0x2b1   : > { %v4638_v62 = vadd.f32 %v4637_v61, %v4636_v60  ;;  %v4639_v63 = vpop.f32.mrb[26].mxu0 }
 0x2b2   : > { %v4884_v33 = vpop.f32.mrb[20].mxu1  ;;  %v4640_v0 = vpop.f32.mrb[27].mxu0 }
 0x2b3   : > { %v4641_v1 = vadd.f32 %v4640_v0, %v4639_v63  ;;  %v1896_v2 = vadd.f32 %v4638_v62, %v1847_v41  ;;  %v1944_v3 = vpop.f32.mrb[21].mxu1 }
 0x2b4   : > { %v4885_v5 = vpop.f32.mrb[22].mxu1 }
 0x2b5   : > { %v1945_v13 = vadd.f32 %v1944_v3, %v1896_v2  ;;  %v1899_v4 = vadd.f32 %v4641_v1, %v1850_v45  ;;  %v1947_v6 = vpop.f32.mrb[23].mxu1 }
 0x2b7   : > { %v1948_v7 = vadd.f32 %v1947_v6, %v1899_v4  ;;  %v4642_v8 = vpop.f32.mrb[28].mxu0  ;;  %v1970_v9 = vmul.f32 %v1945_v13, %v1945_v13 }
 0x2b8   : > { %v4643_v39 = vpop.f32.mrb[29].mxu0 }
 0x2b9   : > { %v1961_v10 = vadd.f32 %v1948_v7, %v1945_v13  ;;  %v1971_v11 = vmul.f32 %v1948_v7, %v1948_v7  ;;  %v4644_v12 = vadd.f32 %v4643_v39, %v4642_v8  ;;  %v4645_v14 = vpop.f32.mrb[30].mxu0  ;;  %v2022_v39 = vld [vmem:[#allocation2] sm:$0xff] }
 0x2ba   : > { %v4646_v15 = vpop.f32.mrb[31].mxu0 }
 0x2bb   : > { %v1974_v16 = vadd.f32 %v1971_v11, %v1970_v9  ;;  %v1904_v24 = vadd.f32 %v4644_v12, %v1855_v57  ;;  %v4647_v17 = vadd.f32 %v4646_v15, %v4645_v14  ;;  %v2068_v11 = vld [vmem:[#allocation2] sm:$0xe0]  ;;  %v2029_v12 = vshll.u32 %v2022_v39, 16 }
 0x2bc   : > { %v2052_v14 = vld [vmem:[#allocation2] sm:$0xf8]  ;;  %v2073_v15 = vshrl.u32 %v2068_v11, 16 }
 0x2bd   : > { %v1953_v18 = vadd.f32 %v4884_v33, %v1904_v24  ;;  %v1907_v19 = vadd.f32 %v4647_v17, %v1858_v59  ;;  %v2054_v24 = vld [vmem:[#allocation2 + $0x18] sm:$0xf8] }
 0x2be   : > { %v2024_v17 = vld [vmem:[#allocation2 + $0x18] sm:$0xff] }
 0x2bf   : > { %v1962_v20 = vadd.f32 %v1961_v10, %v1953_v18  ;;  %v1972_v21 = vmul.f32 %v1953_v18, %v1953_v18  ;;  %v1956_v22 = vadd.f32 %v4885_v5, %v1907_v19  ;;  %v2031_v19 = vrot.slane %v2029_v12, 1 }
 0x2c1   : > { %v1975_v23 = vadd.f32 %v1974_v16, %v1972_v21  ;;  %v1963_v25 = vadd.f32 %v1962_v20, %v1956_v22  ;;  %v1973_v26 = vmul.f32 %v1956_v22, %v1956_v22  ;;  %v2076_v16 = vshll.u32 %v2068_v11, 16  ;;  %v5698_v21 = vld [vmem:[#allocation2 + $0x10] sm:$0xff] }
 0x2c2   : > { %v2060_v20 = vrot.slane %v2052_v14, 3  ;;  %v2178_v12 = vshll.u32 %v5698_v21, 16 }
 0x2c3   : > { %v1964_v28 = vrot.slane %v1963_v25, 4  ;;  %v1976_v29 = vadd.f32 %v1975_v23, %v1973_v26  ;;  %v2075_v23 = vrot.slane %v2073_v15, 5  ;;  %v2041_v26 = vshll.u32 %v2024_v17, 16 }
 0x2c5   : > { %v1965_v30 = vadd.f32 %v1964_v28, %v1963_v25  ;;  %v1977_v31 = vrot.slane %v1976_v29, 4  ;;  %v2078_v25 = vrot.slane %v2076_v16, 6  ;;  %v2070_v28 = vld [vmem:[#allocation2 + $0x18] sm:$0xe0]  ;;  %v5129_v16 = vld [vmem:[%s5473_s30 + $0x490] sm:$0xff]  }
 0x2c7   : > { %v1966_v32 = vrot.slane %v1965_v30, 2  ;;  %v1978_v34 = vadd.f32 %v1977_v31, %v1976_v29 }
 0x2c9   : > { %v1967_v35 = vadd.f32 %v1966_v32, %v1965_v30  ;;  %v1979_v36 = vrot.slane %v1978_v34, 2 }
 0x2cb   : > { %v1968_v37 = vrot.slane %v1967_v35, 1  ;;  %v1980_v38 = vadd.f32 %v1979_v36, %v1978_v34 }
 0x2cd   : > { %v1969_v40 = vadd.f32 %v1968_v37, %v1967_v35  ;;  %v1981_v41 = vrot.slane %v1980_v38, 1  ;;  %v2039_v37 = vshrl.u32 %v2024_v17, 16 }
 0x2cf   : > { %v1982_v42 = vadd.f32 %v1981_v41, %v1980_v38  ;;  %v1983_v43 = vmul.f32 0.03125, %v1969_v40 }
 0x2d1   : > { %v1984_v45 = vmul.f32 0.03125, %v1982_v42  ;;  %v1985_v47 = vmul.f32 %v1983_v43, %v1983_v43  ;;  %v1988_v48 = vsub.f32 %v1945_v13, %v1983_v43  ;;  %v1989_v49 = vsub.f32 %v1948_v7, %v1983_v43 }
 0x2d2   : > { %v1990_v50 = vsub.f32 %v1953_v18, %v1983_v43  ;;  %v1991_v51 = vsub.f32 %v1956_v22, %v1983_v43  ;;  %v2027_v18 = vshrl.u32 %v2022_v39, 16  ;;  %v2063_v22 = vrot.slane %v2054_v24, 3  ;;  %v5130_v24 = vld [vmem:[%s5473_s30 + $0x510] sm:$0xff]  }
 0x2d3   : > { %v1986_v52 = vsub.f32 %v1984_v45, %v1985_v47  ;;  %v2175_v43 = vshrl.u32 %v5698_v21, 16 }
 0x2d4   : > { %v5700_v34 = vor.u32 %v2031_v19, %v2027_v18  ;;  %v5131_v19 = vld [vmem:[%s5473_s30 + $0x4d8] sm:$0xff]  }
 0x2d5   : > { %v1987_v53 = vmax.f32 %v1986_v52, 0.0  ;;  %v2079_v52 = vor.u32 %v2078_v25, %v2075_v23  ;;  %v5133_v23 = vld [vmem:[%s5473_s30 + $0x518] sm:$0xff]  }
 0x2d7   : > { %v1992_v56 = vadd.f32 1e-05, %v1987_v53 }
 0x2d9   : > { %5204 = vrsqrt.f32 %v1992_v56 }
 0x2e3   : > { %v5205_v57 = vpop.eup %5204 }
 0x2e4   : > { %v1994_v59 = vmul.f32 %v5205_v57, %v1988_v48  ;;  %v1995_v60 = vmul.f32 %v5205_v57, %v1989_v49  ;;  %v1996_v61 = vmul.f32 %v5205_v57, %v1990_v50  ;;  %v1997_v62 = vmul.f32 %v5205_v57, %v1991_v51  ;;  %v5123_v48 = vld [vmem:[%s5473_s30 + $0x480] sm:$0xff]  }
 0x2e5   : > { %v2090_v50 = vshrl.u32 %v2070_v28, 16  ;;  %v2093_v51 = vshll.u32 %v2070_v28, 16 }
 0x2e6   : > { %v2002_v63 = vmul.f32 %v2001_v55, %v1994_v59  ;;  %v2003_v33 = vmul.f32 %v2001_v55, %v1995_v60  ;;  %v2004_v0 = vmul.f32 %v2001_v55, %v1996_v61  ;;  %v2005_v1 = vmul.f32 %v2001_v55, %v1997_v62 }
 0x2e8   : > { %v2010_v2 = vadd.f32 %v2009_v58, %v2002_v63  ;;  %v2011_v3 = vadd.f32 %v2009_v58, %v2003_v33  ;;  %v2012_v5 = vadd.f32 %v2009_v58, %v2004_v0  ;;  %v2013_v13 = vadd.f32 %v2009_v58, %v2005_v1  ;;  %v2151_v63 = vld [vmem:[#allocation2 + $0x10] sm:$0x1f]  ;;  %v5126_v0 = vld [vmem:[%s5473_s30 + $0x488] sm:$0xff]  }
 0x2e9   : > { %v2043_v58 = vrot.slane %v2041_v26, 1  ;;  %v5127_v1 = vld [vmem:[%s5473_s30 + $0x508] sm:$0xff]   ;;  %v2159_v15 = vrot.slane %v2151_v63, 5  ;;  %v5134_v26 = vld [vmem:[%s5473_s30 + $0x4e0] sm:$0xff]  }
 0x2ea   : > { %v2014_v4 = vmax.f32 %v2010_v2, 0.0  ;;  %v2015_v6 = vmax.f32 %v2011_v3, 0.0  ;;  %v2016_v7 = vmax.f32 %v2012_v5, 0.0  ;;  %v2017_v8 = vmax.f32 %v2013_v13, 0.0 }
 0x2eb   : > { %v2092_v3 = vrot.slane %v2090_v50, 5  ;;  %v2177_v5 = vrot.slane %v2175_v43, 7  ;;  %v5713_v39 = vor.u32 %v2043_v58, %v2039_v37  ;;  %v5139_v37 = vld [vmem:[%s5473_s30 + $0x528] sm:$0xff]  }
 0x2ec   : > { %v2018_v9 = vpack.c.bf16 %v2015_v6, %v2014_v4  ;;  %v5695_v10 = vpack.c.bf16 %v2017_v8, %v2016_v7  ;;  %v5128_v4 = vld [vmem:[%s5473_s30 + $0x4d0] sm:$0xff]   ;;  %v2095_v6 = vrot.slane %v2093_v51, 6  ;;  %v2113_v51 = vld [vmem:[#allocation2 + $0x28] sm:$0x7] }
 0x2ee   : > { %2020 = vst [vmem:[#allocation2 + $0x8] sm:$0xff] %v2018_v9  ;;  %2021 = vst [vmem:[#allocation2 + $0x20] sm:$0xff] %v5695_v10  ;;  %2726 = vmatprep.mubr.bf16.mxu1 %v2018_v9  ;;  %v2096_v17 = vor.u32 %v2095_v6, %v2092_v3 }
 0x2f5   : > { %v2053_v29 = vld [vmem:[#allocation2 + $0x8] sm:$0x7]  ;;  %v2055_v31 = vld [vmem:[#allocation2 + $0x20] sm:$0x7]  ;;  %v2166_v33 = vld [vmem:[#allocation2 + $0x8] sm:$0x80] }
 0x2f6   : > { %v2023_v30 = vld [vmem:[#allocation2 + $0x8] sm:$0x1]  ;;  %v2061_v32 = vrot.slane %v2053_v29, 3  ;;  %v2064_v38 = vrot.slane %v2055_v31, 3  ;;  %v2025_v42 = vld [vmem:[#allocation2 + $0x20] sm:$0x1] }
 0x2f7   : > { %v2034_v35 = vshll.u32 %v2023_v30, 16  ;;  %v2069_v36 = vld [vmem:[#allocation2 + $0x8] sm:$0x3f]  ;;  %v2071_v49 = vld [vmem:[#allocation2 + $0x20] sm:$0x3f]  ;;  %v2046_v59 = vshll.u32 %v2025_v42, 16 }
 0x2f8   : > { %v2081_v40 = vshrl.u32 %v2069_v36, 16  ;;  %v2084_v41 = vshll.u32 %v2069_v36, 16  ;;  %v2062_v45 = vsel %vm293_vm0, %v2060_v20, %v2061_v32  ;;  %v2098_v55 = vshrl.u32 %v2071_v49, 16  ;;  %v2150_v2 = vld [vmem:[#allocation2 + $0x8] sm:$0xe0]  ;;  %v5135_v29 = vld [vmem:[%s5473_s30 + $0x4a0] sm:$0xff]  }
 0x2f9   : > { %v2036_v47 = vrot.slane %v2034_v35, 1  ;;  %2677 = vmatprep.mubr.bf16.mxu0 %v2062_v45  ;;  %v2101_v60 = vshll.u32 %v2071_v49, 16  ;;  %v2065_v61 = vsel %vm293_vm0, %v2063_v22, %v2064_v38  ;;  %v2048_v9 = vrot.slane %v2046_v59, 1  ;;  %v5132_v22 = vld [vmem:[%s5473_s30 + $0x498] sm:$0xff]   ;;  %v5136_v30 = vld [vmem:[%s5473_s30 + $0x520] sm:$0xff]   ;;  %v5137_v31 = vld [vmem:[%s5473_s30 + $0x4e8] sm:$0xff]  }
 0x2fa   : > { %v2083_v53 = vrot.slane %v2081_v40, 5  ;;  %v2086_v56 = vrot.slane %v2084_v41, 6  ;;  %v2100_v7 = vrot.slane %v2098_v55, 5  ;;  %v2171_v11 = vshrl.u32 %v2166_v33, 16  ;;  %v2110_v32 = vld [vmem:[#allocation2 + $0x8] sm:$0xfc] }
 0x2fb   : > { %v2037_v57 = vsel %vm258_vm1, %v5700_v34, %v2036_v47  ;;  %v2103_v8 = vrot.slane %v2101_v60, 6  ;;  %v2158_v14 = vrot.slane %v2150_v2, 5  ;;  %v2049_v20 = vsel %vm258_vm1, %v5713_v39, %v2048_v9  ;;  %v2111_v35 = vld [vmem:[#allocation2 + $0x10] sm:$0x7]  ;;  %v5138_v36 = vld [vmem:[%s5473_s30 + $0x4a8] sm:$0xff]   ;;  %v5140_v38 = vld [vmem:[%s5473_s30 + $0x4f0] sm:$0xff]  }
 0x2fc   : > { %2678 = vmatmul.mubr.bf16.vlgmr.msra.gmra.mrb[32].mxu0 %v2037_v57  ;;  %v2087_v62 = vor.u32 %v2086_v56, %v2083_v53  ;;  %v2173_v21 = vrot.slane %v2171_v11, 7  ;;  %v2115_v40 = vshrl.u32 %v2110_v32, 16  ;;  %v2118_v41 = vshll.u32 %v2110_v32, 16  ;;  %v2169_v45 = vld [vmem:[#allocation2 + $0x28] sm:$0xff]  ;;  %v5141_v47 = vld [vmem:[%s5473_s30 + $0x4b0] sm:$0xff]  }
 0x2fd   : > { %4715 = vmatpush3.bf16.msra.mxu0 %v5123_v48  ;;  %2685 = vmatprep.mubr.bf16.mxu0 %v2065_v61  ;;  %v2104_v18 = vor.u32 %v2103_v8, %v2100_v7  ;;  %v2123_v42 = vshrl.u32 %v2111_v35, 16  ;;  %v2126_v43 = vshll.u32 %v2111_v35, 16  ;;  %v5142_v48 = vld [vmem:[%s5473_s30 + $0x530] sm:$0xff]   ;;  %v5143_v49 = vld [vmem:[%s5473_s30 + $0x4f8] sm:$0xff]   ;;  %v2187_v50 = vshrl.u32 %v2169_v45, 16 }
 0x2fe   : > { %v2088_v13 = vsel %vm306_vm2, %v2079_v52, %v2087_v62  ;;  %4716 = vmatprep.subr.bf16.mxu0 %v5125_v54  ;;  %v2117_v52 = vrot.slane %v2115_v40, 2  ;;  %v2120_v53 = vrot.slane %v2118_v41, 3  ;;  %v2168_v55 = vld [vmem:[#allocation2 + $0x20] sm:$0x80]  ;;  %v2153_v57 = vld [vmem:[#allocation2 + $0x28] sm:$0x1f] }
 0x2ff   : > { %2727 = vmatmul.mubr.bf16.vlgmr.msra.gmra.mrb[24].mxu1 %v2088_v13  ;;  %v2105_v25 = vsel %vm306_vm2, %v2096_v17, %v2104_v18  ;;  %v2125_v56 = vrot.slane %v2123_v42, 2  ;;  %v2128_v54 = vrot.slane %v2126_v43, 3  ;;  %v2112_v58 = vld [vmem:[#allocation2 + $0x20] sm:$0xfc]  ;;  %v5144_v59 = vld [vmem:[%s5473_s30 + $0x4b8] sm:$0xff]   ;;  %v2190_v62 = vshll.u32 %v2169_v45, 16 }
 0x300   : > { %4887 = vmatpush3.bf16.msra.mxu1 %v5689_v27  ;;  %2734 = vmatprep.mubr.bf16.mxu1 %v5695_v10  ;;  %v5723_v27 = vor.u32 %v2178_v12, %v2177_v5  ;;  %v2160_v10 = vsel %vm394_vm4, %v2158_v14, %v2159_v15  ;;  %v5145_v60 = vld [vmem:[%s5473_s30 + $0x538] sm:$0xff]   ;;  %v2152_v61 = vld [vmem:[#allocation2 + $0x20] sm:$0xe0]  ;;  %v2183_v63 = vshrl.u32 %v2168_v55, 16  ;;  %v2189_v33 = vrot.slane %v2187_v50, 7  ;;  %v5162_v40 = vld [vmem:[%s5473_s30 + $0x5a0] sm:$0xff]  }
 0x301   : > { %4717 = vmatpush3.bf16.msra.mxu0 %v5126_v0  ;;  %4888 = vmatprep.subr.bf16.mxu1 %v5127_v1  ;;  %v2140_v0 = vshrl.u32 %v2113_v51, 16  ;;  %v2121_v2 = vor.u32 %v2120_v53, %v2117_v52  ;;  %v2129_v3 = vor.u32 %v2128_v54, %v2125_v56  ;;  %v2132_v5 = vshrl.u32 %v2112_v58, 16  ;;  %v5157_v32 = vld [vmem:[%s5473_s30 + $0x5d0] sm:$0xff]   ;;  %v5158_v35 = vld [vmem:[%s5473_s30 + $0x598] sm:$0xff]   ;;  %v5163_v41 = vld [vmem:[%s5473_s30 + $0x560] sm:$0xff]  }
 0x302   : > { %4718 = vmatprep.subr.bf16.mxu0 %v5128_v4  ;;  %v2181_v28 = vsel %vm407_vm5, %v2173_v21, %v5723_v27  ;;  %v2135_v13 = vshll.u32 %v2112_v58, 16  ;;  %v2161_v4 = vrot.slane %v2152_v61, 5  ;;  %v2162_v6 = vrot.slane %v2153_v57, 5  ;;  %v5147_v21 = vld [vmem:[%s5473_s30 + $0x540] sm:$0xff]   ;;  %v5166_v43 = vld [vmem:[%s5473_s30 + $0x5a8] sm:$0xff]   ;;  %v5171_v52 = vld [vmem:[%s5473_s30 + $0x570] sm:$0xff]  }
 0x303   : > { %v2185_v7 = vrot.slane %v2183_v63, 7  ;;  %v5743_v8 = vor.u32 %v2190_v62, %v2189_v33  ;;  %v2142_v9 = vrot.slane %v2140_v0, 2  ;;  %v2130_v11 = vsel %vm349_vm3, %v2121_v2, %v2129_v3  ;;  %v5164_v42 = vld [vmem:[%s5473_s30 + $0x620] sm:$0xff]   ;;  %v5169_v50 = vld [vmem:[%s5473_s30 + $0x5e8] sm:$0xff]   ;;  %v5174_v53 = vld [vmem:[%s5473_s30 + $0x5b8] sm:$0xff]  }
 0x304   : > { %4889 = vmatpush3.bf16.msra.mxu1 %v5127_v1  ;;  %2686 = vmatmul.mubr.bf16.gmra.mrb[36].mxu0 %v2049_v20  ;;  %v2143_v1 = vshll.u32 %v2113_v51, 16  ;;  %v2134_v12 = vrot.slane %v2132_v5, 2  ;;  %v2137_v14 = vrot.slane %v2135_v13, 3  ;;  %v5146_v20 = vld [vmem:[%s5473_s30 + $0x580] sm:$0xff]   ;;  %v5172_v51 = vld [vmem:[%s5473_s30 + $0x630] sm:$0xff]   ;;  %v5176_v54 = vld [vmem:[%s5473_s30 + $0x638] sm:$0xff]  }
 0x305   : > { %4719 = vmatpush3.bf16.msra.mxu0 %v5129_v16  ;;  %2775 = vmatprep.mubr.bf16.mxu0 %v2160_v10  ;;  %v2163_v16 = vsel %vm394_vm4, %v2161_v4, %v2162_v6  ;;  %v5148_v10 = vld [vmem:[%s5473_s30 + $0x600] sm:$0xff]   ;;  %v5173_v56 = vld [vmem:[%s5473_s30 + $0x5f0] sm:$0xff]   ;;  %v5175_v55 = vld [vmem:[%s5473_s30 + $0x578] sm:$0xff]  }
 0x306   : > { %4890 = vmatprep.subr.bf16.mxu1 %v5130_v24  ;;  %4720 = vmatprep.subr.bf16.mxu0 %v5131_v19  ;;  %v2145_v15 = vrot.slane %v2143_v1, 3  ;;  %v2138_v17 = vor.u32 %v2137_v14, %v2134_v12  ;;  %v5165_v45 = vld [vmem:[%s5473_s30 + $0x5e0] sm:$0xff]   ;;  %v5177_v58 = vld [vmem:[%s5473_s30 + $0x5f8] sm:$0xff]  }
 0x307   : > { %2735 = vmatmul.mubr.bf16.gmra.mrb[28].mxu1 %v2105_v25  ;;  %v5151_v25 = vld [vmem:[%s5473_s30 + $0x548] sm:$0xff]   ;;  %v5178_v57 = vld [vmem:[%s5473_s30 + $0x680] sm:$0xff]  }
 0x308   : > { %4891 = vmatpush3.bf16.msra.mxu1 %v5130_v24  ;;  %4902 = vmatprep.mubr.bf16.mxu1 %v2181_v28  ;;  %v2193_v24 = vsel %vm407_vm5, %v2185_v7, %v5743_v8  ;;  %v2146_v18 = vor.u32 %v2145_v15, %v2142_v9  ;;  %v5153_v28 = vld [vmem:[%s5473_s30 + $0x5c8] sm:$0xff]  }
 0x309   : > { %4721 = vmatpush3.bf16.msra.mxu0 %v5132_v22  ;;  %4892 = vmatprep.subr.bf16.mxu1 %v5133_v23  ;;  %v5149_v22 = vld [vmem:[%s5473_s30 + $0x5c0] sm:$0xff]  }
 0x30a   : > { %4722 = vmatprep.subr.bf16.mxu0 %v5134_v26  ;;  %v2147_v19 = vsel %vm349_vm3, %v2138_v17, %v2146_v18  ;;  %v5152_v26 = vld [vmem:[%s5473_s30 + $0x608] sm:$0xff]  }
 0x30c   : > { %4893 = vmatpush3.bf16.msra.mxu1 %v5133_v23  ;;  %v5150_v23 = vld [vmem:[%s5473_s30 + $0x588] sm:$0xff]  }
 0x30d   : > { %4723 = vmatpush3.bf16.msra.mxu0 %v5135_v29  ;;  %4894 = vmatprep.subr.bf16.mxu1 %v5136_v30  ;;  %v5154_v29 = vld [vmem:[%s5473_s30 + $0x590] sm:$0xff]  }
 0x30e   : > { %4724 = vmatprep.subr.bf16.mxu0 %v5137_v31  ;;  %v5156_v31 = vld [vmem:[%s5473_s30 + $0x610] sm:$0xff]  }
 0x310   : > { %4895 = vmatpush3.bf16.msra.mxu1 %v5136_v30  ;;  %v5155_v30 = vld [vmem:[%s5473_s30 + $0x550] sm:$0xff]  }
 0x311   : > { %4725 = vmatpush3.bf16.msra.mxu0 %v5138_v36  ;;  %4896 = vmatprep.subr.bf16.mxu1 %v5139_v37  ;;  %v5159_v36 = vld [vmem:[%s5473_s30 + $0x558] sm:$0xff]  }
 0x312   : > { %4726 = vmatprep.subr.bf16.mxu0 %v5140_v38  ;;  %v5161_v38 = vld [vmem:[%s5473_s30 + $0x5d8] sm:$0xff]  }
 0x314   : > { %4897 = vmatpush3.bf16.msra.mxu1 %v5139_v37  ;;  %v5160_v37 = vld [vmem:[%s5473_s30 + $0x618] sm:$0xff]  }
 0x315   : > { %4727 = vmatpush3.bf16.msra.mxu0 %v5141_v47  ;;  %4898 = vmatprep.subr.bf16.mxu1 %v5142_v48  ;;  %v5168_v47 = vld [vmem:[%s5473_s30 + $0x628] sm:$0xff]  }
 0x316   : > { %4728 = vmatprep.subr.bf16.mxu0 %v5143_v49  ;;  %v5170_v49 = vld [vmem:[%s5473_s30 + $0x5b0] sm:$0xff]  }
 0x318   : > { %4899 = vmatpush3.bf16.msra.mxu1 %v5142_v48  ;;  %v5167_v48 = vld [vmem:[%s5473_s30 + $0x568] sm:$0xff]  }
 0x319   : > { %4729 = vmatpush3.bf16.msra.mxu0 %v5144_v59  ;;  %4900 = vmatprep.subr.bf16.mxu1 %v5145_v60  ;;  %v5784_v59 = vld [vmem:[%s5473_s30 + $0x6c0] sm:$0xff]  }
 0x31a   : > { %4752 = vmatprep.subr.bf16.mxu0 %v5146_v20 }
 0x31c   : > { %4901 = vmatpush3.bf16.msra.mxu1 %v5145_v60  ;;  %2776 = vmatmul.mubr.bf16.vlgmr.msra.gmra.mrb[40].mxu0 %v2130_v11 }
 0x31d   : > { %2783 = vmatprep.mubr.bf16.mxu0 %v2163_v16  ;;  %4753 = vmatpush3.bf16.msra.mxu0 %v5147_v21 }
 0x31e   : > { %4780 = vmatprep.subr.bf16.mxu1 %v5148_v10  ;;  %4754 = vmatprep.subr.bf16.mxu0 %v5150_v23 }
 0x31f   : > { %4903 = vmatmul.mubr.bf16.vlgmr.msra.gmra.mrb[32].mxu1 %v2193_v24 }
 0x320   : > { %4781 = vmatpush3.bf16.msra.mxu1 %v5149_v22 }
 0x321   : > { %4755 = vmatpush3.bf16.msra.mxu0 %v5151_v25  ;;  %4782 = vmatprep.subr.bf16.mxu1 %v5152_v26 }
 0x322   : > { %4756 = vmatprep.subr.bf16.mxu0 %v5154_v29 }
 0x324   : > { %2784 = vmatmul.mubr.bf16.gmra.mrb[44].mxu0 %v2147_v19  ;;  %4783 = vmatpush3.bf16.msra.mxu1 %v5153_v28 }
 0x325   : > { %4757 = vmatpush3.bf16.msra.mxu0 %v5155_v30  ;;  %4784 = vmatprep.subr.bf16.mxu1 %v5156_v31 }
 0x326   : > { %4758 = vmatprep.subr.bf16.mxu0 %v5158_v35 }
 0x328   : > { %4785 = vmatpush3.bf16.msra.mxu1 %v5157_v32 }
 0x329   : > { %4759 = vmatpush3.bf16.msra.mxu0 %v5159_v36  ;;  %4786 = vmatprep.subr.bf16.mxu1 %v5160_v37 }
 0x32a   : > { %4760 = vmatprep.subr.bf16.mxu0 %v5162_v40 }
 0x32c   : > { %4787 = vmatpush3.bf16.msra.mxu1 %v5161_v38 }
 0x32d   : > { %4788 = vmatprep.subr.bf16.mxu1 %v5164_v42  ;;  %4761 = vmatpush3.bf16.msra.mxu0 %v5163_v41 }
 0x32e   : > { %4762 = vmatprep.subr.bf16.mxu0 %v5166_v43 }
 0x330   : > { %4789 = vmatpush3.bf16.msra.mxu1 %v5165_v45 }
 0x331   : > { %4790 = vmatprep.subr.bf16.mxu1 %v5168_v47  ;;  %4763 = vmatpush3.bf16.msra.mxu0 %v5167_v48 }
 0x332   : > { %4764 = vmatprep.subr.bf16.mxu0 %v5170_v49 }
 0x334   : > { %4791 = vmatpush3.bf16.msra.mxu1 %v5169_v50 }
 0x335   : > { %4792 = vmatprep.subr.bf16.mxu1 %v5172_v51  ;;  %4765 = vmatpush3.bf16.msra.mxu0 %v5171_v52 }
 0x336   : > { %4766 = vmatprep.subr.bf16.mxu0 %v5174_v53 }
 0x338   : > { %4793 = vmatpush3.bf16.msra.mxu1 %v5173_v56 }
 0x339   : > { %4794 = vmatprep.subr.bf16.mxu1 %v5176_v54  ;;  %4767 = vmatpush3.bf16.msra.mxu0 %v5175_v55 }
 0x33a   : > { %4808 = vmatprep.subr.bf16.mxu0 %v5178_v57 }
 0x33c   : > { %4795 = vmatpush3.bf16.msra.mxu1 %v5177_v58 }
 0x33d   : > { %4906 = vmatprep.subr.bf16.mxu1 %v5784_v59 }
 0x3cf   : > { %v4674_v60 = vpop.f32.mrb[32].mxu0 }
 0x3d0   : > { %v4675_v61 = vpop.f32.mrb[33].mxu0 }
 0x3d1   : > { %v4676_v62 = vadd.f32 %v4675_v61, %v4674_v60  ;;  %v4677_v63 = vpop.f32.mrb[34].mxu0 }
 0x3d2   : > { %v4702_v33 = vpop.f32.mrb[24].mxu1  ;;  %v4678_v0 = vpop.f32.mrb[35].mxu0 }
 0x3d3   : > { %v4679_v1 = vadd.f32 %v4678_v0, %v4677_v63  ;;  %v4703_v2 = vpop.f32.mrb[25].mxu1 }
 0x3d4   : > { %v4704_v3 = vadd.f32 %v4703_v2, %v4702_v33  ;;  %v4705_v5 = vpop.f32.mrb[26].mxu1 }
 0x3d5   : > { %v4706_v13 = vpop.f32.mrb[27].mxu1 }
 0x3d6   : > { %v2729_v4 = vadd.f32 %v4704_v3, %v4676_v62  ;;  %v4707_v6 = vadd.f32 %v4706_v13, %v4705_v5 }
 0x3d7   : > { %v4680_v7 = vpop.f32.mrb[36].mxu0 }
 0x3d8   : > { %v2732_v9 = vadd.f32 %v4707_v6, %v4679_v1  ;;  %v4681_v11 = vpop.f32.mrb[37].mxu0 }
 0x3d9   : > { %v4682_v12 = vadd.f32 %v4681_v11, %v4680_v7  ;;  %v4683_v14 = vpop.f32.mrb[38].mxu0 }
 0x3da   : > { %v4708_v15 = vpop.f32.mrb[28].mxu1  ;;  %v4684_v16 = vpop.f32.mrb[39].mxu0 }
 0x3db   : > { %v4685_v24 = vadd.f32 %v4684_v16, %v4683_v14  ;;  %v4709_v17 = vpop.f32.mrb[29].mxu1 }
 0x3dc   : > { %v4710_v18 = vadd.f32 %v4709_v17, %v4708_v15  ;;  %v4711_v19 = vpop.f32.mrb[30].mxu1 }
 0x3dd   : > { %v4712_v20 = vpop.f32.mrb[31].mxu1 }
 0x3de   : > { %v2737_v21 = vadd.f32 %v4710_v18, %v4682_v12  ;;  %v4713_v10 = vadd.f32 %v4712_v20, %v4711_v19 }
 0x3e0   : > { %v2740_v22 = vadd.f32 %v4713_v10, %v4685_v24 }
 0x3ef   : > { %v4730_v23 = vpop.f32.mrb[40].mxu0 }
 0x3f0   : > { %v4731_v25 = vpop.f32.mrb[41].mxu0 }
 0x3f1   : > { %v4732_v26 = vadd.f32 %v4731_v25, %v4730_v23  ;;  %v4733_v28 = vpop.f32.mrb[42].mxu0 }
 0x3f2   : > { %v4904_v29 = vpop.f32.mrb[32].mxu1  ;;  %v4734_v30 = vpop.f32.mrb[43].mxu0 }
 0x3f3   : > { %v4735_v31 = vadd.f32 %v4734_v30, %v4733_v28  ;;  %v2778_v32 = vadd.f32 %v4732_v26, %v2729_v4  ;;  %v2826_v35 = vpop.f32.mrb[33].mxu1 }
 0x3f4   : > { %v4905_v36 = vpop.f32.mrb[34].mxu1 }
 0x3f5   : > { %v2827_v37 = vadd.f32 %v2826_v35, %v2778_v32  ;;  %v2781_v38 = vadd.f32 %v4735_v31, %v2732_v9  ;;  %v2829_v40 = vpop.f32.mrb[35].mxu1 }
 0x3f7   : > { %v2830_v41 = vadd.f32 %v2829_v40, %v2781_v38  ;;  %v4736_v42 = vpop.f32.mrb[44].mxu0  ;;  %v2852_v45 = vmul.f32 %v2827_v37, %v2827_v37 }
 0x3f8   : > { %v4737_v43 = vpop.f32.mrb[45].mxu0 }
 0x3f9   : > { %v2843_v47 = vadd.f32 %v2830_v41, %v2827_v37  ;;  %v2853_v48 = vmul.f32 %v2830_v41, %v2830_v41  ;;  %v4738_v49 = vadd.f32 %v4737_v43, %v4736_v42  ;;  %v4739_v50 = vpop.f32.mrb[46].mxu0 }
 0x3fa   : > { %v4740_v51 = vpop.f32.mrb[47].mxu0 }
 0x3fb   : > { %v2856_v52 = vadd.f32 %v2853_v48, %v2852_v45  ;;  %v2786_v53 = vadd.f32 %v4738_v49, %v2737_v21  ;;  %v4741_v56 = vadd.f32 %v4740_v51, %v4739_v50  ;;  %v2950_v51 = vld [vmem:[#allocation2] sm:$0xe0] }
 0x3fd   : > { %v2835_v54 = vadd.f32 %v4904_v29, %v2786_v53  ;;  %v2789_v55 = vadd.f32 %v4741_v56, %v2740_v22  ;;  %v4291_v22 = vld [vmem:[%s5479_s22 + $0x4] sm:$0x3]  ;;  %v2955_v53 = vshrl.u32 %v2950_v51, 16  ;;  %v2958_v56 = vshll.u32 %v2950_v51, 16 }
 0x3fe   : > { %v2883_v23 = vrot.slane %v4291_v22, %v5609_v44  ;;  %v2891_v26 = vrot.slane %v4291_v22, %v5612_v46 }
 0x3ff   : > { %v2844_v57 = vadd.f32 %v2843_v47, %v2835_v54  ;;  %v2854_v58 = vmul.f32 %v2835_v54, %v2835_v54  ;;  %v2838_v60 = vadd.f32 %v4905_v36, %v2789_v55  ;;  %v2936_v55 = vld [vmem:[#allocation2 + $0x18] sm:$0xf8] }
 0x401   : > { %v2857_v61 = vadd.f32 %v2856_v52, %v2854_v58  ;;  %v2845_v62 = vadd.f32 %v2844_v57, %v2838_v60  ;;  %v2855_v63 = vmul.f32 %v2838_v60, %v2838_v60  ;;  %v2934_v52 = vld [vmem:[#allocation2] sm:$0xf8]  ;;  %v2957_v57 = vrot.slane %v2955_v53, 5 }
 0x402   : > { %v2960_v58 = vrot.slane %v2958_v56, 6  ;;  %v5190_v56 = vld [vmem:[%s5473_s30 + $0x6a0] sm:$0xff]  }
 0x403   : > { %v2846_v33 = vrot.slane %v2845_v62, 4  ;;  %v2858_v0 = vadd.f32 %v2857_v61, %v2855_v63 }
 0x405   : > { %v2847_v1 = vadd.f32 %v2846_v33, %v2845_v62  ;;  %v2859_v2 = vrot.slane %v2858_v0, 4 }
 0x407   : > { %v2848_v3 = vrot.slane %v2847_v1, 2  ;;  %v2860_v5 = vadd.f32 %v2859_v2, %v2858_v0  ;;  %v2945_v2 = vrot.slane %v2936_v55, 3  ;;  %v5192_v55 = vld [vmem:[%s5473_s30 + $0x6e0] sm:$0xff]  }
 0x409   : > { %v2849_v13 = vadd.f32 %v2848_v3, %v2847_v1  ;;  %v2861_v4 = vrot.slane %v2860_v5, 2 }
 0x40b   : > { %v2850_v6 = vrot.slane %v2849_v13, 1  ;;  %v2862_v7 = vadd.f32 %v2861_v4, %v2860_v5 }
 0x40d   : > { %v2851_v9 = vadd.f32 %v2850_v6, %v2849_v13  ;;  %v2863_v11 = vrot.slane %v2862_v7, 1 }
 0x40f   : > { %v2864_v12 = vadd.f32 %v2863_v11, %v2862_v7  ;;  %v2865_v14 = vmul.f32 0.03125, %v2851_v9  ;;  %v5179_v9 = vld [vmem:[%s5473_s30 + $0x640] sm:$0xff]  }
 0x411   : > { %v2866_v15 = vmul.f32 0.03125, %v2864_v12  ;;  %v2867_v16 = vmul.f32 %v2865_v14, %v2865_v14  ;;  %v2870_v24 = vsub.f32 %v2827_v37, %v2865_v14  ;;  %v2871_v17 = vsub.f32 %v2830_v41, %v2865_v14 }
 0x412   : > { %v2872_v18 = vsub.f32 %v2835_v54, %v2865_v14  ;;  %v2873_v19 = vsub.f32 %v2838_v60, %v2865_v14  ;;  %v2942_v54 = vrot.slane %v2934_v52, 3  ;;  %v2952_v60 = vld [vmem:[#allocation2 + $0x18] sm:$0xe0]  ;;  %v5189_v52 = vld [vmem:[%s5473_s30 + $0x6d8] sm:$0xff]  }
 0x413   : > { %v2868_v20 = vsub.f32 %v2866_v15, %v2867_v16  ;;  %v2972_v12 = vshrl.u32 %v2952_v60, 16  ;;  %v2975_v14 = vshll.u32 %v2952_v60, 16  ;;  %v2961_v15 = vor.u32 %v2960_v58, %v2957_v57  ;;  %v5193_v57 = vld [vmem:[%s5473_s30 + $0x6a8] sm:$0xff]   ;;  %v2993_v60 = vld [vmem:[#allocation2 + $0x10] sm:$0x7] }
 0x415   : > { %v2869_v21 = vmax.f32 %v2868_v20, 0.0 }
 0x417   : > { %v2874_v10 = vadd.f32 1e-05, %v2869_v21 }
 0x419   : > { %5206 = vrsqrt.f32 %v2874_v10 }
 0x423   : > { %v5207_v25 = vpop.eup %5206 }
 0x424   : > { %v2876_v28 = vmul.f32 %v5207_v25, %v2870_v24  ;;  %v2877_v29 = vmul.f32 %v5207_v25, %v2871_v17  ;;  %v2878_v30 = vmul.f32 %v5207_v25, %v2872_v18  ;;  %v2879_v31 = vmul.f32 %v5207_v25, %v2873_v19  ;;  %v5181_v17 = vld [vmem:[%s5473_s30 + $0x688] sm:$0xff]  }
 0x426   : > { %v2884_v32 = vmul.f32 %v2883_v23, %v2876_v28  ;;  %v2885_v35 = vmul.f32 %v2883_v23, %v2877_v29  ;;  %v2886_v36 = vmul.f32 %v2883_v23, %v2878_v30  ;;  %v2887_v37 = vmul.f32 %v2883_v23, %v2879_v31  ;;  %v3033_v23 = vld [vmem:[#allocation2 + $0x10] sm:$0x1f]  ;;  %v5183_v28 = vld [vmem:[%s5473_s30 + $0x6c8] sm:$0xff]  }
 0x427   : > { %v2974_v30 = vrot.slane %v2972_v12, 5  ;;  %v3035_v12 = vld [vmem:[#allocation2 + $0x28] sm:$0x1f] }
 0x428   : > { %v2892_v38 = vadd.f32 %v2891_v26, %v2884_v32  ;;  %v2893_v40 = vadd.f32 %v2891_v26, %v2885_v35  ;;  %v2894_v41 = vadd.f32 %v2891_v26, %v2886_v36  ;;  %v2895_v42 = vadd.f32 %v2891_v26, %v2887_v37  ;;  %v5182_v26 = vld [vmem:[%s5473_s30 + $0x648] sm:$0xff]  }
 0x429   : > { %v2977_v32 = vrot.slane %v2975_v14, 6 }
 0x42a   : > { %v2896_v43 = vmax.f32 %v2892_v38, 0.0  ;;  %v2897_v45 = vmax.f32 %v2893_v40, 0.0  ;;  %v2898_v47 = vmax.f32 %v2894_v41, 0.0  ;;  %v2899_v48 = vmax.f32 %v2895_v42, 0.0  ;;  %v5185_v42 = vld [vmem:[%s5473_s30 + $0x650] sm:$0xff]  }
 0x42b   : > { %v3041_v41 = vrot.slane %v3033_v23, 5 }
 0x42c   : > { %v2900_v49 = vpack.c.bf16 %v2897_v45, %v2896_v43  ;;  %v2901_v50 = vpack.c.bf16 %v2899_v48, %v2898_v47  ;;  %v5186_v43 = vld [vmem:[%s5473_s30 + $0x6d0] sm:$0xff]   ;;  %v2978_v45 = vor.u32 %v2977_v32, %v2974_v30  ;;  %v5187_v48 = vld [vmem:[%s5473_s30 + $0x698] sm:$0xff]  }
 0x42e   : > { %2902 = vst [vmem:[#allocation2 + $0x8] sm:$0xff] %v2900_v49  ;;  %2903 = vst [vmem:[#allocation2 + $0x20] sm:$0xff] %v2901_v50  ;;  %3608 = vmatprep.mubr.bf16.mxu1 %v2900_v49 }
 0x435   : > { %v2935_v61 = vld [vmem:[#allocation2 + $0x8] sm:$0x7]  ;;  %v2937_v63 = vld [vmem:[#allocation2 + $0x20] sm:$0x7]  ;;  %v3048_v25 = vld [vmem:[#allocation2 + $0x8] sm:$0x80] }
 0x436   : > { %v2905_v62 = vld [vmem:[#allocation2 + $0x8] sm:$0x1]  ;;  %v2943_v33 = vrot.slane %v2935_v61, 3  ;;  %v2946_v3 = vrot.slane %v2937_v63, 3  ;;  %v2907_v4 = vld [vmem:[#allocation2 + $0x20] sm:$0x1] }
 0x437   : > { %v2916_v0 = vshll.u32 %v2905_v62, 16  ;;  %v2951_v1 = vld [vmem:[#allocation2 + $0x8] sm:$0x3f]  ;;  %v2953_v11 = vld [vmem:[#allocation2 + $0x20] sm:$0x3f]  ;;  %v2928_v20 = vshll.u32 %v2907_v4, 16 }
 0x438   : > { %v2963_v5 = vshrl.u32 %v2951_v1, 16  ;;  %v2966_v13 = vshll.u32 %v2951_v1, 16  ;;  %v2944_v6 = vsel %vm293_vm0, %v2942_v54, %v2943_v33  ;;  %v2980_v18 = vshrl.u32 %v2953_v11, 16  ;;  %v3032_v29 = vld [vmem:[#allocation2 + $0x8] sm:$0xe0]  ;;  %v5191_v54 = vld [vmem:[%s5473_s30 + $0x660] sm:$0xff]  }
 0x439   : > { %v2918_v7 = vrot.slane %v2916_v0, 1  ;;  %3559 = vmatprep.mubr.bf16.mxu0 %v2944_v6  ;;  %v2983_v21 = vshll.u32 %v2953_v11, 16  ;;  %v2947_v10 = vsel %vm293_vm0, %v2945_v2, %v2946_v3  ;;  %v2930_v37 = vrot.slane %v2928_v20, 1  ;;  %v2992_v58 = vld [vmem:[#allocation2 + $0x8] sm:$0xfc]  ;;  %v5194_v61 = vld [vmem:[%s5473_s30 + $0x668] sm:$0xff]  }
 0x43a   : > { %v2965_v16 = vrot.slane %v2963_v5, 5  ;;  %v2968_v24 = vrot.slane %v2966_v13, 6  ;;  %v2982_v35 = vrot.slane %v2980_v18, 5  ;;  %v3053_v38 = vshrl.u32 %v3048_v25, 16  ;;  %v5195_v62 = vld [vmem:[%s5473_s30 + $0x6e8] sm:$0xff]   ;;  %v5197_v2 = vld [vmem:[%s5473_s30 + $0x670] sm:$0xff]  }
 0x43b   : > { %v2919_v19 = vsel %vm258_vm1, %v5700_v34, %v2918_v7  ;;  %v5184_v34 = vld [vmem:[%s5473_s30 + $0x690] sm:$0xff]   ;;  %v2985_v36 = vrot.slane %v2983_v21, 6  ;;  %v3040_v40 = vrot.slane %v3032_v29, 5  ;;  %v2931_v49 = vsel %vm258_vm1, %v5713_v39, %v2930_v37  ;;  %v5199_v5 = vld [vmem:[%s5473_s30 + $0x6b8] sm:$0xff]  }
 0x43c   : > { %3560 = vmatmul.mubr.bf16.vlgmr.msra.gmra.mrb[48].mxu0 %v2919_v19  ;;  %v2969_v22 = vor.u32 %v2968_v24, %v2965_v16  ;;  %v3055_v51 = vrot.slane %v3053_v38, 7  ;;  %v2997_v63 = vshrl.u32 %v2992_v58, 16  ;;  %v3000_v33 = vshll.u32 %v2992_v58, 16  ;;  %v5198_v3 = vld [vmem:[%s5473_s30 + $0x6f0] sm:$0xff]   ;;  %v2995_v13 = vld [vmem:[#allocation2 + $0x28] sm:$0x7] }
 0x43d   : > { %4809 = vmatpush3.bf16.msra.mxu0 %v5179_v9  ;;  %3567 = vmatprep.mubr.bf16.mxu0 %v2947_v10  ;;  %v2986_v47 = vor.u32 %v2985_v36, %v2982_v35  ;;  %v3005_v0 = vshrl.u32 %v2993_v60, 16  ;;  %v3008_v1 = vshll.u32 %v2993_v60, 16  ;;  %v3050_v11 = vld [vmem:[#allocation2 + $0x20] sm:$0x80]  ;;  %v5201_v16 = vld [vmem:[%s5473_s30 + $0x6f8] sm:$0xff]   ;;  %v3022_v18 = vshrl.u32 %v2995_v13, 16 }
 0x43e   : > { %v2970_v31 = vsel %vm306_vm2, %v2961_v15, %v2969_v22  ;;  %4810 = vmatprep.subr.bf16.mxu0 %v5181_v17  ;;  %v3063_v39 = vsel %vm407_vm5, %v3055_v51, %v5723_v27  ;;  %v5196_v27 = vld [vmem:[%s5473_s30 + $0x6b0] sm:$0xff]   ;;  %v2999_v4 = vrot.slane %v2997_v63, 2  ;;  %v3002_v6 = vrot.slane %v3000_v33, 3  ;;  %v5200_v15 = vld [vmem:[%s5473_s30 + $0x678] sm:$0xff]  }
 0x43f   : > { %3609 = vmatmul.mubr.bf16.vlgmr.msra.gmra.mrb[36].mxu1 %v2970_v31  ;;  %v2987_v53 = vsel %vm306_vm2, %v2978_v45, %v2986_v47  ;;  %v3007_v7 = vrot.slane %v3005_v0, 2  ;;  %v3010_v9 = vrot.slane %v3008_v1, 3  ;;  %v2994_v14 = vld [vmem:[#allocation2 + $0x20] sm:$0xfc]  ;;  %v3065_v17 = vshrl.u32 %v3050_v11, 16 }
 0x440   : > { %4907 = vmatpush3.bf16.msra.mxu1 %v5784_v59  ;;  %3616 = vmatprep.mubr.bf16.mxu1 %v2901_v50  ;;  %v3042_v59 = vsel %vm394_vm4, %v3040_v40, %v3041_v41  ;;  %v5188_v50 = vld [vmem:[%s5473_s30 + $0x658] sm:$0xff]   ;;  %v3034_v24 = vld [vmem:[#allocation2 + $0x20] sm:$0xe0]  ;;  %v3025_v19 = vshll.u32 %v2995_v13, 16  ;;  %v3003_v20 = vor.u32 %v3002_v6, %v2999_v4  ;;  %v3014_v10 = vshrl.u32 %v2994_v14, 16 }
 0x441   : > { %4811 = vmatpush3.bf16.msra.mxu0 %v5182_v26  ;;  %4908 = vmatprep.subr.bf16.mxu1 %v5183_v28  ;;  %v3011_v21 = vor.u32 %v3010_v9, %v3007_v7  ;;  %v3017_v22 = vshll.u32 %v2994_v14, 16  ;;  %v3043_v23 = vrot.slane %v3034_v24, 5  ;;  %v3044_v25 = vrot.slane %v3035_v12, 5 }
 0x442   : > { %4812 = vmatprep.subr.bf16.mxu0 %v5184_v34  ;;  %v3067_v26 = vrot.slane %v3065_v17, 7  ;;  %v3016_v30 = vrot.slane %v3014_v10, 2  ;;  %v3027_v34 = vrot.slane %v3025_v19, 3 }
 0x443   : > { %v3012_v29 = vsel %vm349_vm3, %v3003_v20, %v3011_v21  ;;  %v3019_v31 = vrot.slane %v3017_v22, 3  ;;  %v3045_v32 = vsel %vm394_vm4, %v3043_v23, %v3044_v25 }
 0x444   : > { %4909 = vmatpush3.bf16.msra.mxu1 %v5183_v28  ;;  %3568 = vmatmul.mubr.bf16.gmra.mrb[52].mxu0 %v2931_v49  ;;  %v3024_v28 = vrot.slane %v3022_v18, 2  ;;  %v3075_v35 = vsel %vm407_vm5, %v3067_v26, %v5743_v8 }
 0x445   : > { %4813 = vmatpush3.bf16.msra.mxu0 %v5185_v42  ;;  %3657 = vmatprep.mubr.bf16.mxu0 %v3042_v59  ;;  %v3020_v36 = vor.u32 %v3019_v31, %v3016_v30 }
 0x446   : > { %4910 = vmatprep.subr.bf16.mxu1 %v5186_v43  ;;  %4814 = vmatprep.subr.bf16.mxu0 %v5187_v48  ;;  %v3028_v37 = vor.u32 %v3027_v34, %v3024_v28 }
 0x447   : > { %3617 = vmatmul.mubr.bf16.gmra.mrb[40].mxu1 %v2987_v53 }
 0x448   : > { %4911 = vmatpush3.bf16.msra.mxu1 %v5186_v43  ;;  %4922 = vmatprep.mubr.bf16.mxu1 %v3063_v39  ;;  %v3029_v38 = vsel %vm349_vm3, %v3020_v36, %v3028_v37 }
 0x449   : > { %4815 = vmatpush3.bf16.msra.mxu0 %v5188_v50  ;;  %4912 = vmatprep.subr.bf16.mxu1 %v5189_v52 }
 0x44a   : > { %4816 = vmatprep.subr.bf16.mxu0 %v5190_v56 }
 0x44c   : > { %4913 = vmatpush3.bf16.msra.mxu1 %v5189_v52 }
 0x44d   : > { %4817 = vmatpush3.bf16.msra.mxu0 %v5191_v54  ;;  %4914 = vmatprep.subr.bf16.mxu1 %v5192_v55 }
 0x44e   : > { %4818 = vmatprep.subr.bf16.mxu0 %v5193_v57 }
 0x450   : > { %4915 = vmatpush3.bf16.msra.mxu1 %v5192_v55 }
 0x451   : > { %4819 = vmatpush3.bf16.msra.mxu0 %v5194_v61  ;;  %4916 = vmatprep.subr.bf16.mxu1 %v5195_v62 }
 0x452   : > { %4820 = vmatprep.subr.bf16.mxu0 %v5196_v27 }
 0x454   : > { %4917 = vmatpush3.bf16.msra.mxu1 %v5195_v62 }
 0x455   : > { %4821 = vmatpush3.bf16.msra.mxu0 %v5197_v2  ;;  %4918 = vmatprep.subr.bf16.mxu1 %v5198_v3 }
 0x456   : > { %4822 = vmatprep.subr.bf16.mxu0 %v5199_v5 }
 0x458   : > { %4919 = vmatpush3.bf16.msra.mxu1 %v5198_v3 }
 0x459   : > { %4823 = vmatpush3.bf16.msra.mxu0 %v5200_v15  ;;  %4920 = vmatprep.subr.bf16.mxu1 %v5201_v16 }
 0x45c   : > { %4921 = vmatpush3.bf16.msra.mxu1 %v5201_v16  ;;  %3658 = vmatmul.mubr.bf16.vlgmr.msra.gmra.mrb[56].mxu0 %v3012_v29 }
 0x45d   : > { %3665 = vmatprep.mubr.bf16.mxu0 %v3045_v32 }
 0x45f   : > { %4923 = vmatmul.mubr.bf16.vlgmr.msra.gmra.mrb[44].mxu1 %v3075_v35 }
 0x464   : > { %3666 = vmatmul.mubr.bf16.gmra.mrb[60].mxu0 %v3029_v38 }
 0x50f   : > { %v4768_v40 = vpop.f32.mrb[48].mxu0 }
 0x510   : > { %v4769_v41 = vpop.f32.mrb[49].mxu0 }
 0x511   : > { %v4770_v42 = vadd.f32 %v4769_v41, %v4768_v40  ;;  %v4771_v43 = vpop.f32.mrb[50].mxu0 }
 0x512   : > { %v4796_v45 = vpop.f32.mrb[36].mxu1  ;;  %v4772_v47 = vpop.f32.mrb[51].mxu0 }
 0x513   : > { %v4773_v48 = vadd.f32 %v4772_v47, %v4771_v43  ;;  %v4797_v49 = vpop.f32.mrb[37].mxu1 }
 0x514   : > { %v4798_v51 = vadd.f32 %v4797_v49, %v4796_v45  ;;  %v4799_v59 = vpop.f32.mrb[38].mxu1 }
 0x515   : > { %v4800_v50 = vpop.f32.mrb[39].mxu1 }
 0x516   : > { %v3611_v52 = vadd.f32 %v4798_v51, %v4770_v42  ;;  %v4801_v53 = vadd.f32 %v4800_v50, %v4799_v59 }
 0x517   : > { %v4774_v8 = vpop.f32.mrb[52].mxu0 }
 0x518   : > { %v3614_v56 = vadd.f32 %v4801_v53, %v4773_v48  ;;  %v4775_v39 = vpop.f32.mrb[53].mxu0 }
 0x519   : > { %v4776_v54 = vadd.f32 %v4775_v39, %v4774_v8  ;;  %v4777_v55 = vpop.f32.mrb[54].mxu0 }
 0x51a   : > { %v4802_v57 = vpop.f32.mrb[40].mxu1  ;;  %v4778_v58 = vpop.f32.mrb[55].mxu0 }
 0x51b   : > { %v4779_v60 = vadd.f32 %v4778_v58, %v4777_v55  ;;  %v4803_v61 = vpop.f32.mrb[41].mxu1 }
 0x51c   : > { %v4804_v62 = vadd.f32 %v4803_v61, %v4802_v57  ;;  %v4805_v27 = vpop.f32.mrb[42].mxu1 }
 0x51d   : > { %v4806_v63 = vpop.f32.mrb[43].mxu1 }
 0x51e   : > { %v3619_v33 = vadd.f32 %v4804_v62, %v4776_v54  ;;  %v4807_v0 = vadd.f32 %v4806_v63, %v4805_v27  ;;  %v4460_v62 = vld [vmem:[%s5479_s22 + $0x6] sm:$0x3] }
 0x51f   : > { %v3765_v27 = vrot.slane %v4460_v62, %v5609_v44 }
 0x520   : > { %v3622_v1 = vadd.f32 %v4807_v0, %v4779_v60 }
 0x52f   : > { %v4824_v2 = vpop.f32.mrb[56].mxu0 }
 0x530   : > { %v4825_v3 = vpop.f32.mrb[57].mxu0 }
 0x531   : > { %v4826_v5 = vadd.f32 %v4825_v3, %v4824_v2  ;;  %v4827_v13 = vpop.f32.mrb[58].mxu0 }
 0x532   : > { %v4924_v4 = vpop.f32.mrb[44].mxu1  ;;  %v4828_v6 = vpop.f32.mrb[59].mxu0 }
 0x533   : > { %v4829_v7 = vadd.f32 %v4828_v6, %v4827_v13  ;;  %v3660_v9 = vadd.f32 %v4826_v5, %v3611_v52  ;;  %v3708_v11 = vpop.f32.mrb[45].mxu1 }
 0x534   : > { %v4925_v12 = vpop.f32.mrb[46].mxu1 }
 0x535   : > { %v3709_v14 = vadd.f32 %v3708_v11, %v3660_v9  ;;  %v3663_v15 = vadd.f32 %v4829_v7, %v3614_v56  ;;  %v3711_v16 = vpop.f32.mrb[47].mxu1 }
 0x537   : > { %v3712_v24 = vadd.f32 %v3711_v16, %v3663_v15  ;;  %v4830_v17 = vpop.f32.mrb[60].mxu0  ;;  %v3734_v19 = vmul.f32 %v3709_v14, %v3709_v14 }
 0x538   : > { %v4831_v18 = vpop.f32.mrb[61].mxu0 }
 0x539   : > { %v3725_v20 = vadd.f32 %v3712_v24, %v3709_v14  ;;  %v3735_v21 = vmul.f32 %v3712_v24, %v3712_v24  ;;  %v4832_v10 = vadd.f32 %v4831_v18, %v4830_v17  ;;  %v4833_v22 = vpop.f32.mrb[62].mxu0 }
 0x53a   : > { %v4834_v23 = vpop.f32.mrb[63].mxu0 }
 0x53b   : > { %v3738_v25 = vadd.f32 %v3735_v21, %v3734_v19  ;;  %v3668_v26 = vadd.f32 %v4832_v10, %v3619_v33  ;;  %v4835_v28 = vadd.f32 %v4834_v23, %v4833_v22  ;;  %v3773_v33 = vrot.slane %v4460_v62, %v5612_v46 }
 0x53d   : > { %v3717_v29 = vadd.f32 %v4924_v4, %v3668_v26  ;;  %v3671_v30 = vadd.f32 %v4835_v28, %v3622_v1 }
 0x53f   : > { %v3726_v31 = vadd.f32 %v3725_v20, %v3717_v29  ;;  %v3736_v34 = vmul.f32 %v3717_v29, %v3717_v29  ;;  %v3720_v32 = vadd.f32 %v4925_v12, %v3671_v30 }
 0x541   : > { %v3739_v35 = vadd.f32 %v3738_v25, %v3736_v34  ;;  %v3727_v36 = vadd.f32 %v3726_v31, %v3720_v32  ;;  %v3737_v37 = vmul.f32 %v3720_v32, %v3720_v32 }
 0x543   : > { %v3728_v38 = vrot.slane %v3727_v36, 4  ;;  %v3740_v40 = vadd.f32 %v3739_v35, %v3737_v37 }
 0x545   : > { %v3729_v41 = vadd.f32 %v3728_v38, %v3727_v36  ;;  %v3741_v42 = vrot.slane %v3740_v40, 4 }
 0x547   : > { %v3730_v43 = vrot.slane %v3729_v41, 2  ;;  %v3742_v45 = vadd.f32 %v3741_v42, %v3740_v40 }
 0x549   : > { %v3731_v47 = vadd.f32 %v3730_v43, %v3729_v41  ;;  %v3743_v48 = vrot.slane %v3742_v45, 2 }
 0x54b   : > { %v3732_v49 = vrot.slane %v3731_v47, 1  ;;  %v3744_v51 = vadd.f32 %v3743_v48, %v3742_v45 }
 0x54d   : > { %v3733_v59 = vadd.f32 %v3732_v49, %v3731_v47  ;;  %v3745_v50 = vrot.slane %v3744_v51, 1 }
 0x54f   : > { %v3746_v52 = vadd.f32 %v3745_v50, %v3744_v51  ;;  %v3747_v53 = vmul.f32 0.03125, %v3733_v59 }
 0x551   : > { %v3748_v8 = vmul.f32 0.03125, %v3746_v52  ;;  %v3749_v56 = vmul.f32 %v3747_v53, %v3747_v53  ;;  %v3752_v39 = vsub.f32 %v3709_v14, %v3747_v53  ;;  %v3753_v54 = vsub.f32 %v3712_v24, %v3747_v53 }
 0x552   : > { %v3754_v55 = vsub.f32 %v3717_v29, %v3747_v53  ;;  %v3755_v57 = vsub.f32 %v3720_v32, %v3747_v53 }
 0x553   : > { %v3750_v58 = vsub.f32 %v3748_v8, %v3749_v56 }
 0x555   : > { %v3751_v60 = vmax.f32 %v3750_v58, 0.0 }
 0x557   : > { %v3756_v61 = vadd.f32 1e-05, %v3751_v60 }
 0x559   : > { %5208 = vrsqrt.f32 %v3756_v61 }
 0x563   : > { %v5209_v63 = vpop.eup %5208 }
 0x564   : > { %v3758_v0 = vmul.f32 %v5209_v63, %v3752_v39  ;;  %v3759_v1 = vmul.f32 %v5209_v63, %v3753_v54  ;;  %v3760_v2 = vmul.f32 %v5209_v63, %v3754_v55  ;;  %v3761_v3 = vmul.f32 %v5209_v63, %v3755_v57 }
 0x566   : > { %v3766_v5 = vmul.f32 %v3765_v27, %v3758_v0  ;;  %v3767_v13 = vmul.f32 %v3765_v27, %v3759_v1  ;;  %v3768_v4 = vmul.f32 %v3765_v27, %v3760_v2  ;;  %v3769_v6 = vmul.f32 %v3765_v27, %v3761_v3 }
 0x568   : > { %v3774_v7 = vadd.f32 %v3773_v33, %v3766_v5  ;;  %v3775_v9 = vadd.f32 %v3773_v33, %v3767_v13  ;;  %v3776_v11 = vadd.f32 %v3773_v33, %v3768_v4  ;;  %v3777_v12 = vadd.f32 %v3773_v33, %v3769_v6  ;;  %3789 = sbr.rel (%p4461_p11) target bundleno = 1402 (0x57a), region = 78 }
 0x56a   : > { %v3778_v14 = vmax.f32 %v3774_v7, 0.0  ;;  %v3779_v15 = vmax.f32 %v3775_v9, 0.0  ;;  %v3780_v16 = vmax.f32 %v3776_v11, 0.0  ;;  %v3781_v24 = vmax.f32 %v3777_v12, 0.0 }
 0x56c   : > { %v3782_v44 = vpack.c.bf16 %v3779_v15, %v3778_v14  ;;  %v3783_v17 = vpack.c.bf16 %v3781_v24, %v3780_v16 }
 0x56e   : > { %3784 = vst [vmem:[#allocation2 + $0x8] sm:$0xff] %v3782_v44  ;;  %3785 = vst [vmem:[#allocation2 + $0x20] sm:$0xff] %v3783_v17 }
 0x575   : > { %v3790_v46 = vld [vmem:[#allocation2 + $0x8] sm:$0xff]  ;;  %v3791_v18 = vld [vmem:[#allocation2 + $0x20] sm:$0xff] }
 0x576   : > { %v4462_v19 = vcombine.low %v3790_v46, %v3790_v46  ;;  %v4463_v20 = vcombine.high %v3790_v46, %v3790_v46  ;;  %v4464_v21 = vcombine.low %v3791_v18, %v3791_v18  ;;  %v4465_v10 = vcombine.high %v3791_v18, %v3791_v18 }
 0x578   : > { %3806 = vst [vmem:[%s5861_s3] sm:$0xf] %v4462_v19  ;;  %3807 = vst [vmem:[%s5861_s3 + $0x4] sm:$0xf] %v4463_v20 }
 0x579   : > { %3808 = vst [vmem:[%s5861_s3 + $0x8] sm:$0xf] %v4464_v21  ;;  %3809 = vst [vmem:[%s5861_s3 + $0xc] sm:$0xf] %v4465_v10 }
 0x57a PF: > { %p16_p3 = scmp.ge.s32.totalorder %s5365_s17, 27   ;;  %s5868_s12 = smov %s5306_s13 }
 0x57b   : > { %s5869_s13 = smov %s5310_s14  ;;  %s5870_s14 = smov %s5375_s20 }
 0x57c   : > { %s5871_s15 = smov %s5365_s17  ;;  %18 = sbr.rel (!%p16_p3) target bundleno = 5 (0x5), region = 134 }
 0x583   :  { %3821 = vsyncpa [#allocation5], 1 }
 0x584   :  { %3823 = vsyncpa [#allocation5 + $0x1], 1 }
 0x585   :  { %3824 = vsyncpa [#allocation7], 1 }
 0x586   :  { %3826 = vsyncpa [#allocation7 + $0x1], 1 }
 0x587   :  { %3827 = vsyncmov [#allocation3] }
 0x58a   :  { %s3828_s23 = vpop.sfrf %3827 }
 0x58b   :  { %p4468_p6 = scmp.ne.s32.totalorder %s3828_s23, 0 }
 0x58d   :  { %3832 = shalt.err (%p4468_p6)  }

</bundles_post_ra>
